<compile_context>
chip_gen: v5e
topology: v5e:2x2
jax: 0.10.0
libtpu: 0.0.40
codegen_flags: <defaults>
</compile_context>

<pallas_src>
import functools
import math

import jax
import jax.numpy as jnp
from jax.experimental import pallas as pl
from jax.experimental.pallas import tpu as pltpu

BN_EPS = 1e-5
PAD_OFF = 8   # sublane-aligned column offset for the zero-padded VMEM scratch


# ---------------------------------------------------------------------------
# In-kernel helpers
# ---------------------------------------------------------------------------
def _store_padded(pad_ref, x):
    """Zero-fill `pad_ref` and place x (H, W, C) at (row 1, col PAD_OFF) so the
    scratch holds x with a zero ring; tap (kh, kw) of a 3x3/pad-1 conv is then
    the window pad_ref[kh:kh+H, PAD_OFF-1+kw : PAD_OFF-1+kw+W].  PAD_OFF=8
    keeps the interior store sublane-aligned (unmasked vst)."""
    H, W, _ = x.shape
    pad_ref[...] = jnp.zeros(pad_ref.shape, jnp.float32)
    pad_ref[1:1 + H, PAD_OFF:PAD_OFF + W, :] = x


def _tap(xp, kh, kw, Ho, Wo):
    """(Ho*Wo, C) bf16 patch for static 3x3 tap (kh, kw) of a padded value."""
    C = xp.shape[-1]
    sl = xp[kh:kh + Ho, PAD_OFF - 1 + kw:PAD_OFF - 1 + kw + Wo, :]
    return sl.reshape(Ho * Wo, C).astype(jnp.bfloat16)


def _sigmoid(z):
    # exp and the (approx) reciprocal both run on the EUP slot.
    return pl.reciprocal(1.0 + jnp.exp(-z), approx=True)


# ---------------------------------------------------------------------------
# Kernel 1: DecoderBlock(64, 48, nf, is_deconv=True)
#   conv3x3(64->48)+BN+ReLU  ->  ConvTranspose2d(48->nf, k4 s2 p1)+BN+ReLU
# The transposed conv is computed in polyphase form: 9 taps over the
# zero-padded hidden map with a (48, 4*nf) weight per tap; output column block
# s = 2a+b holds the (row-parity a, col-parity b) phase plane.
# ---------------------------------------------------------------------------
def _dec1_kernel(x_ref, w1_ref, s1_ref, b1_ref, wp_ref, s2_ref, b2_ref,
                 y_ref, xpad_ref, hpad_ref, *, Hh, Wh, Cmid):
    # stage 1: conv3x3 + BN + ReLU at Hh x Wh
    _store_padded(xpad_ref, x_ref[0])
    xp = xpad_ref[...]
    acc = jnp.zeros((Hh * Wh, Cmid), jnp.float32)
    for kh in range(3):
        for kw in range(3):
            acc = acc + jnp.dot(_tap(xp, kh, kw, Hh, Wh),
                                w1_ref[kh * 3 + kw],
                                preferred_element_type=jnp.float32)
    h = jnp.maximum(acc * s1_ref[...] + b1_ref[...], 0.0)

    # stage 2: polyphase ConvTranspose2d + BN + ReLU (no zero-dilated input)
    _store_padded(hpad_ref, h.reshape(Hh, Wh, Cmid))
    hp = hpad_ref[...]
    cout_p = wp_ref.shape[-1]                       # 4 * nf (lane-dense)
    acc2 = jnp.zeros((Hh * Wh, cout_p), jnp.float32)
    for r in range(3):
        for s in range(3):
            acc2 = acc2 + jnp.dot(_tap(hp, r, s, Hh, Wh),
                                  wp_ref[r * 3 + s],
                                  preferred_element_type=jnp.float32)
    y = jnp.maximum(acc2 * s2_ref[...] + b2_ref[...], 0.0)
    y_ref[...] = y.reshape(1, Hh * Wh, cout_p)


def dec1_block_pallas(dec2_nhwc, p):
    B, Hh, Wh, Cin = dec2_nhwc.shape
    Cmid = p["w1"].shape[-1]
    cout_p = p["wp"].shape[-1]
    kern = functools.partial(_dec1_kernel, Hh=Hh, Wh=Wh, Cmid=Cmid)

    def wspec(shape):
        return pl.BlockSpec(shape, lambda n, _r=len(shape): (0,) * _r)

    return pl.pallas_call(
        kern,
        out_shape=jax.ShapeDtypeStruct((B, Hh * Wh, cout_p), jnp.float32),
        grid=(B,),
        in_specs=[
            pl.BlockSpec((1, Hh, Wh, Cin), lambda n: (n, 0, 0, 0)),
            wspec((9, Cin, Cmid)),
            wspec((1, Cmid)),
            wspec((1, Cmid)),
            wspec((9, Cmid, cout_p)),
            wspec((1, cout_p)),
            wspec((1, cout_p)),
        ],
        out_specs=pl.BlockSpec((1, Hh * Wh, cout_p), lambda n: (n, 0, 0)),
        scratch_shapes=[
            pltpu.VMEM((Hh + 2, Wh + PAD_OFF + 1, Cin), jnp.float32),
            pltpu.VMEM((Hh + 2, Wh + PAD_OFF + 1, Cmid), jnp.float32),
        ],
        compiler_params=pltpu.CompilerParams(
            dimension_semantics=("parallel",)),
    )(dec2_nhwc, p["w1"], p["s1"], p["b1"], p["wp"], p["s2t"], p["b2t"])


# ---------------------------------------------------------------------------
# Kernel 2: shape-stream head + dec0 + final, fully fused.
#   acts = sigmoid(cw([edge_out, canny]))          (1x1, bias-free, VPU/EUP)
#   edge = relu(BN(expand(acts)))                   (1x1, 1 -> nf)
#   dec0 = relu(BN(conv3x3([dec1 | edge])))         (2*nf -> nf)
#   x_out = final(dec0)                             (1x1, nf -> num_classes)
# The channel concat is avoided by splitting dec0's weights into the dec1 /
# edge halves; the final 1x1 conv is the epilogue before the only HBM store.
# ---------------------------------------------------------------------------
def _head_dec0_final_kernel(dec1_ref, eo_ref, cn_ref, cw_ref, ew_ref, eb_ref,
                            w0a_ref, w0b_ref, s0_ref, b0_ref, wf_ref, bf_ref,
                            o_ref, apad_ref, bpad_ref, *, H, W, nf, ncls):
    eo = eo_ref[0]                                  # (H, W, 1)
    cn = cn_ref[0]
    cw = cw_ref[0]                                  # (1, 1, 2)
    acts = _sigmoid(cw[:, :, 0:1] * eo + cw[:, :, 1:2] * cn)        # (H, W, 1)
    edge = jnp.maximum(acts * ew_ref[0] + eb_ref[0], 0.0)           # (H, W, nf)

    _store_padded(apad_ref, dec1_ref[0])
    _store_padded(bpad_ref, edge)
    ap = apad_ref[...]
    bp = bpad_ref[...]
    acc = jnp.zeros((H * W, nf), jnp.float32)
    for kh in range(3):
        for kw in range(3):
            t = kh * 3 + kw
            acc = acc + jnp.dot(_tap(ap, kh, kw, H, W), w0a_ref[t],
                                preferred_element_type=jnp.float32)
            acc = acc + jnp.dot(_tap(bp, kh, kw, H, W), w0b_ref[t],
                                preferred_element_type=jnp.float32)
    d0 = jnp.maximum(acc * s0_ref[...] + b0_ref[...], 0.0)          # (H*W, nf)

    # final 1x1 conv folded into the epilogue (only 4 KB stored per step; all
    # other intermediates never leave VMEM).
    xo = jnp.dot(d0.astype(jnp.bfloat16), wf_ref[...],
                 preferred_element_type=jnp.float32) + bf_ref[...]
    o_ref[...] = xo.reshape(1, H * W, ncls)


def head_dec0_final_pallas(dec1_nhwc, edge_out_nhwc, canny_nhwc, p):
    B, H, W, nf = dec1_nhwc.shape
    ncls = p["wf"].shape[-1]
    kern = functools.partial(_head_dec0_final_kernel, H=H, W=W, nf=nf,
                             ncls=ncls)

    def wspec(shape):
        return pl.BlockSpec(shape, lambda n, _r=len(shape): (0,) * _r)

    out = pl.pallas_call(
        kern,
        out_shape=jax.ShapeDtypeStruct((B, H * W, ncls), jnp.float32),
        grid=(B,),
        in_specs=[
            pl.BlockSpec((1, H, W, nf), lambda n: (n, 0, 0, 0)),
            pl.BlockSpec((1, H, W, 1), lambda n: (n, 0, 0, 0)),
            pl.BlockSpec((1, H, W, 1), lambda n: (n, 0, 0, 0)),
            wspec((1, 1, 1, 2)),
            wspec((1, 1, 1, nf)),
            wspec((1, 1, 1, nf)),
            wspec((9, nf, nf)),
            wspec((9, nf, nf)),
            wspec((1, nf)),
            wspec((1, nf)),
            wspec((nf, ncls)),
            wspec((1, ncls)),
        ],
        out_specs=pl.BlockSpec((1, H * W, ncls), lambda n: (n, 0, 0)),
        scratch_shapes=[
            pltpu.VMEM((H + 2, W + PAD_OFF + 1, nf), jnp.float32),
            pltpu.VMEM((H + 2, W + PAD_OFF + 1, nf), jnp.float32),
        ],
        compiler_params=pltpu.CompilerParams(
            dimension_semantics=("parallel",)),
    )(dec1_nhwc, edge_out_nhwc, canny_nhwc,
      p["cw"], p["ew"], p["eb"], p["w0a"], p["w0b"], p["s0"], p["b0"],
      p["wf"], p["bf"])
    return out.reshape(B, H, W, ncls)


# ---------------------------------------------------------------------------
# Parameter prep (plain-JAX glue: BN folding, bf16 casts, polyphase repack)
# ---------------------------------------------------------------------------
def make_params(key, num_filters=32, num_classes=4):
    keys = iter(jax.random.split(key, 16))

    def nrm(shape, std):
        return std * jax.random.normal(next(keys), shape, jnp.float32)

    def conv_w(K, cin, cout):
        # Conv2d init in DecoderBlock: N(0, sqrt(2 / (K*K*out_channels)))
        return nrm((K, K, cin, cout), math.sqrt(2.0 / (K * K * cout)))

    def bn_fold(conv_bias, cout):
        gamma = jnp.ones((cout,), jnp.float32)
        beta = jnp.zeros((cout,), jnp.float32)
        mean = jnp.zeros((cout,), jnp.float32)
        var = jnp.ones((cout,), jnp.float32)
        s = gamma / jnp.sqrt(var + BN_EPS)
        return s, beta + (conv_bias - mean) * s

    nf, ncls = num_filters, num_classes
    p = {}

    # ---- dec1 = DecoderBlock(64, 48, nf, is_deconv=True) ----
    w1 = conv_w(3, 64, 48)                                     # (3,3,64,48)
    s1, b1 = bn_fold(nrm((48,), 0.01), 48)
    p["w1"] = w1.reshape(9, 64, 48).astype(jnp.bfloat16)
    p["s1"] = s1.reshape(1, 48)
    p["b1"] = b1.reshape(1, 48)

    # ConvTranspose2d(48, nf, k=4, s=2, p=1), torch layout (Cin, Cout, kH, kW)
    wt = nrm((48, nf, 4, 4), 0.05)
    s2, b2 = bn_fold(nrm((nf,), 0.01), nf)
    # Polyphase repack: output phase s = 2a+b (row parity a, col parity b);
    # tap (r, s) = (a+dy, b+dx) of the 1-zero-padded input uses kernel entry
    # ky = 3-2*dy (a==0) / 2-2*dy (a==1), same for kx with (b, dx).
    wp = jnp.zeros((3, 3, 48, 4, nf), jnp.float32)
    for a in (0, 1):
        for dy in (0, 1):
            ky = (3 - 2 * dy) if a == 0 else (2 - 2 * dy)
            for b in (0, 1):
                for dx in (0, 1):
                    kx = (3 - 2 * dx) if b == 0 else (2 - 2 * dx)
                    wp = wp.at[a + dy, b + dx, :, 2 * a + b, :].set(
                        wt[:, :, ky, kx])
    p["wp"] = wp.reshape(9, 48, 4 * nf).astype(jnp.bfloat16)
    p["s2t"] = jnp.tile(s2, 4).reshape(1, 4 * nf)
    p["b2t"] = jnp.tile(b2, 4).reshape(1, 4 * nf)

    # ---- shape-stream fusion head ----
    p["cw"] = nrm((1, 1, 1, 2), 0.5)                 # Conv2d(2,1,1,bias=False)
    # expand = Conv2d(1, nf, 1) + Norm2d(nf) + ReLU
    # TODO(synk): Norm2d is an external alias (sync BN); treated as eval-mode BatchNorm2d.
    we = nrm((nf,), 0.5)
    se, be = bn_fold(nrm((nf,), 0.01), nf)
    p["ew"] = (we * se).reshape(1, 1, 1, nf)
    p["eb"] = be.reshape(1, 1, 1, nf)

    # ---- dec0 = conv3x3_bn_relu(2*nf, nf) ----
    w0 = conv_w(3, 2 * nf, nf)                                 # (3,3,64,nf)
    s0, b0 = bn_fold(nrm((nf,), 0.01), nf)
    p["w0a"] = w0[:, :, :nf, :].reshape(9, nf, nf).astype(jnp.bfloat16)
    p["w0b"] = w0[:, :, nf:, :].reshape(9, nf, nf).astype(jnp.bfloat16)
    p["s0"] = s0.reshape(1, nf)
    p["b0"] = b0.reshape(1, nf)

    # ---- final = Conv2d(nf, num_classes, 1) ----
    p["wf"] = nrm((nf, ncls), 0.1).astype(jnp.bfloat16)
    p["bf"] = nrm((ncls,), 0.01).reshape(1, ncls)
    return p


def to_nhwc(t):
    return jnp.transpose(t, (0, 2, 3, 1))


def to_nchw(t):
    return jnp.transpose(t, (0, 3, 1, 2))


@jax.jit
def saunet_tail(params, dec2_nhwc, edge_out_nhwc, canny_nhwc):
    nf = params["s0"].shape[-1]
    B, Hh, Wh, _ = dec2_nhwc.shape
    # kernel 1: fused DecoderBlock; interleave the 4 phase planes to
    # (B, 2Hh, 2Wh, nf) here (tiny XLA relayout between the two launches).
    y = dec1_block_pallas(dec2_nhwc, params)               # (B, Hh*Wh, 4*nf)
    dec1 = (y.reshape(B, Hh, Wh, 2, 2, nf)
            .transpose(0, 1, 3, 2, 4, 5)
            .reshape(B, 2 * Hh, 2 * Wh, nf))
    # kernel 2: cw + sigmoid + expand + dec0 + final, fused.
    x_out_nhwc = head_dec0_final_pallas(dec1, edge_out_nhwc, canny_nhwc,
                                        params)
    return x_out_nhwc, dec1


if __name__ == "__main__":
    B, H, W = 2, 16, 16
    num_filters, num_classes = 32, 4

    key = jax.random.PRNGKey(0)
    k_x, k_d2, k_eo, k_cn, k_p = jax.random.split(key, 5)

    # original forward input (documented; the densenet encoder is not translatable)
    x = jax.random.normal(k_x, (B, 3, H, W), jnp.float32)

    # TODO(synk): synthesized intermediates standing in for undefined modules
    # (densenet121 encoder / ResBlocks / gates / DualAttBlocks / cv2.Canny).
    dec2_nchw = jax.random.normal(k_d2, (B, 64, H // 2, W // 2), jnp.float32)
    edge_out_nchw = jax.nn.sigmoid(
        jax.random.normal(k_eo, (B, 1, H, W), jnp.float32))
    canny_nchw = (jax.random.uniform(k_cn, (B, 1, H, W)) > 0.9
                  ).astype(jnp.float32) * 255.0

    params = make_params(k_p, num_filters, num_classes)

    x_out_nhwc, dec1 = saunet_tail(
        params, to_nhwc(dec2_nchw), to_nhwc(edge_out_nchw),
        to_nhwc(canny_nchw))
    x_out = to_nchw(x_out_nhwc)
    edge_out = edge_out_nchw          # forward returns (x_out, edge_out)

    jax.block_until_ready((x_out, edge_out))
    assert x_out.shape == (B, num_classes, H, W), x_out.shape
    assert edge_out.shape == (B, 1, H, W), edge_out.shape
    assert dec1.shape == (B, H, W, num_filters), dec1.shape
    assert bool(jnp.all(jnp.isfinite(x_out)))
    print("KERNEL_OK")
</pallas_src>

<mosaic_0001>
module attributes {stable_mosaic.version = 11 : i64} {
  func.func @_dec1_kernel(%arg0: i32, %arg1: memref<1x8x8x64xf32, #tpu.memory_space<vmem>>, %arg2: memref<9x64x48xbf16, #tpu.memory_space<vmem>>, %arg3: memref<1x48xf32, #tpu.memory_space<vmem>>, %arg4: memref<1x48xf32, #tpu.memory_space<vmem>>, %arg5: memref<9x48x128xbf16, #tpu.memory_space<vmem>>, %arg6: memref<1x128xf32, #tpu.memory_space<vmem>>, %arg7: memref<1x128xf32, #tpu.memory_space<vmem>>, %arg8: memref<1x64x128xf32, #tpu.memory_space<vmem>>, %arg9: memref<10x17x64xf32, #tpu.memory_space<vmem>>, %arg10: memref<10x17x48xf32, #tpu.memory_space<vmem>>) attributes {dimension_semantics = [#tpu.dimension_semantics<parallel>], iteration_bounds = array<i64: 2>, scalar_prefetch = 0 : i64, scratch_operands = 2 : i64, tpu.core_type = #tpu.core_type<tc>, window_params = [{transform_indices = @transform_0, window_bounds = array<i64: 1, 8, 8, 64>}, {pipeline_mode = #tpu.pipeline_mode<synchronous>, transform_indices = @transform_1, window_bounds = array<i64: 9, 64, 48>}, {pipeline_mode = #tpu.pipeline_mode<synchronous>, transform_indices = @transform_2, window_bounds = array<i64: 1, 48>}, {pipeline_mode = #tpu.pipeline_mode<synchronous>, transform_indices = @transform_3, window_bounds = array<i64: 1, 48>}, {pipeline_mode = #tpu.pipeline_mode<synchronous>, transform_indices = @transform_4, window_bounds = array<i64: 9, 48, 128>}, {pipeline_mode = #tpu.pipeline_mode<synchronous>, transform_indices = @transform_5, window_bounds = array<i64: 1, 128>}, {pipeline_mode = #tpu.pipeline_mode<synchronous>, transform_indices = @transform_6, window_bounds = array<i64: 1, 128>}, {transform_indices = @transform_7, window_bounds = array<i64: 1, 64, 128>}]} {
    %c0 = arith.constant 0 : index
    %c0_0 = arith.constant 0 : index
    %c0_1 = arith.constant 0 : index
    %c0_2 = arith.constant 0 : index
    %0 = vector.load %arg1[%c0, %c0_0, %c0_1, %c0_2] : memref<1x8x8x64xf32, #tpu.memory_space<vmem>>, vector<1x8x8x64xf32>
    %1 = vector.shape_cast %0 : vector<1x8x8x64xf32> to vector<8x8x64xf32>
    %cst = arith.constant 0.000000e+00 : f32
    %2 = vector.broadcast %cst : f32 to vector<10x17x64xf32>
    %c0_3 = arith.constant 0 : index
    %c0_4 = arith.constant 0 : index
    %c0_5 = arith.constant 0 : index
    %3 = vector.load %arg9[%c0_3, %c0_4, %c0_5] : memref<10x17x64xf32, #tpu.memory_space<vmem>>, vector<10x17x64xf32>
    tpu.vector_store %arg9[%c0_3, %c0_4, %c0_5], %2 {strides = array<i32>} : memref<10x17x64xf32, #tpu.memory_space<vmem>>, vector<10x17x64xf32>,
    %c1 = arith.constant 1 : index
    %c8 = arith.constant 8 : index
    %c0_6 = arith.constant 0 : index
    %4 = vector.load %arg9[%c1, %c8, %c0_6] : memref<10x17x64xf32, #tpu.memory_space<vmem>>, vector<8x8x64xf32>
    tpu.vector_store %arg9[%c1, %c8, %c0_6], %1 {strides = array<i32>} : memref<10x17x64xf32, #tpu.memory_space<vmem>>, vector<8x8x64xf32>,
    %c0_7 = arith.constant 0 : index
    %c0_8 = arith.constant 0 : index
    %c0_9 = arith.constant 0 : index
    %5 = vector.load %arg9[%c0_7, %c0_8, %c0_9] : memref<10x17x64xf32, #tpu.memory_space<vmem>>, vector<10x17x64xf32>
    %cst_10 = arith.constant 0.000000e+00 : f32
    %6 = vector.broadcast %cst_10 : f32 to vector<64x48xf32>
    %7 = vector.extract_strided_slice %5 {offsets = [0, 7, 0], sizes = [8, 8, 64], strides = [1, 1, 1]} : vector<10x17x64xf32> to vector<8x8x64xf32>
    %8 = vector.shape_cast %7 : vector<8x8x64xf32> to vector<64x64xf32>
    %9 = arith.truncf %8 : vector<64x64xf32> to vector<64x64xbf16>
    %c0_11 = arith.constant 0 : index
    %c0_12 = arith.constant 0 : index
    %c0_13 = arith.constant 0 : index
    %10 = vector.load %arg2[%c0_11, %c0_12, %c0_13] : memref<9x64x48xbf16, #tpu.memory_space<vmem>>, vector<1x64x48xbf16>
    %11 = vector.shape_cast %10 : vector<1x64x48xbf16> to vector<64x48xbf16>
    %cst_14 = arith.constant dense<0.000000e+00> : vector<64x48xf32>
    %12 = tpu.matmul %9, %11, %cst_14 {dimension_numbers = #tpu.dot_dimension_numbers<[1], [0], [0], [1], [0, 0, 1, 1], [], []>} : vector<64x64xbf16>, vector<64x48xbf16>, vector<64x48xf32> -> vector<64x48xf32>
    %13 = arith.addf %6, %12 : vector<64x48xf32>
    %14 = vector.extract_strided_slice %5 {offsets = [0, 8, 0], sizes = [8, 8, 64], strides = [1, 1, 1]} : vector<10x17x64xf32> to vector<8x8x64xf32>
    %15 = vector.shape_cast %14 : vector<8x8x64xf32> to vector<64x64xf32>
    %16 = arith.truncf %15 : vector<64x64xf32> to vector<64x64xbf16>
    %c1_15 = arith.constant 1 : index
    %c0_16 = arith.constant 0 : index
    %c0_17 = arith.constant 0 : index
    %17 = vector.load %arg2[%c1_15, %c0_16, %c0_17] : memref<9x64x48xbf16, #tpu.memory_space<vmem>>, vector<1x64x48xbf16>
    %18 = vector.shape_cast %17 : vector<1x64x48xbf16> to vector<64x48xbf16>
    %cst_18 = arith.constant dense<0.000000e+00> : vector<64x48xf32>
    %19 = tpu.matmul %16, %18, %cst_18 {dimension_numbers = #tpu.dot_dimension_numbers<[1], [0], [0], [1], [0, 0, 1, 1], [], []>} : vector<64x64xbf16>, vector<64x48xbf16>, vector<64x48xf32> -> vector<64x48xf32>
    %20 = arith.addf %13, %19 : vector<64x48xf32>
    %21 = vector.extract_strided_slice %5 {offsets = [0, 9, 0], sizes = [8, 8, 64], strides = [1, 1, 1]} : vector<10x17x64xf32> to vector<8x8x64xf32>
    %22 = vector.shape_cast %21 : vector<8x8x64xf32> to vector<64x64xf32>
    %23 = arith.truncf %22 : vector<64x64xf32> to vector<64x64xbf16>
    %c2 = arith.constant 2 : index
    %c0_19 = arith.constant 0 : index
    %c0_20 = arith.constant 0 : index
    %24 = vector.load %arg2[%c2, %c0_19, %c0_20] : memref<9x64x48xbf16, #tpu.memory_space<vmem>>, vector<1x64x48xbf16>
    %25 = vector.shape_cast %24 : vector<1x64x48xbf16> to vector<64x48xbf16>
    %cst_21 = arith.constant dense<0.000000e+00> : vector<64x48xf32>
    %26 = tpu.matmul %23, %25, %cst_21 {dimension_numbers = #tpu.dot_dimension_numbers<[1], [0], [0], [1], [0, 0, 1, 1], [], []>} : vector<64x64xbf16>, vector<64x48xbf16>, vector<64x48xf32> -> vector<64x48xf32>
    %27 = arith.addf %20, %26 : vector<64x48xf32>
    %28 = vector.extract_strided_slice %5 {offsets = [1, 7, 0], sizes = [8, 8, 64], strides = [1, 1, 1]} : vector<10x17x64xf32> to vector<8x8x64xf32>
    %29 = vector.shape_cast %28 : vector<8x8x64xf32> to vector<64x64xf32>
    %30 = arith.truncf %29 : vector<64x64xf32> to vector<64x64xbf16>
    %c3 = arith.constant 3 : index
    %c0_22 = arith.constant 0 : index
    %c0_23 = arith.constant 0 : index
    %31 = vector.load %arg2[%c3, %c0_22, %c0_23] : memref<9x64x48xbf16, #tpu.memory_space<vmem>>, vector<1x64x48xbf16>
    %32 = vector.shape_cast %31 : vector<1x64x48xbf16> to vector<64x48xbf16>
    %cst_24 = arith.constant dense<0.000000e+00> : vector<64x48xf32>
    %33 = tpu.matmul %30, %32, %cst_24 {dimension_numbers = #tpu.dot_dimension_numbers<[1], [0], [0], [1], [0, 0, 1, 1], [], []>} : vector<64x64xbf16>, vector<64x48xbf16>, vector<64x48xf32> -> vector<64x48xf32>
    %34 = arith.addf %27, %33 : vector<64x48xf32>
    %35 = vector.extract_strided_slice %5 {offsets = [1, 8, 0], sizes = [8, 8, 64], strides = [1, 1, 1]} : vector<10x17x64xf32> to vector<8x8x64xf32>
    %36 = vector.shape_cast %35 : vector<8x8x64xf32> to vector<64x64xf32>
    %37 = arith.truncf %36 : vector<64x64xf32> to vector<64x64xbf16>
    %c4 = arith.constant 4 : index
    %c0_25 = arith.constant 0 : index
    %c0_26 = arith.constant 0 : index
    %38 = vector.load %arg2[%c4, %c0_25, %c0_26] : memref<9x64x48xbf16, #tpu.memory_space<vmem>>, vector<1x64x48xbf16>
    %39 = vector.shape_cast %38 : vector<1x64x48xbf16> to vector<64x48xbf16>
    %cst_27 = arith.constant dense<0.000000e+00> : vector<64x48xf32>
    %40 = tpu.matmul %37, %39, %cst_27 {dimension_numbers = #tpu.dot_dimension_numbers<[1], [0], [0], [1], [0, 0, 1, 1], [], []>} : vector<64x64xbf16>, vector<64x48xbf16>, vector<64x48xf32> -> vector<64x48xf32>
    %41 = arith.addf %34, %40 : vector<64x48xf32>
    %42 = vector.extract_strided_slice %5 {offsets = [1, 9, 0], sizes = [8, 8, 64], strides = [1, 1, 1]} : vector<10x17x64xf32> to vector<8x8x64xf32>
    %43 = vector.shape_cast %42 : vector<8x8x64xf32> to vector<64x64xf32>
    %44 = arith.truncf %43 : vector<64x64xf32> to vector<64x64xbf16>
    %c5 = arith.constant 5 : index
    %c0_28 = arith.constant 0 : index
    %c0_29 = arith.constant 0 : index
    %45 = vector.load %arg2[%c5, %c0_28, %c0_29] : memref<9x64x48xbf16, #tpu.memory_space<vmem>>, vector<1x64x48xbf16>
    %46 = vector.shape_cast %45 : vector<1x64x48xbf16> to vector<64x48xbf16>
    %cst_30 = arith.constant dense<0.000000e+00> : vector<64x48xf32>
    %47 = tpu.matmul %44, %46, %cst_30 {dimension_numbers = #tpu.dot_dimension_numbers<[1], [0], [0], [1], [0, 0, 1, 1], [], []>} : vector<64x64xbf16>, vector<64x48xbf16>, vector<64x48xf32> -> vector<64x48xf32>
    %48 = arith.addf %41, %47 : vector<64x48xf32>
    %49 = vector.extract_strided_slice %5 {offsets = [2, 7, 0], sizes = [8, 8, 64], strides = [1, 1, 1]} : vector<10x17x64xf32> to vector<8x8x64xf32>
    %50 = vector.shape_cast %49 : vector<8x8x64xf32> to vector<64x64xf32>
    %51 = arith.truncf %50 : vector<64x64xf32> to vector<64x64xbf16>
    %c6 = arith.constant 6 : index
    %c0_31 = arith.constant 0 : index
    %c0_32 = arith.constant 0 : index
    %52 = vector.load %arg2[%c6, %c0_31, %c0_32] : memref<9x64x48xbf16, #tpu.memory_space<vmem>>, vector<1x64x48xbf16>
    %53 = vector.shape_cast %52 : vector<1x64x48xbf16> to vector<64x48xbf16>
    %cst_33 = arith.constant dense<0.000000e+00> : vector<64x48xf32>
    %54 = tpu.matmul %51, %53, %cst_33 {dimension_numbers = #tpu.dot_dimension_numbers<[1], [0], [0], [1], [0, 0, 1, 1], [], []>} : vector<64x64xbf16>, vector<64x48xbf16>, vector<64x48xf32> -> vector<64x48xf32>
    %55 = arith.addf %48, %54 : vector<64x48xf32>
    %56 = vector.extract_strided_slice %5 {offsets = [2, 8, 0], sizes = [8, 8, 64], strides = [1, 1, 1]} : vector<10x17x64xf32> to vector<8x8x64xf32>
    %57 = vector.shape_cast %56 : vector<8x8x64xf32> to vector<64x64xf32>
    %58 = arith.truncf %57 : vector<64x64xf32> to vector<64x64xbf16>
    %c7 = arith.constant 7 : index
    %c0_34 = arith.constant 0 : index
    %c0_35 = arith.constant 0 : index
    %59 = vector.load %arg2[%c7, %c0_34, %c0_35] : memref<9x64x48xbf16, #tpu.memory_space<vmem>>, vector<1x64x48xbf16>
    %60 = vector.shape_cast %59 : vector<1x64x48xbf16> to vector<64x48xbf16>
    %cst_36 = arith.constant dense<0.000000e+00> : vector<64x48xf32>
    %61 = tpu.matmul %58, %60, %cst_36 {dimension_numbers = #tpu.dot_dimension_numbers<[1], [0], [0], [1], [0, 0, 1, 1], [], []>} : vector<64x64xbf16>, vector<64x48xbf16>, vector<64x48xf32> -> vector<64x48xf32>
    %62 = arith.addf %55, %61 : vector<64x48xf32>
    %63 = vector.extract_strided_slice %5 {offsets = [2, 9, 0], sizes = [8, 8, 64], strides = [1, 1, 1]} : vector<10x17x64xf32> to vector<8x8x64xf32>
    %64 = vector.shape_cast %63 : vector<8x8x64xf32> to vector<64x64xf32>
    %65 = arith.truncf %64 : vector<64x64xf32> to vector<64x64xbf16>
    %c8_37 = arith.constant 8 : index
    %c0_38 = arith.constant 0 : index
    %c0_39 = arith.constant 0 : index
    %66 = vector.load %arg2[%c8_37, %c0_38, %c0_39] : memref<9x64x48xbf16, #tpu.memory_space<vmem>>, vector<1x64x48xbf16>
    %67 = vector.shape_cast %66 : vector<1x64x48xbf16> to vector<64x48xbf16>
    %cst_40 = arith.constant dense<0.000000e+00> : vector<64x48xf32>
    %68 = tpu.matmul %65, %67, %cst_40 {dimension_numbers = #tpu.dot_dimension_numbers<[1], [0], [0], [1], [0, 0, 1, 1], [], []>} : vector<64x64xbf16>, vector<64x48xbf16>, vector<64x48xf32> -> vector<64x48xf32>
    %69 = arith.addf %62, %68 : vector<64x48xf32>
    %c0_41 = arith.constant 0 : index
    %c0_42 = arith.constant 0 : index
    %70 = vector.load %arg3[%c0_41, %c0_42] : memref<1x48xf32, #tpu.memory_space<vmem>>, vector<1x48xf32>
    %71 = vector.broadcast %70 : vector<1x48xf32> to vector<64x48xf32>
    %72 = arith.mulf %69, %71 : vector<64x48xf32>
    %c0_43 = arith.constant 0 : index
    %c0_44 = arith.constant 0 : index
    %73 = vector.load %arg4[%c0_43, %c0_44] : memref<1x48xf32, #tpu.memory_space<vmem>>, vector<1x48xf32>
    %74 = vector.broadcast %73 : vector<1x48xf32> to vector<64x48xf32>
    %75 = arith.addf %72, %74 : vector<64x48xf32>
    %cst_45 = arith.constant 0.000000e+00 : f32
    %76 = vector.broadcast %cst_45 : f32 to vector<64x48xf32>
    %77 = arith.maximumf %75, %76 : vector<64x48xf32>
    %78 = vector.shape_cast %77 : vector<64x48xf32> to vector<8x8x48xf32>
    %cst_46 = arith.constant 0.000000e+00 : f32
    %79 = vector.broadcast %cst_46 : f32 to vector<10x17x48xf32>
    %c0_47 = arith.constant 0 : index
    %c0_48 = arith.constant 0 : index
    %c0_49 = arith.constant 0 : index
    %80 = vector.load %arg10[%c0_47, %c0_48, %c0_49] : memref<10x17x48xf32, #tpu.memory_space<vmem>>, vector<10x17x48xf32>
    tpu.vector_store %arg10[%c0_47, %c0_48, %c0_49], %79 {strides = array<i32>} : memref<10x17x48xf32, #tpu.memory_space<vmem>>, vector<10x17x48xf32>,
    %c1_50 = arith.constant 1 : index
    %c8_51 = arith.constant 8 : index
    %c0_52 = arith.constant 0 : index
    %81 = vector.load %arg10[%c1_50, %c8_51, %c0_52] : memref<10x17x48xf32, #tpu.memory_space<vmem>>, vector<8x8x48xf32>
    tpu.vector_store %arg10[%c1_50, %c8_51, %c0_52], %78 {strides = array<i32>} : memref<10x17x48xf32, #tpu.memory_space<vmem>>, vector<8x8x48xf32>,
    %c0_53 = arith.constant 0 : index
    %c0_54 = arith.constant 0 : index
    %c0_55 = arith.constant 0 : index
    %82 = vector.load %arg10[%c0_53, %c0_54, %c0_55] : memref<10x17x48xf32, #tpu.memory_space<vmem>>, vector<10x17x48xf32>
    %cst_56 = arith.constant 0.000000e+00 : f32
    %83 = vector.broadcast %cst_56 : f32 to vector<64x128xf32>
    %84 = vector.extract_strided_slice %82 {offsets = [0, 7, 0], sizes = [8, 8, 48], strides = [1, 1, 1]} : vector<10x17x48xf32> to vector<8x8x48xf32>
    %85 = vector.shape_cast %84 : vector<8x8x48xf32> to vector<64x48xf32>
    %86 = arith.truncf %85 : vector<64x48xf32> to vector<64x48xbf16>
    %c0_57 = arith.constant 0 : index
    %c0_58 = arith.constant 0 : index
    %c0_59 = arith.constant 0 : index
    %87 = vector.load %arg5[%c0_57, %c0_58, %c0_59] : memref<9x48x128xbf16, #tpu.memory_space<vmem>>, vector<1x48x128xbf16>
    %88 = vector.shape_cast %87 : vector<1x48x128xbf16> to vector<48x128xbf16>
    %cst_60 = arith.constant dense<0.000000e+00> : vector<64x128xf32>
    %89 = tpu.matmul %86, %88, %cst_60 {dimension_numbers = #tpu.dot_dimension_numbers<[1], [0], [0], [1], [0, 0, 1, 1], [], []>} : vector<64x48xbf16>, vector<48x128xbf16>, vector<64x128xf32> -> vector<64x128xf32>
    %90 = arith.addf %83, %89 : vector<64x128xf32>
    %91 = vector.extract_strided_slice %82 {offsets = [0, 8, 0], sizes = [8, 8, 48], strides = [1, 1, 1]} : vector<10x17x48xf32> to vector<8x8x48xf32>
    %92 = vector.shape_cast %91 : vector<8x8x48xf32> to vector<64x48xf32>
    %93 = arith.truncf %92 : vector<64x48xf32> to vector<64x48xbf16>
    %c1_61 = arith.constant 1 : index
    %c0_62 = arith.constant 0 : index
    %c0_63 = arith.constant 0 : index
    %94 = vector.load %arg5[%c1_61, %c0_62, %c0_63] : memref<9x48x128xbf16, #tpu.memory_space<vmem>>, vector<1x48x128xbf16>
    %95 = vector.shape_cast %94 : vector<1x48x128xbf16> to vector<48x128xbf16>
    %cst_64 = arith.constant dense<0.000000e+00> : vector<64x128xf32>
    %96 = tpu.matmul %93, %95, %cst_64 {dimension_numbers = #tpu.dot_dimension_numbers<[1], [0], [0], [1], [0, 0, 1, 1], [], []>} : vector<64x48xbf16>, vector<48x128xbf16>, vector<64x128xf32> -> vector<64x128xf32>
    %97 = arith.addf %90, %96 : vector<64x128xf32>
    %98 = vector.extract_strided_slice %82 {offsets = [0, 9, 0], sizes = [8, 8, 48], strides = [1, 1, 1]} : vector<10x17x48xf32> to vector<8x8x48xf32>
    %99 = vector.shape_cast %98 : vector<8x8x48xf32> to vector<64x48xf32>
    %100 = arith.truncf %99 : vector<64x48xf32> to vector<64x48xbf16>
    %c2_65 = arith.constant 2 : index
    %c0_66 = arith.constant 0 : index
    %c0_67 = arith.constant 0 : index
    %101 = vector.load %arg5[%c2_65, %c0_66, %c0_67] : memref<9x48x128xbf16, #tpu.memory_space<vmem>>, vector<1x48x128xbf16>
    %102 = vector.shape_cast %101 : vector<1x48x128xbf16> to vector<48x128xbf16>
    %cst_68 = arith.constant dense<0.000000e+00> : vector<64x128xf32>
    %103 = tpu.matmul %100, %102, %cst_68 {dimension_numbers = #tpu.dot_dimension_numbers<[1], [0], [0], [1], [0, 0, 1, 1], [], []>} : vector<64x48xbf16>, vector<48x128xbf16>, vector<64x128xf32> -> vector<64x128xf32>
    %104 = arith.addf %97, %103 : vector<64x128xf32>
    %105 = vector.extract_strided_slice %82 {offsets = [1, 7, 0], sizes = [8, 8, 48], strides = [1, 1, 1]} : vector<10x17x48xf32> to vector<8x8x48xf32>
    %106 = vector.shape_cast %105 : vector<8x8x48xf32> to vector<64x48xf32>
    %107 = arith.truncf %106 : vector<64x48xf32> to vector<64x48xbf16>
    %c3_69 = arith.constant 3 : index
    %c0_70 = arith.constant 0 : index
    %c0_71 = arith.constant 0 : index
    %108 = vector.load %arg5[%c3_69, %c0_70, %c0_71] : memref<9x48x128xbf16, #tpu.memory_space<vmem>>, vector<1x48x128xbf16>
    %109 = vector.shape_cast %108 : vector<1x48x128xbf16> to vector<48x128xbf16>
    %cst_72 = arith.constant dense<0.000000e+00> : vector<64x128xf32>
    %110 = tpu.matmul %107, %109, %cst_72 {dimension_numbers = #tpu.dot_dimension_numbers<[1], [0], [0], [1], [0, 0, 1, 1], [], []>} : vector<64x48xbf16>, vector<48x128xbf16>, vector<64x128xf32> -> vector<64x128xf32>
    %111 = arith.addf %104, %110 : vector<64x128xf32>
    %112 = vector.extract_strided_slice %82 {offsets = [1, 8, 0], sizes = [8, 8, 48], strides = [1, 1, 1]} : vector<10x17x48xf32> to vector<8x8x48xf32>
    %113 = vector.shape_cast %112 : vector<8x8x48xf32> to vector<64x48xf32>
    %114 = arith.truncf %113 : vector<64x48xf32> to vector<64x48xbf16>
    %c4_73 = arith.constant 4 : index
    %c0_74 = arith.constant 0 : index
    %c0_75 = arith.constant 0 : index
    %115 = vector.load %arg5[%c4_73, %c0_74, %c0_75] : memref<9x48x128xbf16, #tpu.memory_space<vmem>>, vector<1x48x128xbf16>
    %116 = vector.shape_cast %115 : vector<1x48x128xbf16> to vector<48x128xbf16>
    %cst_76 = arith.constant dense<0.000000e+00> : vector<64x128xf32>
    %117 = tpu.matmul %114, %116, %cst_76 {dimension_numbers = #tpu.dot_dimension_numbers<[1], [0], [0], [1], [0, 0, 1, 1], [], []>} : vector<64x48xbf16>, vector<48x128xbf16>, vector<64x128xf32> -> vector<64x128xf32>
    %118 = arith.addf %111, %117 : vector<64x128xf32>
    %119 = vector.extract_strided_slice %82 {offsets = [1, 9, 0], sizes = [8, 8, 48], strides = [1, 1, 1]} : vector<10x17x48xf32> to vector<8x8x48xf32>
    %120 = vector.shape_cast %119 : vector<8x8x48xf32> to vector<64x48xf32>
    %121 = arith.truncf %120 : vector<64x48xf32> to vector<64x48xbf16>
    %c5_77 = arith.constant 5 : index
    %c0_78 = arith.constant 0 : index
    %c0_79 = arith.constant 0 : index
    %122 = vector.load %arg5[%c5_77, %c0_78, %c0_79] : memref<9x48x128xbf16, #tpu.memory_space<vmem>>, vector<1x48x128xbf16>
    %123 = vector.shape_cast %122 : vector<1x48x128xbf16> to vector<48x128xbf16>
    %cst_80 = arith.constant dense<0.000000e+00> : vector<64x128xf32>
    %124 = tpu.matmul %121, %123, %cst_80 {dimension_numbers = #tpu.dot_dimension_numbers<[1], [0], [0], [1], [0, 0, 1, 1], [], []>} : vector<64x48xbf16>, vector<48x128xbf16>, vector<64x128xf32> -> vector<64x128xf32>
    %125 = arith.addf %118, %124 : vector<64x128xf32>
    %126 = vector.extract_strided_slice %82 {offsets = [2, 7, 0], sizes = [8, 8, 48], strides = [1, 1, 1]} : vector<10x17x48xf32> to vector<8x8x48xf32>
    %127 = vector.shape_cast %126 : vector<8x8x48xf32> to vector<64x48xf32>
    %128 = arith.truncf %127 : vector<64x48xf32> to vector<64x48xbf16>
    %c6_81 = arith.constant 6 : index
    %c0_82 = arith.constant 0 : index
    %c0_83 = arith.constant 0 : index
    %129 = vector.load %arg5[%c6_81, %c0_82, %c0_83] : memref<9x48x128xbf16, #tpu.memory_space<vmem>>, vector<1x48x128xbf16>
    %130 = vector.shape_cast %129 : vector<1x48x128xbf16> to vector<48x128xbf16>
    %cst_84 = arith.constant dense<0.000000e+00> : vector<64x128xf32>
    %131 = tpu.matmul %128, %130, %cst_84 {dimension_numbers = #tpu.dot_dimension_numbers<[1], [0], [0], [1], [0, 0, 1, 1], [], []>} : vector<64x48xbf16>, vector<48x128xbf16>, vector<64x128xf32> -> vector<64x128xf32>
    %132 = arith.addf %125, %131 : vector<64x128xf32>
    %133 = vector.extract_strided_slice %82 {offsets = [2, 8, 0], sizes = [8, 8, 48], strides = [1, 1, 1]} : vector<10x17x48xf32> to vector<8x8x48xf32>
    %134 = vector.shape_cast %133 : vector<8x8x48xf32> to vector<64x48xf32>
    %135 = arith.truncf %134 : vector<64x48xf32> to vector<64x48xbf16>
    %c7_85 = arith.constant 7 : index
    %c0_86 = arith.constant 0 : index
    %c0_87 = arith.constant 0 : index
    %136 = vector.load %arg5[%c7_85, %c0_86, %c0_87] : memref<9x48x128xbf16, #tpu.memory_space<vmem>>, vector<1x48x128xbf16>
    %137 = vector.shape_cast %136 : vector<1x48x128xbf16> to vector<48x128xbf16>
    %cst_88 = arith.constant dense<0.000000e+00> : vector<64x128xf32>
    %138 = tpu.matmul %135, %137, %cst_88 {dimension_numbers = #tpu.dot_dimension_numbers<[1], [0], [0], [1], [0, 0, 1, 1], [], []>} : vector<64x48xbf16>, vector<48x128xbf16>, vector<64x128xf32> -> vector<64x128xf32>
    %139 = arith.addf %132, %138 : vector<64x128xf32>
    %140 = vector.extract_strided_slice %82 {offsets = [2, 9, 0], sizes = [8, 8, 48], strides = [1, 1, 1]} : vector<10x17x48xf32> to vector<8x8x48xf32>
    %141 = vector.shape_cast %140 : vector<8x8x48xf32> to vector<64x48xf32>
    %142 = arith.truncf %141 : vector<64x48xf32> to vector<64x48xbf16>
    %c8_89 = arith.constant 8 : index
    %c0_90 = arith.constant 0 : index
    %c0_91 = arith.constant 0 : index
    %143 = vector.load %arg5[%c8_89, %c0_90, %c0_91] : memref<9x48x128xbf16, #tpu.memory_space<vmem>>, vector<1x48x128xbf16>
    %144 = vector.shape_cast %143 : vector<1x48x128xbf16> to vector<48x128xbf16>
    %cst_92 = arith.constant dense<0.000000e+00> : vector<64x128xf32>
    %145 = tpu.matmul %142, %144, %cst_92 {dimension_numbers = #tpu.dot_dimension_numbers<[1], [0], [0], [1], [0, 0, 1, 1], [], []>} : vector<64x48xbf16>, vector<48x128xbf16>, vector<64x128xf32> -> vector<64x128xf32>
    %146 = arith.addf %139, %145 : vector<64x128xf32>
    %c0_93 = arith.constant 0 : index
    %c0_94 = arith.constant 0 : index
    %147 = vector.load %arg6[%c0_93, %c0_94] : memref<1x128xf32, #tpu.memory_space<vmem>>, vector<1x128xf32>
    %148 = vector.broadcast %147 : vector<1x128xf32> to vector<64x128xf32>
    %149 = arith.mulf %146, %148 : vector<64x128xf32>
    %c0_95 = arith.constant 0 : index
    %c0_96 = arith.constant 0 : index
    %150 = vector.load %arg7[%c0_95, %c0_96] : memref<1x128xf32, #tpu.memory_space<vmem>>, vector<1x128xf32>
    %151 = vector.broadcast %150 : vector<1x128xf32> to vector<64x128xf32>
    %152 = arith.addf %149, %151 : vector<64x128xf32>
    %cst_97 = arith.constant 0.000000e+00 : f32
    %153 = vector.broadcast %cst_97 : f32 to vector<64x128xf32>
    %154 = arith.maximumf %152, %153 : vector<64x128xf32>
    %155 = vector.shape_cast %154 : vector<64x128xf32> to vector<1x64x128xf32>
    %c0_98 = arith.constant 0 : index
    %c0_99 = arith.constant 0 : index
    %c0_100 = arith.constant 0 : index
    %156 = vector.load %arg8[%c0_98, %c0_99, %c0_100] : memref<1x64x128xf32, #tpu.memory_space<vmem>>, vector<1x64x128xf32>
    tpu.vector_store %arg8[%c0_98, %c0_99, %c0_100], %155 {strides = array<i32>} : memref<1x64x128xf32, #tpu.memory_space<vmem>>, vector<1x64x128xf32>,
    return
  }
  func.func @transform_0(%arg0: i32) -> (i32, i32, i32, i32) {
    %c0_i32 = arith.constant 0 : i32
    %c0_i32_0 = arith.constant 0 : i32
    %c0_i32_1 = arith.constant 0 : i32
    %c0_i32_2 = arith.constant 0 : i32
    return %arg0, %c0_i32, %c0_i32_0, %c0_i32_1 : i32, i32, i32, i32
  }
  func.func @transform_1(%arg0: i32) -> (i32, i32, i32) {
    %c0_i32 = arith.constant 0 : i32
    %c0_i32_0 = arith.constant 0 : i32
    %c0_i32_1 = arith.constant 0 : i32
    %c0_i32_2 = arith.constant 0 : i32
    return %c0_i32, %c0_i32_0, %c0_i32_1 : i32, i32, i32
  }
  func.func @transform_2(%arg0: i32) -> (i32, i32) {
    %c0_i32 = arith.constant 0 : i32
    %c0_i32_0 = arith.constant 0 : i32
    %c0_i32_1 = arith.constant 0 : i32
    return %c0_i32, %c0_i32_0 : i32, i32
  }
  func.func @transform_3(%arg0: i32) -> (i32, i32) {
    %c0_i32 = arith.constant 0 : i32
    %c0_i32_0 = arith.constant 0 : i32
    %c0_i32_1 = arith.constant 0 : i32
    return %c0_i32, %c0_i32_0 : i32, i32
  }
  func.func @transform_4(%arg0: i32) -> (i32, i32, i32) {
    %c0_i32 = arith.constant 0 : i32
    %c0_i32_0 = arith.constant 0 : i32
    %c0_i32_1 = arith.constant 0 : i32
    %c0_i32_2 = arith.constant 0 : i32
    return %c0_i32, %c0_i32_0, %c0_i32_1 : i32, i32, i32
  }
  func.func @transform_5(%arg0: i32) -> (i32, i32) {
    %c0_i32 = arith.constant 0 : i32
    %c0_i32_0 = arith.constant 0 : i32
    %c0_i32_1 = arith.constant 0 : i32
    return %c0_i32, %c0_i32_0 : i32, i32
  }
  func.func @transform_6(%arg0: i32) -> (i32, i32) {
    %c0_i32 = arith.constant 0 : i32
    %c0_i32_0 = arith.constant 0 : i32
    %c0_i32_1 = arith.constant 0 : i32
    return %c0_i32, %c0_i32_0 : i32, i32
  }
  func.func @transform_7(%arg0: i32) -> (i32, i32, i32) {
    %c0_i32 = arith.constant 0 : i32
    %c0_i32_0 = arith.constant 0 : i32
    %c0_i32_1 = arith.constant 0 : i32
    return %arg0, %c0_i32, %c0_i32_0 : i32, i32, i32
  }
}

module attributes {stable_mosaic.version = 11 : i64} {
  func.func @_head_dec0_final_kernel(%arg0: i32, %arg1: memref<1x16x16x32xf32, #tpu.memory_space<vmem>>, %arg2: memref<1x16x16x1xf32, #tpu.memory_space<vmem>>, %arg3: memref<1x16x16x1xf32, #tpu.memory_space<vmem>>, %arg4: memref<1x1x1x2xf32, #tpu.memory_space<vmem>>, %arg5: memref<1x1x1x32xf32, #tpu.memory_space<vmem>>, %arg6: memref<1x1x1x32xf32, #tpu.memory_space<vmem>>, %arg7: memref<9x32x32xbf16, #tpu.memory_space<vmem>>, %arg8: memref<9x32x32xbf16, #tpu.memory_space<vmem>>, %arg9: memref<1x32xf32, #tpu.memory_space<vmem>>, %arg10: memref<1x32xf32, #tpu.memory_space<vmem>>, %arg11: memref<32x4xbf16, #tpu.memory_space<vmem>>, %arg12: memref<1x4xf32, #tpu.memory_space<vmem>>, %arg13: memref<1x256x4xf32, #tpu.memory_space<vmem>>, %arg14: memref<18x25x32xf32, #tpu.memory_space<vmem>>, %arg15: memref<18x25x32xf32, #tpu.memory_space<vmem>>) attributes {dimension_semantics = [#tpu.dimension_semantics<parallel>], iteration_bounds = array<i64: 2>, scalar_prefetch = 0 : i64, scratch_operands = 2 : i64, tpu.core_type = #tpu.core_type<tc>, window_params = [{transform_indices = @transform_0, window_bounds = array<i64: 1, 16, 16, 32>}, {transform_indices = @transform_1, window_bounds = array<i64: 1, 16, 16, 1>}, {transform_indices = @transform_2, window_bounds = array<i64: 1, 16, 16, 1>}, {pipeline_mode = #tpu.pipeline_mode<synchronous>, transform_indices = @transform_3, window_bounds = array<i64: 1, 1, 1, 2>}, {pipeline_mode = #tpu.pipeline_mode<synchronous>, transform_indices = @transform_4, window_bounds = array<i64: 1, 1, 1, 32>}, {pipeline_mode = #tpu.pipeline_mode<synchronous>, transform_indices = @transform_5, window_bounds = array<i64: 1, 1, 1, 32>}, {pipeline_mode = #tpu.pipeline_mode<synchronous>, transform_indices = @transform_6, window_bounds = array<i64: 9, 32, 32>}, {pipeline_mode = #tpu.pipeline_mode<synchronous>, transform_indices = @transform_7, window_bounds = array<i64: 9, 32, 32>}, {pipeline_mode = #tpu.pipeline_mode<synchronous>, transform_indices = @transform_8, window_bounds = array<i64: 1, 32>}, {pipeline_mode = #tpu.pipeline_mode<synchronous>, transform_indices = @transform_9, window_bounds = array<i64: 1, 32>}, {pipeline_mode = #tpu.pipeline_mode<synchronous>, transform_indices = @transform_10, window_bounds = array<i64: 32, 4>}, {pipeline_mode = #tpu.pipeline_mode<synchronous>, transform_indices = @transform_11, window_bounds = array<i64: 1, 4>}, {transform_indices = @transform_12, window_bounds = array<i64: 1, 256, 4>}]} {
    %c0 = arith.constant 0 : index
    %c0_0 = arith.constant 0 : index
    %c0_1 = arith.constant 0 : index
    %c0_2 = arith.constant 0 : index
    %0 = vector.load %arg2[%c0, %c0_0, %c0_1, %c0_2] : memref<1x16x16x1xf32, #tpu.memory_space<vmem>>, vector<1x16x16x1xf32>
    %1 = vector.shape_cast %0 : vector<1x16x16x1xf32> to vector<16x16x1xf32>
    %c0_3 = arith.constant 0 : index
    %c0_4 = arith.constant 0 : index
    %c0_5 = arith.constant 0 : index
    %c0_6 = arith.constant 0 : index
    %2 = vector.load %arg3[%c0_3, %c0_4, %c0_5, %c0_6] : memref<1x16x16x1xf32, #tpu.memory_space<vmem>>, vector<1x16x16x1xf32>
    %3 = vector.shape_cast %2 : vector<1x16x16x1xf32> to vector<16x16x1xf32>
    %c0_7 = arith.constant 0 : index
    %c0_8 = arith.constant 0 : index
    %c0_9 = arith.constant 0 : index
    %c0_10 = arith.constant 0 : index
    %4 = vector.load %arg4[%c0_7, %c0_8, %c0_9, %c0_10] : memref<1x1x1x2xf32, #tpu.memory_space<vmem>>, vector<1x1x1x2xf32>
    %5 = vector.shape_cast %4 : vector<1x1x1x2xf32> to vector<1x1x2xf32>
    %6 = vector.extract_strided_slice %5 {offsets = [0, 0, 0], sizes = [1, 1, 1], strides = [1, 1, 1]} : vector<1x1x2xf32> to vector<1x1x1xf32>
    %7 = vector.broadcast %6 : vector<1x1x1xf32> to vector<16x16x1xf32>
    %8 = arith.mulf %7, %1 : vector<16x16x1xf32>
    %9 = vector.extract_strided_slice %5 {offsets = [0, 0, 1], sizes = [1, 1, 1], strides = [1, 1, 1]} : vector<1x1x2xf32> to vector<1x1x1xf32>
    %10 = vector.broadcast %9 : vector<1x1x1xf32> to vector<16x16x1xf32>
    %11 = arith.mulf %10, %3 : vector<16x16x1xf32>
    %12 = arith.addf %8, %11 : vector<16x16x1xf32>
    %cst = arith.constant 0.000000e+00 : f32
    %13 = vector.broadcast %cst : f32 to vector<16x16x1xf32>
    %14 = arith.subf %13, %12 : vector<16x16x1xf32>
    %15 = math.exp %14 : vector<16x16x1xf32>
    %cst_11 = arith.constant 1.000000e+00 : f32
    %16 = vector.broadcast %cst_11 : f32 to vector<16x16x1xf32>
    %17 = arith.addf %16, %15 : vector<16x16x1xf32>
    %18 = tpu.reciprocal %17 {approx = true} : vector<16x16x1xf32> -> vector<16x16x1xf32>
    %c0_12 = arith.constant 0 : index
    %c0_13 = arith.constant 0 : index
    %c0_14 = arith.constant 0 : index
    %c0_15 = arith.constant 0 : index
    %19 = vector.load %arg5[%c0_12, %c0_13, %c0_14, %c0_15] : memref<1x1x1x32xf32, #tpu.memory_space<vmem>>, vector<1x1x1x32xf32>
    %20 = vector.shape_cast %19 : vector<1x1x1x32xf32> to vector<1x1x32xf32>
    %21 = vector.broadcast %18 : vector<16x16x1xf32> to vector<16x16x32xf32>
    %22 = vector.broadcast %20 : vector<1x1x32xf32> to vector<16x16x32xf32>
    %23 = arith.mulf %21, %22 : vector<16x16x32xf32>
    %c0_16 = arith.constant 0 : index
    %c0_17 = arith.constant 0 : index
    %c0_18 = arith.constant 0 : index
    %c0_19 = arith.constant 0 : index
    %24 = vector.load %arg6[%c0_16, %c0_17, %c0_18, %c0_19] : memref<1x1x1x32xf32, #tpu.memory_space<vmem>>, vector<1x1x1x32xf32>
    %25 = vector.shape_cast %24 : vector<1x1x1x32xf32> to vector<1x1x32xf32>
    %26 = vector.broadcast %25 : vector<1x1x32xf32> to vector<16x16x32xf32>
    %27 = arith.addf %23, %26 : vector<16x16x32xf32>
    %cst_20 = arith.constant 0.000000e+00 : f32
    %28 = vector.broadcast %cst_20 : f32 to vector<16x16x32xf32>
    %29 = arith.maximumf %27, %28 : vector<16x16x32xf32>
    %c0_21 = arith.constant 0 : index
    %c0_22 = arith.constant 0 : index
    %c0_23 = arith.constant 0 : index
    %c0_24 = arith.constant 0 : index
    %30 = vector.load %arg1[%c0_21, %c0_22, %c0_23, %c0_24] : memref<1x16x16x32xf32, #tpu.memory_space<vmem>>, vector<1x16x16x32xf32>
    %31 = vector.shape_cast %30 : vector<1x16x16x32xf32> to vector<16x16x32xf32>
    %cst_25 = arith.constant 0.000000e+00 : f32
    %32 = vector.broadcast %cst_25 : f32 to vector<18x25x32xf32>
    %c0_26 = arith.constant 0 : index
    %c0_27 = arith.constant 0 : index
    %c0_28 = arith.constant 0 : index
    %33 = vector.load %arg14[%c0_26, %c0_27, %c0_28] : memref<18x25x32xf32, #tpu.memory_space<vmem>>, vector<18x25x32xf32>
    tpu.vector_store %arg14[%c0_26, %c0_27, %c0_28], %32 {strides = array<i32>} : memref<18x25x32xf32, #tpu.memory_space<vmem>>, vector<18x25x32xf32>,
    %c1 = arith.constant 1 : index
    %c8 = arith.constant 8 : index
    %c0_29 = arith.constant 0 : index
    %34 = vector.load %arg14[%c1, %c8, %c0_29] : memref<18x25x32xf32, #tpu.memory_space<vmem>>, vector<16x16x32xf32>
    tpu.vector_store %arg14[%c1, %c8, %c0_29], %31 {strides = array<i32>} : memref<18x25x32xf32, #tpu.memory_space<vmem>>, vector<16x16x32xf32>,
    %cst_30 = arith.constant 0.000000e+00 : f32
    %35 = vector.broadcast %cst_30 : f32 to vector<18x25x32xf32>
    %c0_31 = arith.constant 0 : index
    %c0_32 = arith.constant 0 : index
    %c0_33 = arith.constant 0 : index
    %36 = vector.load %arg15[%c0_31, %c0_32, %c0_33] : memref<18x25x32xf32, #tpu.memory_space<vmem>>, vector<18x25x32xf32>
    tpu.vector_store %arg15[%c0_31, %c0_32, %c0_33], %35 {strides = array<i32>} : memref<18x25x32xf32, #tpu.memory_space<vmem>>, vector<18x25x32xf32>,
    %c1_34 = arith.constant 1 : index
    %c8_35 = arith.constant 8 : index
    %c0_36 = arith.constant 0 : index
    %37 = vector.load %arg15[%c1_34, %c8_35, %c0_36] : memref<18x25x32xf32, #tpu.memory_space<vmem>>, vector<16x16x32xf32>
    tpu.vector_store %arg15[%c1_34, %c8_35, %c0_36], %29 {strides = array<i32>} : memref<18x25x32xf32, #tpu.memory_space<vmem>>, vector<16x16x32xf32>,
    %c0_37 = arith.constant 0 : index
    %c0_38 = arith.constant 0 : index
    %c0_39 = arith.constant 0 : index
    %38 = vector.load %arg14[%c0_37, %c0_38, %c0_39] : memref<18x25x32xf32, #tpu.memory_space<vmem>>, vector<18x25x32xf32>
    %c0_40 = arith.constant 0 : index
    %c0_41 = arith.constant 0 : index
    %c0_42 = arith.constant 0 : index
    %39 = vector.load %arg15[%c0_40, %c0_41, %c0_42] : memref<18x25x32xf32, #tpu.memory_space<vmem>>, vector<18x25x32xf32>
    %cst_43 = arith.constant 0.000000e+00 : f32
    %40 = vector.broadcast %cst_43 : f32 to vector<256x32xf32>
    %41 = vector.extract_strided_slice %38 {offsets = [0, 7, 0], sizes = [16, 16, 32], strides = [1, 1, 1]} : vector<18x25x32xf32> to vector<16x16x32xf32>
    %42 = vector.shape_cast %41 : vector<16x16x32xf32> to vector<256x32xf32>
    %43 = arith.truncf %42 : vector<256x32xf32> to vector<256x32xbf16>
    %c0_44 = arith.constant 0 : index
    %c0_45 = arith.constant 0 : index
    %c0_46 = arith.constant 0 : index
    %44 = vector.load %arg7[%c0_44, %c0_45, %c0_46] : memref<9x32x32xbf16, #tpu.memory_space<vmem>>, vector<1x32x32xbf16>
    %45 = vector.shape_cast %44 : vector<1x32x32xbf16> to vector<32x32xbf16>
    %cst_47 = arith.constant dense<0.000000e+00> : vector<256x32xf32>
    %46 = tpu.matmul %43, %45, %cst_47 {dimension_numbers = #tpu.dot_dimension_numbers<[1], [0], [0], [1], [0, 0, 1, 1], [], []>} : vector<256x32xbf16>, vector<32x32xbf16>, vector<256x32xf32> -> vector<256x32xf32>
    %47 = arith.addf %40, %46 : vector<256x32xf32>
    %48 = vector.extract_strided_slice %39 {offsets = [0, 7, 0], sizes = [16, 16, 32], strides = [1, 1, 1]} : vector<18x25x32xf32> to vector<16x16x32xf32>
    %49 = vector.shape_cast %48 : vector<16x16x32xf32> to vector<256x32xf32>
    %50 = arith.truncf %49 : vector<256x32xf32> to vector<256x32xbf16>
    %c0_48 = arith.constant 0 : index
    %c0_49 = arith.constant 0 : index
    %c0_50 = arith.constant 0 : index
    %51 = vector.load %arg8[%c0_48, %c0_49, %c0_50] : memref<9x32x32xbf16, #tpu.memory_space<vmem>>, vector<1x32x32xbf16>
    %52 = vector.shape_cast %51 : vector<1x32x32xbf16> to vector<32x32xbf16>
    %cst_51 = arith.constant dense<0.000000e+00> : vector<256x32xf32>
    %53 = tpu.matmul %50, %52, %cst_51 {dimension_numbers = #tpu.dot_dimension_numbers<[1], [0], [0], [1], [0, 0, 1, 1], [], []>} : vector<256x32xbf16>, vector<32x32xbf16>, vector<256x32xf32> -> vector<256x32xf32>
    %54 = arith.addf %47, %53 : vector<256x32xf32>
    %55 = vector.extract_strided_slice %38 {offsets = [0, 8, 0], sizes = [16, 16, 32], strides = [1, 1, 1]} : vector<18x25x32xf32> to vector<16x16x32xf32>
    %56 = vector.shape_cast %55 : vector<16x16x32xf32> to vector<256x32xf32>
    %57 = arith.truncf %56 : vector<256x32xf32> to vector<256x32xbf16>
    %c1_52 = arith.constant 1 : index
    %c0_53 = arith.constant 0 : index
    %c0_54 = arith.constant 0 : index
    %58 = vector.load %arg7[%c1_52, %c0_53, %c0_54] : memref<9x32x32xbf16, #tpu.memory_space<vmem>>, vector<1x32x32xbf16>
    %59 = vector.shape_cast %58 : vector<1x32x32xbf16> to vector<32x32xbf16>
    %cst_55 = arith.constant dense<0.000000e+00> : vector<256x32xf32>
    %60 = tpu.matmul %57, %59, %cst_55 {dimension_numbers = #tpu.dot_dimension_numbers<[1], [0], [0], [1], [0, 0, 1, 1], [], []>} : vector<256x32xbf16>, vector<32x32xbf16>, vector<256x32xf32> -> vector<256x32xf32>
    %61 = arith.addf %54, %60 : vector<256x32xf32>
    %62 = vector.extract_strided_slice %39 {offsets = [0, 8, 0], sizes = [16, 16, 32], strides = [1, 1, 1]} : vector<18x25x32xf32> to vector<16x16x32xf32>
    %63 = vector.shape_cast %62 : vector<16x16x32xf32> to vector<256x32xf32>
    %64 = arith.truncf %63 : vector<256x32xf32> to vector<256x32xbf16>
    %c1_56 = arith.constant 1 : index
    %c0_57 = arith.constant 0 : index
    %c0_58 = arith.constant 0 : index
    %65 = vector.load %arg8[%c1_56, %c0_57, %c0_58] : memref<9x32x32xbf16, #tpu.memory_space<vmem>>, vector<1x32x32xbf16>
    %66 = vector.shape_cast %65 : vector<1x32x32xbf16> to vector<32x32xbf16>
    %cst_59 = arith.constant dense<0.000000e+00> : vector<256x32xf32>
    %67 = tpu.matmul %64, %66, %cst_59 {dimension_numbers = #tpu.dot_dimension_numbers<[1], [0], [0], [1], [0, 0, 1, 1], [], []>} : vector<256x32xbf16>, vector<32x32xbf16>, vector<256x32xf32> -> vector<256x32xf32>
    %68 = arith.addf %61, %67 : vector<256x32xf32>
    %69 = vector.extract_strided_slice %38 {offsets = [0, 9, 0], sizes = [16, 16, 32], strides = [1, 1, 1]} : vector<18x25x32xf32> to vector<16x16x32xf32>
    %70 = vector.shape_cast %69 : vector<16x16x32xf32> to vector<256x32xf32>
    %71 = arith.truncf %70 : vector<256x32xf32> to vector<256x32xbf16>
    %c2 = arith.constant 2 : index
    %c0_60 = arith.constant 0 : index
    %c0_61 = arith.constant 0 : index
    %72 = vector.load %arg7[%c2, %c0_60, %c0_61] : memref<9x32x32xbf16, #tpu.memory_space<vmem>>, vector<1x32x32xbf16>
    %73 = vector.shape_cast %72 : vector<1x32x32xbf16> to vector<32x32xbf16>
    %cst_62 = arith.constant dense<0.000000e+00> : vector<256x32xf32>
    %74 = tpu.matmul %71, %73, %cst_62 {dimension_numbers = #tpu.dot_dimension_numbers<[1], [0], [0], [1], [0, 0, 1, 1], [], []>} : vector<256x32xbf16>, vector<32x32xbf16>, vector<256x32xf32> -> vector<256x32xf32>
    %75 = arith.addf %68, %74 : vector<256x32xf32>
    %76 = vector.extract_strided_slice %39 {offsets = [0, 9, 0], sizes = [16, 16, 32], strides = [1, 1, 1]} : vector<18x25x32xf32> to vector<16x16x32xf32>
    %77 = vector.shape_cast %76 : vector<16x16x32xf32> to vector<256x32xf32>
    %78 = arith.truncf %77 : vector<256x32xf32> to vector<256x32xbf16>
    %c2_63 = arith.constant 2 : index
    %c0_64 = arith.constant 0 : index
    %c0_65 = arith.constant 0 : index
    %79 = vector.load %arg8[%c2_63, %c0_64, %c0_65] : memref<9x32x32xbf16, #tpu.memory_space<vmem>>, vector<1x32x32xbf16>
    %80 = vector.shape_cast %79 : vector<1x32x32xbf16> to vector<32x32xbf16>
    %cst_66 = arith.constant dense<0.000000e+00> : vector<256x32xf32>
    %81 = tpu.matmul %78, %80, %cst_66 {dimension_numbers = #tpu.dot_dimension_numbers<[1], [0], [0], [1], [0, 0, 1, 1], [], []>} : vector<256x32xbf16>, vector<32x32xbf16>, vector<256x32xf32> -> vector<256x32xf32>
    %82 = arith.addf %75, %81 : vector<256x32xf32>
    %83 = vector.extract_strided_slice %38 {offsets = [1, 7, 0], sizes = [16, 16, 32], strides = [1, 1, 1]} : vector<18x25x32xf32> to vector<16x16x32xf32>
    %84 = vector.shape_cast %83 : vector<16x16x32xf32> to vector<256x32xf32>
    %85 = arith.truncf %84 : vector<256x32xf32> to vector<256x32xbf16>
    %c3 = arith.constant 3 : index
    %c0_67 = arith.constant 0 : index
    %c0_68 = arith.constant 0 : index
    %86 = vector.load %arg7[%c3, %c0_67, %c0_68] : memref<9x32x32xbf16, #tpu.memory_space<vmem>>, vector<1x32x32xbf16>
    %87 = vector.shape_cast %86 : vector<1x32x32xbf16> to vector<32x32xbf16>
    %cst_69 = arith.constant dense<0.000000e+00> : vector<256x32xf32>
    %88 = tpu.matmul %85, %87, %cst_69 {dimension_numbers = #tpu.dot_dimension_numbers<[1], [0], [0], [1], [0, 0, 1, 1], [], []>} : vector<256x32xbf16>, vector<32x32xbf16>, vector<256x32xf32> -> vector<256x32xf32>
    %89 = arith.addf %82, %88 : vector<256x32xf32>
    %90 = vector.extract_strided_slice %39 {offsets = [1, 7, 0], sizes = [16, 16, 32], strides = [1, 1, 1]} : vector<18x25x32xf32> to vector<16x16x32xf32>
    %91 = vector.shape_cast %90 : vector<16x16x32xf32> to vector<256x32xf32>
    %92 = arith.truncf %91 : vector<256x32xf32> to vector<256x32xbf16>
    %c3_70 = arith.constant 3 : index
    %c0_71 = arith.constant 0 : index
    %c0_72 = arith.constant 0 : index
    %93 = vector.load %arg8[%c3_70, %c0_71, %c0_72] : memref<9x32x32xbf16, #tpu.memory_space<vmem>>, vector<1x32x32xbf16>
    %94 = vector.shape_cast %93 : vector<1x32x32xbf16> to vector<32x32xbf16>
    %cst_73 = arith.constant dense<0.000000e+00> : vector<256x32xf32>
    %95 = tpu.matmul %92, %94, %cst_73 {dimension_numbers = #tpu.dot_dimension_numbers<[1], [0], [0], [1], [0, 0, 1, 1], [], []>} : vector<256x32xbf16>, vector<32x32xbf16>, vector<256x32xf32> -> vector<256x32xf32>
    %96 = arith.addf %89, %95 : vector<256x32xf32>
    %97 = vector.extract_strided_slice %38 {offsets = [1, 8, 0], sizes = [16, 16, 32], strides = [1, 1, 1]} : vector<18x25x32xf32> to vector<16x16x32xf32>
    %98 = vector.shape_cast %97 : vector<16x16x32xf32> to vector<256x32xf32>
    %99 = arith.truncf %98 : vector<256x32xf32> to vector<256x32xbf16>
    %c4 = arith.constant 4 : index
    %c0_74 = arith.constant 0 : index
    %c0_75 = arith.constant 0 : index
    %100 = vector.load %arg7[%c4, %c0_74, %c0_75] : memref<9x32x32xbf16, #tpu.memory_space<vmem>>, vector<1x32x32xbf16>
    %101 = vector.shape_cast %100 : vector<1x32x32xbf16> to vector<32x32xbf16>
    %cst_76 = arith.constant dense<0.000000e+00> : vector<256x32xf32>
    %102 = tpu.matmul %99, %101, %cst_76 {dimension_numbers = #tpu.dot_dimension_numbers<[1], [0], [0], [1], [0, 0, 1, 1], [], []>} : vector<256x32xbf16>, vector<32x32xbf16>, vector<256x32xf32> -> vector<256x32xf32>
    %103 = arith.addf %96, %102 : vector<256x32xf32>
    %104 = vector.extract_strided_slice %39 {offsets = [1, 8, 0], sizes = [16, 16, 32], strides = [1, 1, 1]} : vector<18x25x32xf32> to vector<16x16x32xf32>
    %105 = vector.shape_cast %104 : vector<16x16x32xf32> to vector<256x32xf32>
    %106 = arith.truncf %105 : vector<256x32xf32> to vector<256x32xbf16>
    %c4_77 = arith.constant 4 : index
    %c0_78 = arith.constant 0 : index
    %c0_79 = arith.constant 0 : index
    %107 = vector.load %arg8[%c4_77, %c0_78, %c0_79] : memref<9x32x32xbf16, #tpu.memory_space<vmem>>, vector<1x32x32xbf16>
    %108 = vector.shape_cast %107 : vector<1x32x32xbf16> to vector<32x32xbf16>
    %cst_80 = arith.constant dense<0.000000e+00> : vector<256x32xf32>
    %109 = tpu.matmul %106, %108, %cst_80 {dimension_numbers = #tpu.dot_dimension_numbers<[1], [0], [0], [1], [0, 0, 1, 1], [], []>} : vector<256x32xbf16>, vector<32x32xbf16>, vector<256x32xf32> -> vector<256x32xf32>
    %110 = arith.addf %103, %109 : vector<256x32xf32>
    %111 = vector.extract_strided_slice %38 {offsets = [1, 9, 0], sizes = [16, 16, 32], strides = [1, 1, 1]} : vector<18x25x32xf32> to vector<16x16x32xf32>
    %112 = vector.shape_cast %111 : vector<16x16x32xf32> to vector<256x32xf32>
    %113 = arith.truncf %112 : vector<256x32xf32> to vector<256x32xbf16>
    %c5 = arith.constant 5 : index
    %c0_81 = arith.constant 0 : index
    %c0_82 = arith.constant 0 : index
    %114 = vector.load %arg7[%c5, %c0_81, %c0_82] : memref<9x32x32xbf16, #tpu.memory_space<vmem>>, vector<1x32x32xbf16>
    %115 = vector.shape_cast %114 : vector<1x32x32xbf16> to vector<32x32xbf16>
    %cst_83 = arith.constant dense<0.000000e+00> : vector<256x32xf32>
    %116 = tpu.matmul %113, %115, %cst_83 {dimension_numbers = #tpu.dot_dimension_numbers<[1], [0], [0], [1], [0, 0, 1, 1], [], []>} : vector<256x32xbf16>, vector<32x32xbf16>, vector<256x32xf32> -> vector<256x32xf32>
    %117 = arith.addf %110, %116 : vector<256x32xf32>
    %118 = vector.extract_strided_slice %39 {offsets = [1, 9, 0], sizes = [16, 16, 32], strides = [1, 1, 1]} : vector<18x25x32xf32> to vector<16x16x32xf32>
    %119 = vector.shape_cast %118 : vector<16x16x32xf32> to vector<256x32xf32>
    %120 = arith.truncf %119 : vector<256x32xf32> to vector<256x32xbf16>
    %c5_84 = arith.constant 5 : index
    %c0_85 = arith.constant 0 : index
    %c0_86 = arith.constant 0 : index
    %121 = vector.load %arg8[%c5_84, %c0_85, %c0_86] : memref<9x32x32xbf16, #tpu.memory_space<vmem>>, vector<1x32x32xbf16>
    %122 = vector.shape_cast %121 : vector<1x32x32xbf16> to vector<32x32xbf16>
    %cst_87 = arith.constant dense<0.000000e+00> : vector<256x32xf32>
    %123 = tpu.matmul %120, %122, %cst_87 {dimension_numbers = #tpu.dot_dimension_numbers<[1], [0], [0], [1], [0, 0, 1, 1], [], []>} : vector<256x32xbf16>, vector<32x32xbf16>, vector<256x32xf32> -> vector<256x32xf32>
    %124 = arith.addf %117, %123 : vector<256x32xf32>
    %125 = vector.extract_strided_slice %38 {offsets = [2, 7, 0], sizes = [16, 16, 32], strides = [1, 1, 1]} : vector<18x25x32xf32> to vector<16x16x32xf32>
    %126 = vector.shape_cast %125 : vector<16x16x32xf32> to vector<256x32xf32>
    %127 = arith.truncf %126 : vector<256x32xf32> to vector<256x32xbf16>
    %c6 = arith.constant 6 : index
    %c0_88 = arith.constant 0 : index
    %c0_89 = arith.constant 0 : index
    %128 = vector.load %arg7[%c6, %c0_88, %c0_89] : memref<9x32x32xbf16, #tpu.memory_space<vmem>>, vector<1x32x32xbf16>
    %129 = vector.shape_cast %128 : vector<1x32x32xbf16> to vector<32x32xbf16>
    %cst_90 = arith.constant dense<0.000000e+00> : vector<256x32xf32>
    %130 = tpu.matmul %127, %129, %cst_90 {dimension_numbers = #tpu.dot_dimension_numbers<[1], [0], [0], [1], [0, 0, 1, 1], [], []>} : vector<256x32xbf16>, vector<32x32xbf16>, vector<256x32xf32> -> vector<256x32xf32>
    %131 = arith.addf %124, %130 : vector<256x32xf32>
    %132 = vector.extract_strided_slice %39 {offsets = [2, 7, 0], sizes = [16, 16, 32], strides = [1, 1, 1]} : vector<18x25x32xf32> to vector<16x16x32xf32>
    %133 = vector.shape_cast %132 : vector<16x16x32xf32> to vector<256x32xf32>
    %134 = arith.truncf %133 : vector<256x32xf32> to vector<256x32xbf16>
    %c6_91 = arith.constant 6 : index
    %c0_92 = arith.constant 0 : index
    %c0_93 = arith.constant 0 : index
    %135 = vector.load %arg8[%c6_91, %c0_92, %c0_93] : memref<9x32x32xbf16, #tpu.memory_space<vmem>>, vector<1x32x32xbf16>
    %136 = vector.shape_cast %135 : vector<1x32x32xbf16> to vector<32x32xbf16>
    %cst_94 = arith.constant dense<0.000000e+00> : vector<256x32xf32>
    %137 = tpu.matmul %134, %136, %cst_94 {dimension_numbers = #tpu.dot_dimension_numbers<[1], [0], [0], [1], [0, 0, 1, 1], [], []>} : vector<256x32xbf16>, vector<32x32xbf16>, vector<256x32xf32> -> vector<256x32xf32>
    %138 = arith.addf %131, %137 : vector<256x32xf32>
    %139 = vector.extract_strided_slice %38 {offsets = [2, 8, 0], sizes = [16, 16, 32], strides = [1, 1, 1]} : vector<18x25x32xf32> to vector<16x16x32xf32>
    %140 = vector.shape_cast %139 : vector<16x16x32xf32> to vector<256x32xf32>
    %141 = arith.truncf %140 : vector<256x32xf32> to vector<256x32xbf16>
    %c7 = arith.constant 7 : index
    %c0_95 = arith.constant 0 : index
    %c0_96 = arith.constant 0 : index
    %142 = vector.load %arg7[%c7, %c0_95, %c0_96] : memref<9x32x32xbf16, #tpu.memory_space<vmem>>, vector<1x32x32xbf16>
    %143 = vector.shape_cast %142 : vector<1x32x32xbf16> to vector<32x32xbf16>
    %cst_97 = arith.constant dense<0.000000e+00> : vector<256x32xf32>
    %144 = tpu.matmul %141, %143, %cst_97 {dimension_numbers = #tpu.dot_dimension_numbers<[1], [0], [0], [1], [0, 0, 1, 1], [], []>} : vector<256x32xbf16>, vector<32x32xbf16>, vector<256x32xf32> -> vector<256x32xf32>
    %145 = arith.addf %138, %144 : vector<256x32xf32>
    %146 = vector.extract_strided_slice %39 {offsets = [2, 8, 0], sizes = [16, 16, 32], strides = [1, 1, 1]} : vector<18x25x32xf32> to vector<16x16x32xf32>
    %147 = vector.shape_cast %146 : vector<16x16x32xf32> to vector<256x32xf32>
    %148 = arith.truncf %147 : vector<256x32xf32> to vector<256x32xbf16>
    %c7_98 = arith.constant 7 : index
    %c0_99 = arith.constant 0 : index
    %c0_100 = arith.constant 0 : index
    %149 = vector.load %arg8[%c7_98, %c0_99, %c0_100] : memref<9x32x32xbf16, #tpu.memory_space<vmem>>, vector<1x32x32xbf16>
    %150 = vector.shape_cast %149 : vector<1x32x32xbf16> to vector<32x32xbf16>
    %cst_101 = arith.constant dense<0.000000e+00> : vector<256x32xf32>
    %151 = tpu.matmul %148, %150, %cst_101 {dimension_numbers = #tpu.dot_dimension_numbers<[1], [0], [0], [1], [0, 0, 1, 1], [], []>} : vector<256x32xbf16>, vector<32x32xbf16>, vector<256x32xf32> -> vector<256x32xf32>
    %152 = arith.addf %145, %151 : vector<256x32xf32>
    %153 = vector.extract_strided_slice %38 {offsets = [2, 9, 0], sizes = [16, 16, 32], strides = [1, 1, 1]} : vector<18x25x32xf32> to vector<16x16x32xf32>
    %154 = vector.shape_cast %153 : vector<16x16x32xf32> to vector<256x32xf32>
    %155 = arith.truncf %154 : vector<256x32xf32> to vector<256x32xbf16>
    %c8_102 = arith.constant 8 : index
    %c0_103 = arith.constant 0 : index
    %c0_104 = arith.constant 0 : index
    %156 = vector.load %arg7[%c8_102, %c0_103, %c0_104] : memref<9x32x32xbf16, #tpu.memory_space<vmem>>, vector<1x32x32xbf16>
    %157 = vector.shape_cast %156 : vector<1x32x32xbf16> to vector<32x32xbf16>
    %cst_105 = arith.constant dense<0.000000e+00> : vector<256x32xf32>
    %158 = tpu.matmul %155, %157, %cst_105 {dimension_numbers = #tpu.dot_dimension_numbers<[1], [0], [0], [1], [0, 0, 1, 1], [], []>} : vector<256x32xbf16>, vector<32x32xbf16>, vector<256x32xf32> -> vector<256x32xf32>
    %159 = arith.addf %152, %158 : vector<256x32xf32>
    %160 = vector.extract_strided_slice %39 {offsets = [2, 9, 0], sizes = [16, 16, 32], strides = [1, 1, 1]} : vector<18x25x32xf32> to vector<16x16x32xf32>
    %161 = vector.shape_cast %160 : vector<16x16x32xf32> to vector<256x32xf32>
    %162 = arith.truncf %161 : vector<256x32xf32> to vector<256x32xbf16>
    %c8_106 = arith.constant 8 : index
    %c0_107 = arith.constant 0 : index
    %c0_108 = arith.constant 0 : index
    %163 = vector.load %arg8[%c8_106, %c0_107, %c0_108] : memref<9x32x32xbf16, #tpu.memory_space<vmem>>, vector<1x32x32xbf16>
    %164 = vector.shape_cast %163 : vector<1x32x32xbf16> to vector<32x32xbf16>
    %cst_109 = arith.constant dense<0.000000e+00> : vector<256x32xf32>
    %165 = tpu.matmul %162, %164, %cst_109 {dimension_numbers = #tpu.dot_dimension_numbers<[1], [0], [0], [1], [0, 0, 1, 1], [], []>} : vector<256x32xbf16>, vector<32x32xbf16>, vector<256x32xf32> -> vector<256x32xf32>
    %166 = arith.addf %159, %165 : vector<256x32xf32>
    %c0_110 = arith.constant 0 : index
    %c0_111 = arith.constant 0 : index
    %167 = vector.load %arg9[%c0_110, %c0_111] : memref<1x32xf32, #tpu.memory_space<vmem>>, vector<1x32xf32>
    %168 = vector.broadcast %167 : vector<1x32xf32> to vector<256x32xf32>
    %169 = arith.mulf %166, %168 : vector<256x32xf32>
    %c0_112 = arith.constant 0 : index
    %c0_113 = arith.constant 0 : index
    %170 = vector.load %arg10[%c0_112, %c0_113] : memref<1x32xf32, #tpu.memory_space<vmem>>, vector<1x32xf32>
    %171 = vector.broadcast %170 : vector<1x32xf32> to vector<256x32xf32>
    %172 = arith.addf %169, %171 : vector<256x32xf32>
    %cst_114 = arith.constant 0.000000e+00 : f32
    %173 = vector.broadcast %cst_114 : f32 to vector<256x32xf32>
    %174 = arith.maximumf %172, %173 : vector<256x32xf32>
    %175 = arith.truncf %174 : vector<256x32xf32> to vector<256x32xbf16>
    %c0_115 = arith.constant 0 : index
    %c0_116 = arith.constant 0 : index
    %176 = vector.load %arg11[%c0_115, %c0_116] : memref<32x4xbf16, #tpu.memory_space<vmem>>, vector<32x4xbf16>
    %cst_117 = arith.constant dense<0.000000e+00> : vector<256x4xf32>
    %177 = tpu.matmul %175, %176, %cst_117 {dimension_numbers = #tpu.dot_dimension_numbers<[1], [0], [0], [1], [0, 0, 1, 1], [], []>} : vector<256x32xbf16>, vector<32x4xbf16>, vector<256x4xf32> -> vector<256x4xf32>
    %c0_118 = arith.constant 0 : index
    %c0_119 = arith.constant 0 : index
    %178 = vector.load %arg12[%c0_118, %c0_119] : memref<1x4xf32, #tpu.memory_space<vmem>>, vector<1x4xf32>
    %179 = vector.broadcast %178 : vector<1x4xf32> to vector<256x4xf32>
    %180 = arith.addf %177, %179 : vector<256x4xf32>
    %181 = vector.shape_cast %180 : vector<256x4xf32> to vector<1x256x4xf32>
    %c0_120 = arith.constant 0 : index
    %c0_121 = arith.constant 0 : index
    %c0_122 = arith.constant 0 : index
    %182 = vector.load %arg13[%c0_120, %c0_121, %c0_122] : memref<1x256x4xf32, #tpu.memory_space<vmem>>, vector<1x256x4xf32>
    tpu.vector_store %arg13[%c0_120, %c0_121, %c0_122], %181 {strides = array<i32>} : memref<1x256x4xf32, #tpu.memory_space<vmem>>, vector<1x256x4xf32>,
    return
  }
  func.func @transform_0(%arg0: i32) -> (i32, i32, i32, i32) {
    %c0_i32 = arith.constant 0 : i32
    %c0_i32_0 = arith.constant 0 : i32
    %c0_i32_1 = arith.constant 0 : i32
    %c0_i32_2 = arith.constant 0 : i32
    return %arg0, %c0_i32, %c0_i32_0, %c0_i32_1 : i32, i32, i32, i32
  }
  func.func @transform_1(%arg0: i32) -> (i32, i32, i32, i32) {
    %c0_i32 = arith.constant 0 : i32
    %c0_i32_0 = arith.constant 0 : i32
    %c0_i32_1 = arith.constant 0 : i32
    %c0_i32_2 = arith.constant 0 : i32
    return %arg0, %c0_i32, %c0_i32_0, %c0_i32_1 : i32, i32, i32, i32
  }
  func.func @transform_2(%arg0: i32) -> (i32, i32, i32, i32) {
    %c0_i32 = arith.constant 0 : i32
    %c0_i32_0 = arith.constant 0 : i32
    %c0_i32_1 = arith.constant 0 : i32
    %c0_i32_2 = arith.constant 0 : i32
    return %arg0, %c0_i32, %c0_i32_0, %c0_i32_1 : i32, i32, i32, i32
  }
  func.func @transform_3(%arg0: i32) -> (i32, i32, i32, i32) {
    %c0_i32 = arith.constant 0 : i32
    %c0_i32_0 = arith.constant 0 : i32
    %c0_i32_1 = arith.constant 0 : i32
    %c0_i32_2 = arith.constant 0 : i32
    %c0_i32_3 = arith.constant 0 : i32
    return %c0_i32, %c0_i32_0, %c0_i32_1, %c0_i32_2 : i32, i32, i32, i32
  }
  func.func @transform_4(%arg0: i32) -> (i32, i32, i32, i32) {
    %c0_i32 = arith.constant 0 : i32
    %c0_i32_0 = arith.constant 0 : i32
    %c0_i32_1 = arith.constant 0 : i32
    %c0_i32_2 = arith.constant 0 : i32
    %c0_i32_3 = arith.constant 0 : i32
    return %c0_i32, %c0_i32_0, %c0_i32_1, %c0_i32_2 : i32, i32, i32, i32
  }
  func.func @transform_5(%arg0: i32) -> (i32, i32, i32, i32) {
    %c0_i32 = arith.constant 0 : i32
    %c0_i32_0 = arith.constant 0 : i32
    %c0_i32_1 = arith.constant 0 : i32
    %c0_i32_2 = arith.constant 0 : i32
    %c0_i32_3 = arith.constant 0 : i32
    return %c0_i32, %c0_i32_0, %c0_i32_1, %c0_i32_2 : i32, i32, i32, i32
  }
  func.func @transform_6(%arg0: i32) -> (i32, i32, i32) {
    %c0_i32 = arith.constant 0 : i32
    %c0_i32_0 = arith.constant 0 : i32
    %c0_i32_1 = arith.constant 0 : i32
    %c0_i32_2 = arith.constant 0 : i32
    return %c0_i32, %c0_i32_0, %c0_i32_1 : i32, i32, i32
  }
  func.func @transform_7(%arg0: i32) -> (i32, i32, i32) {
    %c0_i32 = arith.constant 0 : i32
    %c0_i32_0 = arith.constant 0 : i32
    %c0_i32_1 = arith.constant 0 : i32
    %c0_i32_2 = arith.constant 0 : i32
    return %c0_i32, %c0_i32_0, %c0_i32_1 : i32, i32, i32
  }
  func.func @transform_8(%arg0: i32) -> (i32, i32) {
    %c0_i32 = arith.constant 0 : i32
    %c0_i32_0 = arith.constant 0 : i32
    %c0_i32_1 = arith.constant 0 : i32
    return %c0_i32, %c0_i32_0 : i32, i32
  }
  func.func @transform_9(%arg0: i32) -> (i32, i32) {
    %c0_i32 = arith.constant 0 : i32
    %c0_i32_0 = arith.constant 0 : i32
    %c0_i32_1 = arith.constant 0 : i32
    return %c0_i32, %c0_i32_0 : i32, i32
  }
  func.func @transform_10(%arg0: i32) -> (i32, i32) {
    %c0_i32 = arith.constant 0 : i32
    %c0_i32_0 = arith.constant 0 : i32
    %c0_i32_1 = arith.constant 0 : i32
    return %c0_i32, %c0_i32_0 : i32, i32
  }
  func.func @transform_11(%arg0: i32) -> (i32, i32) {
    %c0_i32 = arith.constant 0 : i32
    %c0_i32_0 = arith.constant 0 : i32
    %c0_i32_1 = arith.constant 0 : i32
    return %c0_i32, %c0_i32_0 : i32, i32
  }
  func.func @transform_12(%arg0: i32) -> (i32, i32, i32) {
    %c0_i32 = arith.constant 0 : i32
    %c0_i32_0 = arith.constant 0 : i32
    %c0_i32_1 = arith.constant 0 : i32
    return %arg0, %c0_i32, %c0_i32_0 : i32, i32, i32
  }
}

</mosaic_0001>

<bundles_post_ra>
// kernel: saunet_tail.2
= control target key start
LH: loop header
LB: loop body
LE: loop exit
PB: predicated region body
PF: predicated region fallthrough
CT: control target
= control target key end

     0   :  { %s2731_s24 = smov 0   ;;  %s3580_s0 = inlined_call_operand.vmem [shape: f32[2,8,8,64], index: 0, kind: input, shape index: {}]   ;;  %s3581_s1 = inlined_call_operand.vmem [shape: bf16[9,64,48], index: 1, kind: input, shape index: {}]   ;;  %s3582_s2 = inlined_call_operand.vmem [shape: f32[1,48], index: 2, kind: input, shape index: {}]   ;;  %s3583_s3 = inlined_call_operand.vmem [shape: f32[1,48], index: 3, kind: input, shape index: {}]   ;;  %s3584_s4 = inlined_call_operand.vmem [shape: bf16[9,48,128], index: 4, kind: input, shape index: {}]   ;;  %s3585_s5 = inlined_call_operand.vmem [shape: f32[1,128], index: 5, kind: input, shape index: {}]   ;;  %s3586_s6 = inlined_call_operand.vmem [shape: f32[1,128], index: 6, kind: input, shape index: {}]   ;;  %s3587_s7 = inlined_call_operand.vmem [shape: f32[2,64,128], index: 7, kind: output, shape index: {}]  }
   0x1 LB: > { %s2149_s25 = sadd.s32 4294967295, %s2688_s24   ;;  %p2153_p0 = scmp.ge.s32.totalorder %s2688_s24, 1  ;;  %s2688_s24 = sphi %s2731_s24, %s17_s24  }
   0x2   : > { %p237_p1 = scmp.lt.s32.totalorder %s2688_s24, 3 }
   0x4   : > { %p238_p2 = pnand %p2153_p0, %p237_p1 }
   0x5   : > { %p269_p3 = scmp.lt.s32.totalorder (!%p238_p2), %s2149_s25, 1 }
   0x6   : > { %241 = sbr.rel (%p238_p2) target bundleno = 605 (0x25d), region = 48 }
   0xb   : > { %v2605_v0 = vld [vmem:[%s3581_s1 + $0x38] sm:$0xff]  ;;  %vm288_vm0 = vcmask 523264   ;;  %v2690_v2 = vmov 0.0   ;;  %v2604_v3 = vld [vmem:[%s3581_s1 + $0x30] sm:$0xff]  ;;  %s3589_s25 = smov (!%p269_p3, %s2149_s25), 1  ;;  %v2603_v5 = vld [vmem:[%s3581_s1 + $0x28] sm:$0xff] }
   0xc   : > { %v2601_v1 = vld [vmem:[%s3581_s1 + $0x18] sm:$0xff]  ;;  %303 = vst.msk [vmem:[#allocation2 + $0x68] sm:$0xff] %vm288_vm0, %v2690_v2  ;;  %2661 = vmatpush.bf16.msra.mxu2 %v2605_v0  ;;  %473 = vmatpush.bf16.msra.mxu0 %v2605_v0  ;;  %v2600_v4 = vld [vmem:[%s3581_s1 + $0x10] sm:$0xff]  ;;  %s2596_s11 = sshll.u32 %s3589_s25, 6  ;;  %v2599_v8 = vld [vmem:[%s3581_s1 + $0x8] sm:$0xff]  ;;  %vm375_vm1 = vcmask 1040384  }
   0xd   : > { %306 = vst.msk [vmem:[#allocation2 + $0x80] sm:$0xff] %vm288_vm0, %v2690_v2  ;;  %538 = vmatpush.bf16.msra.mxu1 %v2601_v1  ;;  %2665 = vmatpush.bf16.msra.mxu3 %v2601_v1  ;;  %s2767_s14 = scalar_lea.vmem %s3580_s0, %s2596_s11  ;;  %v2602_v9 = vld [vmem:[%s3581_s1 + $0x20] sm:$0xff]  ;;  %v2609_v11 = vld [vmem:[%s3581_s1 + $0x58] sm:$0xff]  ;;  %v2608_v17 = vld [vmem:[%s3581_s1 + $0x50] sm:$0xff]  ;;  %vm291_vm2 = vcmask 516096   ;;  %vm571_vm3 = vcmask 1046528   ;;  %s3532_s27 = scalar_lea.vmem %s3587_s7, %s2596_s11 }
   0xe   : > { %289 = vst.msk [vmem:[#allocation2] sm:$0xff] %vm288_vm0, %v2690_v2  ;;  %v283_v6 = vld [vmem:[%s2767_s14 + $0x18] sm:$0xff]  ;;  %v284_v7 = vld [vmem:[%s2767_s14 + $0x20] sm:$0xff]  ;;  %v2612_v18 = vld [vmem:[%s3581_s1 + $0x70] sm:$0xff]  ;;  %vm1224_vm4 = vcmask 392192   ;;  %vm1227_vm5 = vcmask 385024  }
   0xf   : > { %290 = vst.msk [vmem:[#allocation2 + $0x8] sm:$0xff] %vm288_vm0, %v2690_v2  ;;  %v2598_v10 = vld [vmem:[%s3581_s1] sm:$0xff]  ;;  %v2613_v12 = vld [vmem:[%s3581_s1 + $0x78] sm:$0xff]  ;;  %v2607_v21 = vld [vmem:[%s3581_s1 + $0x48] sm:$0xff] }
  0x10   : > { %293 = vst.msk [vmem:[#allocation2 + $0x18] sm:$0xff] %vm288_vm0, %v2690_v2  ;;  %2662 = vmatpush.bf16.msra.mxu2 %v2604_v3  ;;  %474 = vmatpush.bf16.msra.mxu0 %v2604_v3  ;;  %v2617_v13 = vld [vmem:[%s3581_s1 + $0x98] sm:$0xff]  ;;  %v280_v19 = vld [vmem:[%s2767_s14] sm:$0xff]  ;;  %v2611_v24 = vld [vmem:[%s3581_s1 + $0x68] sm:$0xff] }
  0x11   : > { %294 = vst.msk [vmem:[#allocation2 + $0x20] sm:$0xff] %vm288_vm0, %v2690_v2  ;;  %539 = vmatpush.bf16.msra.mxu1 %v2600_v4  ;;  %2666 = vmatpush.bf16.msra.mxu3 %v2600_v4  ;;  %v2616_v25 = vld [vmem:[%s3581_s1 + $0x90] sm:$0xff]  ;;  %v285_v28 = vld [vmem:[%s2767_s14 + $0x28] sm:$0xff]  ;;  %v2621_v32 = vld [vmem:[%s3581_s1 + $0xb8] sm:$0xff] }
  0x12   : > { %324 = vst.msk [vmem:[#allocation2 + $0x68] sm:$0xff] %vm288_vm0, %v283_v6  ;;  %v286_v30 = vld [vmem:[%s2767_s14 + $0x30] sm:$0xff]  ;;  %v2615_v31 = vld [vmem:[%s3581_s1 + $0x88] sm:$0xff]  ;;  %v2606_v39 = vld [vmem:[%s3581_s1 + $0x40] sm:$0xff] }
  0x13   : > { %325 = vst.msk [vmem:[#allocation2 + $0x80] sm:$0xff] %vm288_vm0, %v284_v7  ;;  %v281_v35 = vld [vmem:[%s2767_s14 + $0x8] sm:$0xff]  ;;  %v282_v36 = vld [vmem:[%s2767_s14 + $0x10] sm:$0xff]  ;;  %v2610_v40 = vld [vmem:[%s3581_s1 + $0x60] sm:$0xff] }
  0x14   : > { %296 = vst.msk [vmem:[#allocation2 + $0x30] sm:$0xff] %vm288_vm0, %v2690_v2  ;;  %2663 = vmatpush.bf16.msra.mxu2 %v2603_v5  ;;  %475 = vmatpush.bf16.msra.mxu0 %v2603_v5  ;;  %v2625_v42 = vld [vmem:[%s3581_s1 + $0xd8] sm:$0xff]  ;;  %v2620_v43 = vld [vmem:[%s3581_s1 + $0xb0] sm:$0xff]  ;;  %v2614_v45 = vld [vmem:[%s3581_s1 + $0x80] sm:$0xff] }
  0x15   : > { %297 = vst.msk [vmem:[#allocation2 + $0x38] sm:$0xff] %vm288_vm0, %v2690_v2  ;;  %540 = vmatpush.bf16.msra.mxu1 %v2599_v8  ;;  %2667 = vmatpush.bf16.msra.mxu3 %v2599_v8  ;;  %v329_v33 = vld [vmem:[#allocation2] sm:$0xff]  ;;  %v2629_v63 = vld [vmem:[%s3581_s1 + $0xf8] sm:$0xff]  ;;  %v2619_v0 = vld [vmem:[%s3581_s1 + $0xa8] sm:$0xff] }
  0x16   : > { %299 = vst.msk [vmem:[#allocation2 + $0x48] sm:$0xff] %vm288_vm0, %v2690_v2  ;;  %v2868_v37 = vld [vmem:[#allocation2 + $0x8] sm:$0xff]  ;;  %v376_v47 = vrot.slane %v329_v33, 7  ;;  %v2633_v3 = vld [vmem:[%s3581_s1 + $0x118] sm:$0xff]  ;;  %v2628_v33 = vld [vmem:[%s3581_s1 + $0xf0] sm:$0xff] }
  0x17   : > { %300 = vst.msk [vmem:[#allocation2 + $0x50] sm:$0xff] %vm288_vm0, %v2690_v2  ;;  %v332_v44 = vld [vmem:[#allocation2 + $0x18] sm:$0xff]  ;;  %v377_v46 = vrot.slane %v2868_v37, 7 }
  0x18   : > { %302 = vst.msk [vmem:[#allocation2 + $0x60] sm:$0xff] %vm288_vm0, %v2690_v2  ;;  %2664 = vmatpush.bf16.msra.mxu2 %v2602_v9  ;;  %476 = vmatpush.bf16.msra.mxu0 %v2602_v9  ;;  %v379_v48 = vrot.slane %v332_v44, 7  ;;  %v2618_v9 = vld [vmem:[%s3581_s1 + $0xa0] sm:$0xff] }
  0x19   : > { %v2808_v14 = vld [vmem:[#allocation2 + $0x68] sm:$0xff]  ;;  %305 = vst.msk [vmem:[#allocation2 + $0x78] sm:$0xff] %vm288_vm0, %v2690_v2  ;;  %541 = vmatpush.bf16.msra.mxu1 %v2598_v10  ;;  %2668 = vmatpush.bf16.msra.mxu3 %v2598_v10  ;;  %v378_v53 = vsel %vm375_vm1, %v376_v47, %v377_v46  ;;  %v2624_v10 = vld [vmem:[%s3581_s1 + $0xd0] sm:$0xff] }
  0x1a   : > { %v2812_v15 = vld [vmem:[#allocation2 + $0x80] sm:$0xff]  ;;  %308 = vst.msk [vmem:[#allocation2 + $0x90] sm:$0xff] %vm288_vm0, %v2690_v2  ;;  %v389_v20 = vrot.slane %v2808_v14, 7 }
  0x1b   : > { %v2818_v16 = vpack.c.bf16 %v2812_v15, %v2808_v14  ;;  %309 = vst.msk [vmem:[#allocation2 + $0x98] sm:$0xff] %vm288_vm0, %v2690_v2  ;;  %v392_v23 = vrot.slane %v2812_v15, 7  ;;  %v335_v4 = vld [vmem:[#allocation2 + $0x30] sm:$0xff] }
  0x1c   : > { %657 = vmatpush.bf16.msrb.mxu2 %v2609_v11  ;;  %311 = vst.msk [vmem:[#allocation2 + $0xa8] sm:$0xff] %vm288_vm0, %v2690_v2  ;;  %835 = vmatpush.bf16.msrb.mxu0 %v2617_v13 }
  0x1d   : > { %749 = vmatpush.bf16.msrb.mxu3 %v2613_v12  ;;  %2184 = vmatmul.msk.bf16.vlgmr.msra.gmra.mxu2 %vm288_vm0, %v2818_v16  ;;  %312 = vst.msk [vmem:[#allocation2 + $0xb0] sm:$0xff] %vm288_vm0, %v2690_v2  ;;  %v338_v13 = vld [vmem:[#allocation2 + $0x48] sm:$0xff] }
  0x1e   : > { %314 = vst.msk [vmem:[#allocation2 + $0xc0] sm:$0xff] %vm288_vm0, %v2690_v2  ;;  %926 = vmatpush.bf16.msrb.mxu1 %v2621_v32 }
  0x1f   : > { %315 = vst.msk [vmem:[#allocation2 + $0xc8] sm:$0xff] %vm288_vm0, %v2690_v2  ;;  %v341_v22 = vld [vmem:[#allocation2 + $0x60] sm:$0xff] }
  0x20   : > { %658 = vmatpush.bf16.msrb.mxu2 %v2608_v17  ;;  %317 = vst.msk [vmem:[#allocation2 + $0xd8] sm:$0xff] %vm288_vm0, %v2690_v2  ;;  %v344_v26 = vld [vmem:[#allocation2 + $0x78] sm:$0xff]  ;;  %v388_v27 = vrot.slane %v341_v22, 7  ;;  %836 = vmatpush.bf16.msrb.mxu0 %v2616_v25  ;;  %v572_v17 = vrot.slane %v2868_v37, 1 }
  0x21   : > { %750 = vmatpush.bf16.msrb.mxu3 %v2612_v18  ;;  %318 = vst.msk [vmem:[#allocation2 + $0xe0] sm:$0xff] %vm288_vm0, %v2690_v2  ;;  %v391_v29 = vrot.slane %v344_v26, 7  ;;  %v347_v49 = vld [vmem:[#allocation2 + $0x90] sm:$0xff] }
  0x22   : > { %321 = vst.msk [vmem:[#allocation2 + $0x20] sm:$0xff] %vm288_vm0, %v280_v19  ;;  %v2864_v34 = vsel %vm375_vm1, %v388_v27, %v389_v20  ;;  %927 = vmatpush.bf16.msrb.mxu1 %v2620_v43  ;;  %v394_v57 = vrot.slane %v347_v49, 7  ;;  %v382_v20 = vrot.slane %v335_v4, 7 }
  0x23   : > { %v2871_v38 = vsel %vm375_vm1, %v391_v29, %v392_v23  ;;  %326 = vst.msk [vmem:[#allocation2 + $0x98] sm:$0xff] %vm288_vm0, %v285_v28  ;;  %v350_v50 = vld [vmem:[#allocation2 + $0xa8] sm:$0xff] }
  0x24   : > { %659 = vmatpush.bf16.msrb.mxu2 %v2607_v21  ;;  %v2882_v41 = vpack.c.bf16 %v2871_v38, %v2864_v34  ;;  %327 = vst.msk [vmem:[#allocation2 + $0xb0] sm:$0xff] %vm288_vm0, %v286_v30  ;;  %837 = vmatpush.bf16.msrb.mxu0 %v2615_v31  ;;  %v397_v59 = vrot.slane %v350_v50, 7 }
  0x25   : > { %751 = vmatpush.bf16.msrb.mxu3 %v2611_v24  ;;  %322 = vst.msk [vmem:[#allocation2 + $0x38] sm:$0xff] %vm288_vm0, %v281_v35  ;;  %v385_v24 = vrot.slane %v338_v13, 7  ;;  %v2632_v35 = vld [vmem:[%s3581_s1 + $0x110] sm:$0xff] }
  0x26   : > { %2204 = vmatmul.msk.bf16.vlgmr.msra.gmra.mxu3 %vm288_vm0, %v2882_v41  ;;  %323 = vst.msk [vmem:[#allocation2 + $0x50] sm:$0xff] %vm288_vm0, %v282_v36  ;;  %928 = vmatpush.bf16.msrb.mxu1 %v2619_v0  ;;  %v2623_v36 = vld [vmem:[%s3581_s1 + $0xc8] sm:$0xff] }
  0x27   : > { %292 = vst.msk [vmem:[#allocation2 + $0x10] sm:$0x1] %vm291_vm2, %v2690_v2 }
  0x28   : > { %660 = vmatpush.bf16.msrb.mxu2 %v2606_v39  ;;  %295 = vst.msk [vmem:[#allocation2 + $0x28] sm:$0x1] %vm291_vm2, %v2690_v2  ;;  %838 = vmatpush.bf16.msrb.mxu0 %v2614_v45 }
  0x29   : > { %752 = vmatpush.bf16.msrb.mxu3 %v2610_v40  ;;  %v2903_v51 = vld [vmem:[#allocation2 + $0x20] sm:$0xff]  ;;  %298 = vst.msk [vmem:[#allocation2 + $0x40] sm:$0x1] %vm291_vm2, %v2690_v2 }
  0x2a   : > { %v420_v52 = vpack.c.bf16 %v2903_v51, %v2868_v37  ;;  %v380_v54 = vrot.slane %v2903_v51, 7  ;;  %v2911_v55 = vld [vmem:[#allocation2 + $0x98] sm:$0xff]  ;;  %301 = vst.msk [vmem:[#allocation2 + $0x58] sm:$0x1] %vm291_vm2, %v2690_v2  ;;  %v575_v19 = vrot.slane %v2903_v51, 1  ;;  %929 = vmatpush.bf16.msrb.mxu1 %v2618_v9  ;;  %v2630_v9 = vld [vmem:[%s3581_s1 + $0x100] sm:$0xff] }
  0x2b   : > { %v2915_v56 = vld [vmem:[#allocation2 + $0xb0] sm:$0xff]  ;;  %v395_v58 = vrot.slane %v2911_v55, 7  ;;  %304 = vst.msk [vmem:[#allocation2 + $0x70] sm:$0x1] %vm291_vm2, %v2690_v2 }
  0x2c   : > { %1006 = vmatpush.bf16.msra.mxu2 %v2625_v42  ;;  %2182 = vmatmul.msk.bf16.vlgmr.msra.gmra.mxu0 %vm288_vm0, %v420_v52  ;;  %v2922_v60 = vsel %vm375_vm1, %v379_v48, %v380_v54  ;;  %v2926_v61 = vpack.c.bf16 %v2915_v56, %v2911_v55  ;;  %v398_v62 = vrot.slane %v2915_v56, 7  ;;  %307 = vst.msk [vmem:[#allocation2 + $0x88] sm:$0x1] %vm291_vm2, %v2690_v2  ;;  %v336_v11 = vld [vmem:[#allocation2 + $0x38] sm:$0xff]  ;;  %v2627_v52 = vld [vmem:[%s3581_s1 + $0xe8] sm:$0xff] }
  0x2d   : > { %v408_v1 = vpack.c.bf16 %v2922_v60, %v378_v53  ;;  %310 = vst.msk [vmem:[#allocation2 + $0xa0] sm:$0x1] %vm291_vm2, %v2690_v2  ;;  %v2949_v5 = vsel %vm375_vm1, %v394_v57, %v395_v58  ;;  %1080 = vmatpush.bf16.msra.mxu3 %v2629_v63  ;;  %1159 = vmatpush.bf16.msra.mxu0 %v2633_v3  ;;  %v2964_v12 = vld [vmem:[#allocation2 + $0x50] sm:$0xff]  ;;  %v383_v23 = vrot.slane %v336_v11, 7  ;;  %v578_v44 = vrot.slane %v336_v11, 1  ;;  %v2631_v53 = vld [vmem:[%s3581_s1 + $0x108] sm:$0xff] }
  0x2e   : > { %2185 = vmatmul.msk.bf16.gmra.mxu2 %vm288_vm0, %v2926_v61  ;;  %313 = vst.msk [vmem:[#allocation2 + $0xb8] sm:$0x1] %vm291_vm2, %v2690_v2  ;;  %v2952_v6 = vsel %vm375_vm1, %v397_v59, %v398_v62  ;;  %v331_v7 = vld [vmem:[#allocation2 + $0x10] sm:$0x1]  ;;  %v386_v25 = vrot.slane %v2964_v12, 7  ;;  %v2978_v28 = vpack.c.bf16 %v2964_v12, %v336_v11  ;;  %v581_v42 = vrot.slane %v2964_v12, 1 }
  0x2f   : > { %2202 = vmatmul.msk.bf16.vlgmr.msra.gmra.mxu1 %vm288_vm0, %v408_v1  ;;  %316 = vst.msk [vmem:[#allocation2 + $0xd0] sm:$0x1] %vm291_vm2, %v2690_v2  ;;  %v334_v8 = vld [vmem:[#allocation2 + $0x28] sm:$0x1]  ;;  %v2969_v18 = vpack.c.bf16 %v2952_v6, %v2949_v5  ;;  %v573_v21 = vrot.slane %v331_v7, 1  ;;  %v384_v29 = vsel %vm375_vm1, %v382_v20, %v383_v23  ;;  %v782_v47 = vpack.c.bf16 %v336_v11, %v2903_v51  ;;  %v2622_v51 = vld [vmem:[%s3581_s1 + $0xc0] sm:$0xff] }
  0x30   : > { %319 = vst.msk [vmem:[#allocation2 + $0xe8] sm:$0x1] %vm291_vm2, %v2690_v2  ;;  %1007 = vmatpush.bf16.msra.mxu2 %v2624_v10  ;;  %v576_v22 = vrot.slane %v334_v8, 1  ;;  %v387_v30 = vsel %vm375_vm1, %v385_v24, %v386_v25  ;;  %v337_v39 = vld [vmem:[#allocation2 + $0x40] sm:$0x1]  ;;  %v696_v40 = vpack.c.bf16 %v384_v29, %v2922_v60  ;;  %v287_v54 = vld [vmem:[%s2767_s14 + $0x38] sm:$0xff]  ;;  %v783_v3 = vpack.c.bf16 %v2808_v14, %v2964_v12 }
  0x31   : > { %v574_v26 = vsel %vm571_vm3, %v572_v17, %v573_v21  ;;  %v2982_v32 = vpack.c.bf16 %v387_v30, %v384_v29  ;;  %1081 = vmatpush.bf16.msra.mxu3 %v2628_v33  ;;  %1160 = vmatpush.bf16.msra.mxu0 %v2632_v35  ;;  %v340_v37 = vld [vmem:[#allocation2 + $0x58] sm:$0x1]  ;;  %v579_v45 = vrot.slane %v337_v39, 1  ;;  %328 = vst.msk [vmem:[#allocation2 + $0xc8] sm:$0xff] %vm288_vm0, %v287_v54  ;;  %v587_v60 = vrot.slane %v2812_v15, 1  ;;  %v353_v23 = vld [vmem:[#allocation2 + $0xc0] sm:$0xff] }
  0x32   : > { %v577_v27 = vsel %vm571_vm3, %v575_v19, %v576_v22  ;;  %v582_v43 = vrot.slane %v340_v37, 1  ;;  %v343_v58 = vld [vmem:[#allocation2 + $0x70] sm:$0x1]  ;;  %v697_v59 = vpack.c.bf16 %v2864_v34, %v387_v30  ;;  %v584_v63 = vrot.slane %v2808_v14, 1  ;;  %v2626_v34 = vld [vmem:[%s3581_s1 + $0xe0] sm:$0xff]  ;;  %1230 = vst.msk [vmem:[#allocation3 + $0x20] sm:$0xff] %vm1224_vm4, %v2690_v2 }
  0x33   : > { %v604_v31 = vpack.c.bf16 %v577_v27, %v574_v26  ;;  %v580_v48 = vsel %vm571_vm3, %v578_v44, %v579_v45  ;;  %v346_v57 = vld [vmem:[#allocation2 + $0x88] sm:$0x1]  ;;  %v585_v0 = vrot.slane %v343_v58, 1  ;;  %v698_v11 = vpack.c.bf16 %v2949_v5, %v2871_v38  ;;  %1225 = vst.msk [vmem:[#allocation3] sm:$0xff] %vm1224_vm4, %v2690_v2 }
  0x34   : > { %1008 = vmatpush.bf16.msra.mxu2 %v2623_v36  ;;  %v583_v46 = vsel %vm571_vm3, %v581_v42, %v582_v43  ;;  %v873_v50 = vpack.c.bf16 %v580_v48, %v577_v27  ;;  %v588_v62 = vrot.slane %v346_v57, 1  ;;  %v349_v10 = vld [vmem:[#allocation2 + $0xa0] sm:$0x1]  ;;  %v593_v12 = vrot.slane %v2915_v56, 1  ;;  %v2639_v58 = vld [vmem:[%s3584_s4 + $0x28] sm:$0xff]  ;;  %1226 = vst.msk [vmem:[#allocation3 + $0x8] sm:$0xff] %vm1224_vm4, %v2690_v2 }
  0x35   : > { %v3004_v49 = vpack.c.bf16 %v583_v46, %v580_v48  ;;  %1082 = vmatpush.bf16.msra.mxu3 %v2627_v52  ;;  %1161 = vmatpush.bf16.msra.mxu0 %v2631_v53  ;;  %v586_v4 = vsel %vm571_vm3, %v584_v63, %v585_v0  ;;  %v352_v14 = vld [vmem:[#allocation2 + $0xb8] sm:$0x1]  ;;  %v590_v17 = vrot.slane %v2911_v55, 1  ;;  %v591_v19 = vrot.slane %v349_v10, 1  ;;  %1229 = vst.msk [vmem:[#allocation3 + $0x18] sm:$0xff] %vm1224_vm4, %v2690_v2 }
  0x36   : > { %2205 = vmatmul.msk.bf16.gmra.mxu3 %vm288_vm0, %v2969_v18  ;;  %v589_v1 = vsel %vm571_vm3, %v587_v60, %v588_v62  ;;  %v874_v8 = vpack.c.bf16 %v586_v4, %v583_v46  ;;  %v594_v13 = vrot.slane %v352_v14, 1  ;;  %v784_v21 = vpack.c.bf16 %v2911_v55, %v2812_v15  ;;  %v355_v29 = vld [vmem:[#allocation2 + $0xd0] sm:$0x1]  ;;  %1399 = vmatpush.bf16.msra.mxu1 %v2639_v58 }
  0x37   : > { %v606_v7 = vpack.c.bf16 %v589_v1, %v586_v4  ;;  %v592_v22 = vsel %vm571_vm3, %v590_v17, %v591_v19  ;;  %v692_v38 = vrot.slane %v353_v23, 7  ;;  %v870_v55 = vrot.slane %v355_v29, 1  ;;  %1232 = vst.msk [vmem:[#allocation3 + $0x30] sm:$0xff] %vm1224_vm4, %v2690_v2 }
  0x38   : > { %1009 = vmatpush.bf16.msra.mxu2 %v2622_v51  ;;  %v595_v20 = vsel %vm571_vm3, %v593_v12, %v594_v13  ;;  %v354_v24 = vld [vmem:[#allocation2 + $0xc8] sm:$0xff]  ;;  %v875_v26 = vpack.c.bf16 %v592_v22, %v589_v1  ;;  %1233 = vst.msk [vmem:[#allocation3 + $0x38] sm:$0xff] %vm1224_vm4, %v2690_v2 }
  0x39   : > { %1083 = vmatpush.bf16.msra.mxu3 %v2626_v34  ;;  %1162 = vmatpush.bf16.msra.mxu0 %v2630_v9  ;;  %v607_v25 = vpack.c.bf16 %v595_v20, %v592_v22  ;;  %v693_v5 = vrot.slane %v354_v24, 7  ;;  %v869_v15 = vrot.slane %v354_v24, 1  ;;  %v2638_v9 = vld [vmem:[%s3584_s4 + $0x20] sm:$0xff]  ;;  %1235 = vst.msk [vmem:[#allocation3 + $0x48] sm:$0xff] %vm1224_vm4, %v2690_v2 }
  0x3a   : > { %1400 = vmatpush.bf16.msra.mxu1 %v2638_v9  ;;  %1236 = vst.msk [vmem:[#allocation3 + $0x50] sm:$0xff] %vm1224_vm4, %v2690_v2 }
  0x3b   : > { %v694_v27 = vsel %vm375_vm1, %v692_v38, %v693_v5  ;;  %v871_v33 = vsel %vm571_vm3, %v869_v15, %v870_v55  ;;  %1238 = vst.msk [vmem:[#allocation3 + $0x60] sm:$0xff] %vm1224_vm4, %v2690_v2 }
  0x3c   : > { %2183 = vmatmul.msk.bf16.gmra.mxu0 %vm288_vm0, %v2978_v28  ;;  %v699_v30 = vpack.c.bf16 %v694_v27, %v2952_v6  ;;  %v876_v35 = vpack.c.bf16 %v871_v33, %v595_v20  ;;  %v356_v6 = vld [vmem:[#allocation2 + $0xd8] sm:$0xff]  ;;  %1239 = vst.msk [vmem:[#allocation3 + $0x68] sm:$0xff] %vm1224_vm4, %v2690_v2 }
  0x3d   : > { %v961_v36 = vrot.slane %v356_v6, 7  ;;  %1241 = vst.msk [vmem:[#allocation3 + $0x78] sm:$0xff] %vm1224_vm4, %v2690_v2 }
  0x3e   : > { %2230 = vmatmul.msk.bf16.vlgmr.msrb.gmra.mxu2 %vm288_vm0, %v604_v31  ;;  %v785_v31 = vpack.c.bf16 %v354_v24, %v2915_v56  ;;  %1242 = vst.msk [vmem:[#allocation3 + $0x80] sm:$0xff] %vm1224_vm4, %v2690_v2 }
  0x3f   : > { %2203 = vmatmul.msk.bf16.gmra.mxu1 %vm288_vm0, %v2982_v32  ;;  %1244 = vst.msk [vmem:[#allocation3 + $0x90] sm:$0xff] %vm1224_vm4, %v2690_v2 }
  0x40   : > { %1245 = vst.msk [vmem:[#allocation3 + $0x98] sm:$0xff] %vm1224_vm4, %v2690_v2 }
  0x41   : > { %1247 = vst.msk [vmem:[#allocation3 + $0xa8] sm:$0xff] %vm1224_vm4, %v2690_v2 }
  0x42   : > { %1248 = vst.msk [vmem:[#allocation3 + $0xb0] sm:$0xff] %vm1224_vm4, %v2690_v2 }
  0x43   : > { %1250 = vst.msk [vmem:[#allocation3 + $0xc0] sm:$0xff] %vm1224_vm4, %v2690_v2 }
  0x44   : > { %1251 = vst.msk [vmem:[#allocation3 + $0xc8] sm:$0xff] %vm1224_vm4, %v2690_v2 }
  0x45   : > { %1253 = vst.msk [vmem:[#allocation3 + $0xd8] sm:$0xff] %vm1224_vm4, %v2690_v2 }
  0x46   : > { %2258 = vmatmul.msk.bf16.vlgmr.msrb.gmra.mxu3 %vm288_vm0, %v696_v40  ;;  %1254 = vst.msk [vmem:[#allocation3 + $0xe0] sm:$0xff] %vm1224_vm4, %v2690_v2 }
  0x47   : > { %1228 = vst.msk [vmem:[#allocation3 + $0x10] sm:$0x1] %vm1227_vm5, %v2690_v2 }
  0x48   : > { %1231 = vst.msk [vmem:[#allocation3 + $0x28] sm:$0x1] %vm1227_vm5, %v2690_v2 }
  0x49   : > { %1234 = vst.msk [vmem:[#allocation3 + $0x40] sm:$0x1] %vm1227_vm5, %v2690_v2 }
  0x4a   : > { %1237 = vst.msk [vmem:[#allocation3 + $0x58] sm:$0x1] %vm1227_vm5, %v2690_v2 }
  0x4b   : > { %1240 = vst.msk [vmem:[#allocation3 + $0x70] sm:$0x1] %vm1227_vm5, %v2690_v2 }
  0x4c   : > { %2286 = vmatmul.msk.bf16.vlgmr.msrb.gmra.mxu0 %vm288_vm0, %v782_v47  ;;  %1243 = vst.msk [vmem:[#allocation3 + $0x88] sm:$0x1] %vm1227_vm5, %v2690_v2 }
  0x4d   : > { %1246 = vst.msk [vmem:[#allocation3 + $0xa0] sm:$0x1] %vm1227_vm5, %v2690_v2 }
  0x4e   : > { %2231 = vmatmul.msk.bf16.gmra.mxu2 %vm288_vm0, %v3004_v49  ;;  %1249 = vst.msk [vmem:[#allocation3 + $0xb8] sm:$0x1] %vm1227_vm5, %v2690_v2 }
  0x4f   : > { %2314 = vmatmul.msk.bf16.vlgmr.msrb.gmra.mxu1 %vm288_vm0, %v873_v50  ;;  %1252 = vst.msk [vmem:[#allocation3 + $0xd0] sm:$0x1] %vm1227_vm5, %v2690_v2 }
  0x50   : > { %1255 = vst.msk [vmem:[#allocation3 + $0xe8] sm:$0x1] %vm1227_vm5, %v2690_v2 }
  0x56   : > { %2259 = vmatmul.msk.bf16.gmra.mxu3 %vm288_vm0, %v697_v59 }
  0x5c   : > { %2287 = vmatmul.msk.bf16.gmra.mxu0 %vm288_vm0, %v783_v3 }
  0x5e   : > { %2232 = vmatmul.msk.bf16.gmra.mxu2 %vm288_vm0, %v606_v7 }
  0x5f   : > { %2315 = vmatmul.msk.bf16.gmra.mxu1 %vm288_vm0, %v874_v8 }
  0x66   : > { %2260 = vmatmul.msk.bf16.gmra.mxu3 %vm288_vm0, %v698_v11 }
  0x6c   : > { %2288 = vmatmul.msk.bf16.gmra.mxu0 %vm288_vm0, %v784_v21 }
  0x6e   : > { %2233 = vmatmul.msk.bf16.gmra.mxu2 %vm288_vm0, %v607_v25 }
  0x6f   : > { %2316 = vmatmul.msk.bf16.gmra.mxu1 %vm288_vm0, %v875_v26  ;;  %v2637_v26 = vld [vmem:[%s3584_s4 + $0x18] sm:$0xff] }
  0x70   : > { %1401 = vmatpush.bf16.msra.mxu1 %v2637_v26 }
  0x76   : > { %2261 = vmatmul.msk.bf16.gmra.mxu3 %vm288_vm0, %v699_v30 }
  0x7c   : > { %2289 = vmatmul.msk.bf16.gmra.mxu0 %vm288_vm0, %v785_v31  ;;  %v2636_v31 = vld [vmem:[%s3584_s4 + $0x10] sm:$0xff] }
  0x7d   : > { %1458 = vmatpush.bf16.msrb.mxu2 %v2636_v31 }
  0x7e   : > { %2342 = vmatmul.msk.bf16.vlgmr.msra.gmra.mxu2 %vm288_vm0, %v2982_v32  ;;  %v357_v32 = vld [vmem:[#allocation2 + $0xe0] sm:$0xff] }
  0x7f   : > { %2317 = vmatmul.msk.bf16.gmra.mxu1 %vm288_vm0, %v876_v35  ;;  %v962_v37 = vrot.slane %v357_v32, 7  ;;  %v1114_v45 = vrot.slane %v357_v32, 1  ;;  %v1039_v46 = vpack.c.bf16 %v357_v32, %v354_v24 }
  0x86   : > { %2370 = vmatmul.msk.bf16.vlgmr.msra.gmra.mxu3 %vm288_vm0, %v2978_v28  ;;  %v963_v28 = vsel %vm375_vm1, %v961_v36, %v962_v37  ;;  %v2635_v37 = vld [vmem:[%s3584_s4 + $0x8] sm:$0xff] }
  0x87   : > { %v965_v42 = vpack.c.bf16 %v963_v28, %v694_v27  ;;  %v2641_v28 = vld [vmem:[%s3584_s4 + $0x38] sm:$0xff]  ;;  %1459 = vmatpush.bf16.msrb.mxu2 %v2635_v37 }
  0x8c   : > { %2398 = vmatmul.msk.bf16.vlgmr.msra.gmra.mxu0 %vm288_vm0, %v3004_v49 }
  0x8e   : > { %2343 = vmatmul.msk.bf16.gmra.mxu2 %vm288_vm0, %v2882_v41 }
  0x96   : > { %2371 = vmatmul.msk.bf16.gmra.mxu3 %vm288_vm0, %v2818_v16 }
  0x9c   : > { %2399 = vmatmul.msk.bf16.gmra.mxu0 %vm288_vm0, %v606_v7 }
  0x9e   : > { %2344 = vmatmul.msk.bf16.gmra.mxu2 %vm288_vm0, %v2969_v18  ;;  %v358_v18 = vld [vmem:[#allocation2 + $0xe8] sm:$0x1] }
  0xa0   : > { %v488_v56 = vpop.f32.mrf.mxu2 }
  0xa6   : > { %2372 = vmatmul.msk.bf16.gmra.mxu3 %vm288_vm0, %v2926_v61  ;;  %v1115_v61 = vrot.slane %v358_v18, 1  ;;  %v2645_v18 = vld [vmem:[%s3584_s4 + $0x58] sm:$0xff] }
  0xa7   : > { %1652 = vmatpush.bf16.msrb.mxu0 %v2645_v18  ;;  %v1268_v18 = vld [vmem:[#allocation3 + $0x18] sm:$0xff] }
  0xa8   : > { %v3073_v39 = vpop.f32.mrf.mxu2  ;;  %v1116_v48 = vsel %vm571_vm3, %v1114_v45, %v1115_v61  ;;  %v2640_v45 = vld [vmem:[%s3584_s4 + $0x30] sm:$0xff] }
  0xa9   : > { %v478_v41 = vpop.f32.mrf.mxu0  ;;  %v553_v40 = vpop.f32.mrf.mxu3  ;;  %v1118_v49 = vpack.c.bf16 %v1116_v48, %v871_v33  ;;  %v2642_v33 = vld [vmem:[%s3584_s4 + $0x40] sm:$0xff]  ;;  %v2648_v61 = vld [vmem:[%s3584_s4 + $0x70] sm:$0xff] }
  0xaa   : > { %v3075_v16 = vadd.f32 %v553_v40, %v488_v56  ;;  %1568 = vmatpush.bf16.msrb.mxu3 %v2642_v33  ;;  %1730 = vmatpush.bf16.msrb.mxu1 %v2648_v61 }
  0xac   : > { %2400 = vmatmul.msk.bf16.gmra.mxu0 %vm288_vm0, %v607_v25  ;;  %v543_v0 = vpop.f32.mrf.mxu1 }
  0xad   : > { %v544_v38 = vadd.f32 %v543_v0, %v478_v41 }
  0xae   : > { %2345 = vmatmul.msk.bf16.gmra.mxu2 %vm288_vm0, %v965_v42  ;;  %1569 = vmatpush.bf16.msrb.mxu3 %v2641_v28 }
  0xb1   : > { %v3079_v43 = vpop.f32.mrf.mxu0  ;;  %v3081_v44 = vpop.f32.mrf.mxu3 }
  0xb2   : > { %v493_v47 = vpop.f32.mrf.mxu2  ;;  %1570 = vmatpush.bf16.msrb.mxu3 %v2640_v45 }
  0xb4   : > { %v545_v7 = vpop.f32.mrf.mxu1 }
  0xb5   : > { %v546_v35 = vadd.f32 %v545_v7, %v3079_v43  ;;  %v2634_v43 = vld [vmem:[%s3584_s4] sm:$0xff]  ;;  %v2643_v7 = vld [vmem:[%s3584_s4 + $0x48] sm:$0xff] }
  0xb6   : > { %2373 = vmatmul.msk.bf16.gmra.mxu3 %vm288_vm0, %v1039_v46  ;;  %1460 = vmatpush.bf16.msrb.mxu2 %v2634_v43 }
  0xb9   : > { %v3085_v50 = vpop.f32.mrf.mxu0  ;;  %v558_v52 = vpop.f32.mrf.mxu3 }
  0xba   : > { %v3087_v53 = vadd.f32 %v558_v52, %v493_v47  ;;  %v3089_v51 = vpop.f32.mrf.mxu2 }
  0xbc   : > { %2401 = vmatmul.msk.bf16.gmra.mxu0 %vm288_vm0, %v1118_v49  ;;  %v548_v10 = vpop.f32.mrf.mxu1 }
  0xbd   : > { %v549_v46 = vadd.f32 %v548_v10, %v3085_v50 }
  0xc1   : > { %v3092_v54 = vpop.f32.mrf.mxu0  ;;  %v3094_v57 = vpop.f32.mrf.mxu3 }
  0xc2   : > { %v662_v59 = vpop.f32.mrf.mxu2 }
  0xc3   : > { %v682_v5 = vadd.f32 %v662_v59, %v544_v38  ;;  %v2644_v59 = vld [vmem:[%s3584_s4 + $0x50] sm:$0xff] }
  0xc4   : > { %v3122_v20 = vpop.f32.mrf.mxu1  ;;  %1653 = vmatpush.bf16.msrb.mxu0 %v2644_v59 }
  0xc5   : > { %v551_v9 = vadd.f32 %v3122_v20, %v3092_v54 }
  0xc8   : > { %1654 = vmatpush.bf16.msrb.mxu0 %v2643_v7 }
  0xc9   : > { %v840_v60 = vpop.f32.mrf.mxu0  ;;  %v754_v62 = vpop.f32.mrf.mxu3 }
  0xca   : > { %v664_v63 = vpop.f32.mrf.mxu2  ;;  %v774_v15 = vadd.f32 %v754_v62, %v682_v5  ;;  %v3225_v62 = vld [vmem:[%s3582_s2] ss:$0 sm:$0xff] }
  0xcb   : > { %v683_v6 = vadd.f32 %v664_v63, %v546_v35 }
  0xcc   : > { %v931_v24 = vpop.f32.mrf.mxu1  ;;  %v860_v56 = vadd.f32 %v840_v60, %v774_v15 }
  0xce   : > { %v951_v40 = vadd.f32 %v931_v24, %v860_v56 }
  0xd1   : > { %v3099_v1 = vpop.f32.mrf.mxu0  ;;  %v756_v3 = vpop.f32.mrf.mxu3 }
  0xd2   : > { %v3101_v4 = vpop.f32.mrf.mxu2  ;;  %v775_v42 = vadd.f32 %v756_v3, %v683_v6  ;;  %v1265_v6 = vld [vmem:[#allocation3] sm:$0xff] }
  0xd3   : > { %v684_v52 = vadd.f32 %v3101_v4, %v549_v46  ;;  %v3235_v4 = vld [vmem:[%s3583_s3] ss:$0 sm:$0xff]  ;;  %v1311_v43 = vrot.slane %v1265_v6, 7 }
  0xd4   : > { %v933_v55 = vpop.f32.mrf.mxu1  ;;  %v861_v49 = vadd.f32 %v3099_v1, %v775_v42 }
  0xd6   : > { %v952_v0 = vadd.f32 %v933_v55, %v861_v49 }
  0xd9   : > { %v3103_v8 = vpop.f32.mrf.mxu0  ;;  %v3105_v34 = vpop.f32.mrf.mxu3 }
  0xda   : > { %v3110_v14 = vpop.f32.mrf.mxu2  ;;  %v776_v1 = vadd.f32 %v3105_v34, %v684_v52 }
  0xdb   : > { %v685_v24 = vadd.f32 %v3110_v14, %v551_v9  ;;  %v1266_v14 = vld [vmem:[#allocation3 + $0x8] sm:$0xff]  ;;  %v2647_v9 = vld [vmem:[%s3584_s4 + $0x68] sm:$0xff] }
  0xdc   : > { %v936_v47 = vpop.f32.mrf.mxu1  ;;  %v862_v26 = vadd.f32 %v3103_v8, %v776_v1  ;;  %v1267_v8 = vld [vmem:[#allocation3 + $0x10] sm:$0x1]  ;;  %v1490_v42 = vrot.slane %v1266_v14, 1  ;;  %1731 = vmatpush.bf16.msrb.mxu1 %v2647_v9 }
  0xdd   : > { %v1491_v45 = vrot.slane %v1267_v8, 1 }
  0xde   : > { %v953_v35 = vadd.f32 %v936_v47, %v862_v26 }
  0xe1   : > { %v3112_v11 = vpop.f32.mrf.mxu0  ;;  %v3114_v12 = vpop.f32.mrf.mxu3 }
  0xe2   : > { %v3116_v13 = vpop.f32.mrf.mxu2  ;;  %v777_v33 = vadd.f32 %v3114_v12, %v685_v24  ;;  %v1270_v12 = vld [vmem:[#allocation3 + $0x28] sm:$0x1] }
  0xe3   : > { %v686_v37 = vadd.f32 %v3116_v13, %v3075_v16  ;;  %v1314_v16 = vrot.slane %v1268_v18, 7  ;;  %v1494_v13 = vrot.slane %v1270_v12, 1  ;;  %v1276_v12 = vld [vmem:[#allocation3 + $0x58] sm:$0x1] }
  0xe4   : > { %v938_v38 = vpop.f32.mrf.mxu1 }
  0xe9   : > { %v3118_v17 = vpop.f32.mrf.mxu0  ;;  %v3120_v19 = vpop.f32.mrf.mxu3 }
  0xea   : > { %v3124_v21 = vpop.f32.mrf.mxu2  ;;  %v778_v59 = vadd.f32 %v3120_v19, %v686_v37  ;;  %v556_v19 = vadd.f32 %v3081_v44, %v3073_v39 }
  0xf1   : > { %v3126_v22 = vpop.f32.mrf.mxu0  ;;  %v3128_v23 = vpop.f32.mrf.mxu3 }
  0xf2   : > { %v3130_v25 = vpop.f32.mrf.mxu2 }
  0xf9   : > { %v3147_v27 = vpop.f32.mrf.mxu0  ;;  %v3149_v29 = vpop.f32.mrf.mxu3 }
  0xfa   : > { %v3153_v30 = vpop.f32.mrf.mxu2 }
 0x101   : > { %v3176_v32 = vpop.f32.mrf.mxu0  ;;  %v3178_v36 = vpop.f32.mrf.mxu3 }
 0x102   : > { %v1011_v41 = vpop.f32.mrf.mxu2 }
 0x103   : > { %v1031_v48 = vadd.f32 %v1011_v41, %v951_v40  ;;  %v1312_v41 = vrot.slane %v1266_v14, 7  ;;  %v863_v40 = vadd.f32 %v3112_v11, %v777_v33 }
 0x105   : > { %v1313_v11 = vsel %vm375_vm1, %v1311_v43, %v1312_v41  ;;  %v1274_v43 = vld [vmem:[#allocation3 + $0x48] sm:$0xff] }
 0x109   : > { %v1164_v50 = vpop.f32.mrf.mxu0  ;;  %v1085_v58 = vpop.f32.mrf.mxu3 }
 0x10a   : > { %v1105_v60 = vadd.f32 %v1085_v58, %v1031_v48  ;;  %v1013_v63 = vpop.f32.mrf.mxu2  ;;  %v941_v48 = vpop.f32.mrf.mxu1  ;;  %v954_v58 = vadd.f32 %v938_v38, %v863_v40  ;;  %v687_v38 = vadd.f32 %v3124_v21, %v556_v19  ;;  %v1273_v40 = vld [vmem:[#allocation3 + $0x40] sm:$0x1] }
 0x10b   : > { %v1032_v10 = vadd.f32 %v1013_v63, %v952_v0  ;;  %v1492_v63 = vsel %vm571_vm3, %v1490_v42, %v1491_v45 }
 0x10c   : > { %v1184_v3 = vadd.f32 %v1164_v50, %v1105_v60  ;;  %v779_v21 = vadd.f32 %v3128_v23, %v687_v38  ;;  %v688_v23 = vadd.f32 %v3130_v25, %v3087_v53 }
 0x10e   : > { %v1196_v34 = vmul.f32 %v3225_v62, %v1184_v3  ;;  %v865_v42 = vadd.f32 %v3126_v22, %v779_v21  ;;  %v1500_v22 = vrot.slane %v1276_v12, 1  ;;  %v780_v53 = vadd.f32 %v3149_v29, %v688_v23 }
 0x10f   : > { %v561_v29 = vadd.f32 %v3094_v57, %v3089_v51  ;;  %v1277_v57 = vld [vmem:[#allocation3 + $0x60] sm:$0xff] }
 0x110   : > { %v1208_v54 = vadd.f32 %v3235_v4, %v1196_v34  ;;  %v866_v38 = vadd.f32 %v3147_v27, %v780_v53 }
 0x111   : > { %v1166_v20 = vpop.f32.mrf.mxu0  ;;  %v1087_v5 = vpop.f32.mrf.mxu3 }
 0x112   : > { %v1216_v15 = vmax.f32 %v1208_v54, 0.0  ;;  %v1106_v55 = vadd.f32 %v1087_v5, %v1032_v10  ;;  %v1016_v31 = vpop.f32.mrf.mxu2  ;;  %v1271_v5 = vld [vmem:[#allocation3 + $0x30] sm:$0xff]  ;;  %v943_v8 = vpop.f32.mrf.mxu1 }
 0x113   : > { %v1033_v2 = vadd.f32 %v1016_v31, %v953_v35  ;;  %v1317_v35 = vrot.slane %v1271_v5, 7 }
 0x114   : > { %1257 = vst.msk [vmem:[#allocation3 + $0x20] sm:$0xff] %vm1224_vm4, %v1216_v15  ;;  %v1185_v56 = vadd.f32 %v1166_v20, %v1106_v55  ;;  %v864_v15 = vadd.f32 %v3118_v17, %v778_v59 }
 0x116   : > { %v1197_v28 = vmul.f32 %v3225_v62, %v1185_v56  ;;  %v955_v6 = vadd.f32 %v941_v48, %v864_v15  ;;  %v1497_v48 = vrot.slane %v1273_v40, 1  ;;  %v2654_v15 = vld [vmem:[%s3584_s4 + $0xa0] sm:$0xff] }
 0x117   : > { %1885 = vmatpush.bf16.msra.mxu3 %v2654_v15 }
 0x118   : > { %v1209_v61 = vadd.f32 %v3235_v4, %v1197_v28 }
 0x119   : > { %v1169_v46 = vpop.f32.mrf.mxu0  ;;  %v1090_v47 = vpop.f32.mrf.mxu3 }
 0x11a   : > { %v1217_v49 = vmax.f32 %v1209_v61, 0.0  ;;  %v1107_v52 = vadd.f32 %v1090_v47, %v1033_v2  ;;  %v1018_v50 = vpop.f32.mrf.mxu2 }
 0x11b   : > { %v3264_v60 = vld [vmem:[#allocation3 + $0x20] sm:$0xff]  ;;  %v1034_v10 = vadd.f32 %v1018_v50, %v954_v58 }
 0x11c   : > { %1258 = vst.msk [vmem:[#allocation3 + $0x38] sm:$0xff] %vm1224_vm4, %v1217_v49  ;;  %v1186_v0 = vadd.f32 %v1169_v46, %v1107_v52  ;;  %v1353_v1 = vpack.c.bf16 %v3264_v60, %v1266_v14  ;;  %v1315_v3 = vrot.slane %v3264_v60, 7  ;;  %v1493_v7 = vrot.slane %v3264_v60, 1 }
 0x11e   : > { %v1198_v34 = vmul.f32 %v3225_v62, %v1186_v0  ;;  %2420 = vmatmul.msk.bf16.vlgmr.msra.gmra.mxu1 %vm1224_vm4, %v1353_v1  ;;  %v1316_v24 = vsel %vm375_vm1, %v1314_v16, %v1315_v3  ;;  %v3281_v26 = vsel %vm571_vm3, %v1493_v7, %v1494_v13  ;;  %v1320_v16 = vrot.slane %v1274_v43, 7  ;;  %v2646_v0 = vld [vmem:[%s3584_s4 + $0x60] sm:$0xff]  ;;  %v946_v3 = vpop.f32.mrf.mxu1 }
 0x11f   : > { %v1343_v54 = vpack.c.bf16 %v1316_v24, %v1313_v11  ;;  %v1522_v20 = vpack.c.bf16 %v3281_v26, %v1492_v63  ;;  %v956_v13 = vadd.f32 %v943_v8, %v865_v42  ;;  %1732 = vmatpush.bf16.msrb.mxu1 %v2646_v0  ;;  %v1279_v8 = vld [vmem:[#allocation3 + $0x70] sm:$0x1] }
 0x120   : > { %v1210_v39 = vadd.f32 %v3235_v4, %v1198_v34 }
 0x121   : > { %v1171_v44 = vpop.f32.mrf.mxu0  ;;  %v1092_v55 = vpop.f32.mrf.mxu3  ;;  %2436 = vmatmul.msk.bf16.vlgmr.msrb.gmra.mxu2 %vm1224_vm4, %v1343_v54  ;;  %2458 = vmatmul.msk.bf16.vlgmr.msrb.gmra.mxu3 %vm1224_vm4, %v1522_v20 }
 0x122   : > { %v1218_v31 = vmax.f32 %v1210_v39, 0.0  ;;  %v1108_v33 = vadd.f32 %v1092_v55, %v1034_v10  ;;  %v1021_v14 = vpop.f32.mrf.mxu2  ;;  %v689_v10 = vadd.f32 %v3153_v30, %v561_v29  ;;  %v2651_v30 = vld [vmem:[%s3584_s4 + $0x88] sm:$0xff]  ;;  %v1323_v55 = vrot.slane %v1277_v57, 7 }
 0x123   : > { %v3290_v56 = vld [vmem:[#allocation3 + $0x38] sm:$0xff]  ;;  %v1035_v2 = vadd.f32 %v1021_v14, %v955_v6  ;;  %1813 = vmatpush.bf16.msra.mxu2 %v2651_v30  ;;  %v957_v14 = vadd.f32 %v946_v3, %v866_v38  ;;  %v1283_v38 = vld [vmem:[#allocation3 + $0x90] sm:$0xff] }
 0x124   : > { %1259 = vst.msk [vmem:[#allocation3 + $0x50] sm:$0xff] %vm1224_vm4, %v1218_v31  ;;  %v1187_v17 = vadd.f32 %v1171_v44, %v1108_v33  ;;  %v1318_v37 = vrot.slane %v3290_v56, 7  ;;  %v1496_v47 = vrot.slane %v3290_v56, 1  ;;  %v781_v31 = vadd.f32 %v3178_v36, %v689_v10 }
 0x126   : > { %v1199_v28 = vmul.f32 %v3225_v62, %v1187_v17  ;;  %v1319_v41 = vsel %vm375_vm1, %v1317_v35, %v1318_v37  ;;  %v3318_v1 = vsel %vm571_vm3, %v1496_v47, %v1497_v48  ;;  %v948_v40 = vpop.f32.mrf.mxu1 }
 0x127   : > { %v1606_v18 = vpack.c.bf16 %v1319_v41, %v1316_v24 }
 0x128   : > { %v1211_v45 = vadd.f32 %v3235_v4, %v1199_v28  ;;  %v867_v28 = vadd.f32 %v3176_v32, %v781_v31  ;;  %v2653_v32 = vld [vmem:[%s3584_s4 + $0x98] sm:$0xff] }
 0x129   : > { %v1174_v61 = vpop.f32.mrf.mxu0  ;;  %v1095_v46 = vpop.f32.mrf.mxu3  ;;  %2480 = vmatmul.msk.bf16.vlgmr.msrb.gmra.mxu0 %vm1224_vm4, %v1606_v18  ;;  %v1503_v18 = vrot.slane %v1279_v8, 1  ;;  %1886 = vmatpush.bf16.msra.mxu3 %v2653_v32 }
 0x12a   : > { %v1219_v49 = vmax.f32 %v1211_v45, 0.0  ;;  %v1109_v52 = vadd.f32 %v1095_v46, %v1035_v2  ;;  %v1023_v50 = vpop.f32.mrf.mxu2  ;;  %v1280_v2 = vld [vmem:[#allocation3 + $0x78] sm:$0xff]  ;;  %v2650_v45 = vld [vmem:[%s3584_s4 + $0x80] sm:$0xff] }
 0x12b   : > { %v3303_v25 = vld [vmem:[#allocation3 + $0x50] sm:$0xff]  ;;  %v1036_v9 = vadd.f32 %v1023_v50, %v956_v13  ;;  %v1326_v48 = vrot.slane %v1280_v2, 7  ;;  %1814 = vmatpush.bf16.msra.mxu2 %v2650_v45 }
 0x12c   : > { %1260 = vst.msk [vmem:[#allocation3 + $0x68] sm:$0xff] %vm1224_vm4, %v1219_v49  ;;  %v1188_v58 = vadd.f32 %v1174_v61, %v1109_v52  ;;  %v3308_v59 = vpack.c.bf16 %v3303_v25, %v3290_v56  ;;  %v1321_v11 = vrot.slane %v3303_v25, 7  ;;  %v1499_v63 = vrot.slane %v3303_v25, 1  ;;  %v2657_v61 = vld [vmem:[%s3584_s4 + $0xb8] sm:$0xff] }
 0x12d   : > { %v958_v52 = vadd.f32 %v948_v40, %v867_v28  ;;  %1951 = vmatpush.bf16.msra.mxu0 %v2657_v61 }
 0x12e   : > { %v1200_v7 = vmul.f32 %v3225_v62, %v1188_v58  ;;  %2421 = vmatmul.msk.bf16.gmra.mxu1 %vm1224_vm4, %v3308_v59  ;;  %v1322_v19 = vsel %vm375_vm1, %v1320_v16, %v1321_v11  ;;  %v3325_v34 = vsel %vm571_vm3, %v1499_v63, %v1500_v22 }
 0x12f   : > { %v3328_v24 = vpack.c.bf16 %v1322_v19, %v1319_v41  ;;  %v3332_v51 = vpack.c.bf16 %v3325_v34, %v3318_v1  ;;  %v1282_v41 = vld [vmem:[#allocation3 + $0x88] sm:$0x1] }
 0x130   : > { %v1212_v54 = vadd.f32 %v3235_v4, %v1200_v7  ;;  %v1506_v49 = vrot.slane %v1282_v41, 1  ;;  %v2649_v7 = vld [vmem:[%s3584_s4 + $0x78] sm:$0xff] }
 0x131   : > { %v1176_v20 = vpop.f32.mrf.mxu0  ;;  %v1097_v5 = vpop.f32.mrf.mxu3  ;;  %2437 = vmatmul.msk.bf16.gmra.mxu2 %vm1224_vm4, %v3328_v24  ;;  %2459 = vmatmul.msk.bf16.gmra.mxu3 %vm1224_vm4, %v3332_v51 }
 0x132   : > { %v1220_v39 = vmax.f32 %v1212_v54, 0.0  ;;  %v1110_v27 = vadd.f32 %v1097_v5, %v1036_v9  ;;  %v1026_v44 = vpop.f32.mrf.mxu2  ;;  %v2652_v9 = vld [vmem:[%s3584_s4 + $0x90] sm:$0xff]  ;;  %1815 = vmatpush.bf16.msra.mxu2 %v2649_v7 }
 0x133   : > { %v3347_v33 = vld [vmem:[#allocation3 + $0x68] sm:$0xff]  ;;  %v1037_v17 = vadd.f32 %v1026_v44, %v957_v14  ;;  %1887 = vmatpush.bf16.msra.mxu3 %v2652_v9  ;;  %v2656_v5 = vld [vmem:[%s3584_s4 + $0xb0] sm:$0xff] }
 0x134   : > { %1261 = vst.msk [vmem:[#allocation3 + $0x80] sm:$0xff] %vm1224_vm4, %v1220_v39  ;;  %v1189_v35 = vadd.f32 %v1176_v20, %v1110_v27  ;;  %v1324_v21 = vrot.slane %v3347_v33, 7  ;;  %v1502_v23 = vrot.slane %v3347_v33, 1  ;;  %v1329_v39 = vrot.slane %v1283_v38, 7  ;;  %1952 = vmatpush.bf16.msra.mxu0 %v2656_v5 }
 0x136   : > { %v1201_v6 = vmul.f32 %v3225_v62, %v1189_v35  ;;  %v1325_v37 = vsel %vm375_vm1, %v1323_v55, %v1324_v21  ;;  %v3376_v11 = vsel %vm571_vm3, %v1502_v23, %v1503_v18  ;;  %v2655_v55 = vld [vmem:[%s3584_s4 + $0xa8] sm:$0xff] }
 0x137   : > { %v1607_v36 = vpack.c.bf16 %v1325_v37, %v1322_v19  ;;  %v2660_v19 = vld [vmem:[%s3584_s4 + $0xd0] sm:$0xff] }
 0x138   : > { %v1213_v42 = vadd.f32 %v3235_v4, %v1201_v6  ;;  %2022 = vmatpush.bf16.msra.mxu1 %v2660_v19  ;;  %v1285_v6 = vld [vmem:[#allocation3 + $0xa0] sm:$0x1]  ;;  %1953 = vmatpush.bf16.msra.mxu0 %v2655_v55 }
 0x139   : > { %v1179_v43 = vpop.f32.mrf.mxu0  ;;  %v1100_v12 = vpop.f32.mrf.mxu3  ;;  %2481 = vmatmul.msk.bf16.gmra.mxu0 %vm1224_vm4, %v1607_v36  ;;  %v1509_v2 = vrot.slane %v1285_v6, 1 }
 0x13a   : > { %v1221_v46 = vmax.f32 %v1213_v42, 0.0  ;;  %v1111_v47 = vadd.f32 %v1100_v12, %v1037_v17  ;;  %v1028_v16 = vpop.f32.mrf.mxu2  ;;  %v1286_v17 = vld [vmem:[#allocation3 + $0xa8] sm:$0xff] }
 0x13b   : > { %v3366_v50 = vld [vmem:[#allocation3 + $0x80] sm:$0xff]  ;;  %v1038_v29 = vadd.f32 %v1028_v16, %v958_v52  ;;  %v1332_v41 = vrot.slane %v1286_v17, 7 }
 0x13c   : > { %1262 = vst.msk [vmem:[#allocation3 + $0x98] sm:$0xff] %vm1224_vm4, %v1221_v46  ;;  %v1190_v22 = vadd.f32 %v1179_v43, %v1111_v47  ;;  %v1327_v13 = vrot.slane %v3366_v50, 7  ;;  %v3372_v53 = vpack.c.bf16 %v3366_v50, %v3347_v33  ;;  %v1505_v58 = vrot.slane %v3366_v50, 1  ;;  %v1289_v46 = vld [vmem:[#allocation3 + $0xc0] sm:$0xff]  ;;  %v2659_v47 = vld [vmem:[%s3584_s4 + $0xc8] sm:$0xff] }
 0x13d   : > { %2023 = vmatpush.bf16.msra.mxu1 %v2659_v47 }
 0x13e   : > { %v1202_v63 = vmul.f32 %v3225_v62, %v1190_v22  ;;  %v1328_v0 = vsel %vm375_vm1, %v1326_v48, %v1327_v13  ;;  %2422 = vmatmul.msk.bf16.gmra.mxu1 %vm1224_vm4, %v3372_v53  ;;  %v3383_v3 = vsel %vm571_vm3, %v1505_v58, %v1506_v49  ;;  %v1602_v48 = vrot.slane %v1289_v46, 7 }
 0x13f   : > { %v3394_v10 = vpack.c.bf16 %v1328_v0, %v1325_v37  ;;  %v3398_v57 = vpack.c.bf16 %v3383_v3, %v3376_v11  ;;  %v1288_v37 = vld [vmem:[#allocation3 + $0xb8] sm:$0x1]  ;;  %v1684_v13 = vpack.c.bf16 %v3290_v56, %v3264_v60  ;;  %v1767_v58 = vpack.c.bf16 %v3318_v1, %v3281_v26 }
 0x140   : > { %v1214_v54 = vadd.f32 %v3235_v4, %v1202_v63  ;;  %v1512_v42 = vrot.slane %v1288_v37, 1  ;;  %v2658_v63 = vld [vmem:[%s3584_s4 + $0xc0] sm:$0xff]  ;;  %v1685_v60 = vpack.c.bf16 %v3347_v33, %v3303_v25  ;;  %v1768_v26 = vpack.c.bf16 %v3376_v11, %v3325_v34  ;;  %v1292_v1 = vld [vmem:[#allocation3 + $0xd8] sm:$0xff]  ;;  %v1293_v34 = vld [vmem:[#allocation3 + $0xe0] sm:$0xff] }
 0x141   : > { %v1102_v20 = vpop.f32.mrf.mxu3  ;;  %2438 = vmatmul.msk.bf16.gmra.mxu2 %vm1224_vm4, %v3394_v10  ;;  %2460 = vmatmul.msk.bf16.gmra.mxu3 %vm1224_vm4, %v3398_v57  ;;  %v1181_v27 = vpop.f32.mrf.mxu0  ;;  %v1291_v25 = vld [vmem:[#allocation3 + $0xd0] sm:$0x1]  ;;  %v1847_v11 = vrot.slane %v1292_v1, 7 }
 0x142   : > { %v1222_v30 = vmax.f32 %v1214_v54, 0.0  ;;  %v1112_v15 = vadd.f32 %v1102_v20, %v1038_v29  ;;  %2024 = vmatpush.bf16.msra.mxu1 %v2658_v63  ;;  %v1764_v33 = vrot.slane %v1291_v25, 1 }
 0x143   : > { %v1284_v44 = vld [vmem:[#allocation3 + $0x98] sm:$0xff] }
 0x144   : > { %1263 = vst.msk [vmem:[#allocation3 + $0xb0] sm:$0xff] %vm1224_vm4, %v1222_v30  ;;  %v1191_v31 = vadd.f32 %v1181_v27, %v1112_v15  ;;  %v1330_v14 = vrot.slane %v1284_v44, 7  ;;  %v1508_v40 = vrot.slane %v1284_v44, 1  ;;  %v1686_v56 = vpack.c.bf16 %v1284_v44, %v3366_v50 }
 0x146   : > { %v1203_v35 = vmul.f32 %v3225_v62, %v1191_v31  ;;  %v1331_v21 = vsel %vm375_vm1, %v1329_v39, %v1330_v14  ;;  %v1510_v45 = vsel %vm571_vm3, %v1508_v40, %v1509_v2  ;;  %v1984_v14 = vrot.slane %v1293_v34, 1 }
 0x147   : > { %v1608_v8 = vpack.c.bf16 %v1331_v21, %v1328_v0  ;;  %v1848_v0 = vrot.slane %v1293_v34, 7 }
 0x148   : > { %v1215_v28 = vadd.f32 %v3235_v4, %v1203_v35 }
 0x149   : > { %2482 = vmatmul.msk.bf16.gmra.mxu0 %vm1224_vm4, %v1608_v8  ;;  %v1849_v29 = vsel %vm375_vm1, %v1847_v11, %v1848_v0 }
 0x14a   : > { %v1223_v36 = vmax.f32 %v1215_v28, 0.0 }
 0x14b   : > { %v1287_v23 = vld [vmem:[#allocation3 + $0xb0] sm:$0xff] }
 0x14c   : > { %1264 = vst.msk [vmem:[#allocation3 + $0xc8] sm:$0xff] %vm1224_vm4, %v1223_v36  ;;  %v1333_v62 = vrot.slane %v1287_v23, 7  ;;  %v1356_v18 = vpack.c.bf16 %v1287_v23, %v1284_v44  ;;  %v1511_v43 = vrot.slane %v1287_v23, 1  ;;  %v1294_v44 = vld [vmem:[#allocation3 + $0xe8] sm:$0x1] }
 0x14d   : > { %v1985_v35 = vrot.slane %v1294_v44, 1 }
 0x14e   : > { %2423 = vmatmul.msk.bf16.gmra.mxu1 %vm1224_vm4, %v1356_v18  ;;  %v1334_v12 = vsel %vm375_vm1, %v1332_v41, %v1333_v62  ;;  %v1513_v4 = vsel %vm571_vm3, %v1511_v43, %v1512_v42 }
 0x14f   : > { %v1346_v32 = vpack.c.bf16 %v1334_v12, %v1331_v21  ;;  %v1525_v61 = vpack.c.bf16 %v1513_v4, %v1510_v45 }
 0x151   : > { %2439 = vmatmul.msk.bf16.gmra.mxu2 %vm1224_vm4, %v1346_v32  ;;  %2461 = vmatmul.msk.bf16.gmra.mxu3 %vm1224_vm4, %v1525_v61 }
 0x153   : > { %v1290_v49 = vld [vmem:[#allocation3 + $0xc8] sm:$0xff] }
 0x154   : > { %v1603_v52 = vrot.slane %v1290_v49, 7  ;;  %v1917_v9 = vpack.c.bf16 %v1293_v34, %v1290_v49 }
 0x156   : > { %v1604_v16 = vsel %vm375_vm1, %v1602_v48, %v1603_v52 }
 0x157   : > { %v1609_v22 = vpack.c.bf16 %v1604_v16, %v1334_v12  ;;  %v1851_v7 = vpack.c.bf16 %v1849_v29, %v1604_v16 }
 0x159   : > { %2483 = vmatmul.msk.bf16.gmra.mxu0 %vm1224_vm4, %v1609_v22 }
 0x15e   : > { %2502 = vmatmul.msk.bf16.vlgmr.msrb.gmra.mxu1 %vm1224_vm4, %v1684_v13 }
 0x161   : > { %2524 = vmatmul.msk.bf16.vlgmr.msra.gmra.mxu2 %vm1224_vm4, %v1767_v58  ;;  %2546 = vmatmul.msk.bf16.vlgmr.msra.gmra.mxu3 %vm1224_vm4, %v3328_v24  ;;  %v1763_v24 = vrot.slane %v1290_v49, 1 }
 0x163   : > { %v1765_v50 = vsel %vm571_vm3, %v1763_v24, %v1764_v33 }
 0x169   : > { %2568 = vmatmul.msk.bf16.vlgmr.msra.gmra.mxu0 %vm1224_vm4, %v3308_v59  ;;  %v1769_v59 = vpack.c.bf16 %v1510_v45, %v3383_v3  ;;  %v1770_v3 = vpack.c.bf16 %v1765_v50, %v1513_v4 }
 0x16e   : > { %2503 = vmatmul.msk.bf16.gmra.mxu1 %vm1224_vm4, %v1685_v60 }
 0x171   : > { %2525 = vmatmul.msk.bf16.gmra.mxu2 %vm1224_vm4, %v1768_v26  ;;  %2547 = vmatmul.msk.bf16.gmra.mxu3 %vm1224_vm4, %v3394_v10 }
 0x179   : > { %2569 = vmatmul.msk.bf16.gmra.mxu0 %vm1224_vm4, %v3372_v53  ;;  %v1687_v53 = vpack.c.bf16 %v1290_v49, %v1287_v23 }
 0x17e   : > { %2504 = vmatmul.msk.bf16.gmra.mxu1 %vm1224_vm4, %v1686_v56 }
 0x181   : > { %2526 = vmatmul.msk.bf16.gmra.mxu2 %vm1224_vm4, %v1769_v59  ;;  %2548 = vmatmul.msk.bf16.gmra.mxu3 %vm1224_vm4, %v1346_v32 }
 0x189   : > { %2570 = vmatmul.msk.bf16.gmra.mxu0 %vm1224_vm4, %v1356_v18 }
 0x18e   : > { %2505 = vmatmul.msk.bf16.gmra.mxu1 %vm1224_vm4, %v1687_v53 }
 0x191   : > { %2527 = vmatmul.msk.bf16.gmra.mxu2 %vm1224_vm4, %v1770_v3  ;;  %2549 = vmatmul.msk.bf16.gmra.mxu3 %vm1224_vm4, %v1851_v7 }
 0x199   : > { %2571 = vmatmul.msk.bf16.gmra.mxu0 %vm1224_vm4, %v1917_v9 }
 0x19b   : > { %v1403_v19 = vpop.f32.mrf.mxu1 }
 0x19e   : > { %2590 = vmatmul.msk.bf16.vlgmr.msra.gmra.mxu1 %vm1224_vm4, %v3332_v51 }
 0x1a3   : > { %v1405_v10 = vpop.f32.mrf.mxu1 }
 0x1a4   : > { %v1462_v54 = vpop.f32.mrf.mxu2  ;;  %v1572_v5 = vpop.f32.mrf.mxu3 }
 0x1a5   : > { %v1463_v13 = vadd.f32 %v1462_v54, %v1403_v19 }
 0x1a6   : > { %v1656_v30 = vpop.f32.mrf.mxu0 }
 0x1a7   : > { %v1592_v63 = vadd.f32 %v1572_v5, %v1463_v13 }
 0x1a9   : > { %v1676_v59 = vadd.f32 %v1656_v30, %v1592_v63 }
 0x1ab   : > { %v1408_v38 = vpop.f32.mrf.mxu1 }
 0x1ac   : > { %v1464_v15 = vpop.f32.mrf.mxu2  ;;  %v1574_v27 = vpop.f32.mrf.mxu3 }
 0x1ad   : > { %v1465_v25 = vadd.f32 %v1464_v15, %v1405_v10  ;;  %v3517_v10 = vld [vmem:[%s3585_s5] ss:$0 sm:$0xff] }
 0x1ae   : > { %2591 = vmatmul.msk.bf16.gmra.mxu1 %vm1224_vm4, %v3398_v57  ;;  %v1658_v51 = vpop.f32.mrf.mxu0  ;;  %v1986_v57 = vsel %vm571_vm3, %v1984_v14, %v1985_v35 }
 0x1af   : > { %v1988_v8 = vpack.c.bf16 %v1986_v57, %v1765_v50  ;;  %v1593_v24 = vadd.f32 %v1574_v27, %v1465_v25  ;;  %v3522_v27 = vld [vmem:[%s3586_s6] ss:$0 sm:$0xff] }
 0x1b1   : > { %v1677_v50 = vadd.f32 %v1658_v51, %v1593_v24 }
 0x1b3   : > { %v3467_v20 = vpop.f32.mrf.mxu1 }
 0x1b4   : > { %v1467_v31 = vpop.f32.mrf.mxu2  ;;  %v1577_v21 = vpop.f32.mrf.mxu3 }
 0x1b5   : > { %v1468_v29 = vadd.f32 %v1467_v31, %v1408_v38 }
 0x1b6   : > { %v1661_v17 = vpop.f32.mrf.mxu0 }
 0x1b7   : > { %v1594_v9 = vadd.f32 %v1577_v21, %v1468_v29 }
 0x1b9   : > { %v1678_v38 = vadd.f32 %v1661_v17, %v1594_v9 }
 0x1bb   : > { %v3469_v39 = vpop.f32.mrf.mxu1 }
 0x1bc   : > { %v1469_v37 = vpop.f32.mrf.mxu2  ;;  %v1579_v2 = vpop.f32.mrf.mxu3 }
 0x1bd   : > { %v1470_v44 = vadd.f32 %v1469_v37, %v3467_v20 }
 0x1be   : > { %2592 = vmatmul.msk.bf16.gmra.mxu1 %vm1224_vm4, %v1525_v61  ;;  %v3480_v36 = vpop.f32.mrf.mxu0 }
 0x1c3   : > { %v3472_v55 = vpop.f32.mrf.mxu1 }
 0x1c4   : > { %v3482_v41 = vpop.f32.mrf.mxu2  ;;  %v3484_v42 = vpop.f32.mrf.mxu3 }
 0x1c5   : > { %v1473_v13 = vadd.f32 %v3482_v41, %v3469_v39 }
 0x1c6   : > { %v3486_v23 = vpop.f32.mrf.mxu0 }
 0x1c7   : > { %v1596_v25 = vadd.f32 %v3484_v42, %v1473_v13 }
 0x1cb   : > { %v3475_v6 = vpop.f32.mrf.mxu1 }
 0x1cc   : > { %v3488_v62 = vpop.f32.mrf.mxu2  ;;  %v3490_v43 = vpop.f32.mrf.mxu3 }
 0x1cd   : > { %v1475_v39 = vadd.f32 %v3488_v62, %v3472_v55 }
 0x1ce   : > { %2593 = vmatmul.msk.bf16.gmra.mxu1 %vm1224_vm4, %v1988_v8  ;;  %v3492_v45 = vpop.f32.mrf.mxu0  ;;  %v1595_v8 = vadd.f32 %v1579_v2, %v1470_v44 }
 0x1cf   : > { %v1597_v29 = vadd.f32 %v3490_v43, %v1475_v39 }
 0x1d1   : > { %v1681_v55 = vadd.f32 %v3492_v45, %v1597_v29 }
 0x1d3   : > { %v3478_v28 = vpop.f32.mrf.mxu1 }
 0x1d4   : > { %v3494_v4 = vpop.f32.mrf.mxu2  ;;  %v3496_v32 = vpop.f32.mrf.mxu3 }
 0x1d5   : > { %v1478_v62 = vadd.f32 %v3494_v4, %v3475_v6 }
 0x1d6   : > { %v3498_v46 = vpop.f32.mrf.mxu0 }
 0x1d7   : > { %v1598_v44 = vadd.f32 %v3496_v32, %v1478_v62 }
 0x1d9   : > { %v1682_v6 = vadd.f32 %v3498_v46, %v1598_v44 }
 0x1db   : > { %v1734_v40 = vpop.f32.mrf.mxu1 }
 0x1dc   : > { %v3500_v47 = vpop.f32.mrf.mxu2  ;;  %v3504_v49 = vpop.f32.mrf.mxu3  ;;  %v1754_v1 = vadd.f32 %v1734_v40, %v1676_v59 }
 0x1dd   : > { %v1480_v4 = vadd.f32 %v3500_v47, %v3478_v28 }
 0x1de   : > { %v3506_v52 = vpop.f32.mrf.mxu0 }
 0x1e3   : > { %v1736_v18 = vpop.f32.mrf.mxu1 }
 0x1e4   : > { %v1817_v16 = vpop.f32.mrf.mxu2  ;;  %v1889_v58 = vpop.f32.mrf.mxu3  ;;  %v1755_v7 = vadd.f32 %v1736_v18, %v1677_v50 }
 0x1e5   : > { %v1837_v33 = vadd.f32 %v1817_v16, %v1754_v1 }
 0x1e6   : > { %v1955_v60 = vpop.f32.mrf.mxu0 }
 0x1e7   : > { %v1909_v3 = vadd.f32 %v1889_v58, %v1837_v33 }
 0x1e9   : > { %v1975_v19 = vadd.f32 %v1955_v60, %v1909_v3 }
 0x1eb   : > { %v1739_v12 = vpop.f32.mrf.mxu1 }
 0x1ec   : > { %v1819_v26 = vpop.f32.mrf.mxu2  ;;  %v1891_v34 = vpop.f32.mrf.mxu3  ;;  %v1756_v57 = vadd.f32 %v1739_v12, %v1678_v38  ;;  %v1679_v12 = vadd.f32 %v3480_v36, %v1595_v8 }
 0x1ed   : > { %v1838_v54 = vadd.f32 %v1819_v26, %v1755_v7 }
 0x1ee   : > { %v1957_v0 = vpop.f32.mrf.mxu0 }
 0x1ef   : > { %v1910_v51 = vadd.f32 %v1891_v34, %v1838_v54 }
 0x1f1   : > { %v1976_v40 = vadd.f32 %v1957_v0, %v1910_v51  ;;  %v1680_v0 = vadd.f32 %v3486_v23, %v1596_v25 }
 0x1f3   : > { %v1741_v61 = vpop.f32.mrf.mxu1 }
 0x1f4   : > { %v1822_v53 = vpop.f32.mrf.mxu2  ;;  %v1894_v5 = vpop.f32.mrf.mxu3  ;;  %v1757_v60 = vadd.f32 %v1741_v61, %v1679_v12 }
 0x1f5   : > { %v1839_v17 = vadd.f32 %v1822_v53, %v1756_v57 }
 0x1f6   : > { %v1960_v31 = vpop.f32.mrf.mxu0 }
 0x1f7   : > { %v1911_v58 = vadd.f32 %v1894_v5, %v1839_v17  ;;  %v1599_v17 = vadd.f32 %v3504_v49, %v1480_v4 }
 0x1f9   : > { %v1977_v1 = vadd.f32 %v1960_v31, %v1911_v58  ;;  %v1683_v13 = vadd.f32 %v3506_v52, %v1599_v17 }
 0x1fb   : > { %v3502_v48 = vpop.f32.mrf.mxu1 }
 0x1fc   : > { %v1824_v35 = vpop.f32.mrf.mxu2  ;;  %v1896_v16 = vpop.f32.mrf.mxu3  ;;  %v1758_v50 = vadd.f32 %v3502_v48, %v1680_v0 }
 0x1fd   : > { %v1840_v34 = vadd.f32 %v1824_v35, %v1757_v60 }
 0x1fe   : > { %v1962_v26 = vpop.f32.mrf.mxu0 }
 0x1ff   : > { %v1912_v41 = vadd.f32 %v1896_v16, %v1840_v34 }
 0x201   : > { %v1978_v3 = vadd.f32 %v1962_v26, %v1912_v41 }
 0x203   : > { %v3508_v22 = vpop.f32.mrf.mxu1 }
 0x204   : > { %v1827_v59 = vpop.f32.mrf.mxu2  ;;  %v1899_v53 = vpop.f32.mrf.mxu3 }
 0x205   : > { %v1841_v7 = vadd.f32 %v1827_v59, %v1758_v50 }
 0x206   : > { %v1965_v9 = vpop.f32.mrf.mxu0 }
 0x20b   : > { %v3510_v56 = vpop.f32.mrf.mxu1 }
 0x20c   : > { %v1829_v54 = vpop.f32.mrf.mxu2  ;;  %v1901_v38 = vpop.f32.mrf.mxu3 }
 0x20e   : > { %v1967_v57 = vpop.f32.mrf.mxu0 }
 0x213   : > { %v3512_v11 = vpop.f32.mrf.mxu1 }
 0x214   : > { %v1904_v16 = vpop.f32.mrf.mxu3 }
 0x216   : > { %v1970_v58 = vpop.f32.mrf.mxu0 }
 0x21b   : > { %v2026_v30 = vpop.f32.mrf.mxu1 }
 0x21c   : > { %v2046_v15 = vadd.f32 %v2026_v30, %v1975_v19  ;;  %v1913_v30 = vadd.f32 %v1899_v53, %v1841_v7 }
 0x21e   : > { %v2058_v14 = vmul.f32 %v3517_v10, %v2046_v15  ;;  %v1759_v15 = vadd.f32 %v3508_v22, %v1681_v55  ;;  %v1979_v51 = vadd.f32 %v1965_v9, %v1913_v30 }
 0x220   : > { %v2070_v21 = vadd.f32 %v3522_v27, %v2058_v14  ;;  %v1842_v31 = vadd.f32 %v1829_v54, %v1759_v15 }
 0x222   : > { %v2078_v18 = vmax.f32 %v2070_v21, 0.0  ;;  %v1832_v21 = vpop.f32.mrf.mxu2  ;;  %v1914_v22 = vadd.f32 %v1901_v38, %v1842_v31 }
 0x223   : > { %v2028_v20 = vpop.f32.mrf.mxu1 }
 0x224   : > { %2086 = vst [vmem:[%s3532_s27] sm:$0xff] %v2078_v18  ;;  %v2047_v37 = vadd.f32 %v2028_v20, %v1976_v40  ;;  %v1760_v40 = vadd.f32 %v3510_v56, %v1682_v6  ;;  %v1980_v18 = vadd.f32 %v1967_v57, %v1914_v22  ;;  %v1761_v56 = vadd.f32 %v3512_v11, %v1683_v13 }
 0x226   : > { %v2059_v63 = vmul.f32 %v3517_v10, %v2047_v37  ;;  %v1843_v20 = vadd.f32 %v1832_v21, %v1760_v40 }
 0x228   : > { %v2071_v2 = vadd.f32 %v3522_v27, %v2059_v63  ;;  %v1915_v28 = vadd.f32 %v1904_v16, %v1843_v20 }
 0x22a   : > { %v2079_v24 = vmax.f32 %v2071_v2, 0.0  ;;  %v1834_v63 = vpop.f32.mrf.mxu2  ;;  %v1981_v60 = vadd.f32 %v1970_v58, %v1915_v28 }
 0x22b   : > { %v2031_v33 = vpop.f32.mrf.mxu1  ;;  %v1844_v26 = vadd.f32 %v1834_v63, %v1761_v56 }
 0x22c   : > { %2087 = vst [vmem:[%s3532_s27 + $0x8] sm:$0xff] %v2079_v24  ;;  %v2048_v36 = vadd.f32 %v2031_v33, %v1977_v1  ;;  %v1906_v1 = vpop.f32.mrf.mxu3  ;;  %v1972_v33 = vpop.f32.mrf.mxu0 }
 0x22d   : > { %v1916_v34 = vadd.f32 %v1906_v1, %v1844_v26 }
 0x22e   : > { %v2060_v61 = vmul.f32 %v3517_v10, %v2048_v36 }
 0x22f   : > { %v1982_v36 = vadd.f32 %v1972_v33, %v1916_v34 }
 0x230   : > { %v2072_v42 = vadd.f32 %v3522_v27, %v2060_v61 }
 0x232   : > { %v2080_v19 = vmax.f32 %v2072_v42, 0.0 }
 0x233   : > { %v2033_v23 = vpop.f32.mrf.mxu1 }
 0x234   : > { %2088 = vst [vmem:[%s3532_s27 + $0x10] sm:$0xff] %v2080_v19  ;;  %v2049_v5 = vadd.f32 %v2033_v23, %v1978_v3 }
 0x236   : > { %v2061_v48 = vmul.f32 %v3517_v10, %v2049_v5 }
 0x238   : > { %v2073_v43 = vadd.f32 %v3522_v27, %v2061_v48 }
 0x23a   : > { %v2081_v14 = vmax.f32 %v2073_v43, 0.0 }
 0x23b   : > { %v2036_v35 = vpop.f32.mrf.mxu1 }
 0x23c   : > { %2089 = vst [vmem:[%s3532_s27 + $0x18] sm:$0xff] %v2081_v14  ;;  %v2050_v45 = vadd.f32 %v2036_v35, %v1979_v51 }
 0x23e   : > { %v2062_v8 = vmul.f32 %v3517_v10, %v2050_v45 }
 0x240   : > { %v2074_v32 = vadd.f32 %v3522_v27, %v2062_v8 }
 0x242   : > { %v2082_v37 = vmax.f32 %v2074_v32, 0.0 }
 0x243   : > { %v2038_v12 = vpop.f32.mrf.mxu1 }
 0x244   : > { %2090 = vst [vmem:[%s3532_s27 + $0x20] sm:$0xff] %v2082_v37  ;;  %v2051_v46 = vadd.f32 %v2038_v12, %v1980_v18 }
 0x246   : > { %v2063_v47 = vmul.f32 %v3517_v10, %v2051_v46 }
 0x248   : > { %v2075_v49 = vadd.f32 %v3522_v27, %v2063_v47 }
 0x24a   : > { %v2083_v2 = vmax.f32 %v2075_v49, 0.0 }
 0x24b   : > { %v2041_v59 = vpop.f32.mrf.mxu1 }
 0x24c   : > { %2091 = vst [vmem:[%s3532_s27 + $0x28] sm:$0xff] %v2083_v2  ;;  %v2052_v25 = vadd.f32 %v2041_v59, %v1981_v60 }
 0x24e   : > { %v2064_v52 = vmul.f32 %v3517_v10, %v2052_v25 }
 0x250   : > { %v2076_v24 = vadd.f32 %v3522_v27, %v2064_v52 }
 0x252   : > { %v2084_v0 = vmax.f32 %v2076_v24, 0.0 }
 0x253   : > { %v2043_v11 = vpop.f32.mrf.mxu1 }
 0x254   : > { %2092 = vst [vmem:[%s3532_s27 + $0x30] sm:$0xff] %v2084_v0  ;;  %v2053_v39 = vadd.f32 %v2043_v11, %v1982_v36 }
 0x256   : > { %v2065_v41 = vmul.f32 %v3517_v10, %v2053_v39 }
 0x258   : > { %v2077_v61 = vadd.f32 %v3522_v27, %v2065_v41 }
 0x25a   : > { %v2085_v53 = vmax.f32 %v2077_v61, 0.0 }
 0x25c   : > { %2093 = vst [vmem:[%s3532_s27 + $0x38] sm:$0xff] %v2085_v53 }
 0x25d PF: > { %s17_s24 = sadd.s32 1, %s2688_s24  }
 0x25e   : > { %p14_p4 = scmp.ge.s32.totalorder %s17_s24, 4  }
 0x260   :  { %16 = sbr.rel (!%p14_p4) target bundleno = 1 (0x1), region = 96 }

// kernel: saunet_tail.3
= control target key start
LH: loop header
LB: loop body
LE: loop exit
PB: predicated region body
PF: predicated region fallthrough
CT: control target
= control target key end

     0   :  { %s6438_s21 = smov 0   ;;  %s9778_s0 = inlined_call_operand.vmem [shape: f32[2,16,16,32], index: 0, kind: input, shape index: {}]   ;;  %s9779_s1 = inlined_call_operand.vmem [shape: f32[2,16,16,1], index: 1, kind: input, shape index: {}]   ;;  %s9780_s2 = inlined_call_operand.vmem [shape: f32[2,16,16,1], index: 2, kind: input, shape index: {}]   ;;  %s9781_s3 = inlined_call_operand.vmem [shape: f32[1,1,1,2], index: 3, kind: input, shape index: {}]   ;;  %s9782_s4 = inlined_call_operand.vmem [shape: f32[1,1,1,32], index: 4, kind: input, shape index: {}]   ;;  %s9783_s5 = inlined_call_operand.vmem [shape: f32[1,1,1,32], index: 5, kind: input, shape index: {}]   ;;  %s9784_s6 = inlined_call_operand.vmem [shape: bf16[9,32,32], index: 6, kind: input, shape index: {}]   ;;  %s9785_s7 = inlined_call_operand.vmem [shape: bf16[9,32,32], index: 7, kind: input, shape index: {}]   ;;  %s9786_s8 = inlined_call_operand.vmem [shape: f32[1,32], index: 8, kind: input, shape index: {}]   ;;  %s9787_s9 = inlined_call_operand.vmem [shape: f32[1,32], index: 9, kind: input, shape index: {}]   ;;  %s9788_s10 = inlined_call_operand.vmem [shape: bf16[32,4], index: 10, kind: input, shape index: {}]   ;;  %s9789_s11 = inlined_call_operand.vmem [shape: f32[1,4], index: 11, kind: input, shape index: {}]   ;;  %s9790_s12 = inlined_call_operand.vmem [shape: f32[2,256,4], index: 12, kind: output, shape index: {}]  }
   0x1 LB: > { %s5576_s22 = sadd.s32 4294967295, %s6367_s21   ;;  %p5580_p0 = scmp.ge.s32.totalorder %s6367_s21, 1  ;;  %s6367_s21 = sphi %s6438_s21, %s22_s21  }
   0x2   : > { %p382_p1 = scmp.lt.s32.totalorder %s6367_s21, 3 }
   0x4   : > { %p383_p2 = pnand %p5580_p0, %p382_p1 }
   0x6   : > { %386 = sbr.rel (%p383_p2) target bundleno = 2115 (0x843), region = 68 }
   0xb   : > { %p434_p3 = scmp.lt.s32.totalorder %s5576_s22, 1  ;;  %s6369_s27 = smov 1   ;;  %v6489_v16 = vld [vmem:[%s9781_s3] ss:$0 sm:$0xff]  ;;  %v6116_v37 = vld [vmem:[%s9784_s6 + $0x8] sm:$0xff]  ;;  %vm1331_vm0 = vcmask 261120  }
   0xc   : > { %s6370_s30 = smov 127   ;;  %v6371_v38 = vmov 0.0   ;;  %2263 = vmatpush.bf16.msra.mxu1 %v6116_v37  ;;  %v6115_v39 = vld [vmem:[%s9784_s6] sm:$0xff]  ;;  %vm1735_vm1 = vcmask 1040384   ;;  %vm1335_vm2 = vcmask 253952   ;;  %vm2766_vm3 = vcmask 1046528  }
   0xd   : > { %s10442_s22 = smov (!%p434_p3, %s5576_s22), 1  ;;  %1332 = vst.msk [vmem:[#allocation2] sm:$0xff] %vm1331_vm0, %v6371_v38  ;;  %vm5464_vm4 = vcmask 31744  }
   0xe   : > { %s6446_s23 = sshll.u32 %s10442_s22, 8  ;;  %1333 = vst.msk [vmem:[#allocation2 + $0x8] sm:$0xff] %vm1331_vm0, %v6371_v38 }
   0xf   : > { %s6452_s26 = scalar_lea.vmem %s9780_s2, %s6446_s23  ;;  %1334 = vst.msk [vmem:[#allocation2 + $0x10] sm:$0xff] %vm1331_vm0, %v6371_v38  ;;  %s6722_s19 = scalar_lea.vmem %s9779_s1, %s6446_s23 }
  0x10   : > { %v509_v0 = vld [vmem:[%s6452_s26 + $0xb0] sm:$0xff]  ;;  %v487_v1 = vld [vmem:[%s6452_s26] sm:$0xff]  ;;  %v510_v3 = vld [vmem:[%s6452_s26 + $0xb8] sm:$0xff]  ;;  %1337 = vst.msk [vmem:[#allocation2 + $0x20] sm:$0xff] %vm1331_vm0, %v6371_v38  ;;  %2264 = vmatpush.bf16.msra.mxu1 %v6115_v39  ;;  %s6762_s24 = scalar_lea.vmem %s9778_s0, %s6446_s23  ;;  %s9618_s13 = scalar_lea.vmem %s9790_s12, %s6446_s23 }
  0x11   : > { %v511_v2 = vld [vmem:[%s6452_s26 + $0xc0] sm:$0xff]  ;;  %631 = vrot.lane.b32.xlu0 %v509_v0, %s6369_s27  ;;  %587 = vrot.lane.b32.xlu2 %v487_v1, %s6369_s27  ;;  %v488_v4 = vld [vmem:[%s6452_s26 + $0x8] sm:$0xff]  ;;  %1338 = vst.msk [vmem:[#allocation2 + $0x28] sm:$0xff] %vm1331_vm0, %v6371_v38 }
  0x12   : > { %635 = vrot.lane.b32.xlu1 %v511_v2, %s6369_s27  ;;  %v512_v5 = vld [vmem:[%s6452_s26 + $0xc8] sm:$0xff]  ;;  %v513_v6 = vld [vmem:[%s6452_s26 + $0xd0] sm:$0xff]  ;;  %v514_v8 = vld [vmem:[%s6452_s26 + $0xd8] sm:$0xff]  ;;  %1339 = vst.msk [vmem:[#allocation2 + $0x30] sm:$0xff] %vm1331_vm0, %v6371_v38 }
  0x13   : > { %v489_v7 = vld [vmem:[%s6452_s26 + $0x10] sm:$0xff]  ;;  %v490_v9 = vld [vmem:[%s6452_s26 + $0x18] sm:$0xff]  ;;  %v491_v10 = vld [vmem:[%s6452_s26 + $0x20] sm:$0xff]  ;;  %1341 = vst.msk [vmem:[#allocation2 + $0x40] sm:$0xff] %vm1331_vm0, %v6371_v38 }
  0x14   : > { %v516_v11 = vld [vmem:[%s6452_s26 + $0xe8] sm:$0xff]  ;;  %v515_v12 = vld [vmem:[%s6452_s26 + $0xe0] sm:$0xff]  ;;  %v494_v14 = vld [vmem:[%s6452_s26 + $0x38] sm:$0xff]  ;;  %1342 = vst.msk [vmem:[#allocation2 + $0x48] sm:$0xff] %vm1331_vm0, %v6371_v38 }
  0x15   : > { %v492_v13 = vld [vmem:[%s6452_s26 + $0x28] sm:$0xff]  ;;  %v493_v15 = vld [vmem:[%s6452_s26 + $0x30] sm:$0xff]  ;;  %v495_v30 = vld [vmem:[%s6452_s26 + $0x40] sm:$0xff]  ;;  %1343 = vst.msk [vmem:[#allocation2 + $0x50] sm:$0xff] %vm1331_vm0, %v6371_v38 }
  0x16   : > { %v496_v19 = vld [vmem:[%s6452_s26 + $0x48] sm:$0xff]  ;;  %v497_v29 = vld [vmem:[%s6452_s26 + $0x50] sm:$0xff]  ;;  %v498_v42 = vld [vmem:[%s6452_s26 + $0x58] sm:$0xff]  ;;  %1345 = vst.msk [vmem:[#allocation2 + $0x60] sm:$0xff] %vm1331_vm0, %v6371_v38 }
  0x17   : > { %v1543_v43 = vld [vmem:[#allocation2] sm:$0xff]  ;;  %v1544_v45 = vld [vmem:[#allocation2 + $0x8] sm:$0xff]  ;;  %v1545_v47 = vld [vmem:[#allocation2 + $0x10] sm:$0xff]  ;;  %1346 = vst.msk [vmem:[#allocation2 + $0x68] sm:$0xff] %vm1331_vm0, %v6371_v38 }
  0x18   : > { %v1736_v46 = vrot.slane %v1543_v43, 7  ;;  %v1737_v48 = vrot.slane %v1544_v45, 7  ;;  %v1739_v49 = vrot.slane %v1545_v47, 7  ;;  %1347 = vst.msk [vmem:[#allocation2 + $0x70] sm:$0xff] %vm1331_vm0, %v6371_v38  ;;  %v500_v60 = vld [vmem:[%s6452_s26 + $0x68] sm:$0xff] }
  0x19   : > { %633 = vrot.lane.b32.xlu0 %v510_v3, %s6369_s27  ;;  %589 = vrot.lane.b32.xlu2 %v488_v4, %s6369_s27  ;;  %1349 = vst.msk [vmem:[#allocation2 + $0x80] sm:$0xff] %vm1331_vm0, %v6371_v38  ;;  %v478_v4 = vld [vmem:[%s6722_s19 + $0xb8] sm:$0xff] }
  0x1a   : > { %637 = vrot.lane.b32.xlu1 %v512_v5, %s6369_s27  ;;  %v1738_v52 = vsel %vm1735_vm1, %v1736_v46, %v1737_v48  ;;  %v1740_v53 = vsel %vm1735_vm1, %v1737_v48, %v1739_v49  ;;  %1350 = vst.msk [vmem:[#allocation2 + $0x88] sm:$0xff] %vm1331_vm0, %v6371_v38  ;;  %v546_v5 = vmul.f32 %v6489_v16, %v478_v4 }
  0x1b   : > { %v1848_v54 = vpack.c.bf16 %v1740_v53, %v1738_v52  ;;  %1351 = vst.msk [vmem:[#allocation2 + $0x90] sm:$0xff] %vm1331_vm0, %v6371_v38  ;;  %v479_v52 = vld [vmem:[%s6722_s19 + $0xc0] sm:$0xff]  ;;  %v1305_v53 = vld [vmem:[%s6762_s24 + $0x30] sm:$0xff] }
  0x1c   : > { %1353 = vst.msk [vmem:[#allocation2 + $0xa0] sm:$0xff] %vm1331_vm0, %v6371_v38 }
  0x1d   : > { %5621 = vmatmul.msk.bf16.vlgmr.msra.gmra.mxu1 %vm1331_vm0, %v1848_v54  ;;  %1354 = vst.msk [vmem:[#allocation2 + $0xa8] sm:$0xff] %vm1331_vm0, %v6371_v38  ;;  %v1306_v54 = vld [vmem:[%s6762_s24 + $0x38] sm:$0xff] }
  0x1e   : > { %1355 = vst.msk [vmem:[#allocation2 + $0xb0] sm:$0xff] %vm1331_vm0, %v6371_v38 }
  0x1f   : > { %1357 = vst.msk [vmem:[#allocation2 + $0xc0] sm:$0xff] %vm1331_vm0, %v6371_v38 }
  0x20   : > { %1358 = vst.msk [vmem:[#allocation2 + $0xc8] sm:$0xff] %vm1331_vm0, %v6371_v38 }
  0x21   : > { %639 = vrot.lane.b32.xlu0 %v513_v6, %s6369_s27  ;;  %591 = vrot.lane.b32.xlu2 %v489_v7, %s6369_s27  ;;  %1359 = vst.msk [vmem:[#allocation2 + $0xd0] sm:$0xff] %vm1331_vm0, %v6371_v38 }
  0x22   : > { %641 = vrot.lane.b32.xlu1 %v514_v8, %s6369_s27  ;;  %1361 = vst.msk [vmem:[#allocation2 + $0xe0] sm:$0xff] %vm1331_vm0, %v6371_v38 }
  0x23   : > { %1362 = vst.msk [vmem:[#allocation2 + $0xe8] sm:$0xff] %vm1331_vm0, %v6371_v38 }
  0x24   : > { %1363 = vst.msk [vmem:[#allocation2 + $0xf0] sm:$0xff] %vm1331_vm0, %v6371_v38 }
  0x25   : > { %1365 = vst.msk [vmem:[#allocation2 + $0x100] sm:$0xff] %vm1331_vm0, %v6371_v38 }
  0x26   : > { %1366 = vst.msk [vmem:[#allocation2 + $0x108] sm:$0xff] %vm1331_vm0, %v6371_v38 }
  0x27   : > { %1367 = vst.msk [vmem:[#allocation2 + $0x110] sm:$0xff] %vm1331_vm0, %v6371_v38 }
  0x28   : > { %1369 = vst.msk [vmem:[#allocation2 + $0x120] sm:$0xff] %vm1331_vm0, %v6371_v38 }
  0x29   : > { %593 = vrot.lane.b32.xlu0 %v490_v9, %s6369_s27  ;;  %595 = vrot.lane.b32.xlu2 %v491_v10, %s6369_s27  ;;  %1370 = vst.msk [vmem:[#allocation2 + $0x128] sm:$0xff] %vm1331_vm0, %v6371_v38 }
  0x2a   : > { %645 = vrot.lane.b32.xlu1 %v516_v11, %s6369_s27  ;;  %1371 = vst.msk [vmem:[#allocation2 + $0x130] sm:$0xff] %vm1331_vm0, %v6371_v38  ;;  %v1299_v11 = vld [vmem:[%s6762_s24] sm:$0xff] }
  0x2b   : > { %1373 = vst.msk [vmem:[#allocation2 + $0x140] sm:$0xff] %vm1331_vm0, %v6371_v38 }
  0x2c   : > { %1374 = vst.msk [vmem:[#allocation2 + $0x148] sm:$0xff] %vm1331_vm0, %v6371_v38 }
  0x2d   : > { %1375 = vst.msk [vmem:[#allocation2 + $0x150] sm:$0xff] %vm1331_vm0, %v6371_v38 }
  0x2e   : > { %1377 = vst.msk [vmem:[#allocation2 + $0x160] sm:$0xff] %vm1331_vm0, %v6371_v38 }
  0x2f   : > { %1378 = vst.msk [vmem:[#allocation2 + $0x168] sm:$0xff] %vm1331_vm0, %v6371_v38 }
  0x30   : > { %1379 = vst.msk [vmem:[#allocation2 + $0x170] sm:$0xff] %vm1331_vm0, %v6371_v38 }
  0x31   : > { %643 = vrot.lane.b32.xlu0 %v515_v12, %s6369_s27  ;;  %599 = vrot.lane.b32.xlu2 %v493_v15, %s6369_s27  ;;  %1381 = vst.msk [vmem:[#allocation2 + $0x180] sm:$0xff] %vm1331_vm0, %v6371_v38  ;;  %v1300_v12 = vld [vmem:[%s6762_s24 + $0x8] sm:$0xff] }
  0x32   : > { %1382 = vst.msk [vmem:[#allocation2 + $0x188] sm:$0xff] %vm1331_vm0, %v6371_v38 }
  0x33   : > { %1383 = vst.msk [vmem:[#allocation2 + $0x190] sm:$0xff] %vm1331_vm0, %v6371_v38 }
  0x34   : > { %1385 = vst.msk [vmem:[#allocation2 + $0x1a0] sm:$0xff] %vm1331_vm0, %v6371_v38 }
  0x35   : > { %1386 = vst.msk [vmem:[#allocation2 + $0x1a8] sm:$0xff] %vm1331_vm0, %v6371_v38 }
  0x36   : > { %1387 = vst.msk [vmem:[#allocation2 + $0x1b0] sm:$0xff] %vm1331_vm0, %v6371_v38 }
  0x37   : > { %1389 = vst.msk [vmem:[#allocation2 + $0x1c0] sm:$0xff] %vm1331_vm0, %v6371_v38 }
  0x38   : > { %1390 = vst.msk [vmem:[#allocation2 + $0x1c8] sm:$0xff] %vm1331_vm0, %v6371_v38 }
  0x39   : > { %597 = vrot.lane.b32.xlu0 %v492_v13, %s6369_s27  ;;  %1391 = vst.msk [vmem:[#allocation2 + $0x1d0] sm:$0xff] %vm1331_vm0, %v6371_v38  ;;  %v455_v13 = vld [vmem:[%s6722_s19] sm:$0xff] }
  0x3a   : > { %1393 = vst.msk [vmem:[#allocation2 + $0x1e0] sm:$0xff] %vm1331_vm0, %v6371_v38 }
  0x3b   : > { %1394 = vst.msk [vmem:[#allocation2 + $0x1e8] sm:$0xff] %vm1331_vm0, %v6371_v38 }
  0x3c   : > { %1395 = vst.msk [vmem:[#allocation2 + $0x1f0] sm:$0xff] %vm1331_vm0, %v6371_v38 }
  0x3d   : > { %1397 = vst.msk [vmem:[#allocation2 + $0x200] sm:$0xff] %vm1331_vm0, %v6371_v38 }
  0x3e   : > { %1398 = vst.msk [vmem:[#allocation2 + $0x208] sm:$0xff] %vm1331_vm0, %v6371_v38 }
  0x3f   : > { %1399 = vst.msk [vmem:[#allocation2 + $0x210] sm:$0xff] %vm1331_vm0, %v6371_v38 }
  0x40   : > { %1401 = vst.msk [vmem:[#allocation2 + $0x220] sm:$0xff] %vm1331_vm0, %v6371_v38 }
  0x41   : > { %601 = vrot.lane.b32.xlu0 %v494_v14, %s6369_s27  ;;  %1402 = vst.msk [vmem:[#allocation2 + $0x228] sm:$0xff] %vm1331_vm0, %v6371_v38 }
  0x42   : > { %1403 = vst.msk [vmem:[#allocation2 + $0x230] sm:$0xff] %vm1331_vm0, %v6371_v38 }
  0x43   : > { %1438 = vst.msk [vmem:[#allocation3] sm:$0xff] %vm1331_vm0, %v6371_v38 }
  0x44   : > { %1439 = vst.msk [vmem:[#allocation3 + $0x8] sm:$0xff] %vm1331_vm0, %v6371_v38 }
  0x45   : > { %1440 = vst.msk [vmem:[#allocation3 + $0x10] sm:$0xff] %vm1331_vm0, %v6371_v38 }
  0x46   : > { %1442 = vst.msk [vmem:[#allocation3 + $0x20] sm:$0xff] %vm1331_vm0, %v6371_v38 }
  0x47   : > { %1443 = vst.msk [vmem:[#allocation3 + $0x28] sm:$0xff] %vm1331_vm0, %v6371_v38 }
  0x48   : > { %1444 = vst.msk [vmem:[#allocation3 + $0x30] sm:$0xff] %vm1331_vm0, %v6371_v38 }
  0x49   : > { %1446 = vst.msk [vmem:[#allocation3 + $0x40] sm:$0xff] %vm1331_vm0, %v6371_v38 }
  0x4a   : > { %1447 = vst.msk [vmem:[#allocation3 + $0x48] sm:$0xff] %vm1331_vm0, %v6371_v38 }
  0x4b   : > { %1448 = vst.msk [vmem:[#allocation3 + $0x50] sm:$0xff] %vm1331_vm0, %v6371_v38 }
  0x4c   : > { %1450 = vst.msk [vmem:[#allocation3 + $0x60] sm:$0xff] %vm1331_vm0, %v6371_v38 }
  0x4d   : > { %1451 = vst.msk [vmem:[#allocation3 + $0x68] sm:$0xff] %vm1331_vm0, %v6371_v38 }
  0x4e   : > { %1452 = vst.msk [vmem:[#allocation3 + $0x70] sm:$0xff] %vm1331_vm0, %v6371_v38 }
  0x4f   : > { %1454 = vst.msk [vmem:[#allocation3 + $0x80] sm:$0xff] %vm1331_vm0, %v6371_v38 }
  0x50   : > { %1455 = vst.msk [vmem:[#allocation3 + $0x88] sm:$0xff] %vm1331_vm0, %v6371_v38 }
  0x51   : > { %1456 = vst.msk [vmem:[#allocation3 + $0x90] sm:$0xff] %vm1331_vm0, %v6371_v38 }
  0x52   : > { %1458 = vst.msk [vmem:[#allocation3 + $0xa0] sm:$0xff] %vm1331_vm0, %v6371_v38 }
  0x53   : > { %1459 = vst.msk [vmem:[#allocation3 + $0xa8] sm:$0xff] %vm1331_vm0, %v6371_v38 }
  0x54   : > { %1460 = vst.msk [vmem:[#allocation3 + $0xb0] sm:$0xff] %vm1331_vm0, %v6371_v38 }
  0x55   : > { %1462 = vst.msk [vmem:[#allocation3 + $0xc0] sm:$0xff] %vm1331_vm0, %v6371_v38 }
  0x56   : > { %1463 = vst.msk [vmem:[#allocation3 + $0xc8] sm:$0xff] %vm1331_vm0, %v6371_v38 }
  0x57   : > { %1464 = vst.msk [vmem:[#allocation3 + $0xd0] sm:$0xff] %vm1331_vm0, %v6371_v38 }
  0x58   : > { %1466 = vst.msk [vmem:[#allocation3 + $0xe0] sm:$0xff] %vm1331_vm0, %v6371_v38 }
  0x59   : > { %1467 = vst.msk [vmem:[#allocation3 + $0xe8] sm:$0xff] %vm1331_vm0, %v6371_v38 }
  0x5a   : > { %1468 = vst.msk [vmem:[#allocation3 + $0xf0] sm:$0xff] %vm1331_vm0, %v6371_v38 }
  0x5b   : > { %1470 = vst.msk [vmem:[#allocation3 + $0x100] sm:$0xff] %vm1331_vm0, %v6371_v38 }
  0x5c   : > { %1471 = vst.msk [vmem:[#allocation3 + $0x108] sm:$0xff] %vm1331_vm0, %v6371_v38 }
  0x5d   : > { %1472 = vst.msk [vmem:[#allocation3 + $0x110] sm:$0xff] %vm1331_vm0, %v6371_v38 }
  0x5e   : > { %1474 = vst.msk [vmem:[#allocation3 + $0x120] sm:$0xff] %vm1331_vm0, %v6371_v38 }
  0x5f   : > { %1475 = vst.msk [vmem:[#allocation3 + $0x128] sm:$0xff] %vm1331_vm0, %v6371_v38 }
  0x60   : > { %1476 = vst.msk [vmem:[#allocation3 + $0x130] sm:$0xff] %vm1331_vm0, %v6371_v38 }
  0x61   : > { %1478 = vst.msk [vmem:[#allocation3 + $0x140] sm:$0xff] %vm1331_vm0, %v6371_v38 }
  0x62   : > { %1479 = vst.msk [vmem:[#allocation3 + $0x148] sm:$0xff] %vm1331_vm0, %v6371_v38 }
  0x63   : > { %1480 = vst.msk [vmem:[#allocation3 + $0x150] sm:$0xff] %vm1331_vm0, %v6371_v38 }
  0x64   : > { %1482 = vst.msk [vmem:[#allocation3 + $0x160] sm:$0xff] %vm1331_vm0, %v6371_v38 }
  0x65   : > { %1483 = vst.msk [vmem:[#allocation3 + $0x168] sm:$0xff] %vm1331_vm0, %v6371_v38 }
  0x66   : > { %1484 = vst.msk [vmem:[#allocation3 + $0x170] sm:$0xff] %vm1331_vm0, %v6371_v38 }
  0x67   : > { %1486 = vst.msk [vmem:[#allocation3 + $0x180] sm:$0xff] %vm1331_vm0, %v6371_v38 }
  0x68   : > { %1487 = vst.msk [vmem:[#allocation3 + $0x188] sm:$0xff] %vm1331_vm0, %v6371_v38 }
  0x69   : > { %1488 = vst.msk [vmem:[#allocation3 + $0x190] sm:$0xff] %vm1331_vm0, %v6371_v38 }
  0x6a   : > { %1490 = vst.msk [vmem:[#allocation3 + $0x1a0] sm:$0xff] %vm1331_vm0, %v6371_v38 }
  0x6b   : > { %v588_v17 = vpop.permute.xlu2 %587  ;;  %1491 = vst.msk [vmem:[#allocation3 + $0x1a8] sm:$0xff] %vm1331_vm0, %v6371_v38 }
  0x6c   : > { %v683_v18 = vmul.f32 %v6489_v16, %v588_v17  ;;  %1492 = vst.msk [vmem:[#allocation3 + $0x1b0] sm:$0xff] %vm1331_vm0, %v6371_v38  ;;  %v477_v17 = vld [vmem:[%s6722_s19 + $0xb0] sm:$0xff] }
  0x6d   : > { %1494 = vst.msk [vmem:[#allocation3 + $0x1c0] sm:$0xff] %vm1331_vm0, %v6371_v38 }
  0x6e   : > { %747 = vrot.lane.b32.xlu0 %v683_v18, %s6370_s30  ;;  %1495 = vst.msk [vmem:[#allocation3 + $0x1c8] sm:$0xff] %vm1331_vm0, %v6371_v38 }
  0x6f   : > { %1496 = vst.msk [vmem:[#allocation3 + $0x1d0] sm:$0xff] %vm1331_vm0, %v6371_v38 }
  0x70   : > { %1498 = vst.msk [vmem:[#allocation3 + $0x1e0] sm:$0xff] %vm1331_vm0, %v6371_v38 }
  0x71   : > { %1499 = vst.msk [vmem:[#allocation3 + $0x1e8] sm:$0xff] %vm1331_vm0, %v6371_v38 }
  0x72   : > { %1500 = vst.msk [vmem:[#allocation3 + $0x1f0] sm:$0xff] %vm1331_vm0, %v6371_v38 }
  0x73   : > { %v590_v20 = vpop.permute.xlu2 %589  ;;  %1502 = vst.msk [vmem:[#allocation3 + $0x200] sm:$0xff] %vm1331_vm0, %v6371_v38 }
  0x74   : > { %v684_v36 = vmul.f32 %v6489_v16, %v590_v20  ;;  %1503 = vst.msk [vmem:[#allocation3 + $0x208] sm:$0xff] %vm1331_vm0, %v6371_v38  ;;  %v545_v20 = vmul.f32 %v6489_v16, %v477_v17 }
  0x75   : > { %1504 = vst.msk [vmem:[#allocation3 + $0x210] sm:$0xff] %vm1331_vm0, %v6371_v38 }
  0x76   : > { %605 = vrot.lane.b32.xlu0 %v496_v19, %s6369_s27  ;;  %1506 = vst.msk [vmem:[#allocation3 + $0x220] sm:$0xff] %vm1331_vm0, %v6371_v38  ;;  %v1301_v19 = vld [vmem:[%s6762_s24 + $0x10] sm:$0xff] }
  0x77   : > { %1507 = vst.msk [vmem:[#allocation3 + $0x228] sm:$0xff] %vm1331_vm0, %v6371_v38 }
  0x78   : > { %1508 = vst.msk [vmem:[#allocation3 + $0x230] sm:$0xff] %vm1331_vm0, %v6371_v38 }
  0x79   : > { %1406 = vst.msk [vmem:[#allocation2 + $0x28] sm:$0xff] %vm1331_vm0, %v1299_v11 }
  0x7a   : > { %1407 = vst.msk [vmem:[#allocation2 + $0x30] sm:$0xff] %vm1331_vm0, %v1300_v12 }
  0x7b   : > { %v592_v21 = vpop.permute.xlu2 %591  ;;  %1408 = vst.msk [vmem:[#allocation2 + $0x48] sm:$0xff] %vm1331_vm0, %v1301_v19  ;;  %v456_v19 = vld [vmem:[%s6722_s19 + $0x8] sm:$0xff] }
  0x7c   : > { %v685_v22 = vmul.f32 %v6489_v16, %v592_v21  ;;  %v1302_v21 = vld [vmem:[%s6762_s24 + $0x18] sm:$0xff]  ;;  %1412 = vst.msk [vmem:[#allocation2 + $0x88] sm:$0xff] %vm1331_vm0, %v1305_v53 }
  0x7d   : > { %1409 = vst.msk [vmem:[#allocation2 + $0x50] sm:$0xff] %vm1331_vm0, %v1302_v21  ;;  %v482_v21 = vld [vmem:[%s6722_s19 + $0xd8] sm:$0xff] }
  0x7e   : > { %751 = vrot.lane.b32.xlu0 %v685_v22, %s6370_s30  ;;  %v480_v22 = vld [vmem:[%s6722_s19 + $0xc8] sm:$0xff]  ;;  %1413 = vst.msk [vmem:[#allocation2 + $0x90] sm:$0xff] %vm1331_vm0, %v1306_v54 }
  0x7f   : > { %1441 = vst.msk [vmem:[#allocation3 + $0x18] sm:$0x1] %vm1335_vm2, %v6371_v38 }
  0x80   : > { %1336 = vst.msk [vmem:[#allocation2 + $0x18] sm:$0x1] %vm1335_vm2, %v6371_v38 }
  0x81   : > { %v6796_v37 = vld [vmem:[#allocation2 + $0x30] sm:$0xff]  ;;  %1340 = vst.msk [vmem:[#allocation2 + $0x38] sm:$0x1] %vm1335_vm2, %v6371_v38 }
  0x82   : > { %1344 = vst.msk [vmem:[#allocation2 + $0x58] sm:$0x1] %vm1335_vm2, %v6371_v38 }
  0x83   : > { %v632_v23 = vpop.permute.xlu0 %631  ;;  %v596_v31 = vpop.permute.xlu2 %595  ;;  %1348 = vst.msk [vmem:[#allocation2 + $0x78] sm:$0x1] %vm1335_vm2, %v6371_v38 }
  0x84   : > { %v705_v24 = vmul.f32 %v6489_v16, %v632_v23  ;;  %v636_v25 = vpop.permute.xlu1 %635  ;;  %v687_v33 = vmul.f32 %v6489_v16, %v596_v31  ;;  %v523_v23 = vmul.f32 %v6489_v16, %v455_v13  ;;  %1352 = vst.msk [vmem:[#allocation2 + $0x98] sm:$0x1] %vm1335_vm2, %v6371_v38 }
  0x85   : > { %v707_v26 = vmul.f32 %v6489_v16, %v636_v25  ;;  %v1303_v25 = vld [vmem:[%s6762_s24 + $0x20] sm:$0xff]  ;;  %1356 = vst.msk [vmem:[#allocation2 + $0xb8] sm:$0x1] %vm1335_vm2, %v6371_v38 }
  0x86   : > { %791 = vrot.lane.b32.xlu1 %v705_v24, %s6370_s30  ;;  %755 = vrot.lane.b32.xlu0 %v687_v33, %s6370_s30  ;;  %1410 = vst.msk [vmem:[#allocation2 + $0x68] sm:$0xff] %vm1331_vm0, %v1303_v25  ;;  %v550_v25 = vmul.f32 %v6489_v16, %v482_v21 }
  0x87   : > { %1360 = vst.msk [vmem:[#allocation2 + $0xd8] sm:$0x1] %vm1335_vm2, %v6371_v38 }
  0x88   : > { %1364 = vst.msk [vmem:[#allocation2 + $0xf8] sm:$0x1] %vm1335_vm2, %v6371_v38 }
  0x89   : > { %1368 = vst.msk [vmem:[#allocation2 + $0x118] sm:$0x1] %vm1335_vm2, %v6371_v38 }
  0x8a   : > { %1372 = vst.msk [vmem:[#allocation2 + $0x138] sm:$0x1] %vm1335_vm2, %v6371_v38 }
  0x8b   : > { %v634_v27 = vpop.permute.xlu0 %633  ;;  %v600_v62 = vpop.permute.xlu2 %599  ;;  %1376 = vst.msk [vmem:[#allocation2 + $0x158] sm:$0x1] %vm1335_vm2, %v6371_v38 }
  0x8c   : > { %v706_v28 = vmul.f32 %v6489_v16, %v634_v27  ;;  %v638_v32 = vpop.permute.xlu1 %637  ;;  %v689_v63 = vmul.f32 %v6489_v16, %v600_v62  ;;  %v1304_v27 = vld [vmem:[%s6762_s24 + $0x28] sm:$0xff]  ;;  %1380 = vst.msk [vmem:[#allocation2 + $0x178] sm:$0x1] %vm1335_vm2, %v6371_v38 }
  0x8d   : > { %v708_v35 = vmul.f32 %v6489_v16, %v638_v32  ;;  %1411 = vst.msk [vmem:[#allocation2 + $0x70] sm:$0xff] %vm1331_vm0, %v1304_v27  ;;  %v457_v27 = vld [vmem:[%s6722_s19 + $0x10] sm:$0xff] }
  0x8e   : > { %795 = vrot.lane.b32.xlu1 %v707_v26, %s6370_s30  ;;  %793 = vrot.lane.b32.xlu2 %v706_v28, %s6370_s30  ;;  %v1547_v28 = vld [vmem:[#allocation2 + $0x20] sm:$0xff]  ;;  %1384 = vst.msk [vmem:[#allocation2 + $0x198] sm:$0x1] %vm1335_vm2, %v6371_v38 }
  0x8f   : > { %613 = vrot.lane.b32.xlu0 %v500_v60, %s6369_s27  ;;  %v1741_v33 = vrot.slane %v1547_v28, 7  ;;  %v1307_v28 = vld [vmem:[%s6762_s24 + $0x40] sm:$0xff]  ;;  %1388 = vst.msk [vmem:[#allocation2 + $0x1b8] sm:$0x1] %vm1335_vm2, %v6371_v38 }
  0x90   : > { %1414 = vst.msk [vmem:[#allocation2 + $0xa8] sm:$0xff] %vm1331_vm0, %v1307_v28 }
  0x91   : > { %1392 = vst.msk [vmem:[#allocation2 + $0x1d8] sm:$0x1] %vm1335_vm2, %v6371_v38 }
  0x92   : > { %1396 = vst.msk [vmem:[#allocation2 + $0x1f8] sm:$0x1] %vm1335_vm2, %v6371_v38 }
  0x93   : > { %v640_v34 = vpop.permute.xlu0 %639  ;;  %1400 = vst.msk [vmem:[#allocation2 + $0x218] sm:$0x1] %vm1335_vm2, %v6371_v38 }
  0x94   : > { %v709_v40 = vmul.f32 %v6489_v16, %v640_v34  ;;  %v642_v44 = vpop.permute.xlu1 %641  ;;  %1404 = vst.msk [vmem:[#allocation2 + $0x238] sm:$0x1] %vm1335_vm2, %v6371_v38 }
  0x95   : > { %v710_v51 = vmul.f32 %v6489_v16, %v642_v44  ;;  %1445 = vst.msk [vmem:[#allocation3 + $0x38] sm:$0x1] %vm1335_vm2, %v6371_v38 }
  0x96   : > { %607 = vrot.lane.b32.xlu1 %v497_v29, %s6369_s27  ;;  %603 = vrot.lane.b32.xlu2 %v495_v30, %s6369_s27  ;;  %v548_v30 = vmul.f32 %v6489_v16, %v480_v22  ;;  %v499_v22 = vld [vmem:[%s6452_s26 + $0x60] sm:$0xff]  ;;  %1449 = vst.msk [vmem:[#allocation3 + $0x58] sm:$0x1] %vm1335_vm2, %v6371_v38 }
  0x97   : > { %1453 = vst.msk [vmem:[#allocation3 + $0x78] sm:$0x1] %vm1335_vm2, %v6371_v38 }
  0x98   : > { %1457 = vst.msk [vmem:[#allocation3 + $0x98] sm:$0x1] %vm1335_vm2, %v6371_v38 }
  0x99   : > { %1461 = vst.msk [vmem:[#allocation3 + $0xb8] sm:$0x1] %vm1335_vm2, %v6371_v38 }
  0x9a   : > { %1465 = vst.msk [vmem:[#allocation3 + $0xd8] sm:$0x1] %vm1335_vm2, %v6371_v38 }
  0x9b   : > { %v594_v41 = vpop.permute.xlu0 %593  ;;  %1469 = vst.msk [vmem:[#allocation3 + $0xf8] sm:$0x1] %vm1335_vm2, %v6371_v38 }
  0x9c   : > { %v686_v50 = vmul.f32 %v6489_v16, %v594_v41  ;;  %v646_v56 = vpop.permute.xlu1 %645  ;;  %1473 = vst.msk [vmem:[#allocation3 + $0x118] sm:$0x1] %vm1335_vm2, %v6371_v38 }
  0x9d   : > { %v712_v58 = vmul.f32 %v6489_v16, %v646_v56  ;;  %v547_v56 = vmul.f32 %v6489_v16, %v479_v52  ;;  %1477 = vst.msk [vmem:[#allocation3 + $0x138] sm:$0x1] %vm1335_vm2, %v6371_v38 }
  0x9e   : > { %797 = vrot.lane.b32.xlu2 %v708_v35, %s6370_s30  ;;  %749 = vrot.lane.b32.xlu1 %v684_v36, %s6370_s30  ;;  %v6794_v35 = vld [vmem:[#allocation2 + $0x28] sm:$0xff]  ;;  %1481 = vst.msk [vmem:[#allocation3 + $0x158] sm:$0x1] %vm1335_vm2, %v6371_v38 }
  0x9f   : > { %v1742_v39 = vrot.slane %v6794_v35, 7  ;;  %1485 = vst.msk [vmem:[#allocation3 + $0x178] sm:$0x1] %vm1335_vm2, %v6371_v38 }
  0xa0   : > { %1489 = vst.msk [vmem:[#allocation3 + $0x198] sm:$0x1] %vm1335_vm2, %v6371_v38 }
  0xa1   : > { %v1743_v43 = vsel %vm1735_vm1, %v1741_v33, %v1742_v39  ;;  %1493 = vst.msk [vmem:[#allocation3 + $0x1b8] sm:$0x1] %vm1335_vm2, %v6371_v38 }
  0xa2   : > { %1497 = vst.msk [vmem:[#allocation3 + $0x1d8] sm:$0x1] %vm1335_vm2, %v6371_v38 }
  0xa3   : > { %v644_v55 = vpop.permute.xlu0 %643  ;;  %1501 = vst.msk [vmem:[#allocation3 + $0x1f8] sm:$0x1] %vm1335_vm2, %v6371_v38 }
  0xa4   : > { %v711_v57 = vmul.f32 %v6489_v16, %v644_v55  ;;  %v6372_v55 = vmov 0   ;;  %1505 = vst.msk [vmem:[#allocation3 + $0x218] sm:$0x1] %vm1335_vm2, %v6371_v38 }
  0xa5   : > { %6172 = vset.pattern.permute.xlu0 %v6372_v55  ;;  %6173 = vset.pattern.permute.xlu1 %v6372_v55  ;;  %1509 = vst.msk [vmem:[#allocation3 + $0x238] sm:$0x1] %vm1335_vm2, %v6371_v38 }
  0xa6   : > { %799 = vrot.lane.b32.xlu1 %v709_v40, %s6370_s30  ;;  %609 = vrot.lane.b32.xlu2 %v498_v42, %s6369_s27  ;;  %v1744_v40 = vrot.slane %v6796_v37, 7 }
  0xa7   : > { %6171 = vset.pattern.permute.xlu2 %v6372_v55  ;;  %v1666_v38 = vld [vmem:[#allocation3 + $0x198] sm:$0x1] }
  0xa8   : > { %v1745_v44 = vsel %vm1735_vm1, %v1742_v39, %v1744_v40 }
  0xa9   : > { %v6802_v47 = vpack.c.bf16 %v1745_v44, %v1743_v43 }
  0xab   : > { %v598_v59 = vpop.permute.xlu0 %597  ;;  %5622 = vmatmul.msk.bf16.gmra.mxu1 %vm1331_vm0, %v6802_v47 }
  0xac   : > { %v688_v61 = vmul.f32 %v6489_v16, %v598_v59  ;;  %v1553_v59 = vld [vmem:[#allocation2 + $0x50] sm:$0xff] }
  0xae   : > { %753 = vrot.lane.b32.xlu1 %v686_v50, %s6370_s30  ;;  %801 = vrot.lane.b32.xlu2 %v710_v51, %s6370_s30 }
  0xb3   : > { %v602_v0 = vpop.permute.xlu0 %601 }
  0xb4   : > { %v690_v1 = vmul.f32 %v6489_v16, %v602_v0  ;;  %v1749_v0 = vrot.slane %v1553_v59, 7 }
  0xb6   : > { %803 = vrot.lane.b32.xlu1 %v711_v57, %s6370_s30  ;;  %805 = vrot.lane.b32.xlu2 %v712_v58, %s6370_s30  ;;  %v1551_v57 = vld [vmem:[#allocation2 + $0x40] sm:$0xff]  ;;  %v1552_v58 = vld [vmem:[#allocation2 + $0x48] sm:$0xff] }
  0xb7   : > { %v1746_v62 = vrot.slane %v1551_v57, 7 }
  0xbe   : > { %757 = vrot.lane.b32.xlu1 %v688_v61, %s6370_s30  ;;  %761 = vrot.lane.b32.xlu2 %v690_v1, %s6370_s30 }
  0xc6   : > { %759 = vrot.lane.b32.xlu1 %v689_v63, %s6370_s30  ;;  %v1747_v63 = vrot.slane %v1552_v58, 7 }
  0xe0   : > { %v748_v2 = vpop.permute.xlu0 %747 }
  0xe1   : > { %v843_v31 = vadd.f32 %v748_v2, %v523_v23  ;;  %v1556_v23 = vld [vmem:[#allocation2 + $0x68] sm:$0xff] }
  0xe2   : > { %v1752_v39 = vrot.slane %v1556_v23, 7 }
  0xe3   : > { %v875_v41 = vsub.f32 0.0, %v843_v31  ;;  %v525_v31 = vmul.f32 %v6489_v16, %v457_v27 }
  0xe5   : > { %v907_v49 = vmul.f32 1.442695, %v875_v41 }
  0xe8   : > { %v794_v3 = vpop.permute.xlu2 %793  ;;  %v606_v9 = vpop.permute.xlu0 %605 }
  0xe9   : > { %v866_v6 = vadd.f32 %v794_v3, %v546_v5  ;;  %v692_v10 = vmul.f32 %v6489_v16, %v606_v9  ;;  %v1748_v9 = vsel %vm1735_vm1, %v1746_v62, %v1747_v63 }
  0xeb   : > { %v898_v7 = vsub.f32 0.0, %v866_v6  ;;  %765 = vrot.lane.b32.xlu1 %v692_v10, %s6370_s30  ;;  %v1750_v10 = vsel %vm1735_vm1, %v1747_v63, %v1749_v0  ;;  %v502_v0 = vld [vmem:[%s6452_s26 + $0x78] sm:$0xff] }
  0xec   : > { %v6821_v12 = vpack.c.bf16 %v1750_v10, %v1748_v9 }
  0xed   : > { %v953_v8 = vmul.f32 1.442695, %v898_v7 }
  0xee   : > { %9969 = vst [vmem:[#allocation4_spill] sm:$0xff] %v6821_v12  ;;  %5623 = vmatmul.msk.bf16.gmra.mxu1 %vm1331_vm0, %v6821_v12 }
  0xef   : > { %6180 = vpow2.f32 %v953_v8 }
  0xf0   : > { %v6775_v14 = vpop.permute.xlu2 %603 }
  0xf1   : > { %v691_v6 = vmul.f32 %v6489_v16, %v6775_v14 }
  0xf5   : > { %v6181_v18 = vpop.eup %6180 }
  0xf6   : > { %v994_v26 = vadd.f32 1.0, %v6181_v18 }
  0xf8   : > { %v792_v15 = vpop.permute.xlu1 %791  ;;  %6182 = vrcp.f32 %v994_v26  ;;  %v798_v34 = vpop.permute.xlu2 %797 }
  0xf9   : > { %v865_v24 = vadd.f32 %v792_v15, %v545_v20  ;;  %v868_v36 = vadd.f32 %v798_v34, %v548_v30  ;;  %v1555_v15 = vld [vmem:[#allocation2 + $0x60] sm:$0xff]  ;;  %v752_v26 = vpop.permute.xlu0 %751  ;;  %v481_v30 = vld [vmem:[%s6722_s19 + $0xd0] sm:$0xff] }
  0xfa   : > { %v845_v40 = vadd.f32 %v752_v26, %v525_v31  ;;  %v549_v44 = vmul.f32 %v6489_v16, %v481_v30 }
  0xfb   : > { %v897_v29 = vsub.f32 0.0, %v865_v24  ;;  %v900_v42 = vsub.f32 0.0, %v868_v36  ;;  %v524_v24 = vmul.f32 %v6489_v16, %v456_v19  ;;  %v1751_v36 = vrot.slane %v1555_v15, 7  ;;  %v1309_v15 = vld [vmem:[%s6762_s24 + $0x50] sm:$0xff] }
  0xfc   : > { %1416 = vst.msk [vmem:[#allocation2 + $0xc8] sm:$0xff] %vm1331_vm0, %v1309_v15 }
  0xfd   : > { %v951_v32 = vmul.f32 1.442695, %v897_v29  ;;  %v957_v45 = vmul.f32 1.442695, %v900_v42  ;;  %v1557_v29 = vld [vmem:[#allocation2 + $0x70] sm:$0xff]  ;;  %v1753_v53 = vsel %vm1735_vm1, %v1751_v36, %v1752_v39 }
  0xfe   : > { %v6183_v46 = vpop.eup %6182  ;;  %v1754_v41 = vrot.slane %v1557_v29, 7 }
  0xff   : > { %6184 = vpow2.f32 %v951_v32  ;;  %1153 = vperm.xlu0 %6172, %v6183_v46   ;;  %v1308_v32 = vld [vmem:[%s6762_s24 + $0x48] sm:$0xff]  ;;  %v877_v46 = vsub.f32 0.0, %v845_v40 }
 0x100   : > { %6186 = vpow2.f32 %v957_v45  ;;  %v796_v51 = vpop.permute.xlu1 %795  ;;  %v6812_v3 = vpop.permute.xlu2 %609  ;;  %1415 = vst.msk [vmem:[#allocation2 + $0xb0] sm:$0xff] %vm1331_vm0, %v1308_v32  ;;  %v1755_v54 = vsel %vm1735_vm1, %v1752_v39, %v1754_v41 }
 0x101   : > { %v867_v60 = vadd.f32 %v796_v51, %v547_v56  ;;  %v911_v52 = vmul.f32 1.442695, %v877_v46  ;;  %v6841_v57 = vpack.c.bf16 %v1755_v54, %v1753_v53  ;;  %v694_v58 = vmul.f32 %v6489_v16, %v6812_v3  ;;  %v1561_v3 = vld [vmem:[#allocation2 + $0x90] sm:$0xff]  ;;  %v1563_v53 = vld [vmem:[#allocation2 + $0xa0] sm:$0xff] }
 0x103   : > { %v899_v1 = vsub.f32 0.0, %v867_v60  ;;  %9970 = vst [vmem:[#allocation5_spill] sm:$0xff] %v6841_v57  ;;  %5624 = vmatmul.msk.bf16.gmra.mxu1 %vm1331_vm0, %v6841_v57 }
 0x105   : > { %v6185_v48 = vpop.eup %6184  ;;  %v955_v4 = vmul.f32 1.442695, %v899_v1  ;;  %v501_v1 = vld [vmem:[%s6452_s26 + $0x70] sm:$0xff] }
 0x106   : > { %v993_v50 = vadd.f32 1.0, %v6185_v48  ;;  %v6187_v61 = vpop.eup %6186 }
 0x107   : > { %v996_v2 = vadd.f32 1.0, %v6187_v61  ;;  %763 = vrot.lane.b32.xlu0 %v691_v6, %s6370_s30  ;;  %v1559_v61 = vld [vmem:[#allocation2 + $0x80] sm:$0xff]  ;;  %v1560_v6 = vld [vmem:[#allocation2 + $0x88] sm:$0xff] }
 0x108   : > { %6188 = vrcp.f32 %v993_v50  ;;  %v6816_v7 = vpop.permute.xlu1 %607  ;;  %v802_v20 = vpop.permute.xlu2 %801  ;;  %v1757_v23 = vrot.slane %v1560_v6, 7 }
 0x109   : > { %6190 = vpow2.f32 %v907_v49  ;;  %v870_v34 = vadd.f32 %v802_v20, %v550_v25  ;;  %v1756_v20 = vrot.slane %v1559_v61, 7 }
 0x10a   : > { %6192 = vrcp.f32 %v996_v2 }
 0x10b   : > { %6194 = vpow2.f32 %v955_v4  ;;  %v902_v43 = vsub.f32 0.0, %v870_v34  ;;  %v458_v4 = vld [vmem:[%s6722_s19 + $0x18] sm:$0xff]  ;;  %v1758_v34 = vsel %vm1735_vm1, %v1756_v20, %v1757_v23 }
 0x10c   : > { %v526_v9 = vmul.f32 %v6489_v16, %v458_v4 }
 0x10d   : > { %v961_v49 = vmul.f32 1.442695, %v902_v43 }
 0x10e   : > { %v6189_v5 = vpop.eup %6188 }
 0x10f   : > { %v6191_v8 = vpop.eup %6190  ;;  %1148 = vperm.xlu2 %6171, %v6189_v5  }
 0x110   : > { %v971_v11 = vadd.f32 1.0, %v6191_v8  ;;  %v6193_v13 = vpop.eup %6192  ;;  %v750_v18 = vpop.permute.xlu1 %749 }
 0x111   : > { %v6195_v14 = vpop.eup %6194  ;;  %1163 = vperm.xlu1 %6173, %v6193_v13   ;;  %v844_v33 = vadd.f32 %v750_v18, %v524_v24  ;;  %v806_v10 = vpop.permute.xlu2 %805  ;;  %v483_v13 = vld [vmem:[%s6722_s19 + $0xe0] sm:$0xff]  ;;  %v1759_v24 = vrot.slane %v1561_v3, 7 }
 0x112   : > { %6196 = vrcp.f32 %v971_v11  ;;  %v995_v17 = vadd.f32 1.0, %v6195_v14  ;;  %v484_v11 = vld [vmem:[%s6722_s19 + $0xe8] sm:$0xff]  ;;  %v551_v26 = vmul.f32 %v6489_v16, %v483_v13 }
 0x113   : > { %v876_v42 = vsub.f32 0.0, %v844_v33  ;;  %v552_v14 = vmul.f32 %v6489_v16, %v484_v11  ;;  %v1760_v36 = vsel %vm1735_vm1, %v1757_v23, %v1759_v24  ;;  %v503_v11 = vld [vmem:[%s6452_s26 + $0x80] sm:$0xff]  ;;  %v461_v23 = vld [vmem:[%s6722_s19 + $0x30] sm:$0xff] }
 0x114   : > { %6198 = vrcp.f32 %v995_v17  ;;  %v1310_v17 = vld [vmem:[%s6762_s24 + $0x58] sm:$0xff]  ;;  %v6864_v41 = vpack.c.bf16 %v1760_v36, %v1758_v34 }
 0x115   : > { %v909_v48 = vmul.f32 1.442695, %v876_v42  ;;  %v872_v21 = vadd.f32 %v806_v10, %v552_v14  ;;  %1417 = vst.msk [vmem:[#allocation2 + $0xd0] sm:$0xff] %vm1331_vm0, %v1310_v17 }
 0x116   : > { %9971 = vst [vmem:[#allocation6_spill] sm:$0xff] %v6864_v41  ;;  %5625 = vmatmul.msk.bf16.gmra.mxu1 %vm1331_vm0, %v6864_v41 }
 0x117   : > { %611 = vrot.lane.b32.xlu2 %v499_v22, %s6369_s27  ;;  %6200 = vpow2.f32 %v909_v48  ;;  %v904_v28 = vsub.f32 0.0, %v872_v21 }
 0x118   : > { %v6197_v45 = vpop.eup %6196  ;;  %v800_v51 = vpop.permute.xlu1 %799  ;;  %6202 = vpow2.f32 %v961_v49 }
 0x119   : > { %1038 = vperm.xlu1 %6173, %v6197_v45   ;;  %v869_v55 = vadd.f32 %v800_v51, %v549_v44  ;;  %6204 = vpow2.f32 %v911_v52  ;;  %v965_v32 = vmul.f32 1.442695, %v904_v28  ;;  %v756_v51 = vpop.permute.xlu0 %755  ;;  %v459_v52 = vld [vmem:[%s6722_s19 + $0x20] sm:$0xff]  ;;  %v762_v24 = vpop.permute.xlu2 %761  ;;  %v529_v28 = vmul.f32 %v6489_v16, %v461_v23  ;;  %v1318_v23 = vld [vmem:[%s6762_s24 + $0x98] sm:$0xff] }
 0x11a   : > { %v6199_v50 = vpop.eup %6198  ;;  %1425 = vst.msk [vmem:[#allocation2 + $0x150] sm:$0xff] %vm1331_vm0, %v1318_v23 }
 0x11b   : > { %1158 = vperm.xlu0 %6172, %v6199_v50   ;;  %v901_v56 = vsub.f32 0.0, %v869_v55  ;;  %v460_v50 = vld [vmem:[%s6722_s19 + $0x28] sm:$0xff]  ;;  %v527_v55 = vmul.f32 %v6489_v16, %v459_v52 }
 0x11c   : > { %v528_v54 = vmul.f32 %v6489_v16, %v460_v50 }
 0x11d   : > { %v959_v59 = vmul.f32 1.442695, %v901_v56  ;;  %v6201_v60 = vpop.eup %6200  ;;  %v1311_v56 = vld [vmem:[%s6762_s24 + $0x60] sm:$0xff] }
 0x11e   : > { %v6203_v62 = vpop.eup %6202  ;;  %v972_v63 = vadd.f32 1.0, %v6201_v60  ;;  %v1565_v60 = vld [vmem:[#allocation2 + $0xb0] sm:$0xff]  ;;  %1418 = vst.msk [vmem:[#allocation2 + $0xe8] sm:$0xff] %vm1331_vm0, %v1311_v56 }
 0x11f   : > { %6206 = vpow2.f32 %v959_v59  ;;  %v6205_v5 = vpop.eup %6204  ;;  %v998_v8 = vadd.f32 1.0, %v6203_v62  ;;  %617 = vrot.lane.b32.xlu2 %v502_v0, %s6369_s27  ;;  %v1564_v59 = vld [vmem:[#allocation2 + $0xa8] sm:$0xff]  ;;  %v693_v0 = vmul.f32 %v6489_v16, %v6816_v7 }
 0x120   : > { %v754_v2 = vpop.permute.xlu1 %753  ;;  %6208 = vrcp.f32 %v972_v63  ;;  %v973_v18 = vadd.f32 1.0, %v6205_v5  ;;  %v847_v63 = vadd.f32 %v756_v51, %v527_v55  ;;  %v1762_v4 = vrot.slane %v1564_v59, 7 }
 0x121   : > { %615 = vrot.lane.b32.xlu1 %v501_v1, %s6369_s27  ;;  %6210 = vrcp.f32 %v998_v8  ;;  %v846_v19 = vadd.f32 %v754_v2, %v526_v9  ;;  %v1761_v1 = vrot.slane %v1563_v53, 7  ;;  %v1764_v5 = vrot.slane %v1565_v60, 7  ;;  %v614_v53 = vpop.permute.xlu0 %613  ;;  %v505_v60 = vld [vmem:[%s6452_s26 + $0x90] sm:$0xff] }
 0x122   : > { %6212 = vrcp.f32 %v973_v18  ;;  %v879_v3 = vsub.f32 0.0, %v847_v63  ;;  %v696_v55 = vmul.f32 %v6489_v16, %v614_v53 }
 0x123   : > { %769 = vrot.lane.b32.xlu0 %v694_v58, %s6370_s30  ;;  %v878_v25 = vsub.f32 0.0, %v846_v19  ;;  %v1312_v58 = vld [vmem:[%s6762_s24 + $0x68] sm:$0xff]  ;;  %v1763_v14 = vsel %vm1735_vm1, %v1761_v1, %v1762_v4  ;;  %v1765_v15 = vsel %vm1735_vm1, %v1762_v4, %v1764_v5  ;;  %v1315_v1 = vld [vmem:[%s6762_s24 + $0x80] sm:$0xff] }
 0x124   : > { %1419 = vst.msk [vmem:[#allocation2 + $0xf0] sm:$0xff] %vm1331_vm0, %v1312_v58  ;;  %v915_v10 = vmul.f32 1.442695, %v879_v3  ;;  %v6883_v7 = vpack.c.bf16 %v1765_v15, %v1763_v14  ;;  %v6919_v14 = vld [vmem:[%s9781_s3] ss:$0 sm:$0xff] }
 0x125   : > { %v6207_v22 = vpop.eup %6206  ;;  %v913_v29 = vmul.f32 1.442695, %v878_v25  ;;  %v462_v25 = vld [vmem:[%s6722_s19 + $0x38] sm:$0xff]  ;;  %1422 = vst.msk [vmem:[#allocation2 + $0x128] sm:$0xff] %vm1331_vm0, %v1315_v1 }
 0x126   : > { %v997_v27 = vadd.f32 1.0, %v6207_v22  ;;  %v6209_v30 = vpop.eup %6208  ;;  %9972 = vst [vmem:[#allocation7_spill] sm:$0xff] %v6883_v7  ;;  %5626 = vmatmul.msk.bf16.gmra.mxu1 %vm1331_vm0, %v6883_v7 }
 0x127   : > { %v6211_v33 = vpop.eup %6210  ;;  %1043 = vperm.xlu2 %6171, %v6209_v30   ;;  %v1313_v30 = vld [vmem:[%s6762_s24 + $0x70] sm:$0xff] }
 0x128   : > { %6214 = vrcp.f32 %v997_v27  ;;  %v804_v31 = vpop.permute.xlu1 %803  ;;  %v6213_v42 = vpop.eup %6212  ;;  %1420 = vst.msk [vmem:[#allocation2 + $0x108] sm:$0xff] %vm1331_vm0, %v1313_v30 }
 0x129   : > { %6216 = vpow2.f32 %v913_v29  ;;  %v871_v39 = vadd.f32 %v804_v31, %v551_v26  ;;  %v1567_v26 = vld [vmem:[#allocation2 + $0xc0] sm:$0xff]  ;;  %v530_v29 = vmul.f32 %v6489_v16, %v462_v25  ;;  %v1314_v31 = vld [vmem:[%s6762_s24 + $0x78] sm:$0xff] }
 0x12a   : > { %6218 = vpow2.f32 %v965_v32  ;;  %v1568_v32 = vld [vmem:[#allocation2 + $0xc8] sm:$0xff]  ;;  %1421 = vst.msk [vmem:[#allocation2 + $0x110] sm:$0xff] %vm1331_vm0, %v1314_v31 }
 0x12b   : > { %1173 = vperm.xlu0 %6172, %v6211_v33   ;;  %v903_v40 = vsub.f32 0.0, %v871_v39  ;;  %v1569_v33 = vld [vmem:[#allocation2 + $0xd0] sm:$0xff]  ;;  %v850_v36 = vadd.f32 %v762_v24, %v530_v29  ;;  %v1766_v39 = vrot.slane %v1567_v26, 7  ;;  %v6936_v29 = vld [vmem:[%s9783_s5] ss:$0 sm:$0xff] }
 0x12d   : > { %v963_v43 = vmul.f32 1.442695, %v903_v40  ;;  %v1767_v40 = vrot.slane %v1568_v32, 7 }
 0x12e   : > { %v6215_v44 = vpop.eup %6214 }
 0x12f   : > { %v6217_v45 = vpop.eup %6216  ;;  %6220 = vpow2.f32 %v963_v43  ;;  %1168 = vperm.xlu2 %6171, %v6215_v44   ;;  %v882_v44 = vsub.f32 0.0, %v850_v36  ;;  %v1768_v51 = vsel %vm1735_vm1, %v1766_v39, %v1767_v40 }
 0x130   : > { %v6219_v46 = vpop.eup %6218  ;;  %v974_v48 = vadd.f32 1.0, %v6217_v45  ;;  %v758_v49 = vpop.permute.xlu1 %757  ;;  %v504_v45 = vld [vmem:[%s6452_s26 + $0x88] sm:$0xff] }
 0x131   : > { %v1000_v61 = vadd.f32 1.0, %v6219_v46  ;;  %v848_v62 = vadd.f32 %v758_v49, %v528_v54 }
 0x132   : > { %6222 = vrcp.f32 %v974_v48  ;;  %v921_v48 = vmul.f32 1.442695, %v882_v44 }
 0x133   : > { %1048 = vperm.xlu0 %6172, %v6213_v42   ;;  %v880_v6 = vsub.f32 0.0, %v848_v62  ;;  %6224 = vrcp.f32 %v1000_v61  ;;  %v1769_v42 = vrot.slane %v1569_v33, 7  ;;  %v1571_v61 = vld [vmem:[#allocation2 + $0xe0] sm:$0xff]  ;;  %v1572_v62 = vld [vmem:[#allocation2 + $0xe8] sm:$0xff] }
 0x134   : > { %v1771_v16 = vrot.slane %v1571_v61, 7  ;;  %v1772_v4 = vrot.slane %v1572_v62, 7 }
 0x135   : > { %v6221_v2 = vpop.eup %6220  ;;  %v917_v9 = vmul.f32 1.442695, %v880_v6  ;;  %v1770_v52 = vsel %vm1735_vm1, %v1767_v40, %v1769_v42 }
 0x136   : > { %v999_v8 = vadd.f32 1.0, %v6221_v2  ;;  %v6899_v54 = vpack.c.bf16 %v1770_v52, %v1768_v51  ;;  %v1316_v2 = vld [vmem:[%s6762_s24 + $0x88] sm:$0xff] }
 0x137   : > { %767 = vrot.lane.b32.xlu2 %v693_v0, %s6370_s30  ;;  %v1573_v0 = vld [vmem:[#allocation2 + $0xf0] sm:$0xff]  ;;  %1423 = vst.msk [vmem:[#allocation2 + $0x130] sm:$0xff] %vm1331_vm0, %v1316_v2  ;;  %v1320_v51 = vld [vmem:[%s6762_s24 + $0xa8] sm:$0xff] }
 0x138   : > { %v6223_v13 = vpop.eup %6222  ;;  %6226 = vrcp.f32 %v999_v8  ;;  %v760_v22 = vpop.permute.xlu1 %759  ;;  %9973 = vst [vmem:[#allocation8_spill] sm:$0xff] %v6899_v54  ;;  %5627 = vmatmul.msk.bf16.gmra.mxu1 %vm1331_vm0, %v6899_v54  ;;  %v1774_v5 = vrot.slane %v1573_v0, 7  ;;  %v1773_v8 = vsel %vm1735_vm1, %v1771_v16, %v1772_v4 }
 0x139   : > { %6228 = vpow2.f32 %v917_v9  ;;  %1053 = vperm.xlu1 %6173, %v6223_v13   ;;  %v6225_v17 = vpop.eup %6224  ;;  %v849_v34 = vadd.f32 %v760_v22, %v529_v28  ;;  %v464_v13 = vld [vmem:[%s6722_s19 + $0x48] sm:$0xff]  ;;  %v1317_v22 = vld [vmem:[%s6762_s24 + $0x90] sm:$0xff]  ;;  %v6931_v28 = vld [vmem:[%s9782_s4] ss:$0 sm:$0xff]  ;;  %1427 = vst.msk [vmem:[#allocation2 + $0x170] sm:$0xff] %vm1331_vm0, %v1320_v51 }
 0x13a   : > { %6230 = vpow2.f32 %v915_v10  ;;  %v1775_v9 = vsel %vm1735_vm1, %v1772_v4, %v1774_v5  ;;  %v532_v15 = vmul.f32 %v6919_v14, %v464_v13  ;;  %1424 = vst.msk [vmem:[#allocation2 + $0x148] sm:$0xff] %vm1331_vm0, %v1317_v22  ;;  %v6117_v22 = vld [vmem:[%s9785_s7] sm:$0xff] }
 0x13b   : > { %619 = vrot.lane.b32.xlu0 %v503_v11, %s6369_s27  ;;  %v881_v43 = vsub.f32 0.0, %v849_v34  ;;  %v6913_v10 = vpack.c.bf16 %v1775_v9, %v1773_v8  ;;  %v1663_v8 = vld [vmem:[#allocation3 + $0x180] sm:$0xff] }
 0x13d   : > { %v919_v46 = vmul.f32 1.442695, %v881_v43  ;;  %9974 = vst [vmem:[#allocation9_spill] sm:$0xff] %v6913_v10  ;;  %v507_v43 = vld [vmem:[%s6452_s26 + $0xa0] sm:$0xff] }
 0x13e   : > { %v6227_v18 = vpop.eup %6226 }
 0x13f   : > { %v6229_v19 = vpop.eup %6228  ;;  %1183 = vperm.xlu2 %6171, %v6225_v17  }
 0x140   : > { %v6231_v20 = vpop.eup %6230  ;;  %v976_v21 = vadd.f32 1.0, %v6229_v19  ;;  %v1576_v19 = vld [vmem:[#allocation2 + $0x108] sm:$0xff] }
 0x141   : > { %v975_v27 = vadd.f32 1.0, %v6231_v20  ;;  %1178 = vperm.xlu1 %6173, %v6227_v18   ;;  %v1575_v18 = vld [vmem:[#allocation2 + $0x100] sm:$0xff]  ;;  %v1577_v20 = vld [vmem:[#allocation2 + $0x110] sm:$0xff]  ;;  %v1777_v26 = vrot.slane %v1576_v19, 7  ;;  %v1976_v19 = vrot.slane %v1663_v8, 7 }
 0x142   : > { %6232 = vrcp.f32 %v976_v21  ;;  %v1776_v24 = vrot.slane %v1575_v18, 7  ;;  %v1585_v18 = vld [vmem:[#allocation2 + $0x150] sm:$0xff] }
 0x143   : > { %6234 = vrcp.f32 %v975_v27  ;;  %v1779_v27 = vrot.slane %v1577_v20, 7 }
 0x144   : > { %6236 = vpow2.f32 %v919_v46  ;;  %v1778_v32 = vsel %vm1735_vm1, %v1776_v24, %v1777_v26  ;;  %v1580_v46 = vld [vmem:[#allocation2 + $0x128] sm:$0xff] }
 0x145   : > { %6238 = vpow2.f32 %v921_v48  ;;  %v1780_v33 = vsel %vm1735_vm1, %v1777_v26, %v1779_v27 }
 0x146   : > { %v6942_v40 = vpack.c.bf16 %v1780_v33, %v1778_v32  ;;  %v6120_v32 = vld [vmem:[%s9784_s6 + $0x18] sm:$0xff] }
 0x147   : > { %2433 = vmatpush.bf16.msra.mxu2 %v6120_v32 }
 0x148   : > { %v6233_v49 = vpop.eup %6232  ;;  %5628 = vmatmul.msk.bf16.gmra.mxu1 %vm1331_vm0, %v6913_v10  ;;  %9975 = vst [vmem:[#allocation10_spill] sm:$0xff] %v6942_v40 }
 0x149   : > { %v6235_v50 = vpop.eup %6234  ;;  %1063 = vperm.xlu0 %6172, %v6233_v49   ;;  %621 = vrot.lane.b32.xlu1 %v504_v45, %s6369_s27  ;;  %v1579_v45 = vld [vmem:[#allocation2 + $0x120] sm:$0xff]  ;;  %v1581_v49 = vld [vmem:[#allocation2 + $0x130] sm:$0xff] }
 0x14a   : > { %1058 = vperm.xlu2 %6171, %v6235_v50   ;;  %v6237_v56 = vpop.eup %6236  ;;  %v1319_v50 = vld [vmem:[%s6762_s24 + $0xa0] sm:$0xff] }
 0x14b   : > { %v6239_v58 = vpop.eup %6238  ;;  %v977_v59 = vadd.f32 1.0, %v6237_v56  ;;  %1426 = vst.msk [vmem:[#allocation2 + $0x168] sm:$0xff] %vm1331_vm0, %v1319_v50  ;;  %v1782_v56 = vrot.slane %v1580_v46, 7 }
 0x14c   : > { %v978_v63 = vadd.f32 1.0, %v6239_v58  ;;  %v1784_v58 = vrot.slane %v1581_v49, 7  ;;  %v6309_v49 = vld [vmem:[%s9784_s6 + $0x8] sm:$0xff] }
 0x14d   : > { %6240 = vrcp.f32 %v977_v59 }
 0x14e   : > { %6242 = vrcp.f32 %v978_v63  ;;  %v1785_v63 = vsel %vm1735_vm1, %v1782_v56, %v1784_v58 }
 0x151   : > { %623 = vrot.lane.b32.xlu0 %v505_v60, %s6369_s27  ;;  %v463_v60 = vld [vmem:[%s6722_s19 + $0x40] sm:$0xff] }
 0x152   : > { %773 = vrot.lane.b32.xlu2 %v696_v55, %s6370_s30  ;;  %v1781_v55 = vrot.slane %v1579_v45, 7  ;;  %v531_v1 = vmul.f32 %v6919_v14, %v463_v60 }
 0x153   : > { %v6241_v6 = vpop.eup %6240 }
 0x154   : > { %v6243_v3 = vpop.eup %6242  ;;  %v1783_v62 = vsel %vm1735_vm1, %v1781_v55, %v1782_v56  ;;  %v6310_v55 = vld [vmem:[#allocation2 + $0x8] sm:$0xff]  ;;  %v6311_v56 = vld [vmem:[#allocation2 + $0x10] sm:$0xff] }
 0x155   : > { %v6962_v16 = vpack.c.bf16 %v1785_v63, %v1783_v62  ;;  %v2346_v58 = vpack.c.bf16 %v6311_v56, %v6310_v55 }
 0x157   : > { %9976 = vst [vmem:[#allocation11_spill] sm:$0xff] %v6962_v16 }
 0x158   : > { %5629 = vmatmul.msk.bf16.gmra.mxu1 %vm1331_vm0, %v6942_v40 }
 0x159   : > { %1073 = vperm.xlu0 %6172, %v6243_v3   ;;  %v506_v3 = vld [vmem:[%s6452_s26 + $0x98] sm:$0xff] }
 0x15a   : > { %1068 = vperm.xlu2 %6171, %v6241_v6  }
 0x15d   : > { %v766_v11 = vpop.permute.xlu1 %765 }
 0x15e   : > { %v852_v17 = vadd.f32 %v766_v11, %v532_v15  ;;  %v1583_v11 = vld [vmem:[#allocation2 + $0x140] sm:$0xff]  ;;  %v6118_v15 = vld [vmem:[%s9785_s7 + $0x8] sm:$0xff] }
 0x15f   : > { %6153 = vmatpush.bf16.msra.mxu3 %v6118_v15  ;;  %2114 = vmatpush.bf16.msra.mxu0 %v6118_v15  ;;  %v1786_v24 = vrot.slane %v1583_v11, 7  ;;  %v6125_v11 = vld [vmem:[%s9785_s7 + $0x20] sm:$0xff] }
 0x160   : > { %v884_v21 = vsub.f32 0.0, %v852_v17  ;;  %v1584_v17 = vld [vmem:[#allocation2 + $0x148] sm:$0xff] }
 0x161   : > { %627 = vrot.lane.b32.xlu0 %v507_v43, %s6369_s27  ;;  %v1787_v27 = vrot.slane %v1584_v17, 7  ;;  %v6119_v43 = vld [vmem:[%s9784_s6 + $0x10] sm:$0xff] }
 0x162   : > { %v925_v25 = vmul.f32 1.442695, %v884_v21  ;;  %2434 = vmatpush.bf16.msra.mxu2 %v6119_v43 }
 0x163   : > { %6154 = vmatpush.bf16.msra.mxu3 %v6117_v22  ;;  %2115 = vmatpush.bf16.msra.mxu0 %v6117_v22  ;;  %v1788_v50 = vsel %vm1735_vm1, %v1786_v24, %v1787_v27 }
 0x164   : > { %6244 = vpow2.f32 %v925_v25 }
 0x165   : > { %5649 = vmatmul.msk.bf16.vlgmr.msra.gmra.mxu2 %vm1331_vm0, %v2346_v58 }
 0x167   : > { %6155 = vmatpush.bf16.msrb.mxu3 %v6309_v49 }
 0x168   : > { %5630 = vmatmul.msk.bf16.gmra.mxu1 %vm1331_vm0, %v6962_v16 }
 0x169   : > { %v1149_v30 = vpop.permute.xlu2 %1148 }
 0x16a   : > { %v1221_v31 = vmul.f32 %v6931_v28, %v1149_v30  ;;  %v6245_v39 = vpop.eup %6244  ;;  %v1789_v30 = vrot.slane %v1585_v18, 7 }
 0x16b   : > { %v980_v42 = vadd.f32 1.0, %v6245_v39 }
 0x16c   : > { %v1257_v34 = vadd.f32 %v6936_v29, %v1221_v31  ;;  %v1790_v51 = vsel %vm1735_vm1, %v1787_v27, %v1789_v30 }
 0x16d   : > { %6246 = vrcp.f32 %v980_v42 }
 0x16e   : > { %v1289_v36 = vmax.f32 %v1257_v34, 0.0 }
 0x170   : > { %1533 = vst.msk [vmem:[#allocation3 + $0x188] sm:$0xff] %vm1331_vm0, %v1289_v36 }
 0x171   : > { %v612_v44 = vpop.permute.xlu2 %611  ;;  %v1154_v52 = vpop.permute.xlu0 %1153 }
 0x172   : > { %v695_v48 = vmul.f32 %v6919_v14, %v612_v44  ;;  %v1222_v59 = vmul.f32 %v6931_v28, %v1154_v52  ;;  %v6126_v44 = vld [vmem:[%s9785_s7 + $0x28] sm:$0xff] }
 0x173   : > { %v6247_v53 = vpop.eup %6246  ;;  %3296 = vmatpush.bf16.msrb.mxu1 %v6126_v44  ;;  %v1588_v44 = vld [vmem:[#allocation2 + $0x168] sm:$0xff] }
 0x174   : > { %771 = vrot.lane.b32.xlu1 %v695_v48, %s6370_s30  ;;  %1083 = vperm.xlu0 %6172, %v6247_v53   ;;  %v1258_v61 = vadd.f32 %v6936_v29, %v1222_v59  ;;  %v1792_v56 = vrot.slane %v1588_v44, 7 }
 0x176   : > { %v1290_v0 = vmax.f32 %v1258_v61, 0.0 }
 0x177   : > { %v6971_v9 = vld [vmem:[#allocation3 + $0x188] sm:$0xff]  ;;  %3297 = vmatpush.bf16.msrb.mxu1 %v6125_v11 }
 0x178   : > { %1534 = vst.msk [vmem:[#allocation3 + $0x190] sm:$0xff] %vm1331_vm0, %v1290_v0  ;;  %v1977_v23 = vrot.slane %v6971_v9, 7  ;;  %v3157_v52 = vrot.slane %v6971_v9, 1 }
 0x179   : > { %v618_v2 = vpop.permute.xlu2 %617  ;;  %v764_v4 = vpop.permute.xlu0 %763 }
 0x17a   : > { %v698_v5 = vmul.f32 %v6919_v14, %v618_v2  ;;  %v851_v6 = vadd.f32 %v764_v4, %v531_v1  ;;  %v1978_v39 = vsel %vm1735_vm1, %v1976_v19, %v1977_v23  ;;  %v1615_v1 = vld [vmem:[#allocation3] sm:$0xff]  ;;  %v7041_v2 = vld [vmem:[#allocation3 + $0x8] sm:$0xff]  ;;  %v7043_v4 = vld [vmem:[#allocation3 + $0x10] sm:$0xff] }
 0x17b   : > { %v1917_v15 = vrot.slane %v7041_v2, 7  ;;  %v1919_v17 = vrot.slane %v7043_v4, 7 }
 0x17c   : > { %625 = vrot.lane.b32.xlu1 %v506_v3, %s6369_s27  ;;  %777 = vrot.lane.b32.xlu2 %v698_v5, %s6370_s30  ;;  %v883_v13 = vsub.f32 0.0, %v851_v6  ;;  %v6312_v5 = vld [vmem:[%s9784_s6] sm:$0xff]  ;;  %v7053_v3 = vpack.c.bf16 %v1790_v51, %v1788_v50 }
 0x17d   : > { %6156 = vmatpush.bf16.msrb.mxu3 %v6312_v5  ;;  %v1920_v22 = vsel %vm1735_vm1, %v1917_v15, %v1919_v17 }
 0x17e   : > { %v923_v20 = vmul.f32 1.442695, %v883_v13  ;;  %9979 = vst [vmem:[#allocation14_spill] sm:$0xff] %v7053_v3  ;;  %v1916_v13 = vrot.slane %v1615_v1, 7  ;;  %5631 = vmatmul.msk.bf16.gmra.mxu1 %vm1331_vm0, %v7053_v3  ;;  %v7106_v1 = vpack.c.bf16 %v6796_v37, %v6794_v35  ;;  %v6324_v3 = vld [vmem:[#allocation2 + $0xc8] sm:$0xff] }
 0x17f   : > { %v6992_v26 = vld [vmem:[#allocation3 + $0x190] sm:$0xff] }
 0x180   : > { %6248 = vpow2.f32 %v923_v20  ;;  %v1979_v33 = vrot.slane %v6992_v26, 7  ;;  %v7034_v59 = vpack.c.bf16 %v6992_v26, %v6971_v9  ;;  %v3158_v60 = vrot.slane %v6992_v26, 1  ;;  %9980 = vst [vmem:[#allocation15_spill] sm:$0xff] %v7106_v1  ;;  %5650 = vmatmul.msk.bf16.gmra.mxu2 %vm1331_vm0, %v7106_v1 }
 0x181   : > { %v1044_v31 = vpop.permute.xlu2 %1043 }
 0x182   : > { %v1200_v36 = vmul.f32 %v6931_v28, %v1044_v31  ;;  %v1980_v42 = vsel %vm1735_vm1, %v1977_v23, %v1979_v33  ;;  %9978 = vst [vmem:[#allocation13_spill] sm:$0xff] %v7034_v59  ;;  %v7051_v6 = vsel %vm2766_vm3, %v3157_v52, %v3158_v60  ;;  %v466_v33 = vld [vmem:[%s6722_s19 + $0x58] sm:$0xff] }
 0x183   : > { %v1164_v21 = vpop.permute.xlu1 %1163  ;;  %v7017_v48 = vpack.c.bf16 %v1980_v42, %v1978_v39 }
 0x184   : > { %v1224_v25 = vmul.f32 %v6931_v28, %v1164_v21  ;;  %v1236_v46 = vadd.f32 %v6936_v29, %v1200_v36  ;;  %v1918_v21 = vsel %vm1735_vm1, %v1916_v13, %v1917_v15  ;;  %v534_v36 = vmul.f32 %v6919_v14, %v466_v33 }
 0x185   : > { %9977 = vst [vmem:[#allocation12_spill] sm:$0xff] %v7017_v48  ;;  %5609 = vmatmul.msk.bf16.vlgmr.msra.gmra.mxu3 %vm1331_vm0, %v7017_v48  ;;  %v2028_v30 = vpack.c.bf16 %v1920_v22, %v1918_v21 }
 0x186   : > { %v1260_v34 = vadd.f32 %v6936_v29, %v1224_v25  ;;  %v1268_v53 = vmax.f32 %v1236_v46, 0.0  ;;  %v6249_v61 = vpop.eup %6248  ;;  %6157 = vmatpush.bf16.msra.mxu3 %v6120_v32 }
 0x187   : > { %v979_v63 = vadd.f32 1.0, %v6249_v61  ;;  %5597 = vmatmul.msk.bf16.vlgmr.msra.gmra.mxu0 %vm1331_vm0, %v2028_v30 }
 0x188   : > { %v1292_v45 = vmax.f32 %v1260_v34, 0.0  ;;  %1512 = vst.msk [vmem:[#allocation3 + $0x30] sm:$0xff] %vm1331_vm0, %v1268_v53  ;;  %v465_v34 = vld [vmem:[%s6722_s19 + $0x50] sm:$0xff]  ;;  %v7092_v53 = vpop.f32.mrf.mxu1 }
 0x189   : > { %v1169_v9 = vpop.permute.xlu2 %1168  ;;  %6250 = vrcp.f32 %v979_v63  ;;  %v533_v39 = vmul.f32 %v6919_v14, %v465_v34 }
 0x18a   : > { %1536 = vst.msk [vmem:[#allocation3 + $0x1b0] sm:$0xff] %vm1331_vm0, %v1292_v45  ;;  %v1225_v19 = vmul.f32 %v6931_v28, %v1169_v9  ;;  %6158 = vmatpush.bf16.msra.mxu3 %v6119_v43  ;;  %v1587_v43 = vld [vmem:[#allocation2 + $0x160] sm:$0xff]  ;;  %v1589_v45 = vld [vmem:[#allocation2 + $0x170] sm:$0xff] }
 0x18b   : > { %v1039_v62 = vpop.permute.xlu1 %1038  ;;  %v1791_v55 = vrot.slane %v1587_v43, 7  ;;  %v1794_v58 = vrot.slane %v1589_v45, 7 }
 0x18c   : > { %v1199_v0 = vmul.f32 %v6931_v28, %v1039_v62  ;;  %v1261_v25 = vadd.f32 %v6936_v29, %v1225_v19  ;;  %v508_v19 = vld [vmem:[%s6452_s26 + $0xa8] sm:$0xff] }
 0x18d   : > { %v1159_v8 = vpop.permute.xlu0 %1158  ;;  %v1793_v5 = vsel %vm1735_vm1, %v1791_v55, %v1792_v56 }
 0x18e   : > { %v1223_v18 = vmul.f32 %v6931_v28, %v1159_v8  ;;  %v1235_v20 = vadd.f32 %v6936_v29, %v1199_v0  ;;  %v1293_v32 = vmax.f32 %v1261_v25, 0.0  ;;  %v1795_v8 = vsel %vm1735_vm1, %v1792_v56, %v1794_v58 }
 0x18f   : > { %v6251_v42 = vpop.eup %6250  ;;  %v7114_v9 = vld [vmem:[#allocation3 + $0x30] sm:$0xff]  ;;  %v7118_v35 = vpack.c.bf16 %v1795_v8, %v1793_v5 }
 0x190   : > { %v1259_v24 = vadd.f32 %v6936_v29, %v1223_v18  ;;  %v1267_v27 = vmax.f32 %v1235_v20, 0.0  ;;  %1537 = vst.msk [vmem:[#allocation3 + $0x1c8] sm:$0xff] %vm1331_vm0, %v1293_v32  ;;  %1078 = vperm.xlu2 %6171, %v6251_v42   ;;  %v1619_v20 = vld [vmem:[#allocation3 + $0x20] sm:$0xff]  ;;  %v1924_v22 = vrot.slane %v7114_v9, 7 }
 0x191   : > { %v768_v49 = vpop.permute.xlu2 %767  ;;  %9981 = vst [vmem:[#allocation16_spill] sm:$0xff] %v7118_v35  ;;  %v7125_v17 = vld [vmem:[#allocation3 + $0x1b0] sm:$0xff]  ;;  %5632 = vmatmul.msk.bf16.gmra.mxu1 %vm1331_vm0, %v7118_v35 }
 0x192   : > { %v1291_v31 = vmax.f32 %v1259_v24, 0.0  ;;  %1511 = vst.msk [vmem:[#allocation3 + $0x28] sm:$0xff] %vm1331_vm0, %v1267_v27  ;;  %v853_v51 = vadd.f32 %v768_v49, %v533_v39  ;;  %v1921_v24 = vrot.slane %v1619_v20, 7  ;;  %v1667_v27 = vld [vmem:[#allocation3 + $0x1a0] sm:$0xff]  ;;  %v1618_v39 = vld [vmem:[#allocation3 + $0x18] sm:$0x1] }
 0x193   : > { %v616_v52 = vpop.permute.xlu1 %615  ;;  %v1981_v34 = vrot.slane %v1667_v27, 7  ;;  %v1984_v44 = vrot.slane %v7125_v17, 7  ;;  %v3100_v58 = vrot.slane %v1618_v39, 1  ;;  %v1671_v27 = vld [vmem:[#allocation3 + $0x1c0] sm:$0xff] }
 0x194   : > { %1535 = vst.msk [vmem:[#allocation3 + $0x1a8] sm:$0xff] %vm1331_vm0, %v1291_v31  ;;  %v697_v61 = vmul.f32 %v6919_v14, %v616_v52  ;;  %v885_v62 = vsub.f32 0.0, %v853_v51  ;;  %v7137_v31 = vpop.f32.mrf.mxu1  ;;  %v3098_v51 = vrot.slane %v7043_v4, 1 }
 0x195   : > { %v770_v46 = vpop.permute.xlu0 %769  ;;  %9982 = vst [vmem:[#allocation17_spill] sm:$0xff] %v7137_v31 }
 0x196   : > { %v854_v50 = vadd.f32 %v770_v46, %v534_v36  ;;  %775 = vrot.lane.b32.xlu1 %v697_v61, %s6370_s30  ;;  %v927_v0 = vmul.f32 1.442695, %v885_v62  ;;  %v3097_v46 = vrot.slane %v7041_v2, 1 }
 0x198   : > { %v886_v63 = vsub.f32 0.0, %v854_v50  ;;  %6252 = vpow2.f32 %v927_v0 }
 0x199   : > { %v1184_v11 = vpop.permute.xlu2 %1183  ;;  %v7131_v21 = vld [vmem:[#allocation3 + $0x28] sm:$0xff] }
 0x19a   : > { %v929_v37 = vmul.f32 1.442695, %v886_v63  ;;  %v1228_v15 = vmul.f32 %v6931_v28, %v1184_v11  ;;  %v1922_v25 = vrot.slane %v7131_v21, 7  ;;  %v3163_v63 = vrot.slane %v7125_v17, 1 }
 0x19b   : > { %v1668_v30 = vld [vmem:[#allocation3 + $0x1a8] sm:$0xff]  ;;  %v7172_v8 = vpack.c.bf16 %v7114_v9, %v7131_v21 }
 0x19c   : > { %v1264_v33 = vadd.f32 %v6936_v29, %v1228_v15  ;;  %v1982_v36 = vrot.slane %v1668_v30, 7  ;;  %v1923_v42 = vsel %vm1735_vm1, %v1921_v24, %v1922_v25  ;;  %v1925_v43 = vsel %vm1735_vm1, %v1922_v25, %v1924_v22 }
 0x19d   : > { %v1174_v13 = vpop.permute.xlu0 %1173  ;;  %6254 = vpow2.f32 %v929_v37  ;;  %v7154_v49 = vpack.c.bf16 %v1925_v43, %v1923_v42  ;;  %9985 = vst [vmem:[#allocation20_spill] sm:$0xff] %v7172_v8  ;;  %v7175_v11 = vpack.c.bf16 %v7125_v17, %v1668_v30  ;;  %v3162_v37 = vrot.slane %v1668_v30, 1  ;;  %v1672_v30 = vld [vmem:[#allocation3 + $0x1c8] sm:$0xff] }
 0x19e   : > { %v1226_v18 = vmul.f32 %v6931_v28, %v1174_v13  ;;  %629 = vrot.lane.b32.xlu1 %v508_v19, %s6369_s27  ;;  %v6253_v45 = vpop.eup %6252  ;;  %v1983_v50 = vsel %vm1735_vm1, %v1981_v34, %v1982_v36  ;;  %v1985_v56 = vsel %vm1735_vm1, %v1982_v36, %v1984_v44  ;;  %v1296_v61 = vmax.f32 %v1264_v33, 0.0  ;;  %v1670_v33 = vld [vmem:[#allocation3 + $0x1b8] sm:$0x1]  ;;  %v7191_v34 = vpop.f32.mrf.mxu1 }
 0x19f   : > { %9983 = vst [vmem:[#allocation18_spill] sm:$0xff] %v7154_v49  ;;  %v981_v52 = vadd.f32 1.0, %v6253_v45  ;;  %5598 = vmatmul.msk.bf16.gmra.mxu0 %vm1331_vm0, %v7154_v49  ;;  %v7165_v62 = vpack.c.bf16 %v1985_v56, %v1983_v50  ;;  %v3164_v19 = vsel %vm2766_vm3, %v3162_v37, %v3163_v63  ;;  %v3099_v24 = vsel %vm2766_vm3, %v3097_v46, %v3098_v51 }
 0x1a0   : > { %v1262_v32 = vadd.f32 %v6936_v29, %v1226_v18  ;;  %9986 = vst [vmem:[#allocation21_spill] sm:$0xff] %v7175_v11  ;;  %v468_v18 = vld [vmem:[%s6722_s19 + $0x68] sm:$0xff]  ;;  %v3101_v25 = vsel %vm2766_vm3, %v3098_v51, %v3100_v58  ;;  %v3165_v43 = vrot.slane %v1670_v33, 1  ;;  %v1986_v51 = vrot.slane %v1671_v27, 7 }
 0x1a1   : > { %9984 = vst [vmem:[#allocation19_spill] sm:$0xff] %v7165_v62  ;;  %6256 = vrcp.f32 %v981_v52  ;;  %5610 = vmatmul.msk.bf16.gmra.mxu3 %vm1331_vm0, %v7165_v62  ;;  %v536_v42 = vmul.f32 %v6919_v14, %v468_v18  ;;  %v1987_v52 = vrot.slane %v1672_v30, 7  ;;  %v3209_v58 = vpack.c.bf16 %v3101_v25, %v3099_v24  ;;  %v1674_v18 = vld [vmem:[#allocation3 + $0x1d8] sm:$0x1] }
 0x1a2   : > { %v1294_v55 = vmax.f32 %v1262_v32, 0.0  ;;  %1540 = vst.msk [vmem:[#allocation3 + $0x1f0] sm:$0xff] %vm1331_vm0, %v1296_v61  ;;  %v3160_v32 = vrot.slane %v1666_v38, 1  ;;  %v3166_v56 = vsel %vm2766_vm3, %v3163_v63, %v3165_v43  ;;  %v3167_v24 = vrot.slane %v1672_v30, 1  ;;  %v1622_v43 = vld [vmem:[#allocation3 + $0x38] sm:$0x1] }
 0x1a3   : > { %v6255_v20 = vpop.eup %6254  ;;  %v1988_v63 = vsel %vm1735_vm1, %v1986_v51, %v1987_v52  ;;  %5733 = vmatmul.msk.bf16.vlgmr.msrb.gmra.mxu1 %vm1331_vm0, %v3209_v58  ;;  %v3170_v27 = vrot.slane %v1674_v18, 1 }
 0x1a4   : > { %v1059_v5 = vpop.permute.xlu2 %1058  ;;  %1538 = vst.msk [vmem:[#allocation3 + $0x1d0] sm:$0xff] %vm1331_vm0, %v1294_v55  ;;  %v982_v45 = vadd.f32 1.0, %v6255_v20  ;;  %v3161_v50 = vsel %vm2766_vm3, %v3158_v60, %v3160_v32 }
 0x1a5   : > { %v1049_v0 = vpop.permute.xlu0 %1048  ;;  %v1203_v15 = vmul.f32 %v6931_v28, %v1059_v5  ;;  %v7199_v55 = vpack.c.bf16 %v3161_v50, %v7051_v6  ;;  %v7204_v5 = vpack.c.bf16 %v3166_v56, %v3164_v19  ;;  %v6314_v56 = vld [vmem:[#allocation2 + $0x50] sm:$0xff] }
 0x1a6   : > { %v1201_v13 = vmul.f32 %v6931_v28, %v1049_v0  ;;  %6258 = vrcp.f32 %v982_v45  ;;  %v7217_v32 = vpop.f32.mrf.mxu1 }
 0x1a7   : > { %v1239_v22 = vadd.f32 %v6936_v29, %v1203_v15  ;;  %v6257_v44 = vpop.eup %6256  ;;  %9987 = vst [vmem:[#allocation22_spill] sm:$0xff] %v7199_v55 }
 0x1a8   : > { %v1237_v17 = vadd.f32 %v6936_v29, %v1201_v13  ;;  %1088 = vperm.xlu0 %6172, %v6257_v44   ;;  %9988 = vst [vmem:[#allocation23_spill] sm:$0xff] %v7204_v5 }
 0x1a9   : > { %v1271_v39 = vmax.f32 %v1239_v22, 0.0  ;;  %9991 = vst [vmem:[#allocation26_spill] sm:$0xff] %v7217_v32 }
 0x1aa   : > { %v1269_v36 = vmax.f32 %v1237_v17, 0.0 }
 0x1ab   : > { %v1054_v46 = vpop.permute.xlu1 %1053  ;;  %1515 = vst.msk [vmem:[#allocation3 + $0x68] sm:$0xff] %vm1331_vm0, %v1271_v39  ;;  %v1673_v13 = vld [vmem:[#allocation3 + $0x1d0] sm:$0xff] }
 0x1ac   : > { %1513 = vst.msk [vmem:[#allocation3 + $0x48] sm:$0xff] %vm1331_vm0, %v1269_v36  ;;  %v774_v0 = vpop.permute.xlu2 %773  ;;  %v1202_v26 = vmul.f32 %v6931_v28, %v1054_v46  ;;  %v1989_v6 = vrot.slane %v1673_v13, 7  ;;  %v7212_v22 = vpack.c.bf16 %v1673_v13, %v1672_v30  ;;  %v3168_v25 = vrot.slane %v1673_v13, 1 }
 0x1ad   : > { %v620_v61 = vpop.permute.xlu0 %619  ;;  %v856_v37 = vadd.f32 %v774_v0, %v536_v42  ;;  %v6259_v42 = vpop.eup %6258  ;;  %v3102_v30 = vrot.slane %v7131_v21, 1  ;;  %v3103_v0 = vrot.slane %v7114_v9, 1 }
 0x1ae   : > { %v699_v60 = vmul.f32 %v6919_v14, %v620_v61  ;;  %v1238_v15 = vadd.f32 %v6936_v29, %v1202_v26  ;;  %v1990_v19 = vsel %vm1735_vm1, %v1987_v52, %v1989_v6  ;;  %9989 = vst [vmem:[#allocation24_spill] sm:$0xff] %v7212_v22  ;;  %v3169_v36 = vsel %vm2766_vm3, %v3167_v24, %v3168_v25  ;;  %v6313_v52 = vld [vmem:[#allocation2 + $0x48] sm:$0xff] }
 0x1af   : > { %v888_v20 = vsub.f32 0.0, %v856_v37  ;;  %v7214_v38 = vpack.c.bf16 %v1990_v19, %v1988_v63  ;;  %v3171_v39 = vsel %vm2766_vm3, %v3168_v25, %v3170_v27  ;;  %v7228_v58 = vpack.c.bf16 %v6314_v56, %v6313_v52  ;;  %v1623_v19 = vld [vmem:[#allocation3 + $0x40] sm:$0xff]  ;;  %v1626_v52 = vld [vmem:[#allocation3 + $0x58] sm:$0x1] }
 0x1b0   : > { %779 = vrot.lane.b32.xlu1 %v699_v60, %s6370_s30  ;;  %v1270_v17 = vmax.f32 %v1238_v15, 0.0  ;;  %v7222_v46 = vpack.c.bf16 %v3171_v39, %v3169_v36  ;;  %v3105_v26 = vrot.slane %v1622_v43, 1  ;;  %v3104_v37 = vsel %vm2766_vm3, %v3102_v30, %v3103_v0 }
 0x1b1   : > { %9990 = vst [vmem:[#allocation25_spill] sm:$0xff] %v7214_v38  ;;  %v933_v44 = vmul.f32 1.442695, %v888_v20  ;;  %5611 = vmatmul.msk.bf16.gmra.mxu3 %vm1331_vm0, %v7214_v38  ;;  %5651 = vmatmul.msk.bf16.gmra.mxu2 %vm1331_vm0, %v7228_v58  ;;  %v1926_v36 = vrot.slane %v1623_v19, 7 }
 0x1b2   : > { %1514 = vst.msk [vmem:[#allocation3 + $0x50] sm:$0xff] %vm1331_vm0, %v1270_v17  ;;  %v3106_v15 = vsel %vm2766_vm3, %v3103_v0, %v3105_v26  ;;  %v7243_v17 = vpop.f32.mrf.mxu1 }
 0x1b3   : > { %v1179_v33 = vpop.permute.xlu1 %1178  ;;  %9992 = vst [vmem:[#allocation27_spill] sm:$0xff] %v7222_v46  ;;  %6260 = vpow2.f32 %v933_v44  ;;  %v7239_v63 = vpack.c.bf16 %v3106_v15, %v3104_v37  ;;  %v1624_v24 = vld [vmem:[#allocation3 + $0x48] sm:$0xff]  ;;  %v3110_v37 = vrot.slane %v1626_v52, 1 }
 0x1b4   : > { %v1069_v45 = vpop.permute.xlu2 %1068  ;;  %v1227_v50 = vmul.f32 %v6931_v28, %v1179_v33  ;;  %9993 = vst [vmem:[#allocation28_spill] sm:$0xff] %v7228_v58  ;;  %v1927_v39 = vrot.slane %v1624_v24, 7  ;;  %v3107_v0 = vrot.slane %v1624_v24, 1  ;;  %v467_v58 = vld [vmem:[%s6722_s19 + $0x60] sm:$0xff] }
 0x1b5   : > { %v1205_v51 = vmul.f32 %v6931_v28, %v1069_v45  ;;  %9994 = vst [vmem:[#allocation29_spill] sm:$0xff] %v7239_v63  ;;  %5734 = vmatmul.msk.bf16.gmra.mxu1 %vm1331_vm0, %v7239_v63 }
 0x1b6   : > { %v1263_v61 = vadd.f32 %v6936_v29, %v1227_v50  ;;  %v1928_v44 = vsel %vm1735_vm1, %v1926_v36, %v1927_v39 }
 0x1b7   : > { %v1241_v60 = vadd.f32 %v6936_v29, %v1205_v51 }
 0x1b8   : > { %1093 = vperm.xlu1 %6173, %v6259_v42   ;;  %v1295_v21 = vmax.f32 %v1263_v61, 0.0  ;;  %v1677_v61 = vld [vmem:[#allocation3 + $0x1f0] sm:$0xff] }
 0x1b9   : > { %v1273_v13 = vmax.f32 %v1241_v60, 0.0  ;;  %v1625_v25 = vld [vmem:[#allocation3 + $0x50] sm:$0xff]  ;;  %v6261_v27 = vpop.eup %6260 }
 0x1ba   : > { %1539 = vst.msk [vmem:[#allocation3 + $0x1e8] sm:$0xff] %vm1331_vm0, %v1295_v21  ;;  %v1929_v42 = vrot.slane %v1625_v25, 7  ;;  %v7251_v50 = vpack.c.bf16 %v1625_v25, %v1624_v24  ;;  %v984_v30 = vadd.f32 1.0, %v6261_v27  ;;  %v3108_v26 = vrot.slane %v1625_v25, 1  ;;  %v1678_v21 = vld [vmem:[#allocation3 + $0x1f8] sm:$0x1] }
 0x1bb   : > { %1517 = vst.msk [vmem:[#allocation3 + $0x88] sm:$0xff] %vm1331_vm0, %v1273_v13  ;;  %v1064_v6 = vpop.permute.xlu0 %1063  ;;  %v622_v9 = vpop.permute.xlu1 %621  ;;  %v1675_v13 = vld [vmem:[#allocation3 + $0x1e0] sm:$0xff]  ;;  %v1994_v27 = vrot.slane %v1677_v61, 7  ;;  %v3173_v24 = vrot.slane %v1677_v61, 1  ;;  %v3175_v25 = vrot.slane %v1678_v21, 1 }
 0x1bc   : > { %v1204_v18 = vmul.f32 %v6931_v28, %v1064_v6  ;;  %v700_v20 = vmul.f32 %v6919_v14, %v622_v9  ;;  %v1930_v45 = vsel %vm1735_vm1, %v1927_v39, %v1929_v42  ;;  %9995 = vst [vmem:[#allocation30_spill] sm:$0xff] %v7251_v50  ;;  %6262 = vrcp.f32 %v984_v30  ;;  %v6315_v6 = vld [vmem:[#allocation2 + $0x68] sm:$0xff]  ;;  %v6316_v9 = vld [vmem:[#allocation2 + $0x70] sm:$0xff] }
 0x1bd   : > { %v7253_v51 = vpack.c.bf16 %v1930_v45, %v1928_v44  ;;  %v3109_v36 = vsel %vm2766_vm3, %v3107_v0, %v3108_v26  ;;  %v1627_v45 = vld [vmem:[#allocation3 + $0x60] sm:$0xff]  ;;  %v1628_v30 = vld [vmem:[#allocation3 + $0x68] sm:$0xff]  ;;  %v3176_v21 = vsel %vm2766_vm3, %v3173_v24, %v3175_v25 }
 0x1be   : > { %v1240_v33 = vadd.f32 %v6936_v29, %v1204_v18  ;;  %781 = vrot.lane.b32.xlu2 %v700_v20, %s6370_s30  ;;  %v7259_v18 = vpack.c.bf16 %v6316_v9, %v6315_v6  ;;  %v1991_v20 = vrot.slane %v1675_v13, 7  ;;  %v1932_v6 = vrot.slane %v1628_v30, 7 }
 0x1bf   : > { %9996 = vst [vmem:[#allocation31_spill] sm:$0xff] %v7253_v51  ;;  %5599 = vmatmul.msk.bf16.gmra.mxu0 %vm1331_vm0, %v7253_v51 }
 0x1c0   : > { %v1272_v43 = vmax.f32 %v1240_v33, 0.0  ;;  %9997 = vst [vmem:[#allocation32_spill] sm:$0xff] %v7259_v18  ;;  %v7262_v33 = vpop.f32.mrf.mxu1 }
 0x1c1   : > { %v1676_v15 = vld [vmem:[#allocation3 + $0x1e8] sm:$0xff]  ;;  %9998 = vst [vmem:[#allocation33_spill] sm:$0xff] %v7262_v33  ;;  %5652 = vmatmul.msk.bf16.gmra.mxu2 %vm1331_vm0, %v7259_v18  ;;  %v1323_v18 = vld [vmem:[%s6762_s24 + $0xc0] sm:$0xff] }
 0x1c2   : > { %1516 = vst.msk [vmem:[#allocation3 + $0x70] sm:$0xff] %vm1331_vm0, %v1272_v43  ;;  %v1992_v19 = vrot.slane %v1676_v15, 7  ;;  %v3111_v43 = vsel %vm2766_vm3, %v3108_v26, %v3110_v37  ;;  %v7272_v52 = vpack.c.bf16 %v1677_v61, %v1676_v15  ;;  %v1931_v37 = vrot.slane %v1627_v45, 7 }
 0x1c3   : > { %v624_v56 = vpop.permute.xlu0 %623  ;;  %v7278_v13 = vpack.c.bf16 %v3111_v43, %v3109_v36  ;;  %1430 = vst.msk [vmem:[#allocation2 + $0x1a8] sm:$0xff] %vm1331_vm0, %v1323_v18 }
 0x1c4   : > { %v701_v60 = vmul.f32 %v6919_v14, %v624_v56  ;;  %v1993_v39 = vsel %vm1735_vm1, %v1991_v20, %v1992_v19  ;;  %v1995_v42 = vsel %vm1735_vm1, %v1992_v19, %v1994_v27  ;;  %10000 = vst [vmem:[#allocation35_spill] sm:$0xff] %v7272_v52  ;;  %v3172_v56 = vrot.slane %v1676_v15, 1  ;;  %v1321_v27 = vld [vmem:[%s6762_s24 + $0xb0] sm:$0xff] }
 0x1c5   : > { %v7270_v44 = vpack.c.bf16 %v1995_v42, %v1993_v39  ;;  %10001 = vst [vmem:[#allocation36_spill] sm:$0xff] %v7278_v13  ;;  %v1322_v39 = vld [vmem:[%s6762_s24 + $0xb8] sm:$0xff]  ;;  %5735 = vmatmul.msk.bf16.gmra.mxu1 %vm1331_vm0, %v7278_v13 }
 0x1c6   : > { %783 = vrot.lane.b32.xlu2 %v701_v60, %s6370_s30  ;;  %v6263_v60 = vpop.eup %6262  ;;  %v3174_v0 = vsel %vm2766_vm3, %v3172_v56, %v3173_v24  ;;  %v1933_v24 = vsel %vm1735_vm1, %v1931_v37, %v1932_v6  ;;  %1428 = vst.msk [vmem:[#allocation2 + $0x188] sm:$0xff] %vm1331_vm0, %v1321_v27  ;;  %v1630_v56 = vld [vmem:[#allocation3 + $0x78] sm:$0x1]  ;;  %v6318_v37 = vld [vmem:[#allocation2 + $0x90] sm:$0xff] }
 0x1c7   : > { %9999 = vst [vmem:[#allocation34_spill] sm:$0xff] %v7270_v44  ;;  %5612 = vmatmul.msk.bf16.gmra.mxu3 %vm1331_vm0, %v7270_v44  ;;  %v7280_v9 = vpack.c.bf16 %v3176_v21, %v3174_v0  ;;  %v3115_v0 = vrot.slane %v1630_v56, 1  ;;  %v1591_v21 = vld [vmem:[#allocation2 + $0x180] sm:$0xff] }
 0x1c8   : > { %v7291_v36 = vpop.f32.mrf.mxu1  ;;  %1429 = vst.msk [vmem:[#allocation2 + $0x190] sm:$0xff] %vm1331_vm0, %v1322_v39 }
 0x1c9   : > { %10002 = vst [vmem:[#allocation37_spill] sm:$0xff] %v7280_v9  ;;  %v1629_v20 = vld [vmem:[#allocation3 + $0x70] sm:$0xff] }
 0x1ca   : > { %v1934_v15 = vrot.slane %v1629_v20, 7  ;;  %v7296_v45 = vpack.c.bf16 %v1629_v20, %v1628_v30  ;;  %v7344_v38 = vld [vmem:[#allocation2 + $0x1a8] sm:$0xff] }
 0x1cb   : > { %v1074_v26 = vpop.permute.xlu0 %1073 }
 0x1cc   : > { %v1206_v61 = vmul.f32 %v6931_v28, %v1074_v26  ;;  %v1935_v25 = vsel %vm1735_vm1, %v1932_v6, %v1934_v15  ;;  %10004 = vst [vmem:[#allocation39_spill] sm:$0xff] %v7296_v45  ;;  %v6317_v26 = vld [vmem:[#allocation2 + $0x88] sm:$0xff]  ;;  %v3112_v15 = vrot.slane %v1628_v30, 1 }
 0x1cd   : > { %v7293_v43 = vpack.c.bf16 %v1935_v25, %v1933_v24  ;;  %v7301_v6 = vpack.c.bf16 %v6318_v37, %v6317_v26  ;;  %v1632_v30 = vld [vmem:[#allocation3 + $0x88] sm:$0xff] }
 0x1ce   : > { %1103 = vperm.xlu2 %6171, %v6263_v60   ;;  %v1242_v19 = vadd.f32 %v6936_v29, %v1206_v61  ;;  %v3113_v60 = vrot.slane %v1629_v20, 1  ;;  %v1796_v61 = vrot.slane %v1591_v21, 7 }
 0x1cf   : > { %10003 = vst [vmem:[#allocation38_spill] sm:$0xff] %v7293_v43  ;;  %5600 = vmatmul.msk.bf16.gmra.mxu0 %vm1331_vm0, %v7293_v43  ;;  %v7307_v27 = vld [vmem:[#allocation2 + $0x190] sm:$0xff] }
 0x1d0   : > { %v1274_v42 = vmax.f32 %v1242_v19, 0.0  ;;  %10005 = vst [vmem:[#allocation40_spill] sm:$0xff] %v7301_v6  ;;  %v7303_v19 = vld [vmem:[#allocation2 + $0x188] sm:$0xff]  ;;  %v3114_v20 = vsel %vm2766_vm3, %v3112_v15, %v3113_v60  ;;  %v3116_v24 = vsel %vm2766_vm3, %v3113_v60, %v3115_v0  ;;  %v1799_v25 = vrot.slane %v7307_v27, 7  ;;  %v7314_v21 = vpop.f32.mrf.mxu1  ;;  %v470_v60 = vld [vmem:[%s6722_s19 + $0x78] sm:$0xff] }
 0x1d1   : > { %5653 = vmatmul.msk.bf16.gmra.mxu2 %vm1331_vm0, %v7301_v6  ;;  %v1797_v39 = vrot.slane %v7303_v19, 7  ;;  %10006 = vst [vmem:[#allocation41_spill] sm:$0xff] %v7314_v21  ;;  %v7317_v37 = vpack.c.bf16 %v3116_v24, %v3114_v20  ;;  %v1937_v15 = vrot.slane %v1632_v30, 7  ;;  %v538_v6 = vmul.f32 %v6919_v14, %v470_v60  ;;  %v1634_v60 = vld [vmem:[#allocation3 + $0x98] sm:$0x1] }
 0x1d2   : > { %1518 = vst.msk [vmem:[#allocation3 + $0x90] sm:$0xff] %vm1331_vm0, %v1274_v42  ;;  %v1631_v42 = vld [vmem:[#allocation3 + $0x80] sm:$0xff]  ;;  %v3120_v44 = vrot.slane %v1634_v60, 1 }
 0x1d3   : > { %v1798_v56 = vsel %vm1735_vm1, %v1796_v61, %v1797_v39  ;;  %v1800_v26 = vsel %vm1735_vm1, %v1797_v39, %v1799_v25  ;;  %10007 = vst [vmem:[#allocation42_spill] sm:$0xff] %v7317_v37  ;;  %v1936_v13 = vrot.slane %v1631_v42, 7  ;;  %v1324_v61 = vld [vmem:[%s6762_s24 + $0xc8] sm:$0xff]  ;;  %v628_v24 = vpop.permute.xlu0 %627 }
 0x1d4   : > { %v7319_v23 = vpack.c.bf16 %v1800_v26, %v1798_v56  ;;  %1431 = vst.msk [vmem:[#allocation2 + $0x1b0] sm:$0xff] %vm1331_vm0, %v1324_v61 }
 0x1d5   : > { %5736 = vmatmul.msk.bf16.gmra.mxu1 %vm1331_vm0, %v7317_v37  ;;  %v1938_v39 = vsel %vm1735_vm1, %v1936_v13, %v1937_v15 }
 0x1d6   : > { %10008 = vst [vmem:[#allocation43_spill] sm:$0xff] %v7319_v23  ;;  %v778_v25 = vpop.permute.xlu2 %777 }
 0x1d7   : > { %5633 = vmatmul.msk.bf16.vlgmr.msrb.gmra.mxu3 %vm1331_vm0, %v7319_v23  ;;  %v858_v56 = vadd.f32 %v778_v25, %v538_v6  ;;  %v535_v6 = vmul.f32 %v6919_v14, %v467_v58 }
 0x1d8   : > { %v7339_v13 = vpop.f32.mrf.mxu1 }
 0x1d9   : > { %v1633_v63 = vld [vmem:[#allocation3 + $0x90] sm:$0xff] }
 0x1da   : > { %v1939_v0 = vrot.slane %v1633_v63, 7  ;;  %v7334_v26 = vpack.c.bf16 %v1633_v63, %v1632_v30  ;;  %v3118_v37 = vrot.slane %v1633_v63, 1 }
 0x1db   : > { %v7347_v48 = vld [vmem:[#allocation2 + $0x1b0] sm:$0xff] }
 0x1dc   : > { %v1940_v20 = vsel %vm1735_vm1, %v1937_v15, %v1939_v0  ;;  %10010 = vst [vmem:[#allocation45_spill] sm:$0xff] %v7334_v26  ;;  %v890_v15 = vsub.f32 0.0, %v858_v56  ;;  %v1595_v0 = vld [vmem:[#allocation2 + $0x1a0] sm:$0xff]  ;;  %v3121_v62 = vsel %vm2766_vm3, %v3118_v37, %v3120_v44  ;;  %v1802_v56 = vrot.slane %v7344_v38, 7 }
 0x1dd   : > { %v7331_v42 = vpack.c.bf16 %v1940_v20, %v1938_v39  ;;  %v3117_v20 = vrot.slane %v1632_v30, 1  ;;  %v1801_v18 = vrot.slane %v1595_v0, 7  ;;  %v1804_v30 = vrot.slane %v7347_v48, 7 }
 0x1de   : > { %v937_v63 = vmul.f32 1.442695, %v890_v15 }
 0x1df   : > { %10009 = vst [vmem:[#allocation44_spill] sm:$0xff] %v7331_v42  ;;  %5601 = vmatmul.msk.bf16.gmra.mxu0 %vm1331_vm0, %v7331_v42  ;;  %v3119_v25 = vsel %vm2766_vm3, %v3117_v20, %v3118_v37  ;;  %v1803_v0 = vsel %vm1735_vm1, %v1801_v18, %v1802_v56  ;;  %v1805_v44 = vsel %vm1735_vm1, %v1802_v56, %v1804_v30  ;;  %v6325_v42 = vld [vmem:[#allocation2 + $0xd0] sm:$0xff] }
 0x1e0   : > { %v7354_v21 = vpack.c.bf16 %v3121_v62, %v3119_v25  ;;  %6264 = vpow2.f32 %v937_v63  ;;  %v7357_v15 = vpack.c.bf16 %v1805_v44, %v1803_v0  ;;  %v7360_v33 = vpop.f32.mrf.mxu1  ;;  %v1326_v62 = vld [vmem:[%s6762_s24 + $0xd8] sm:$0xff] }
 0x1e1   : > { %10013 = vst [vmem:[#allocation48_spill] sm:$0xff] %v7360_v33 }
 0x1e2   : > { %10011 = vst [vmem:[#allocation46_spill] sm:$0xff] %v7354_v21 }
 0x1e3   : > { %10012 = vst [vmem:[#allocation47_spill] sm:$0xff] %v7357_v15 }
 0x1e4   : > { %1433 = vst.msk [vmem:[#allocation2 + $0x1d0] sm:$0xff] %vm1331_vm0, %v1326_v62 }
 0x1e5   : > { %5737 = vmatmul.msk.bf16.gmra.mxu1 %vm1331_vm0, %v7354_v21 }
 0x1e6   : > { %v772_v39 = vpop.permute.xlu1 %771  ;;  %v1084_v61 = vpop.permute.xlu0 %1083 }
 0x1e7   : > { %v855_v1 = vadd.f32 %v772_v39, %v535_v6  ;;  %v1208_v60 = vmul.f32 %v6931_v28, %v1084_v61  ;;  %5634 = vmatmul.msk.bf16.gmra.mxu3 %vm1331_vm0, %v7357_v15  ;;  %v6265_v56 = vpop.eup %6264 }
 0x1e9   : > { %v887_v58 = vsub.f32 0.0, %v855_v1  ;;  %v1244_v20 = vadd.f32 %v6936_v29, %v1208_v60  ;;  %v1325_v1 = vld [vmem:[%s6762_s24 + $0xd0] sm:$0xff] }
 0x1ea   : > { %v1079_v6 = vpop.permute.xlu2 %1078  ;;  %1432 = vst.msk [vmem:[#allocation2 + $0x1c8] sm:$0xff] %vm1331_vm0, %v1325_v1 }
 0x1eb   : > { %v931_v37 = vmul.f32 1.442695, %v887_v58  ;;  %v1276_v39 = vmax.f32 %v1244_v20, 0.0  ;;  %v1207_v61 = vmul.f32 %v6931_v28, %v1079_v6  ;;  %v1599_v58 = vld [vmem:[#allocation2 + $0x1c0] sm:$0xff]  ;;  %v7386_v6 = vpop.f32.mrf.mxu1 }
 0x1ec   : > { %v1806_v0 = vrot.slane %v1599_v58, 7 }
 0x1ed   : > { %6266 = vpow2.f32 %v931_v37  ;;  %1520 = vst.msk [vmem:[#allocation3 + $0xb0] sm:$0xff] %vm1331_vm0, %v1276_v39  ;;  %v1243_v18 = vadd.f32 %v6936_v29, %v1207_v61  ;;  %v7378_v29 = vld [vmem:[%s9781_s3] ss:$0 sm:$0xff]  ;;  %v7383_v37 = vld [vmem:[#allocation2 + $0x1d0] sm:$0xff] }
 0x1ee   : > { %v626_v25 = vpop.permute.xlu1 %625  ;;  %v703_v20 = vmul.f32 %v7378_v29, %v628_v24  ;;  %v1809_v61 = vrot.slane %v7383_v37, 7 }
 0x1ef   : > { %v702_v63 = vmul.f32 %v6919_v14, %v626_v25  ;;  %v1275_v28 = vmax.f32 %v1243_v18, 0.0  ;;  %v986_v14 = vadd.f32 1.0, %v6265_v56  ;;  %v1638_v25 = vld [vmem:[#allocation3 + $0xb8] sm:$0x1]  ;;  %v6321_v56 = vld [vmem:[#allocation2 + $0xb0] sm:$0xff] }
 0x1f1   : > { %785 = vrot.lane.b32.xlu0 %v702_v63, %s6370_s30  ;;  %1519 = vst.msk [vmem:[#allocation3 + $0xa8] sm:$0xff] %vm1331_vm0, %v1275_v28  ;;  %v7381_v44 = vld [vmem:[#allocation2 + $0x1c8] sm:$0xff] }
 0x1f2   : > { %v1807_v39 = vrot.slane %v7381_v44, 7  ;;  %v6320_v28 = vld [vmem:[#allocation2 + $0xa8] sm:$0xff] }
 0x1f3   : > { %v6267_v60 = vpop.eup %6266  ;;  %v7414_v15 = vpop.f32.mrf.mxu1 }
 0x1f4   : > { %v983_v30 = vadd.f32 1.0, %v6267_v60  ;;  %v1808_v1 = vsel %vm1735_vm1, %v1806_v0, %v1807_v39  ;;  %v1810_v62 = vsel %vm1735_vm1, %v1807_v39, %v1809_v61  ;;  %v1637_v18 = vld [vmem:[#allocation3 + $0xb0] sm:$0xff]  ;;  %v7394_v60 = vpack.c.bf16 %v6321_v56, %v6320_v28  ;;  %10019 = vst [vmem:[#allocation54_spill] sm:$0xff] %v7414_v15 }
 0x1f5   : > { %v7392_v24 = vpack.c.bf16 %v1810_v62, %v1808_v1  ;;  %v3123_v21 = vrot.slane %v1637_v18, 1  ;;  %v3125_v0 = vrot.slane %v1638_v25, 1  ;;  %v1944_v61 = vrot.slane %v1637_v18, 7  ;;  %v1327_v1 = vld [vmem:[%s6762_s24 + $0xe0] sm:$0xff]  ;;  %v1328_v62 = vld [vmem:[%s6762_s24 + $0xe8] sm:$0xff] }
 0x1f6   : > { %6268 = vrcp.f32 %v983_v30  ;;  %10015 = vst [vmem:[#allocation50_spill] sm:$0xff] %v7394_v60  ;;  %v1635_v30 = vld [vmem:[#allocation3 + $0xa0] sm:$0xff]  ;;  %5654 = vmatmul.msk.bf16.gmra.mxu2 %vm1331_vm0, %v7394_v60 }
 0x1f7   : > { %6270 = vrcp.f32 %v986_v14  ;;  %10014 = vst [vmem:[#allocation49_spill] sm:$0xff] %v7392_v24  ;;  %v1941_v14 = vrot.slane %v1635_v30, 7  ;;  %5635 = vmatmul.msk.bf16.gmra.mxu3 %vm1331_vm0, %v7392_v24 }
 0x1f8   : > { %v1636_v58 = vld [vmem:[#allocation3 + $0xa8] sm:$0xff]  ;;  %1434 = vst.msk [vmem:[#allocation2 + $0x1e8] sm:$0xff] %vm1331_vm0, %v1327_v1 }
 0x1f9   : > { %787 = vrot.lane.b32.xlu0 %v703_v20, %s6370_s30  ;;  %v1942_v39 = vrot.slane %v1636_v58, 7  ;;  %v3122_v20 = vrot.slane %v1636_v58, 1  ;;  %1435 = vst.msk [vmem:[#allocation2 + $0x1f0] sm:$0xff] %vm1331_vm0, %v1328_v62  ;;  %v7412_v60 = vpack.c.bf16 %v1637_v18, %v1636_v58 }
 0x1fb   : > { %v1943_v28 = vsel %vm1735_vm1, %v1941_v14, %v1942_v39  ;;  %v1945_v56 = vsel %vm1735_vm1, %v1942_v39, %v1944_v61  ;;  %v3124_v25 = vsel %vm2766_vm3, %v3122_v20, %v3123_v21  ;;  %10018 = vst [vmem:[#allocation53_spill] sm:$0xff] %v7412_v60 }
 0x1fc   : > { %v6269_v63 = vpop.eup %6268  ;;  %v7407_v33 = vpack.c.bf16 %v1945_v56, %v1943_v28 }
 0x1fd   : > { %1098 = vperm.xlu1 %6173, %v6269_v63   ;;  %v3126_v63 = vsel %vm2766_vm3, %v3123_v21, %v3125_v0  ;;  %v6271_v30 = vpop.eup %6270  ;;  %v1603_v21 = vld [vmem:[#allocation2 + $0x1e0] sm:$0xff]  ;;  %v469_v0 = vld [vmem:[%s6722_s19 + $0x70] sm:$0xff] }
 0x1fe   : > { %10016 = vst [vmem:[#allocation51_spill] sm:$0xff] %v7407_v33  ;;  %v7409_v24 = vpack.c.bf16 %v3126_v63, %v3124_v25  ;;  %5602 = vmatmul.msk.bf16.gmra.mxu0 %vm1331_vm0, %v7407_v33  ;;  %v1811_v14 = vrot.slane %v1603_v21, 7  ;;  %v537_v39 = vmul.f32 %v7378_v29, %v469_v0 }
 0x1ff   : > { %v7422_v61 = vld [vmem:[#allocation2 + $0x1e8] sm:$0xff] }
 0x200   : > { %10017 = vst [vmem:[#allocation52_spill] sm:$0xff] %v7409_v24  ;;  %5738 = vmatmul.msk.bf16.gmra.mxu1 %vm1331_vm0, %v7409_v24  ;;  %v7424_v20 = vld [vmem:[#allocation2 + $0x1f0] sm:$0xff]  ;;  %v1812_v18 = vrot.slane %v7422_v61, 7  ;;  %v2436_v24 = vpop.f32.mrf.mxu2 }
 0x201   : > { %1113 = vperm.xlu0 %6172, %v6271_v30   ;;  %v1814_v58 = vrot.slane %v7424_v20, 7 }
 0x202   : > { %v1813_v62 = vsel %vm1735_vm1, %v1811_v14, %v1812_v18 }
 0x203   : > { %v1815_v56 = vsel %vm1735_vm1, %v1812_v18, %v1814_v58  ;;  %v472_v18 = vld [vmem:[%s6722_s19 + $0x88] sm:$0xff] }
 0x204   : > { %v7430_v25 = vpack.c.bf16 %v1815_v56, %v1813_v62  ;;  %v2117_v30 = vpop.f32.mrf.mxu0 }
 0x205   : > { %v2267_v0 = vadd.f32 %v7092_v53, %v2117_v30  ;;  %v540_v53 = vmul.f32 %v7378_v29, %v472_v18 }
 0x206   : > { %10020 = vst [vmem:[#allocation55_spill] sm:$0xff] %v7430_v25 }
 0x207   : > { %5636 = vmatmul.msk.bf16.gmra.mxu3 %vm1331_vm0, %v7430_v25  ;;  %v7435_v15 = vadd.f32 %v2436_v24, %v2267_v0  ;;  %v473_v0 = vld [vmem:[%s6722_s19 + $0x90] sm:$0xff]  ;;  %v7456_v25 = vld [vmem:[%s9782_s4] ss:$0 sm:$0xff] }
 0x208   : > { %v776_v1 = vpop.permute.xlu1 %775 }
 0x209   : > { %v857_v28 = vadd.f32 %v776_v1, %v537_v39  ;;  %v7439_v39 = vpop.f32.mrf.mxu3 }
 0x20b   : > { %v889_v63 = vsub.f32 0.0, %v857_v28  ;;  %v7445_v28 = vpop.f32.mrf.mxu2 }
 0x20c   : > { %v7442_v1 = vpop.f32.mrf.mxu0  ;;  %10022 = vst [vmem:[#allocation57_spill] sm:$0xff] %v7445_v28 }
 0x20d   : > { %v935_v21 = vmul.f32 1.442695, %v889_v63  ;;  %10021 = vst [vmem:[#allocation56_spill] sm:$0xff] %v7442_v1 }
 0x20f   : > { %6272 = vpow2.f32 %v935_v21 }
 0x210   : > { %v630_v23 = vpop.permute.xlu1 %629 }
 0x211   : > { %v704_v14 = vmul.f32 %v7378_v29, %v630_v23  ;;  %v7449_v23 = vpack.c.bf16 %v7307_v27, %v7303_v19  ;;  %v7468_v27 = vld [vmem:[%s9783_s5] ss:$0 sm:$0xff] }
 0x213   : > { %789 = vrot.lane.b32.xlu1 %v704_v14, %s6370_s30  ;;  %10023 = vst [vmem:[#allocation58_spill] sm:$0xff] %v7449_v23  ;;  %v471_v14 = vld [vmem:[%s6722_s19 + $0x80] sm:$0xff]  ;;  %v2441_v19 = vpop.f32.mrf.mxu2 }
 0x215   : > { %v6273_v58 = vpop.eup %6272 }
 0x216   : > { %v985_v62 = vadd.f32 1.0, %v6273_v58  ;;  %v541_v58 = vmul.f32 %v7378_v29, %v473_v0 }
 0x217   : > { %5661 = vmatmul.msk.bf16.vlgmr.msra.gmra.mxu3 %vm1331_vm0, %v7449_v23 }
 0x218   : > { %v782_v24 = vpop.permute.xlu2 %781  ;;  %6274 = vrcp.f32 %v985_v62 }
 0x219   : > { %v860_v56 = vadd.f32 %v782_v24, %v540_v53  ;;  %v539_v53 = vmul.f32 %v7378_v29, %v471_v14  ;;  %v7461_v24 = vpop.f32.mrf.mxu3 }
 0x21a   : > { %v1089_v21 = vpop.permute.xlu0 %1088 }
 0x21b   : > { %v892_v63 = vsub.f32 0.0, %v860_v56  ;;  %v1209_v18 = vmul.f32 %v7456_v25, %v1089_v21 }
 0x21d   : > { %v941_v30 = vmul.f32 1.442695, %v892_v63  ;;  %v1245_v56 = vadd.f32 %v7468_v27, %v1209_v18  ;;  %v2122_v63 = vpop.f32.mrf.mxu0  ;;  %v7475_v18 = vpack.c.bf16 %v6325_v42, %v6324_v3  ;;  %v7485_v3 = vpack.c.bf16 %v7347_v48, %v7344_v38  ;;  %v7493_v48 = vpop.f32.mrf.mxu2 }
 0x21e   : > { %v6275_v62 = vpop.eup %6274  ;;  %v2272_v0 = vadd.f32 %v7191_v34, %v2122_v63  ;;  %10026 = vst [vmem:[#allocation61_spill] sm:$0xff] %v7493_v48  ;;  %v7597_v48 = vld [vmem:[#allocation2 + $0x110] sm:$0xff] }
 0x21f   : > { %6276 = vpow2.f32 %v941_v30  ;;  %1108 = vperm.xlu2 %6171, %v6275_v62   ;;  %v1277_v35 = vmax.f32 %v1245_v56, 0.0  ;;  %10024 = vst [vmem:[#allocation59_spill] sm:$0xff] %v7475_v18  ;;  %5655 = vmatmul.msk.bf16.gmra.mxu2 %vm1331_vm0, %v7475_v18 }
 0x220   : > { %v784_v21 = vpop.permute.xlu2 %783  ;;  %v7472_v33 = vadd.f32 %v2441_v19, %v2272_v0  ;;  %10025 = vst [vmem:[#allocation60_spill] sm:$0xff] %v7485_v3  ;;  %v1639_v0 = vld [vmem:[#allocation3 + $0xc0] sm:$0xff] }
 0x221   : > { %v861_v14 = vadd.f32 %v784_v21, %v541_v58  ;;  %1521 = vst.msk [vmem:[#allocation3 + $0xc8] sm:$0xff] %vm1331_vm0, %v1277_v35  ;;  %v7497_v21 = vpop.f32.mrf.mxu1 }
 0x222   : > { %v780_v32 = vpop.permute.xlu1 %779  ;;  %10044 = vst [vmem:[#allocation78_spill] sm:$0xff] %v7597_v48 }
 0x223   : > { %v859_v28 = vadd.f32 %v780_v32, %v539_v53  ;;  %v893_v30 = vsub.f32 0.0, %v861_v14 }
 0x224   : > { %v7479_v34 = vpop.f32.mrf.mxu3 }
 0x225   : > { %v891_v23 = vsub.f32 0.0, %v859_v28  ;;  %v6277_v31 = vpop.eup %6276  ;;  %v943_v1 = vmul.f32 1.442695, %v893_v30  ;;  %v1642_v30 = vld [vmem:[#allocation3 + $0xd8] sm:$0x1] }
 0x226   : > { %v988_v62 = vadd.f32 1.0, %v6277_v31 }
 0x227   : > { %v939_v16 = vmul.f32 1.442695, %v891_v23  ;;  %6278 = vpow2.f32 %v943_v1  ;;  %5662 = vmatmul.msk.bf16.gmra.mxu3 %vm1331_vm0, %v7485_v3 }
 0x228   : > { %6280 = vrcp.f32 %v988_v62  ;;  %v1104_v32 = vpop.permute.xlu2 %1103  ;;  %v1640_v14 = vld [vmem:[#allocation3 + $0xc8] sm:$0xff] }
 0x229   : > { %6282 = vpow2.f32 %v939_v16  ;;  %v1212_v35 = vmul.f32 %v7456_v25, %v1104_v32  ;;  %v1946_v32 = vrot.slane %v1639_v0, 7  ;;  %v7520_v18 = vpop.f32.mrf.mxu1 }
 0x22a   : > { %v1094_v58 = vpop.permute.xlu1 %1093  ;;  %10032 = vst [vmem:[#allocation67_spill] sm:$0xff] %v7520_v18 }
 0x22b   : > { %v1210_v28 = vmul.f32 %v7456_v25, %v1094_v58  ;;  %v1248_v31 = vadd.f32 %v7468_v27, %v1212_v35  ;;  %v1947_v58 = vrot.slane %v1640_v14, 7  ;;  %v3130_v35 = vrot.slane %v1642_v30, 1 }
 0x22c   : > { %v7495_v38 = vpop.f32.mrf.mxu3 }
 0x22d   : > { %v1246_v42 = vadd.f32 %v7468_v27, %v1210_v28  ;;  %v6279_v1 = vpop.eup %6278  ;;  %v1280_v19 = vmax.f32 %v1248_v31, 0.0  ;;  %v7499_v31 = vpop.f32.mrf.mxu0 }
 0x22e   : > { %v6281_v23 = vpop.eup %6280  ;;  %v989_v53 = vadd.f32 1.0, %v6279_v1  ;;  %10027 = vst [vmem:[#allocation62_spill] sm:$0xff] %v7499_v31 }
 0x22f   : > { %v1278_v56 = vmax.f32 %v1246_v42, 0.0  ;;  %v6283_v16 = vpop.eup %6282  ;;  %1123 = vperm.xlu2 %6171, %v6281_v23   ;;  %1524 = vst.msk [vmem:[#allocation3 + $0xf0] sm:$0xff] %vm1331_vm0, %v1280_v19  ;;  %v3127_v23 = vrot.slane %v1640_v14, 1  ;;  %v7503_v19 = vpack.c.bf16 %v7383_v37, %v7381_v44  ;;  %v6122_v44 = vld [vmem:[%s9785_s7 + $0x18] sm:$0xff] }
 0x230   : > { %6284 = vrcp.f32 %v989_v53  ;;  %v987_v63 = vadd.f32 1.0, %v6283_v16  ;;  %v1948_v16 = vsel %vm1735_vm1, %v1946_v32, %v1947_v58  ;;  %2635 = vmatpush.bf16.msrb.mxu3 %v6122_v44 }
 0x231   : > { %1522 = vst.msk [vmem:[#allocation3 + $0xd0] sm:$0xff] %vm1331_vm0, %v1278_v56 }
 0x232   : > { %6286 = vrcp.f32 %v987_v63  ;;  %10028 = vst [vmem:[#allocation63_spill] sm:$0xff] %v7503_v19 }
 0x234   : > { %v2446_v56 = vpop.f32.mrf.mxu2 }
 0x236   : > { %v6285_v62 = vpop.eup %6284 }
 0x237   : > { %1128 = vperm.xlu0 %6172, %v6285_v62   ;;  %v7509_v62 = vpop.f32.mrf.mxu3  ;;  %5663 = vmatmul.msk.bf16.gmra.mxu3 %vm1331_vm0, %v7503_v19  ;;  %v7571_v19 = vld [vmem:[#allocation2 + $0xe8] sm:$0xff] }
 0x238   : > { %v6287_v28 = vpop.eup %6286  ;;  %v1641_v42 = vld [vmem:[#allocation3 + $0xd0] sm:$0xff]  ;;  %10039 = vst [vmem:[#allocation73_spill] sm:$0xff] %v7571_v19 }
 0x239   : > { %1118 = vperm.xlu1 %6173, %v6287_v28   ;;  %v1949_v1 = vrot.slane %v1641_v42, 7  ;;  %v3128_v53 = vrot.slane %v1641_v42, 1  ;;  %v7518_v37 = vpack.c.bf16 %v1641_v42, %v1640_v14 }
 0x23b   : > { %v1950_v63 = vsel %vm1735_vm1, %v1947_v58, %v1949_v1  ;;  %v3129_v0 = vsel %vm2766_vm3, %v3127_v23, %v3128_v53  ;;  %v3131_v30 = vsel %vm2766_vm3, %v3128_v53, %v3130_v35  ;;  %10031 = vst [vmem:[#allocation66_spill] sm:$0xff] %v7518_v37  ;;  %v6121_v58 = vld [vmem:[%s9785_s7 + $0x10] sm:$0xff]  ;;  %v7542_v53 = vpack.c.bf16 %v7424_v20, %v7422_v61  ;;  %v6124_v61 = vld [vmem:[%s9784_s6 + $0x28] sm:$0xff] }
 0x23c   : > { %v7511_v3 = vpack.c.bf16 %v1950_v63, %v1948_v16  ;;  %v7513_v28 = vpack.c.bf16 %v3131_v30, %v3129_v0  ;;  %v2127_v32 = vpop.f32.mrf.mxu0  ;;  %v7532_v35 = vpop.f32.mrf.mxu2  ;;  %2636 = vmatpush.bf16.msrb.mxu3 %v6121_v58  ;;  %v10038_v20 = vpack.c.bf16 %v7043_v4, %v7041_v2  ;;  %v474_v58 = vld [vmem:[%s6722_s19 + $0x98] sm:$0xff]  ;;  %2966 = vmatpush.bf16.msrb.mxu0 %v6124_v61 }
 0x23d   : > { %v2277_v14 = vadd.f32 %v7243_v17, %v2127_v32  ;;  %10033 = vst [vmem:[#allocation68_spill] sm:$0xff] %v7532_v35 }
 0x23e   : > { %10029 = vst [vmem:[#allocation64_spill] sm:$0xff] %v7511_v3  ;;  %5603 = vmatmul.msk.bf16.gmra.mxu0 %vm1331_vm0, %v7511_v3  ;;  %5739 = vmatmul.msk.bf16.gmra.mxu1 %vm1331_vm0, %v7513_v28  ;;  %v1643_v3 = vld [vmem:[#allocation3 + $0xe0] sm:$0xff] }
 0x23f   : > { %10030 = vst [vmem:[#allocation65_spill] sm:$0xff] %v7513_v28  ;;  %v7534_v42 = vadd.f32 %v2446_v56, %v2277_v14  ;;  %v7536_v1 = vpop.f32.mrf.mxu3  ;;  %v7573_v28 = vld [vmem:[#allocation2 + $0xf0] sm:$0xff] }
 0x240   : > { %10035 = vst [vmem:[#allocation70_spill] sm:$0xff] %v7542_v53  ;;  %v7577_v2 = vpack.c.bf16 %v7573_v28, %v7571_v19  ;;  %v476_v19 = vld [vmem:[%s6722_s19 + $0xa8] sm:$0xff] }
 0x241   : > { %10040 = vst [vmem:[#allocation74_spill] sm:$0xff] %v7573_v28 }
 0x242   : > { %10041 = vst [vmem:[#allocation75_spill] sm:$0xff] %v7577_v2  ;;  %5656 = vmatmul.msk.bf16.gmra.mxu2 %vm1331_vm0, %v7577_v2 }
 0x244   : > { %v7538_v23 = vpop.f32.mrf.mxu0  ;;  %v2451_v16 = vpop.f32.mrf.mxu2 }
 0x245   : > { %10034 = vst [vmem:[#allocation69_spill] sm:$0xff] %v7538_v23 }
 0x247   : > { %5664 = vmatmul.msk.bf16.gmra.mxu3 %vm1331_vm0, %v7542_v53 }
 0x24a   : > { %v7544_v63 = vpop.f32.mrf.mxu3 }
 0x24c   : > { %v2132_v17 = vpop.f32.mrf.mxu0  ;;  %v7551_v30 = vpop.f32.mrf.mxu2 }
 0x24d   : > { %v2282_v56 = vadd.f32 %v7291_v36, %v2132_v17  ;;  %10036 = vst [vmem:[#allocation71_spill] sm:$0xff] %v7551_v30 }
 0x24f   : > { %v7549_v0 = vadd.f32 %v2451_v16, %v2282_v56  ;;  %v542_v56 = vmul.f32 %v7378_v29, %v474_v58 }
 0x252   : > { %v7553_v44 = vpop.f32.mrf.mxu3 }
 0x254   : > { %v7555_v32 = vpop.f32.mrf.mxu0  ;;  %v2456_v14 = vpop.f32.mrf.mxu2 }
 0x255   : > { %10037 = vst [vmem:[#allocation72_spill] sm:$0xff] %v7555_v32 }
 0x257   : > { %5677 = vmatmul.msk.bf16.vlgmr.msrb.gmra.mxu3 %vm1331_vm0, %v10038_v20  ;;  %v475_v20 = vld [vmem:[%s6722_s19 + $0xa0] sm:$0xff] }
 0x25a   : > { %v7565_v16 = vpop.f32.mrf.mxu3 }
 0x25c   : > { %v2137_v36 = vpop.f32.mrf.mxu0 }
 0x25d   : > { %v2287_v17 = vadd.f32 %v7339_v13, %v2137_v36  ;;  %v543_v36 = vmul.f32 %v7378_v29, %v475_v20 }
 0x25f   : > { %v7569_v53 = vadd.f32 %v2456_v14, %v2287_v17  ;;  %v7585_v14 = vpop.f32.mrf.mxu1 }
 0x262   : > { %v7582_v13 = vpop.f32.mrf.mxu3 }
 0x263   : > { %v786_v4 = vpop.permute.xlu0 %785 }
 0x264   : > { %v862_v61 = vadd.f32 %v786_v4, %v542_v56 }
 0x266   : > { %v894_v18 = vsub.f32 0.0, %v862_v61 }
 0x267   : > { %5678 = vmatmul.msk.bf16.gmra.mxu3 %vm1331_vm0, %v7172_v8 }
 0x268   : > { %v945_v58 = vmul.f32 1.442695, %v894_v18 }
 0x26a   : > { %6288 = vpow2.f32 %v945_v58  ;;  %v7590_v4 = vpop.f32.mrf.mxu3  ;;  %v7593_v58 = vpop.f32.mrf.mxu1 }
 0x26b   : > { %v788_v17 = vpop.permute.xlu0 %787  ;;  %10042 = vst [vmem:[#allocation76_spill] sm:$0xff] %v7593_v58 }
 0x26c   : > { %v863_v30 = vadd.f32 %v788_v17, %v543_v36  ;;  %v7595_v17 = vld [vmem:[#allocation2 + $0x108] sm:$0xff] }
 0x26d   : > { %10043 = vst [vmem:[#allocation77_spill] sm:$0xff] %v7595_v17 }
 0x26e   : > { %v895_v32 = vsub.f32 0.0, %v863_v30 }
 0x26f   : > { %v1099_v35 = vpop.permute.xlu1 %1098 }
 0x270   : > { %v1211_v2 = vmul.f32 %v7456_v25, %v1099_v35  ;;  %v6289_v56 = vpop.eup %6288  ;;  %v947_v61 = vmul.f32 1.442695, %v895_v32  ;;  %v7601_v35 = vpack.c.bf16 %v7597_v48, %v7595_v17  ;;  %v7605_v32 = vpop.f32.mrf.mxu0  ;;  %v1951_v17 = vrot.slane %v1643_v3, 7 }
 0x271   : > { %v990_v23 = vadd.f32 1.0, %v6289_v56  ;;  %10046 = vst [vmem:[#allocation80_spill] sm:$0xff] %v7605_v32  ;;  %v7612_v56 = vld [vmem:[#allocation3 + $0xf0] sm:$0xff] }
 0x272   : > { %v1247_v18 = vadd.f32 %v7468_v27, %v1211_v2  ;;  %6290 = vpow2.f32 %v947_v61  ;;  %10045 = vst [vmem:[#allocation79_spill] sm:$0xff] %v7601_v35  ;;  %5657 = vmatmul.msk.bf16.gmra.mxu2 %vm1331_vm0, %v7601_v35  ;;  %v1646_v61 = vld [vmem:[#allocation3 + $0xf8] sm:$0x1]  ;;  %v7614_v58 = vpop.f32.mrf.mxu3  ;;  %v3133_v35 = vrot.slane %v7612_v56, 1 }
 0x273   : > { %6292 = vrcp.f32 %v990_v23  ;;  %v1114_v36 = vpop.permute.xlu0 %1113  ;;  %v7609_v23 = vpop.f32.mrf.mxu2 }
 0x274   : > { %v1279_v20 = vmax.f32 %v1247_v18, 0.0  ;;  %v1214_v30 = vmul.f32 %v7456_v25, %v1114_v36  ;;  %10047 = vst [vmem:[#allocation81_spill] sm:$0xff] %v7609_v23  ;;  %v3135_v23 = vrot.slane %v1646_v61, 1  ;;  %v7627_v61 = vpop.f32.mrf.mxu1 }
 0x276   : > { %1523 = vst.msk [vmem:[#allocation3 + $0xe8] sm:$0xff] %vm1331_vm0, %v1279_v20  ;;  %v1250_v2 = vadd.f32 %v7468_v27, %v1214_v30 }
 0x277   : > { %5679 = vmatmul.msk.bf16.gmra.mxu3 %vm1331_vm0, %v7251_v50 }
 0x278   : > { %v6291_v18 = vpop.eup %6290  ;;  %v1282_v36 = vmax.f32 %v1250_v2, 0.0 }
 0x279   : > { %v1109_v31 = vpop.permute.xlu2 %1108  ;;  %v6293_v20 = vpop.eup %6292  ;;  %v991_v48 = vadd.f32 1.0, %v6291_v18  ;;  %v1954_v18 = vrot.slane %v7612_v56, 7 }
 0x27a   : > { %v1213_v32 = vmul.f32 %v7456_v25, %v1109_v31  ;;  %1133 = vperm.xlu1 %6173, %v6293_v20   ;;  %1526 = vst.msk [vmem:[#allocation3 + $0x110] sm:$0xff] %vm1331_vm0, %v1282_v36  ;;  %v3136_v36 = vsel %vm2766_vm3, %v3133_v35, %v3135_v23  ;;  %v7637_v50 = vpop.f32.mrf.mxu3 }
 0x27b   : > { %6294 = vrcp.f32 %v991_v48  ;;  %v2142_v48 = vpop.f32.mrf.mxu0  ;;  %v2461_v51 = vpop.f32.mrf.mxu2 }
 0x27c   : > { %v1249_v30 = vadd.f32 %v7468_v27, %v1213_v32  ;;  %v2292_v3 = vadd.f32 %v7386_v6, %v2142_v48  ;;  %v517_v32 = vld [vmem:[%s6452_s26 + $0xf0] sm:$0xff]  ;;  %v544_v6 = vmul.f32 %v7378_v29, %v476_v19  ;;  %v1650_v48 = vld [vmem:[#allocation3 + $0x118] sm:$0x1] }
 0x27d   : > { %v7620_v28 = vld [vmem:[#allocation3 + $0xe8] sm:$0xff] }
 0x27e   : > { %v1281_v2 = vmax.f32 %v1249_v30, 0.0  ;;  %v1952_v31 = vrot.slane %v7620_v28, 7  ;;  %v3132_v20 = vrot.slane %v7620_v28, 1  ;;  %v7643_v49 = vadd.f32 %v2461_v51, %v2292_v3  ;;  %v7652_v51 = vpop.f32.mrf.mxu1 }
 0x27f   : > { %10050 = vst [vmem:[#allocation84_spill] sm:$0xff] %v7652_v51 }
 0x280   : > { %1525 = vst.msk [vmem:[#allocation3 + $0x108] sm:$0xff] %vm1331_vm0, %v1281_v2  ;;  %v1953_v43 = vsel %vm1735_vm1, %v1951_v17, %v1952_v31  ;;  %v1955_v30 = vsel %vm1735_vm1, %v1952_v31, %v1954_v18  ;;  %v3134_v40 = vsel %vm2766_vm3, %v3132_v20, %v3133_v35  ;;  %v1647_v31 = vld [vmem:[#allocation3 + $0x100] sm:$0xff] }
 0x281   : > { %v7639_v10 = vpack.c.bf16 %v1955_v30, %v1953_v43  ;;  %v7641_v8 = vpack.c.bf16 %v3136_v36, %v3134_v40  ;;  %v6295_v23 = vpop.eup %6294  ;;  %v518_v40 = vld [vmem:[%s6452_s26 + $0xf8] sm:$0xff] }
 0x282   : > { %1138 = vperm.xlu2 %6171, %v6295_v23   ;;  %647 = vrot.lane.b32.xlu1 %v517_v32, %s6369_s27  ;;  %v2338_v20 = vpop.f32.mrf.mxu3  ;;  %v1649_v32 = vld [vmem:[#allocation3 + $0x110] sm:$0xff]  ;;  %v1956_v23 = vrot.slane %v1647_v31, 7 }
 0x283   : > { %10048 = vst [vmem:[#allocation82_spill] sm:$0xff] %v7639_v10  ;;  %5604 = vmatmul.msk.bf16.gmra.mxu0 %vm1331_vm0, %v7639_v10  ;;  %5740 = vmatmul.msk.bf16.gmra.mxu1 %vm1331_vm0, %v7641_v8  ;;  %v7656_v36 = vadd.f32 %v2338_v20, %v7536_v1  ;;  %v1959_v51 = vrot.slane %v1649_v32, 7  ;;  %v3138_v10 = vrot.slane %v1649_v32, 1 }
 0x284   : > { %10049 = vst [vmem:[#allocation83_spill] sm:$0xff] %v7641_v8 }
 0x285   : > { %v790_v17 = vpop.permute.xlu1 %789 }
 0x286   : > { %v864_v35 = vadd.f32 %v790_v17, %v544_v6 }
 0x287   : > { %v1648_v18 = vld [vmem:[#allocation3 + $0x108] sm:$0xff]  ;;  %5680 = vmatmul.msk.bf16.gmra.mxu3 %vm1331_vm0, %v7296_v45 }
 0x288   : > { %v896_v43 = vsub.f32 0.0, %v864_v35  ;;  %v1957_v6 = vrot.slane %v1648_v18, 7  ;;  %v3137_v17 = vrot.slane %v1648_v18, 1  ;;  %v3140_v35 = vrot.slane %v1650_v48, 1 }
 0x289   : > { %v1124_v2 = vpop.permute.xlu2 %1123  ;;  %v7660_v54 = vpack.c.bf16 %v1649_v32, %v1648_v18 }
 0x28a   : > { %v1216_v19 = vmul.f32 %v7456_v25, %v1124_v2  ;;  %v949_v3 = vmul.f32 1.442695, %v896_v43  ;;  %649 = vrot.lane.b32.xlu2 %v518_v40, %s6369_s27  ;;  %v1958_v1 = vsel %vm1735_vm1, %v1956_v23, %v1957_v6  ;;  %v1960_v43 = vsel %vm1735_vm1, %v1957_v6, %v1959_v51  ;;  %v2341_v40 = vpop.f32.mrf.mxu3  ;;  %v7691_v23 = vld [vmem:[#allocation2 + $0x130] sm:$0xff] }
 0x28b   : > { %10051 = vst [vmem:[#allocation85_spill] sm:$0xff] %v7660_v54  ;;  %v3139_v2 = vsel %vm2766_vm3, %v3137_v17, %v3138_v10  ;;  %v3141_v31 = vsel %vm2766_vm3, %v3138_v10, %v3140_v35  ;;  %v7672_v18 = vpack.c.bf16 %v1960_v43, %v1958_v1  ;;  %v2327_v17 = vadd.f32 %v7565_v16, %v7439_v39 }
 0x28c   : > { %v1252_v30 = vadd.f32 %v7468_v27, %v1216_v19  ;;  %6296 = vpow2.f32 %v949_v3  ;;  %v7670_v19 = vadd.f32 %v2341_v40, %v7544_v63  ;;  %v7674_v48 = vpack.c.bf16 %v3141_v31, %v3139_v2  ;;  %v7676_v3 = vpop.f32.mrf.mxu1 }
 0x28d   : > { %10052 = vst [vmem:[#allocation86_spill] sm:$0xff] %v7672_v18  ;;  %v2329_v43 = vadd.f32 %v7582_v13, %v7461_v24  ;;  %v2332_v13 = vadd.f32 %v7590_v4, %v7479_v34  ;;  %v2334_v34 = vadd.f32 %v7614_v58, %v7495_v38 }
 0x28e   : > { %v1284_v8 = vmax.f32 %v1252_v30, 0.0  ;;  %10053 = vst [vmem:[#allocation87_spill] sm:$0xff] %v7674_v48  ;;  %v7689_v30 = vld [vmem:[#allocation2 + $0x128] sm:$0xff] }
 0x28f   : > { %v7695_v6 = vpack.c.bf16 %v7691_v23, %v7689_v30 }
 0x290   : > { %1528 = vst.msk [vmem:[#allocation3 + $0x130] sm:$0xff] %vm1331_vm0, %v1284_v8 }
 0x291   : > { %10056 = vst [vmem:[#allocation90_spill] sm:$0xff] %v7695_v6  ;;  %5658 = vmatmul.msk.bf16.gmra.mxu2 %vm1331_vm0, %v7695_v6 }
 0x292   : > { %v6297_v20 = vpop.eup %6296  ;;  %v2343_v51 = vpop.f32.mrf.mxu3 }
 0x293   : > { %v992_v8 = vadd.f32 1.0, %v6297_v20  ;;  %5605 = vmatmul.msk.bf16.gmra.mxu0 %vm1331_vm0, %v7672_v18  ;;  %5741 = vmatmul.msk.bf16.gmra.mxu1 %vm1331_vm0, %v7674_v48  ;;  %v7683_v10 = vadd.f32 %v2343_v51, %v7553_v44 }
 0x294   : > { %v7685_v32 = vpop.f32.mrf.mxu1 }
 0x295   : > { %6298 = vrcp.f32 %v992_v8  ;;  %10054 = vst [vmem:[#allocation88_spill] sm:$0xff] %v7683_v10 }
 0x296   : > { %10055 = vst [vmem:[#allocation89_spill] sm:$0xff] %v7685_v32 }
 0x297   : > { %5681 = vmatmul.msk.bf16.gmra.mxu3 %vm1331_vm0, %v7334_v26 }
 0x29a   : > { %v2496_v44 = vpop.f32.mrf.mxu3 }
 0x29b   : > { %v6299_v63 = vpop.eup %6298  ;;  %v7701_v35 = vadd.f32 %v2496_v44, %v2327_v17 }
 0x29c   : > { %1143 = vperm.xlu0 %6172, %v6299_v63   ;;  %v7703_v1 = vpop.f32.mrf.mxu1 }
 0x2a2   : > { %v2498_v40 = vpop.f32.mrf.mxu3 }
 0x2a3   : > { %v7708_v20 = vadd.f32 %v2498_v40, %v2329_v43  ;;  %v7721_v43 = vpop.f32.mrf.mxu0 }
 0x2a4   : > { %v7718_v17 = vpop.f32.mrf.mxu1  ;;  %10058 = vst [vmem:[#allocation92_spill] sm:$0xff] %v7721_v43 }
 0x2a5   : > { %10057 = vst [vmem:[#allocation91_spill] sm:$0xff] %v7718_v17 }
 0x2a7   : > { %5682 = vmatmul.msk.bf16.gmra.mxu3 %vm1331_vm0, %v7412_v60 }
 0x2a9   : > { %v1129_v2 = vpop.permute.xlu0 %1128 }
 0x2aa   : > { %v1217_v31 = vmul.f32 %v7456_v25, %v1129_v2  ;;  %v2501_v44 = vpop.f32.mrf.mxu3  ;;  %v7723_v2 = vpop.f32.mrf.mxu2 }
 0x2ab   : > { %v1119_v8 = vpop.permute.xlu1 %1118  ;;  %10059 = vst [vmem:[#allocation93_spill] sm:$0xff] %v7723_v2  ;;  %v7725_v40 = vadd.f32 %v2501_v44, %v2332_v13  ;;  %v6123_v44 = vld [vmem:[%s9784_s6 + $0x20] sm:$0xff] }
 0x2ac   : > { %v1253_v39 = vadd.f32 %v7468_v27, %v1217_v31  ;;  %v1215_v16 = vmul.f32 %v7456_v25, %v1119_v8  ;;  %v1653_v31 = vld [vmem:[#allocation3 + $0x130] sm:$0xff]  ;;  %v1654_v8 = vld [vmem:[#allocation3 + $0x138] sm:$0x1]  ;;  %v7739_v10 = vpop.f32.mrf.mxu1  ;;  %2967 = vmatpush.bf16.msrb.mxu0 %v6123_v44 }
 0x2ae   : > { %v1285_v51 = vmax.f32 %v1253_v39, 0.0  ;;  %v1251_v63 = vadd.f32 %v7468_v27, %v1215_v16  ;;  %v1651_v39 = vld [vmem:[#allocation3 + $0x120] sm:$0xff]  ;;  %v3143_v16 = vrot.slane %v1653_v31, 1 }
 0x2b0   : > { %1529 = vst.msk [vmem:[#allocation3 + $0x148] sm:$0xff] %vm1331_vm0, %v1285_v51  ;;  %v1283_v24 = vmax.f32 %v1251_v63, 0.0  ;;  %v3145_v51 = vrot.slane %v1654_v8, 1  ;;  %v1961_v63 = vrot.slane %v1651_v39, 7 }
 0x2b2   : > { %1527 = vst.msk [vmem:[#allocation3 + $0x128] sm:$0xff] %vm1331_vm0, %v1283_v24  ;;  %v2503_v48 = vpop.f32.mrf.mxu3  ;;  %v1964_v24 = vrot.slane %v1653_v31, 7  ;;  %v2466_v2 = vpop.f32.mrf.mxu2  ;;  %v3146_v13 = vsel %vm2766_vm3, %v3143_v16, %v3145_v51 }
 0x2b3   : > { %v7729_v32 = vadd.f32 %v2503_v48, %v2334_v34 }
 0x2b7   : > { %5683 = vmatmul.msk.bf16.gmra.mxu3 %vm1331_vm0, %v7518_v37 }
 0x2b9   : > { %v1652_v4 = vld [vmem:[#allocation3 + $0x128] sm:$0xff] }
 0x2ba   : > { %v1962_v6 = vrot.slane %v1652_v4, 7  ;;  %v3142_v17 = vrot.slane %v1652_v4, 1 }
 0x2bb   : > { %v2147_v43 = vpop.f32.mrf.mxu0 }
 0x2bc   : > { %v2297_v8 = vadd.f32 %v7497_v21, %v2147_v43  ;;  %v1963_v39 = vsel %vm1735_vm1, %v1961_v63, %v1962_v6  ;;  %v1965_v38 = vsel %vm1735_vm1, %v1962_v6, %v1964_v24  ;;  %v3144_v58 = vsel %vm2766_vm3, %v3142_v17, %v3143_v16  ;;  %v2506_v6 = vpop.f32.mrf.mxu3  ;;  %v7757_v43 = vpop.f32.mrf.mxu1 }
 0x2bd   : > { %v7741_v48 = vpack.c.bf16 %v1965_v38, %v1963_v39  ;;  %v7743_v34 = vpack.c.bf16 %v3146_v13, %v3144_v58  ;;  %v2337_v21 = vadd.f32 %v7637_v50, %v7509_v62  ;;  %v7764_v63 = vpack.c.bf16 %v7612_v56, %v7620_v28  ;;  %v7784_v58 = vld [vmem:[#allocation2 + $0x148] sm:$0xff] }
 0x2be   : > { %v7745_v51 = vadd.f32 %v2466_v2, %v2297_v8 }
 0x2bf   : > { %10060 = vst [vmem:[#allocation94_spill] sm:$0xff] %v7741_v48  ;;  %5606 = vmatmul.msk.bf16.gmra.mxu0 %vm1331_vm0, %v7741_v48  ;;  %5742 = vmatmul.msk.bf16.gmra.mxu1 %vm1331_vm0, %v7743_v34  ;;  %v7755_v17 = vadd.f32 %v2506_v6, %v2337_v21  ;;  %v7815_v48 = vpop.f32.mrf.mxu2 }
 0x2c0   : > { %10061 = vst [vmem:[#allocation95_spill] sm:$0xff] %v7743_v34 }
 0x2c1   : > { %10062 = vst [vmem:[#allocation96_spill] sm:$0xff] %v7755_v17 }
 0x2c2   : > { %10064 = vst [vmem:[#allocation98_spill] sm:$0xff] %v7764_v63 }
 0x2c3   : > { %10069 = vst [vmem:[#allocation103_spill] sm:$0xff] %v7815_v48 }
 0x2c4   : > { %v2508_v16 = vpop.f32.mrf.mxu3  ;;  %v7768_v24 = vpop.f32.mrf.mxu1 }
 0x2c5   : > { %v7760_v2 = vadd.f32 %v2508_v16, %v7656_v36 }
 0x2c7   : > { %10063 = vst [vmem:[#allocation97_spill] sm:$0xff] %v7760_v2  ;;  %5684 = vmatmul.msk.bf16.gmra.mxu3 %vm1331_vm0, %v7764_v63  ;;  %v2471_v17 = vpop.f32.mrf.mxu2 }
 0x2cc   : > { %v2511_v13 = vpop.f32.mrf.mxu3  ;;  %v7775_v44 = vpop.f32.mrf.mxu1 }
 0x2cd   : > { %v7771_v50 = vadd.f32 %v2511_v13, %v7670_v19  ;;  %v7786_v19 = vld [vmem:[#allocation2 + $0x150] sm:$0xff] }
 0x2ce   : > { %v7790_v21 = vpack.c.bf16 %v7786_v19, %v7784_v58 }
 0x2cf   : > { %10065 = vst [vmem:[#allocation99_spill] sm:$0xff] %v7771_v50  ;;  %v1658_v50 = vld [vmem:[#allocation3 + $0x158] sm:$0x1] }
 0x2d0   : > { %10067 = vst [vmem:[#allocation101_spill] sm:$0xff] %v7790_v21  ;;  %5659 = vmatmul.msk.bf16.gmra.mxu2 %vm1331_vm0, %v7790_v21 }
 0x2d4   : > { %v7773_v62 = vpop.f32.mrf.mxu3  ;;  %v7792_v6 = vpop.f32.mrf.mxu1 }
 0x2d5   : > { %10066 = vst [vmem:[#allocation100_spill] sm:$0xff] %v7773_v62  ;;  %v1656_v62 = vld [vmem:[#allocation3 + $0x148] sm:$0xff] }
 0x2d7   : > { %5685 = vmatmul.msk.bf16.gmra.mxu3 %vm1331_vm0, %v7660_v54 }
 0x2dc   : > { %v1139_v8 = vpop.permute.xlu2 %1138  ;;  %v2638_v36 = vpop.f32.mrf.mxu3 }
 0x2dd   : > { %v1219_v28 = vmul.f32 %v7456_v25, %v1139_v8  ;;  %v7782_v39 = vadd.f32 %v2638_v36, %v7435_v15  ;;  %v6128_v8 = vld [vmem:[%s9784_s6 + $0x38] sm:$0xff]  ;;  %v7806_v36 = vpop.f32.mrf.mxu1 }
 0x2de   : > { %3448 = vmatpush.bf16.msrb.mxu2 %v6128_v8 }
 0x2df   : > { %v1255_v56 = vadd.f32 %v7468_v27, %v1219_v28  ;;  %v7804_v28 = vpack.c.bf16 %v1653_v31, %v1652_v4 }
 0x2e1   : > { %v1287_v38 = vmax.f32 %v1255_v56, 0.0  ;;  %10068 = vst [vmem:[#allocation102_spill] sm:$0xff] %v7804_v28 }
 0x2e3   : > { %1531 = vst.msk [vmem:[#allocation3 + $0x168] sm:$0xff] %vm1331_vm0, %v1287_v38 }
 0x2e4   : > { %v650_v16 = vpop.permute.xlu2 %649  ;;  %v7799_v13 = vpop.f32.mrf.mxu3 }
 0x2e5   : > { %v714_v15 = vmul.f32 %v7378_v29, %v650_v16  ;;  %v7818_v4 = vpop.f32.mrf.mxu1 }
 0x2e6   : > { %10070 = vst [vmem:[#allocation104_spill] sm:$0xff] %v7818_v4 }
 0x2e7   : > { %809 = vrot.lane.b32.xlu1 %v714_v15, %s6370_s30  ;;  %5686 = vmatmul.msk.bf16.gmra.mxu3 %vm1331_vm0, %v7804_v28  ;;  %v1655_v28 = vld [vmem:[#allocation3 + $0x140] sm:$0xff] }
 0x2ec   : > { %v1134_v56 = vpop.permute.xlu1 %1133  ;;  %v2643_v15 = vpop.f32.mrf.mxu3 }
 0x2ed   : > { %v1218_v38 = vmul.f32 %v7456_v25, %v1134_v56  ;;  %v7813_v34 = vadd.f32 %v2643_v15, %v7472_v33  ;;  %v7822_v56 = vpop.f32.mrf.mxu0  ;;  %v1966_v33 = vrot.slane %v1655_v28, 7  ;;  %v3150_v15 = vrot.slane %v1658_v50, 1  ;;  %v7838_v4 = vpop.f32.mrf.mxu1 }
 0x2ee   : > { %10071 = vst [vmem:[#allocation105_spill] sm:$0xff] %v7822_v56 }
 0x2ef   : > { %v1254_v16 = vadd.f32 %v7468_v27, %v1218_v38 }
 0x2f1   : > { %v1286_v21 = vmax.f32 %v1254_v16, 0.0  ;;  %v1967_v16 = vrot.slane %v1656_v62, 7 }
 0x2f3   : > { %1530 = vst.msk [vmem:[#allocation3 + $0x150] sm:$0xff] %vm1331_vm0, %v1286_v21  ;;  %v3147_v21 = vrot.slane %v1656_v62, 1 }
 0x2f4   : > { %v648_v31 = vpop.permute.xlu1 %647  ;;  %v7824_v38 = vpop.f32.mrf.mxu3 }
 0x2f5   : > { %v713_v8 = vmul.f32 %v7378_v29, %v648_v31  ;;  %v1968_v29 = vsel %vm1735_vm1, %v1966_v33, %v1967_v16 }
 0x2f7   : > { %807 = vrot.lane.b32.xlu0 %v713_v8, %s6370_s30 }
 0x2fa   : > { %v1657_v48 = vld [vmem:[#allocation3 + $0x150] sm:$0xff] }
 0x2fb   : > { %v7826_v54 = vpack.c.bf16 %v1657_v48, %v1656_v62  ;;  %v3148_v18 = vrot.slane %v1657_v48, 1  ;;  %v1969_v2 = vrot.slane %v1657_v48, 7 }
 0x2fc   : > { %v2648_v62 = vpop.f32.mrf.mxu3 }
 0x2fd   : > { %10072 = vst [vmem:[#allocation106_spill] sm:$0xff] %v7826_v54  ;;  %5687 = vmatmul.msk.bf16.gmra.mxu3 %vm1331_vm0, %v7826_v54  ;;  %v1970_v31 = vsel %vm1735_vm1, %v1967_v16, %v1969_v2  ;;  %v3149_v8 = vsel %vm2766_vm3, %v3147_v21, %v3148_v18  ;;  %v3151_v28 = vsel %vm2766_vm3, %v3148_v18, %v3150_v15  ;;  %v7848_v18 = vld [vmem:[#allocation2 + $0x168] sm:$0xff]  ;;  %v7850_v16 = vld [vmem:[#allocation2 + $0x170] sm:$0xff] }
 0x2fe   : > { %v7834_v56 = vpack.c.bf16 %v1970_v31, %v1968_v29  ;;  %v7836_v50 = vpack.c.bf16 %v3151_v28, %v3149_v8  ;;  %v7845_v2 = vadd.f32 %v2648_v62, %v7534_v42  ;;  %v7854_v15 = vpack.c.bf16 %v7850_v16, %v7848_v18  ;;  %v7860_v29 = vpop.f32.mrf.mxu2 }
 0x2ff   : > { %10076 = vst [vmem:[#allocation110_spill] sm:$0xff] %v7860_v29  ;;  %v6130_v29 = vld [vmem:[%s9785_s7 + $0x38] sm:$0xff] }
 0x300   : > { %10073 = vst [vmem:[#allocation107_spill] sm:$0xff] %v7834_v56  ;;  %v2152_v48 = vpop.f32.mrf.mxu0  ;;  %5607 = vmatmul.msk.bf16.gmra.mxu0 %vm1331_vm0, %v7834_v56  ;;  %5743 = vmatmul.msk.bf16.gmra.mxu1 %vm1331_vm0, %v7836_v50 }
 0x301   : > { %10074 = vst [vmem:[#allocation108_spill] sm:$0xff] %v7836_v50  ;;  %v2302_v33 = vadd.f32 %v7585_v14, %v2152_v48  ;;  %5660 = vmatmul.msk.bf16.gmra.mxu2 %vm1331_vm0, %v7854_v15  ;;  %v7866_v14 = vpop.f32.mrf.mxu1  ;;  %3600 = vmatpush.bf16.msra.mxu3 %v6130_v29 }
 0x302   : > { %10075 = vst [vmem:[#allocation109_spill] sm:$0xff] %v7854_v15 }
 0x303   : > { %v7856_v21 = vadd.f32 %v2471_v17, %v2302_v33  ;;  %10078 = vst [vmem:[#allocation112_spill] sm:$0xff] %v7866_v14 }
 0x304   : > { %v7862_v31 = vpop.f32.mrf.mxu3 }
 0x306   : > { %v2476_v62 = vpop.f32.mrf.mxu2 }
 0x308   : > { %v7864_v42 = vpop.f32.mrf.mxu0 }
 0x309   : > { %10077 = vst [vmem:[#allocation111_spill] sm:$0xff] %v7864_v42  ;;  %v6127_v42 = vld [vmem:[%s9784_s6 + $0x30] sm:$0xff] }
 0x30a   : > { %3449 = vmatpush.bf16.msrb.mxu2 %v6127_v42 }
 0x30c   : > { %v2653_v48 = vpop.f32.mrf.mxu3 }
 0x30d   : > { %v7871_v33 = vadd.f32 %v2653_v48, %v7549_v0  ;;  %v1659_v0 = vld [vmem:[#allocation3 + $0x160] sm:$0xff] }
 0x30e   : > { %v1144_v8 = vpop.permute.xlu0 %1143  ;;  %v1971_v29 = vrot.slane %v1659_v0, 7 }
 0x30f   : > { %v1220_v28 = vmul.f32 %v7456_v25, %v1144_v8  ;;  %v7880_v25 = vpop.f32.mrf.mxu1 }
 0x310   : > { %v2157_v17 = vpop.f32.mrf.mxu0  ;;  %10079 = vst [vmem:[#allocation113_spill] sm:$0xff] %v7880_v25 }
 0x311   : > { %v1256_v50 = vadd.f32 %v7468_v27, %v1220_v28  ;;  %v2307_v15 = vadd.f32 %v7627_v61, %v2157_v17  ;;  %5761 = vmatmul.msk.bf16.vlgmr.msrb.gmra.mxu2 %vm1331_vm0, %v6802_v47  ;;  %v1660_v27 = vld [vmem:[#allocation3 + $0x168] sm:$0xff]  ;;  %v1662_v61 = vld [vmem:[#allocation3 + $0x178] sm:$0x1] }
 0x312   : > { %v1972_v42 = vrot.slane %v1660_v27, 7  ;;  %v3152_v48 = vrot.slane %v1660_v27, 1 }
 0x313   : > { %v1288_v54 = vmax.f32 %v1256_v50, 0.0  ;;  %v7882_v8 = vadd.f32 %v2476_v62, %v2307_v15  ;;  %v6132_v50 = vld [vmem:[%s9784_s6 + $0x48] sm:$0xff]  ;;  %v3155_v62 = vrot.slane %v1662_v61, 1 }
 0x314   : > { %v7887_v28 = vpop.f32.mrf.mxu3  ;;  %v6134_v15 = vld [vmem:[%s9785_s7 + $0x48] sm:$0xff]  ;;  %3742 = vmatpush.bf16.msra.mxu0 %v6132_v50 }
 0x315   : > { %1532 = vst.msk [vmem:[#allocation3 + $0x170] sm:$0xff] %vm1331_vm0, %v1288_v54  ;;  %3884 = vmatpush.bf16.msra.mxu1 %v6134_v15 }
 0x316   : > { %10080 = vst [vmem:[#allocation114_spill] sm:$0xff] %v7887_v28  ;;  %v1973_v28 = vsel %vm1735_vm1, %v1971_v29, %v1972_v42  ;;  %v1546_v29 = vld [vmem:[#allocation2 + $0x18] sm:$0x1] }
 0x317   : > { %v7897_v25 = vpop.f32.mrf.mxu1 }
 0x31c   : > { %v1661_v54 = vld [vmem:[#allocation3 + $0x170] sm:$0xff] }
 0x31d   : > { %v7895_v47 = vpack.c.bf16 %v1661_v54, %v1660_v27  ;;  %v3153_v17 = vrot.slane %v1661_v54, 1  ;;  %v1974_v56 = vrot.slane %v1661_v54, 7  ;;  %v2658_v27 = vpop.f32.mrf.mxu3 }
 0x31e   : > { %v7910_v54 = vadd.f32 %v2658_v27, %v7569_v53 }
 0x31f   : > { %10081 = vst [vmem:[#allocation115_spill] sm:$0xff] %v7895_v47  ;;  %5688 = vmatmul.msk.bf16.gmra.mxu3 %vm1331_vm0, %v7895_v47  ;;  %v1975_v14 = vsel %vm1735_vm1, %v1972_v42, %v1974_v56  ;;  %v3154_v0 = vsel %vm2766_vm3, %v3152_v48, %v3153_v17  ;;  %v3156_v61 = vsel %vm2766_vm3, %v3153_v17, %v3155_v62  ;;  %v6336_v56 = vld [vmem:[#allocation2 + $0x8] sm:$0xff]  ;;  %v6337_v48 = vld [vmem:[#allocation2 + $0x10] sm:$0xff]  ;;  %v2770_v62 = vrot.slane %v1546_v29, 1 }
 0x320   : > { %v7905_v50 = vpack.c.bf16 %v1975_v14, %v1973_v28  ;;  %v7907_v15 = vpack.c.bf16 %v3156_v61, %v3154_v0  ;;  %v2767_v42 = vrot.slane %v6336_v56, 1  ;;  %v2768_v47 = vrot.slane %v6337_v48, 1  ;;  %v7918_v14 = vpop.f32.mrf.mxu1  ;;  %v7934_v56 = vpop.f32.mrf.mxu0  ;;  %v6338_v48 = vld [vmem:[#allocation2 + $0x28] sm:$0xff] }
 0x321   : > { %5762 = vmatmul.msk.bf16.gmra.mxu2 %vm1331_vm0, %v6821_v12  ;;  %10084 = vst [vmem:[#allocation118_spill] sm:$0xff] %v7934_v56 }
 0x322   : > { %10082 = vst [vmem:[#allocation116_spill] sm:$0xff] %v7905_v50  ;;  %5608 = vmatmul.msk.bf16.gmra.mxu0 %vm1331_vm0, %v7905_v50  ;;  %5744 = vmatmul.msk.bf16.gmra.mxu1 %vm1331_vm0, %v7907_v15  ;;  %v2769_v53 = vsel %vm2766_vm3, %v2767_v42, %v2768_v47  ;;  %v2771_v17 = vsel %vm2766_vm3, %v2768_v47, %v2770_v62  ;;  %v7936_v42 = vpop.f32.mrf.mxu2  ;;  %v1550_v47 = vld [vmem:[#allocation2 + $0x38] sm:$0x1]  ;;  %v2772_v62 = vrot.slane %v6338_v48, 1 }
 0x323   : > { %10083 = vst [vmem:[#allocation117_spill] sm:$0xff] %v7907_v15  ;;  %v2879_v0 = vpack.c.bf16 %v2771_v17, %v2769_v53  ;;  %v6339_v53 = vld [vmem:[#allocation2 + $0x30] sm:$0xff]  ;;  %v2775_v12 = vrot.slane %v1550_v47, 1 }
 0x324   : > { %10085 = vst [vmem:[#allocation119_spill] sm:$0xff] %v7936_v42  ;;  %v2773_v17 = vrot.slane %v6339_v53, 1 }
 0x325   : > { %v7920_v28 = vpop.f32.mrf.mxu3 }
 0x326   : > { %v2776_v56 = vsel %vm2766_vm3, %v2773_v17, %v2775_v12 }
 0x328   : > { %v7926_v61 = vpop.f32.mrf.mxu1 }
 0x32a   : > { %v2481_v15 = vpop.f32.mrf.mxu2 }
 0x32d   : > { %v2663_v27 = vpop.f32.mrf.mxu3 }
 0x32e   : > { %v7929_v29 = vadd.f32 %v2663_v27, %v7643_v49 }
 0x32f   : > { %5689 = vmatmul.msk.bf16.gmra.mxu3 %vm1331_vm0, %v7034_v59 }
 0x330   : > { %v7942_v27 = vpop.f32.mrf.mxu1 }
 0x331   : > { %5763 = vmatmul.msk.bf16.gmra.mxu2 %vm1331_vm0, %v6841_v57 }
 0x332   : > { %5705 = vmatmul.msk.bf16.vlgmr.msrb.gmra.mxu0 %vm1331_vm0, %v2879_v0  ;;  %5745 = vmatmul.msk.bf16.gmra.mxu1 %vm1331_vm0, %v7199_v55  ;;  %v2774_v55 = vsel %vm2766_vm3, %v2772_v62, %v2773_v17 }
 0x333   : > { %v7949_v48 = vpack.c.bf16 %v2776_v56, %v2774_v55  ;;  %v6341_v56 = vld [vmem:[#allocation2 + $0x50] sm:$0xff] }
 0x335   : > { %v7940_v49 = vpop.f32.mrf.mxu3  ;;  %10086 = vst [vmem:[#allocation120_spill] sm:$0xff] %v7949_v48 }
 0x338   : > { %v7960_v12 = vpop.f32.mrf.mxu1 }
 0x33c   : > { %v2162_v0 = vpop.f32.mrf.mxu0 }
 0x33d   : > { %v2312_v42 = vadd.f32 %v7676_v3, %v2162_v0  ;;  %v2668_v47 = vpop.f32.mrf.mxu3  ;;  %v1554_v3 = vld [vmem:[#allocation2 + $0x58] sm:$0x1] }
 0x33e   : > { %v7954_v53 = vadd.f32 %v2668_v47, %v7745_v51  ;;  %v2780_v62 = vrot.slane %v1554_v3, 1  ;;  %v486_v3 = vld [vmem:[%s6722_s19 + $0xf8] sm:$0xff] }
 0x33f   : > { %v7947_v59 = vadd.f32 %v2481_v15, %v2312_v42  ;;  %5690 = vmatmul.msk.bf16.gmra.mxu3 %vm1331_vm0, %v7175_v11  ;;  %v6340_v15 = vld [vmem:[#allocation2 + $0x48] sm:$0xff]  ;;  %v2778_v42 = vrot.slane %v6341_v56, 1  ;;  %v6129_v11 = vld [vmem:[%s9785_s7 + $0x30] sm:$0xff] }
 0x340   : > { %v2777_v55 = vrot.slane %v6340_v15, 1  ;;  %v7968_v47 = vpop.f32.mrf.mxu1  ;;  %3601 = vmatpush.bf16.msra.mxu3 %v6129_v11 }
 0x341   : > { %5764 = vmatmul.msk.bf16.gmra.mxu2 %vm1331_vm0, %v6864_v41  ;;  %v2781_v0 = vsel %vm2766_vm3, %v2778_v42, %v2780_v62  ;;  %v6342_v62 = vld [vmem:[%s9781_s3] ss:$0 sm:$0xff] }
 0x342   : > { %5706 = vmatmul.msk.bf16.gmra.mxu0 %vm1331_vm0, %v7949_v48  ;;  %5746 = vmatmul.msk.bf16.gmra.mxu1 %vm1331_vm0, %v7204_v5  ;;  %v2779_v17 = vsel %vm2766_vm3, %v2777_v55, %v2778_v42  ;;  %v1558_v55 = vld [vmem:[#allocation2 + $0x78] sm:$0x1]  ;;  %v6344_v5 = vld [vmem:[#allocation2 + $0x70] sm:$0xff] }
 0x343   : > { %v7970_v57 = vpack.c.bf16 %v2781_v0, %v2779_v17  ;;  %v554_v17 = vmul.f32 %v6342_v62, %v486_v3  ;;  %v6343_v0 = vld [vmem:[#allocation2 + $0x68] sm:$0xff] }
 0x344   : > { %v2782_v41 = vrot.slane %v6343_v0, 1 }
 0x345   : > { %v7964_v51 = vpop.f32.mrf.mxu3  ;;  %10087 = vst [vmem:[#allocation121_spill] sm:$0xff] %v7970_v57 }
 0x348   : > { %v7982_v42 = vpop.f32.mrf.mxu1 }
 0x349   : > { %10089 = vst [vmem:[#allocation123_spill] sm:$0xff] %v7982_v42 }
 0x34d   : > { %v2673_v15 = vpop.f32.mrf.mxu3 }
 0x34e   : > { %v7975_v56 = vadd.f32 %v2673_v15, %v7856_v21  ;;  %v2783_v21 = vrot.slane %v6344_v5, 1  ;;  %v2785_v15 = vrot.slane %v1558_v55, 1 }
 0x34f   : > { %5691 = vmatmul.msk.bf16.gmra.mxu3 %vm1331_vm0, %v7212_v22 }
 0x350   : > { %10088 = vst [vmem:[#allocation122_spill] sm:$0xff] %v7975_v56  ;;  %v2784_v0 = vsel %vm2766_vm3, %v2782_v41, %v2783_v21  ;;  %v2786_v5 = vsel %vm2766_vm3, %v2783_v21, %v2785_v15  ;;  %v1562_v41 = vld [vmem:[#allocation2 + $0x98] sm:$0x1]  ;;  %v6346_v15 = vld [vmem:[#allocation2 + $0x90] sm:$0xff] }
 0x351   : > { %5765 = vmatmul.msk.bf16.gmra.mxu2 %vm1331_vm0, %v6883_v7  ;;  %v7999_v7 = vpack.c.bf16 %v2786_v5, %v2784_v0  ;;  %v2790_v0 = vrot.slane %v1562_v41, 1  ;;  %v10092_v5 = vld [vmem:[#allocation8_spill] sm:$0xff] }
 0x352   : > { %5707 = vmatmul.msk.bf16.gmra.mxu0 %vm1331_vm0, %v7970_v57  ;;  %5747 = vmatmul.msk.bf16.gmra.mxu1 %vm1331_vm0, %v7222_v46  ;;  %v6133_v57 = vld [vmem:[%s9785_s7 + $0x40] sm:$0xff] }
 0x353   : > { %3885 = vmatpush.bf16.msra.mxu1 %v6133_v57  ;;  %10091 = vst [vmem:[#allocation125_spill] sm:$0xff] %v7999_v7  ;;  %v485_v57 = vld [vmem:[%s6722_s19 + $0xf0] sm:$0xff] }
 0x355   : > { %v7989_v22 = vpop.f32.mrf.mxu3 }
 0x356   : > { %10090 = vst [vmem:[#allocation124_spill] sm:$0xff] %v7989_v22  ;;  %v8001_v22 = vpop.f32.mrf.mxu1 }
 0x359   : > { %v810_v46 = vpop.permute.xlu1 %809 }
 0x35a   : > { %v874_v3 = vadd.f32 %v810_v46, %v554_v17  ;;  %v553_v46 = vmul.f32 %v6342_v62, %v485_v57  ;;  %v6345_v17 = vld [vmem:[#allocation2 + $0x88] sm:$0xff] }
 0x35b   : > { %v2787_v21 = vrot.slane %v6345_v17, 1  ;;  %v8021_v17 = vpop.f32.mrf.mxu2 }
 0x35c   : > { %v906_v55 = vsub.f32 0.0, %v874_v3  ;;  %v2788_v3 = vrot.slane %v6346_v15, 1  ;;  %10093 = vst [vmem:[#allocation126_spill] sm:$0xff] %v8021_v17 }
 0x35d   : > { %v2678_v56 = vpop.f32.mrf.mxu3 }
 0x35e   : > { %v969_v42 = vmul.f32 1.442695, %v906_v55  ;;  %v8006_v48 = vadd.f32 %v2678_v56, %v7882_v8  ;;  %v8015_v56 = vpop.f32.mrf.mxu1  ;;  %v2791_v62 = vsel %vm2766_vm3, %v2788_v3, %v2790_v0  ;;  %v6347_v0 = vld [vmem:[#allocation2 + $0xa8] sm:$0xff] }
 0x35f   : > { %5692 = vmatmul.msk.bf16.gmra.mxu3 %vm1331_vm0, %v7272_v52  ;;  %v2789_v52 = vsel %vm2766_vm3, %v2787_v21, %v2788_v3  ;;  %v8036_v21 = vpop.f32.mrf.mxu0 }
 0x360   : > { %6300 = vpow2.f32 %v969_v42  ;;  %v8023_v15 = vpack.c.bf16 %v2791_v62, %v2789_v52  ;;  %v1566_v52 = vld [vmem:[#allocation2 + $0xb8] sm:$0x1]  ;;  %10099 = vst [vmem:[#allocation128_spill] sm:$0xff] %v8036_v21  ;;  %v6348_v62 = vld [vmem:[#allocation2 + $0xb0] sm:$0xff] }
 0x361   : > { %5766 = vmatmul.msk.bf16.gmra.mxu2 %vm1331_vm0, %v10092_v5 }
 0x362   : > { %5708 = vmatmul.msk.bf16.gmra.mxu0 %vm1331_vm0, %v7999_v7  ;;  %5748 = vmatmul.msk.bf16.gmra.mxu1 %vm1331_vm0, %v7280_v9  ;;  %10094 = vst [vmem:[#allocation127_spill] sm:$0xff] %v8023_v15  ;;  %v10095_v7 = vld [vmem:[#allocation18_spill] sm:$0xff] }
 0x363   : > { %v2486_v3 = vpop.f32.mrf.mxu2 }
 0x365   : > { %v8017_v42 = vpop.f32.mrf.mxu3 }
 0x366   : > { %v6301_v11 = vpop.eup %6300 }
 0x367   : > { %v1002_v8 = vadd.f32 1.0, %v6301_v11 }
 0x369   : > { %6302 = vrcp.f32 %v1002_v8  ;;  %v808_v55 = vpop.permute.xlu0 %807 }
 0x36a   : > { %v873_v9 = vadd.f32 %v808_v55, %v553_v46  ;;  %v10097_v46 = vld [vmem:[#allocation20_spill] sm:$0xff]  ;;  %v2792_v55 = vrot.slane %v6347_v0, 1 }
 0x36c   : > { %v905_v57 = vsub.f32 0.0, %v873_v9  ;;  %v8034_v9 = vpop.f32.mrf.mxu1 }
 0x36d   : > { %v2683_v5 = vpop.f32.mrf.mxu3  ;;  %10098 = vst [vmem:[#allocation20_spill] sm:$0xff] %v8034_v9 }
 0x36e   : > { %v967_v41 = vmul.f32 1.442695, %v905_v57  ;;  %v8028_v8 = vadd.f32 %v2683_v5, %v7947_v59  ;;  %v2793_v57 = vrot.slane %v6348_v62, 1  ;;  %v10100_v59 = vld [vmem:[#allocation9_spill] sm:$0xff]  ;;  %v10104_v62 = vld [vmem:[#allocation31_spill] sm:$0xff] }
 0x36f   : > { %5789 = vmatmul.msk.bf16.vlgmr.msra.gmra.mxu3 %vm1331_vm0, %v10095_v7  ;;  %v6303_v11 = vpop.eup %6302 }
 0x370   : > { %6304 = vpow2.f32 %v967_v41  ;;  %1193 = vperm.xlu0 %6172, %v6303_v11   ;;  %10096 = vst [vmem:[#allocation18_spill] sm:$0xff] %v8028_v8  ;;  %v2795_v41 = vrot.slane %v1566_v52, 1 }
 0x371   : > { %5767 = vmatmul.msk.bf16.gmra.mxu2 %vm1331_vm0, %v10100_v59  ;;  %v8051_v59 = vpop.f32.mrf.mxu2 }
 0x372   : > { %5709 = vmatmul.msk.bf16.gmra.mxu0 %vm1331_vm0, %v8023_v15  ;;  %5845 = vmatmul.msk.bf16.vlgmr.msra.gmra.mxu1 %vm1331_vm0, %v10097_v46  ;;  %v2794_v15 = vsel %vm2766_vm3, %v2792_v55, %v2793_v57  ;;  %v2796_v17 = vsel %vm2766_vm3, %v2793_v57, %v2795_v41  ;;  %10105 = vst [vmem:[#allocation132_spill] sm:$0xff] %v8051_v59  ;;  %v10106_v55 = vld [vmem:[#allocation30_spill] sm:$0xff] }
 0x373   : > { %v8046_v21 = vpack.c.bf16 %v2796_v17, %v2794_v15  ;;  %v1570_v17 = vld [vmem:[#allocation2 + $0xd8] sm:$0x1]  ;;  %v6350_v41 = vld [vmem:[#allocation2 + $0xd0] sm:$0xff] }
 0x374   : > { %v8042_v46 = vpop.f32.mrf.mxu1  ;;  %v10109_v59 = vld [vmem:[#allocation10_spill] sm:$0xff] }
 0x375   : > { %v8040_v11 = vpop.f32.mrf.mxu3  ;;  %10102 = vst [vmem:[#allocation130_spill] sm:$0xff] %v8042_v46  ;;  %v10128_v46 = vld [vmem:[#allocation17_spill] sm:$0xff] }
 0x376   : > { %v6305_v7 = vpop.eup %6304  ;;  %10101 = vst [vmem:[#allocation129_spill] sm:$0xff] %v8040_v11  ;;  %v2800_v11 = vrot.slane %v1570_v17, 1 }
 0x377   : > { %v1001_v5 = vadd.f32 1.0, %v6305_v7  ;;  %10103 = vst [vmem:[#allocation131_spill] sm:$0xff] %v8046_v21 }
 0x379   : > { %6306 = vrcp.f32 %v1001_v5 }
 0x37c   : > { %v8059_v15 = vpop.f32.mrf.mxu1 }
 0x37d   : > { %v2167_v8 = vpop.f32.mrf.mxu0  ;;  %10108 = vst [vmem:[#allocation134_spill] sm:$0xff] %v8059_v15 }
 0x37e   : > { %v2317_v0 = vadd.f32 %v7703_v1, %v2167_v8  ;;  %v6349_v1 = vld [vmem:[#allocation2 + $0xc8] sm:$0xff] }
 0x37f   : > { %5790 = vmatmul.msk.bf16.gmra.mxu3 %vm1331_vm0, %v10104_v62  ;;  %v6307_v52 = vpop.eup %6306  ;;  %v2797_v8 = vrot.slane %v6349_v1, 1  ;;  %v2798_v62 = vrot.slane %v6350_v41, 1  ;;  %v6131_v1 = vld [vmem:[%s9784_s6 + $0x40] sm:$0xff]  ;;  %v10115_v41 = vld [vmem:[#allocation73_spill] sm:$0xff] }
 0x380   : > { %v2536_v7 = vadd.f32 %v2486_v3, %v2317_v0  ;;  %1188 = vperm.xlu2 %6171, %v6307_v52   ;;  %v2688_v5 = vpop.f32.mrf.mxu3  ;;  %3743 = vmatpush.bf16.msra.mxu0 %v6131_v1 }
 0x381   : > { %5768 = vmatmul.msk.bf16.gmra.mxu2 %vm1331_vm0, %v10109_v59  ;;  %v2799_v0 = vsel %vm2766_vm3, %v2797_v8, %v2798_v62  ;;  %v2801_v52 = vsel %vm2766_vm3, %v2798_v62, %v2800_v11  ;;  %v1574_v8 = vld [vmem:[#allocation2 + $0xf8] sm:$0x1] }
 0x382   : > { %5710 = vmatmul.msk.bf16.gmra.mxu0 %vm1331_vm0, %v8046_v21  ;;  %5846 = vmatmul.msk.bf16.gmra.mxu1 %vm1331_vm0, %v10106_v55  ;;  %v8057_v57 = vadd.f32 %v2688_v5, %v2536_v7  ;;  %v8067_v7 = vpack.c.bf16 %v2801_v52, %v2799_v0  ;;  %v10112_v5 = vld [vmem:[#allocation38_spill] sm:$0xff]  ;;  %v2802_v0 = vrot.slane %v10115_v41, 1  ;;  %v2805_v55 = vrot.slane %v1574_v8, 1 }
 0x383   : > { %v10116_v52 = vld [vmem:[#allocation74_spill] sm:$0xff] }
 0x384   : > { %10107 = vst [vmem:[#allocation133_spill] sm:$0xff] %v8057_v57  ;;  %v2491_v3 = vpop.f32.mrf.mxu2  ;;  %v8065_v21 = vpop.f32.mrf.mxu1  ;;  %v2803_v59 = vrot.slane %v10116_v52, 1 }
 0x385   : > { %10110 = vst [vmem:[#allocation135_spill] sm:$0xff] %v8065_v21  ;;  %v8078_v11 = vpop.f32.mrf.mxu0 }
 0x386   : > { %10111 = vst [vmem:[#allocation136_spill] sm:$0xff] %v8067_v7  ;;  %v2804_v21 = vsel %vm2766_vm3, %v2802_v0, %v2803_v59  ;;  %v2806_v57 = vsel %vm2766_vm3, %v2803_v59, %v2805_v55  ;;  %v6136_v55 = vld [vmem:[%s9784_s6 + $0x58] sm:$0xff] }
 0x387   : > { %10113 = vst [vmem:[#allocation137_spill] sm:$0xff] %v8078_v11  ;;  %v8090_v1 = vpack.c.bf16 %v2806_v57, %v2804_v21  ;;  %v1578_v21 = vld [vmem:[#allocation2 + $0x118] sm:$0x1]  ;;  %4034 = vmatpush.bf16.msra.mxu2 %v6136_v55 }
 0x389   : > { %10119 = vst [vmem:[#allocation74_spill] sm:$0xff] %v8090_v1 }
 0x38c   : > { %v2493_v17 = vpop.f32.mrf.mxu2  ;;  %v8080_v62 = vpop.f32.mrf.mxu1 }
 0x38d   : > { %10114 = vst [vmem:[#allocation138_spill] sm:$0xff] %v8080_v62  ;;  %v10121_v62 = vld [vmem:[#allocation44_spill] sm:$0xff] }
 0x38f   : > { %5791 = vmatmul.msk.bf16.gmra.mxu3 %vm1331_vm0, %v10112_v5  ;;  %v10117_v5 = vld [vmem:[#allocation11_spill] sm:$0xff] }
 0x391   : > { %5769 = vmatmul.msk.bf16.gmra.mxu2 %vm1331_vm0, %v10117_v5 }
 0x392   : > { %5711 = vmatmul.msk.bf16.gmra.mxu0 %vm1331_vm0, %v8067_v7  ;;  %5847 = vmatmul.msk.bf16.gmra.mxu1 %vm1331_vm0, %v7296_v45  ;;  %v8086_v45 = vpop.f32.mrf.mxu3 }
 0x393   : > { %10118 = vst [vmem:[#allocation73_spill] sm:$0xff] %v8086_v45 }
 0x394   : > { %v3451_v7 = vpop.f32.mrf.mxu2 }
 0x39c   : > { %v3453_v0 = vpop.f32.mrf.mxu2 }
 0x39f   : > { %v2172_v11 = vpop.f32.mrf.mxu0  ;;  %v8092_v15 = vpop.f32.mrf.mxu1  ;;  %5792 = vmatmul.msk.bf16.gmra.mxu3 %vm1331_vm0, %v10121_v62  ;;  %v2810_v62 = vrot.slane %v1578_v21, 1 }
 0x3a0   : > { %10120 = vst [vmem:[#allocation139_spill] sm:$0xff] %v8092_v15  ;;  %v2322_v8 = vadd.f32 %v7739_v10, %v2172_v11  ;;  %v10124_v10 = vld [vmem:[#allocation77_spill] sm:$0xff]  ;;  %v10125_v11 = vld [vmem:[#allocation78_spill] sm:$0xff] }
 0x3a2   : > { %v2538_v41 = vadd.f32 %v2491_v3, %v2322_v8  ;;  %v2693_v52 = vpop.f32.mrf.mxu3  ;;  %5712 = vmatmul.msk.bf16.gmra.mxu0 %vm1331_vm0, %v8090_v1  ;;  %5848 = vmatmul.msk.bf16.gmra.mxu1 %vm1331_vm0, %v7334_v26  ;;  %v2807_v3 = vrot.slane %v10124_v10, 1  ;;  %v2808_v8 = vrot.slane %v10125_v11, 1  ;;  %v10126_v1 = vld [vmem:[#allocation14_spill] sm:$0xff] }
 0x3a3   : > { %5770 = vmatmul.msk.bf16.gmra.mxu2 %vm1331_vm0, %v10126_v1  ;;  %v10130_v1 = vld [vmem:[#allocation51_spill] sm:$0xff] }
 0x3a4   : > { %v8101_v59 = vadd.f32 %v2693_v52, %v2538_v41  ;;  %v3456_v15 = vpop.f32.mrf.mxu2  ;;  %v2811_v55 = vsel %vm2766_vm3, %v2808_v8, %v2810_v62 }
 0x3a6   : > { %10122 = vst [vmem:[#allocation140_spill] sm:$0xff] %v8101_v59  ;;  %v2809_v59 = vsel %vm2766_vm3, %v2807_v3, %v2808_v8 }
 0x3a7   : > { %v2174_v57 = vpop.f32.mrf.mxu0  ;;  %v8106_v5 = vpop.f32.mrf.mxu1  ;;  %v8119_v9 = vpack.c.bf16 %v2811_v55, %v2809_v59  ;;  %v1582_v59 = vld [vmem:[#allocation2 + $0x138] sm:$0x1]  ;;  %v2813_v55 = vrot.slane %v7691_v23, 1 }
 0x3a8   : > { %10123 = vst [vmem:[#allocation141_spill] sm:$0xff] %v8106_v5  ;;  %v2324_v41 = vadd.f32 %v7757_v43, %v2174_v57  ;;  %v10127_v5 = vld [vmem:[#allocation56_spill] sm:$0xff] }
 0x3a9   : > { %v2269_v10 = vadd.f32 %v10128_v46, %v10127_v5  ;;  %10129 = vst [vmem:[#allocation77_spill] sm:$0xff] %v8119_v9 }
 0x3aa   : > { %v2539_v52 = vadd.f32 %v2493_v17, %v2324_v41  ;;  %v2695_v26 = vpop.f32.mrf.mxu3  ;;  %v10131_v17 = vld [vmem:[#allocation57_spill] sm:$0xff] }
 0x3ab   : > { %v2517_v57 = vadd.f32 %v10131_v17, %v2269_v10  ;;  %v2815_v10 = vrot.slane %v1582_v59, 1  ;;  %v10134_v59 = vld [vmem:[#allocation64_spill] sm:$0xff] }
 0x3ac   : > { %v8115_v45 = vadd.f32 %v2695_v26, %v2539_v52  ;;  %v3458_v46 = vpop.f32.mrf.mxu2  ;;  %v2812_v52 = vrot.slane %v7689_v30, 1 }
 0x3af   : > { %v2969_v21 = vpop.f32.mrf.mxu0  ;;  %v8121_v11 = vpop.f32.mrf.mxu1  ;;  %5793 = vmatmul.msk.bf16.gmra.mxu3 %vm1331_vm0, %v10130_v1 }
 0x3b0   : > { %v3049_v43 = vadd.f32 %v2969_v21, %v7782_v39  ;;  %v2719_v39 = vadd.f32 %v7799_v13, %v2517_v57  ;;  %v10132_v21 = vld [vmem:[#allocation16_spill] sm:$0xff]  ;;  %v2814_v13 = vsel %vm2766_vm3, %v2812_v52, %v2813_v55  ;;  %v2816_v57 = vsel %vm2766_vm3, %v2813_v55, %v2815_v10  ;;  %v10137_v10 = vld [vmem:[#allocation61_spill] sm:$0xff] }
 0x3b1   : > { %v8152_v30 = vpack.c.bf16 %v2816_v57, %v2814_v13  ;;  %v1586_v13 = vld [vmem:[#allocation2 + $0x158] sm:$0x1] }
 0x3b2   : > { %v2698_v3 = vpop.f32.mrf.mxu3  ;;  %5713 = vmatmul.msk.bf16.gmra.mxu0 %vm1331_vm0, %v8119_v9  ;;  %5849 = vmatmul.msk.bf16.gmra.mxu1 %vm1331_vm0, %v7412_v60  ;;  %v3379_v26 = vadd.f32 %v7768_v24, %v3049_v43  ;;  %v10155_v60 = vld [vmem:[#allocation99_spill] sm:$0xff] }
 0x3b3   : > { %v8133_v5 = vadd.f32 %v2698_v3, %v7701_v35  ;;  %5771 = vmatmul.msk.bf16.gmra.mxu2 %vm1331_vm0, %v10132_v21  ;;  %10133 = vst [vmem:[#allocation78_spill] sm:$0xff] %v8152_v30  ;;  %v2820_v21 = vrot.slane %v1586_v13, 1  ;;  %v10140_v13 = vld [vmem:[#allocation82_spill] sm:$0xff] }
 0x3b4   : > { %v8135_v62 = vadd.f32 %v3451_v7, %v3379_v26  ;;  %v3461_v7 = vpop.f32.mrf.mxu2 }
 0x3b7   : > { %v2971_v8 = vpop.f32.mrf.mxu0  ;;  %v8138_v41 = vpop.f32.mrf.mxu1 }
 0x3b8   : > { %v3050_v24 = vadd.f32 %v2971_v8, %v2719_v39  ;;  %v10135_v39 = vld [vmem:[#allocation62_spill] sm:$0xff] }
 0x3ba   : > { %v2700_v43 = vpop.f32.mrf.mxu3  ;;  %v3380_v35 = vadd.f32 %v7775_v44, %v3050_v24  ;;  %v10136_v44 = vld [vmem:[#allocation26_spill] sm:$0xff] }
 0x3bb   : > { %v8146_v17 = vadd.f32 %v2700_v43, %v7708_v20  ;;  %v2274_v8 = vadd.f32 %v10136_v44, %v10135_v39  ;;  %v2817_v39 = vrot.slane %v7784_v58, 1  ;;  %v2818_v44 = vrot.slane %v7786_v19, 1 }
 0x3bc   : > { %v8150_v3 = vadd.f32 %v3453_v0, %v3380_v35  ;;  %v3463_v52 = vpop.f32.mrf.mxu2 }
 0x3bd   : > { %v2519_v43 = vadd.f32 %v10137_v10, %v2274_v8 }
 0x3bf   : > { %v2974_v23 = vpop.f32.mrf.mxu0  ;;  %v8154_v26 = vpop.f32.mrf.mxu1  ;;  %5794 = vmatmul.msk.bf16.gmra.mxu3 %vm1331_vm0, %v10134_v59 }
 0x3c0   : > { %v3051_v20 = vadd.f32 %v2974_v23, %v7813_v34  ;;  %v2721_v34 = vadd.f32 %v7824_v38, %v2519_v43  ;;  %v2819_v38 = vsel %vm2766_vm3, %v2817_v39, %v2818_v44 }
 0x3c2   : > { %v2703_v24 = vpop.f32.mrf.mxu3  ;;  %5714 = vmatmul.msk.bf16.gmra.mxu0 %vm1331_vm0, %v8152_v30  ;;  %5850 = vmatmul.msk.bf16.gmra.mxu1 %vm1331_vm0, %v7518_v37  ;;  %v3381_v0 = vadd.f32 %v7792_v6, %v3051_v20  ;;  %v10138_v6 = vld [vmem:[#allocation43_spill] sm:$0xff] }
 0x3c3   : > { %v8167_v55 = vadd.f32 %v2703_v24, %v7725_v40  ;;  %5772 = vmatmul.msk.bf16.gmra.mxu2 %vm1331_vm0, %v10138_v6  ;;  %v2822_v6 = vrot.slane %v7848_v18, 1 }
 0x3c4   : > { %v8170_v35 = vadd.f32 %v3456_v15, %v3381_v0  ;;  %v3466_v15 = vpop.f32.mrf.mxu2  ;;  %v2821_v0 = vsel %vm2766_vm3, %v2818_v44, %v2820_v21  ;;  %v10144_v44 = vld [vmem:[#allocation96_spill] sm:$0xff] }
 0x3c5   : > { %v8187_v58 = vpack.c.bf16 %v2821_v0, %v2819_v38 }
 0x3c7   : > { %v2976_v57 = vpop.f32.mrf.mxu0  ;;  %v8173_v23 = vpop.f32.mrf.mxu1  ;;  %10139 = vst [vmem:[#allocation56_spill] sm:$0xff] %v8187_v58 }
 0x3c8   : > { %v3052_v40 = vadd.f32 %v2976_v57, %v2721_v34  ;;  %v10141_v34 = vld [vmem:[#allocation69_spill] sm:$0xff] }
 0x3ca   : > { %v2705_v20 = vpop.f32.mrf.mxu3  ;;  %v3382_v8 = vadd.f32 %v7806_v36, %v3052_v40  ;;  %v10142_v36 = vld [vmem:[#allocation33_spill] sm:$0xff] }
 0x3cb   : > { %v8181_v24 = vadd.f32 %v2705_v20, %v7729_v32  ;;  %v2279_v57 = vadd.f32 %v10142_v36, %v10141_v34  ;;  %v1590_v34 = vld [vmem:[#allocation2 + $0x178] sm:$0x1] }
 0x3cc   : > { %v8185_v10 = vadd.f32 %v3458_v46, %v3382_v8  ;;  %v10143_v46 = vld [vmem:[#allocation104_spill] sm:$0xff]  ;;  %v8201_v39 = vpop.f32.mrf.mxu2 }
 0x3cd   : > { %v10145_v8 = vld [vmem:[#allocation68_spill] sm:$0xff] }
 0x3ce   : > { %v2521_v38 = vadd.f32 %v10145_v8, %v2279_v57 }
 0x3cf   : > { %v2979_v19 = vpop.f32.mrf.mxu0  ;;  %v8189_v43 = vpop.f32.mrf.mxu1  ;;  %5795 = vmatmul.msk.bf16.gmra.mxu3 %vm1331_vm0, %v10140_v13  ;;  %v10157_v13 = vld [vmem:[#allocation114_spill] sm:$0xff] }
 0x3d0   : > { %v3053_v32 = vadd.f32 %v2979_v19, %v7845_v2  ;;  %v2723_v2 = vadd.f32 %v7862_v31, %v2521_v38 }
 0x3d2   : > { %v2708_v40 = vpop.f32.mrf.mxu3  ;;  %5715 = vmatmul.msk.bf16.gmra.mxu0 %vm1331_vm0, %v8187_v58  ;;  %5851 = vmatmul.msk.bf16.gmra.mxu1 %vm1331_vm0, %v7764_v63  ;;  %v3383_v21 = vadd.f32 %v10143_v46, %v3053_v32  ;;  %v2823_v63 = vrot.slane %v7850_v16, 1  ;;  %v2825_v32 = vrot.slane %v1590_v34, 1  ;;  %v10146_v46 = vld [vmem:[#allocation47_spill] sm:$0xff]  ;;  %v6351_v16 = vld [vmem:[%s9782_s4] ss:$0 sm:$0xff] }
 0x3d3   : > { %v8204_v20 = vadd.f32 %v2708_v40, %v10144_v44  ;;  %5773 = vmatmul.msk.bf16.gmra.mxu2 %vm1331_vm0, %v10146_v46 }
 0x3d4   : > { %v8207_v0 = vadd.f32 %v3461_v7, %v3383_v21  ;;  %v8217_v7 = vpop.f32.mrf.mxu2  ;;  %v10147_v21 = vld [vmem:[#allocation97_spill] sm:$0xff]  ;;  %v2824_v38 = vsel %vm2766_vm3, %v2822_v6, %v2823_v63  ;;  %v2826_v18 = vsel %vm2766_vm3, %v2823_v63, %v2825_v32  ;;  %v10150_v6 = vld [vmem:[#allocation86_spill] sm:$0xff]  ;;  %v10151_v63 = vld [vmem:[#allocation72_spill] sm:$0xff] }
 0x3d7   : > { %v2981_v19 = vpop.f32.mrf.mxu0  ;;  %v8210_v36 = vpop.f32.mrf.mxu1 }
 0x3d8   : > { %v3054_v40 = vadd.f32 %v2981_v19, %v2723_v2  ;;  %v8232_v19 = vpack.c.bf16 %v2826_v18, %v2824_v38  ;;  %v10153_v38 = vld [vmem:[#allocation85_spill] sm:$0xff]  ;;  %v10154_v18 = vld [vmem:[#allocation112_spill] sm:$0xff] }
 0x3da   : > { %v2710_v44 = vpop.f32.mrf.mxu3  ;;  %v3384_v57 = vadd.f32 %v7838_v4, %v3054_v40  ;;  %v1189_v31 = vpop.permute.xlu2 %1188  ;;  %v6352_v4 = vld [vmem:[%s9783_s5] ss:$0 sm:$0xff]  ;;  %10148 = vst [vmem:[#allocation17_spill] sm:$0xff] %v8232_v19 }
 0x3db   : > { %v8220_v8 = vadd.f32 %v2710_v44, %v10147_v21  ;;  %v1229_v34 = vmul.f32 %v6351_v16, %v1189_v31 }
 0x3dc   : > { %v8224_v37 = vadd.f32 %v3463_v52, %v3384_v57  ;;  %v10152_v52 = vld [vmem:[#allocation41_spill] sm:$0xff]  ;;  %v8247_v46 = vpop.f32.mrf.mxu2 }
 0x3dd   : > { %v1265_v2 = vadd.f32 %v6352_v4, %v1229_v34  ;;  %v2284_v32 = vadd.f32 %v10152_v52, %v10151_v63 }
 0x3df   : > { %v2984_v40 = vpop.f32.mrf.mxu0  ;;  %v8234_v44 = vpop.f32.mrf.mxu1  ;;  %5796 = vmatmul.msk.bf16.gmra.mxu3 %vm1331_vm0, %v10150_v6  ;;  %v1297_v57 = vmax.f32 %v1265_v2, 0.0  ;;  %v10156_v2 = vld [vmem:[#allocation71_spill] sm:$0xff] }
 0x3e0   : > { %10149 = vst [vmem:[#allocation57_spill] sm:$0xff] %v8234_v44  ;;  %v3055_v21 = vadd.f32 %v2984_v40, %v7871_v33  ;;  %v2523_v52 = vadd.f32 %v10156_v2, %v2284_v32 }
 0x3e1   : > { %1541 = vst.msk [vmem:[#allocation3 + $0x208] sm:$0xff] %vm1331_vm0, %v1297_v57  ;;  %v1594_v57 = vld [vmem:[#allocation2 + $0x198] sm:$0x1] }
 0x3e2   : > { %v2713_v31 = vpop.f32.mrf.mxu3  ;;  %5716 = vmatmul.msk.bf16.gmra.mxu0 %vm1331_vm0, %v8232_v19  ;;  %5852 = vmatmul.msk.bf16.gmra.mxu1 %vm1331_vm0, %v10153_v38  ;;  %v3385_v34 = vadd.f32 %v10154_v18, %v3055_v21  ;;  %v1194_v63 = vpop.permute.xlu0 %1193  ;;  %v2725_v59 = vadd.f32 %v10157_v13, %v2523_v52  ;;  %v6353_v38 = vld [vmem:[#allocation2 + $0x188] sm:$0xff]  ;;  %v6354_v18 = vld [vmem:[#allocation2 + $0x190] sm:$0xff]  ;;  %v2830_v30 = vrot.slane %v1594_v57, 1 }
 0x3e3   : > { %v8250_v6 = vadd.f32 %v2713_v31, %v10155_v60  ;;  %v1230_v40 = vmul.f32 %v6351_v16, %v1194_v63  ;;  %v2827_v21 = vrot.slane %v6353_v38, 1  ;;  %v2828_v1 = vrot.slane %v6354_v18, 1  ;;  %v10158_v60 = vld [vmem:[#allocation49_spill] sm:$0xff] }
 0x3e4   : > { %v8253_v33 = vadd.f32 %v3466_v15, %v3385_v34  ;;  %5774 = vmatmul.msk.bf16.gmra.mxu2 %vm1331_vm0, %v10158_v60  ;;  %v10159_v15 = vld [vmem:[#allocation88_spill] sm:$0xff]  ;;  %v8264_v2 = vpop.f32.mrf.mxu2 }
 0x3e5   : > { %v1266_v19 = vadd.f32 %v6352_v4, %v1230_v40  ;;  %v10160_v34 = vld [vmem:[#allocation100_spill] sm:$0xff]  ;;  %v10161_v4 = vld [vmem:[#allocation113_spill] sm:$0xff]  ;;  %v2829_v38 = vsel %vm2766_vm3, %v2827_v21, %v2828_v1  ;;  %v2831_v40 = vsel %vm2766_vm3, %v2828_v1, %v2830_v30  ;;  %v10166_v30 = vld [vmem:[#allocation102_spill] sm:$0xff] }
 0x3e6   : > { %v2547_v16 = vadd.f32 %v10160_v34, %v10159_v15 }
 0x3e7   : > { %v2986_v58 = vpop.f32.mrf.mxu0  ;;  %v8256_v44 = vpop.f32.mrf.mxu1  ;;  %v1298_v31 = vmax.f32 %v1266_v19, 0.0  ;;  %v10163_v19 = vld [vmem:[#allocation94_spill] sm:$0xff] }
 0x3e8   : > { %v3056_v32 = vadd.f32 %v2986_v58, %v2725_v59  ;;  %v8273_v59 = vpack.c.bf16 %v2831_v40, %v2829_v38  ;;  %v8296_v38 = vld [vmem:[#allocation3 + $0x208] sm:$0xff] }
 0x3e9   : > { %1542 = vst.msk [vmem:[#allocation3 + $0x210] sm:$0xff] %vm1331_vm0, %v1298_v31  ;;  %v10164_v31 = vld [vmem:[#allocation80_spill] sm:$0xff] }
 0x3ea   : > { %v2715_v13 = vpop.f32.mrf.mxu3  ;;  %v3386_v63 = vadd.f32 %v10161_v4, %v3056_v32  ;;  %10162 = vst [vmem:[#allocation62_spill] sm:$0xff] %v8273_v59  ;;  %v10165_v32 = vld [vmem:[#allocation48_spill] sm:$0xff] }
 0x3eb   : > { %v8266_v52 = vadd.f32 %v2715_v13, %v2547_v16  ;;  %v2289_v15 = vadd.f32 %v10165_v32, %v10164_v31  ;;  %v10167_v13 = vld [vmem:[#allocation81_spill] sm:$0xff] }
 0x3ec   : > { %v8271_v57 = vadd.f32 %v8201_v39, %v3386_v63  ;;  %v8287_v21 = vpop.f32.mrf.mxu2  ;;  %v6355_v32 = vld [vmem:[#allocation2 + $0x1a8] sm:$0xff] }
 0x3ed   : > { %v2525_v4 = vadd.f32 %v10167_v13, %v2289_v15 }
 0x3ef   : > { %v2989_v58 = vpop.f32.mrf.mxu0  ;;  %5797 = vmatmul.msk.bf16.gmra.mxu3 %vm1331_vm0, %v10163_v19  ;;  %v8277_v18 = vpop.f32.mrf.mxu1  ;;  %v2727_v40 = vadd.f32 %v7920_v28, %v2525_v4 }
 0x3f0   : > { %v3057_v34 = vadd.f32 %v2989_v58, %v7910_v54  ;;  %v1598_v54 = vld [vmem:[#allocation2 + $0x1b8] sm:$0x1]  ;;  %v8303_v15 = vld [vmem:[#allocation3 + $0x210] sm:$0xff] }
 0x3f1   : > { %v4151_v13 = vrot.slane %v8303_v15, 1 }
 0x3f2   : > { %5717 = vmatmul.msk.bf16.gmra.mxu0 %vm1331_vm0, %v8273_v59  ;;  %v3603_v1 = vpop.f32.mrf.mxu3  ;;  %5853 = vmatmul.msk.bf16.gmra.mxu1 %vm1331_vm0, %v10166_v30  ;;  %v3387_v39 = vadd.f32 %v7897_v25, %v3057_v34  ;;  %v2832_v25 = vrot.slane %v6355_v32, 1  ;;  %v6356_v34 = vld [vmem:[#allocation2 + $0x1b0] sm:$0xff]  ;;  %v2835_v30 = vrot.slane %v1598_v54, 1 }
 0x3f3   : > { %v8290_v16 = vadd.f32 %v3603_v1, %v8135_v62  ;;  %v2833_v60 = vrot.slane %v6356_v34, 1  ;;  %v10169_v62 = vld [vmem:[#allocation55_spill] sm:$0xff] }
 0x3f4   : > { %v8294_v63 = vadd.f32 %v8217_v7, %v3387_v39  ;;  %5775 = vmatmul.msk.bf16.gmra.mxu2 %vm1331_vm0, %v10169_v62  ;;  %v1682_v7 = vld [vmem:[#allocation3 + $0x218] sm:$0x1]  ;;  %v4150_v39 = vrot.slane %v8296_v38, 1  ;;  %v8308_v32 = vpop.f32.mrf.mxu2 }
 0x3f5   : > { %v4153_v28 = vrot.slane %v1682_v7, 1  ;;  %v2834_v62 = vsel %vm2766_vm3, %v2832_v25, %v2833_v60 }
 0x3f6   : > { %v4152_v54 = vsel %vm2766_vm3, %v4150_v39, %v4151_v13 }
 0x3f7   : > { %v2991_v58 = vpop.f32.mrf.mxu0  ;;  %v8299_v31 = vpop.f32.mrf.mxu1 }
 0x3f8   : > { %10168 = vst [vmem:[#allocation26_spill] sm:$0xff] %v8299_v31  ;;  %v3058_v1 = vadd.f32 %v2991_v58, %v2727_v40  ;;  %v2836_v40 = vsel %vm2766_vm3, %v2833_v60, %v2835_v30  ;;  %v4154_v58 = vsel %vm2766_vm3, %v4151_v13, %v4153_v28  ;;  %v10172_v31 = vld [vmem:[#allocation107_spill] sm:$0xff]  ;;  %v1329_v30 = vld [vmem:[%s6762_s24 + $0xf0] sm:$0xff] }
 0x3f9   : > { %v8320_v59 = vpack.c.bf16 %v4154_v58, %v4152_v54  ;;  %v1330_v13 = vld [vmem:[%s6762_s24 + $0xf8] sm:$0xff]  ;;  %1436 = vst.msk [vmem:[#allocation2 + $0x208] sm:$0xff] %vm1331_vm0, %v1329_v30 }
 0x3fa   : > { %v3605_v4 = vpop.f32.mrf.mxu3  ;;  %v3388_v19 = vadd.f32 %v7918_v14, %v3058_v1  ;;  %v8322_v14 = vpack.c.bf16 %v2836_v40, %v2834_v62  ;;  %1437 = vst.msk [vmem:[#allocation2 + $0x210] sm:$0xff] %vm1331_vm0, %v1330_v13 }
 0x3fb   : > { %v8312_v34 = vadd.f32 %v3605_v4, %v8150_v3  ;;  %10170 = vst [vmem:[#allocation61_spill] sm:$0xff] %v8320_v59  ;;  %v10173_v3 = vld [vmem:[#allocation92_spill] sm:$0xff]  ;;  %v10174_v4 = vld [vmem:[#allocation54_spill] sm:$0xff] }
 0x3fc   : > { %v8318_v7 = vadd.f32 %v8247_v46, %v3388_v19  ;;  %10171 = vst [vmem:[#allocation69_spill] sm:$0xff] %v8322_v14  ;;  %v2294_v25 = vadd.f32 %v10174_v4, %v10173_v3  ;;  %v10175_v19 = vld [vmem:[#allocation106_spill] sm:$0xff]  ;;  %v8339_v28 = vpop.f32.mrf.mxu2  ;;  %v1607_v3 = vld [vmem:[#allocation2 + $0x200] sm:$0xff] }
 0x3fd   : > { %v6358_v59 = vld [vmem:[#allocation2 + $0x1d0] sm:$0xff] }
 0x3ff   : > { %v2994_v1 = vpop.f32.mrf.mxu0  ;;  %5798 = vmatmul.msk.bf16.gmra.mxu3 %vm1331_vm0, %v10172_v31  ;;  %v8326_v39 = vpop.f32.mrf.mxu1  ;;  %v2838_v31 = vrot.slane %v6358_v59, 1 }
 0x400   : > { %v3059_v60 = vadd.f32 %v2994_v1, %v7929_v29  ;;  %v10176_v29 = vld [vmem:[#allocation93_spill] sm:$0xff]  ;;  %v1602_v1 = vld [vmem:[#allocation2 + $0x1d8] sm:$0x1] }
 0x401   : > { %v2527_v40 = vadd.f32 %v10176_v29, %v2294_v25  ;;  %v2840_v13 = vrot.slane %v1602_v1, 1  ;;  %v8354_v25 = vld [vmem:[#allocation2 + $0x210] sm:$0xff] }
 0x402   : > { %5718 = vmatmul.msk.bf16.gmra.mxu0 %vm1331_vm0, %v8322_v14  ;;  %v3608_v46 = vpop.f32.mrf.mxu3  ;;  %5854 = vmatmul.msk.bf16.gmra.mxu1 %vm1331_vm0, %v10175_v19  ;;  %v3389_v62 = vadd.f32 %v7926_v61, %v3059_v60  ;;  %v6357_v61 = vld [vmem:[#allocation2 + $0x1c8] sm:$0xff]  ;;  %v3414_v14 = vrot.slane %v1607_v3, 7  ;;  %10179 = vst [vmem:[#allocation96_spill] sm:$0xff] %v8354_v25 }
 0x403   : > { %v8343_v54 = vadd.f32 %v3608_v46, %v8170_v35  ;;  %v2729_v4 = vadd.f32 %v7940_v49, %v2527_v40  ;;  %v2837_v60 = vrot.slane %v6357_v61, 1  ;;  %v8352_v46 = vld [vmem:[#allocation2 + $0x208] sm:$0xff]  ;;  %v3417_v49 = vrot.slane %v8354_v25, 7 }
 0x404   : > { %v8347_v58 = vadd.f32 %v8264_v2, %v3389_v62  ;;  %10178 = vst [vmem:[#allocation104_spill] sm:$0xff] %v8352_v46  ;;  %v3415_v2 = vrot.slane %v8352_v46, 7  ;;  %v3486_v40 = vpop.f32.mrf.mxu2  ;;  %v2841_v1 = vsel %vm2766_vm3, %v2838_v31, %v2840_v13  ;;  %v10183_v13 = vld [vmem:[#allocation67_spill] sm:$0xff] }
 0x405   : > { %v2839_v59 = vsel %vm2766_vm3, %v2837_v60, %v2838_v31 }
 0x406   : > { %v3416_v3 = vsel %vm1735_vm1, %v3414_v14, %v3415_v2  ;;  %v8377_v60 = vpack.c.bf16 %v2841_v1, %v2839_v59 }
 0x407   : > { %v2996_v30 = vpop.f32.mrf.mxu0  ;;  %v8350_v19 = vpop.f32.mrf.mxu1 }
 0x408   : > { %10177 = vst [vmem:[#allocation33_spill] sm:$0xff] %v8350_v19  ;;  %v3060_v35 = vadd.f32 %v2996_v30, %v2729_v4  ;;  %v6138_v4 = vld [vmem:[%s9785_s7 + $0x58] sm:$0xff] }
 0x409   : > { %4184 = vmatpush.bf16.msrb.mxu3 %v6138_v4  ;;  %10181 = vst [vmem:[#allocation97_spill] sm:$0xff] %v8377_v60  ;;  %v10185_v4 = vld [vmem:[#allocation103_spill] sm:$0xff] }
 0x40a   : > { %v3610_v62 = vpop.f32.mrf.mxu3  ;;  %v3390_v29 = vadd.f32 %v7942_v27, %v3060_v35  ;;  %v3418_v27 = vsel %vm1735_vm1, %v3415_v2, %v3417_v49 }
 0x40b   : > { %v8360_v19 = vadd.f32 %v3610_v62, %v8185_v10  ;;  %v6135_v10 = vld [vmem:[%s9784_s6 + $0x50] sm:$0xff]  ;;  %v8375_v61 = vpack.c.bf16 %v3418_v27, %v3416_v3  ;;  %v6140_v3 = vld [vmem:[%s9784_s6 + $0x68] sm:$0xff] }
 0x40c   : > { %v8369_v30 = vadd.f32 %v8287_v21, %v3390_v29  ;;  %4035 = vmatpush.bf16.msra.mxu2 %v6135_v10  ;;  %v10182_v21 = vld [vmem:[#allocation105_spill] sm:$0xff]  ;;  %v10184_v29 = vld [vmem:[#allocation115_spill] sm:$0xff]  ;;  %v3488_v59 = vpop.f32.mrf.mxu2  ;;  %4336 = vmatpush.bf16.msrb.mxu0 %v6140_v3 }
 0x40d   : > { %10180 = vst [vmem:[#allocation68_spill] sm:$0xff] %v8375_v61  ;;  %5776 = vmatmul.msk.bf16.gmra.mxu2 %vm1331_vm0, %v8375_v61  ;;  %v2299_v35 = vadd.f32 %v10183_v13, %v10182_v21  ;;  %v1606_v10 = vld [vmem:[#allocation2 + $0x1f8] sm:$0x1]  ;;  %v6359_v13 = vld [vmem:[#allocation2 + $0x1e8] sm:$0xff] }
 0x40f   : > { %v2999_v31 = vpop.f32.mrf.mxu0  ;;  %5799 = vmatmul.msk.bf16.gmra.mxu3 %vm1331_vm0, %v7905_v50  ;;  %v8381_v14 = vpop.f32.mrf.mxu1  ;;  %v2529_v27 = vadd.f32 %v10185_v4, %v2299_v35  ;;  %v2845_v35 = vrot.slane %v1606_v10, 1 }
 0x410   : > { %v3061_v2 = vadd.f32 %v2999_v31, %v7954_v53  ;;  %v6142_v31 = vld [vmem:[%s9785_s7 + $0x68] sm:$0xff] }
 0x411   : > { %4488 = vmatpush.bf16.msrb.mxu1 %v6142_v31 }
 0x412   : > { %5719 = vmatmul.msk.bf16.gmra.mxu0 %vm1331_vm0, %v8377_v60  ;;  %v3613_v62 = vpop.f32.mrf.mxu3  ;;  %5855 = vmatmul.msk.bf16.gmra.mxu1 %vm1331_vm0, %v10184_v29  ;;  %v3391_v49 = vadd.f32 %v7960_v12, %v3061_v2  ;;  %v2731_v12 = vadd.f32 %v7964_v51, %v2529_v27  ;;  %v2842_v2 = vrot.slane %v6359_v13, 1 }
 0x413   : > { %v8394_v1 = vadd.f32 %v3613_v62, %v8207_v0  ;;  %v6360_v62 = vld [vmem:[#allocation2 + $0x1f0] sm:$0xff] }
 0x414   : > { %v8401_v53 = vadd.f32 %v8308_v32, %v3391_v49  ;;  %v2843_v61 = vrot.slane %v6360_v62, 1  ;;  %v3491_v29 = vpop.f32.mrf.mxu2  ;;  %v10187_v62 = vld [vmem:[#allocation12_spill] sm:$0xff] }
 0x416   : > { %v2844_v3 = vsel %vm2766_vm3, %v2842_v2, %v2843_v61  ;;  %v2846_v51 = vsel %vm2766_vm3, %v2843_v61, %v2845_v35  ;;  %v10191_v2 = vld [vmem:[#allocation122_spill] sm:$0xff]  ;;  %v10192_v61 = vld [vmem:[#allocation13_spill] sm:$0xff]  ;;  %v10193_v35 = vld [vmem:[#allocation123_spill] sm:$0xff] }
 0x417   : > { %v3001_v0 = vpop.f32.mrf.mxu0  ;;  %v8407_v21 = vpop.f32.mrf.mxu1  ;;  %v8418_v31 = vpack.c.bf16 %v2846_v51, %v2844_v3  ;;  %v10194_v51 = vld [vmem:[#allocation110_spill] sm:$0xff] }
 0x418   : > { %v3062_v4 = vadd.f32 %v3001_v0, %v2731_v12  ;;  %v10190_v12 = vld [vmem:[#allocation76_spill] sm:$0xff] }
 0x419   : > { %10186 = vst [vmem:[#allocation72_spill] sm:$0xff] %v8418_v31 }
 0x41a   : > { %v3615_v32 = vpop.f32.mrf.mxu3  ;;  %v3392_v49 = vadd.f32 %v7968_v47, %v3062_v4  ;;  %v10188_v47 = vld [vmem:[#allocation120_spill] sm:$0xff] }
 0x41b   : > { %v8411_v25 = vadd.f32 %v3615_v32, %v8224_v37  ;;  %v10189_v37 = vld [vmem:[#allocation111_spill] sm:$0xff] }
 0x41c   : > { %v8416_v27 = vadd.f32 %v8339_v28, %v3392_v49  ;;  %v2304_v0 = vadd.f32 %v10190_v12, %v10189_v37  ;;  %v3493_v49 = vpop.f32.mrf.mxu2  ;;  %v10195_v37 = vld [vmem:[#allocation124_spill] sm:$0xff] }
 0x41d   : > { %5873 = vmatmul.msk.bf16.vlgmr.msra.gmra.mxu2 %vm1331_vm0, %v10188_v47 }
 0x41e   : > { %v2531_v47 = vadd.f32 %v10194_v51, %v2304_v0  ;;  %v10198_v0 = vld [vmem:[#allocation121_spill] sm:$0xff]  ;;  %v10200_v51 = vld [vmem:[#allocation84_spill] sm:$0xff] }
 0x41f   : > { %v3004_v13 = vpop.f32.mrf.mxu0  ;;  %5800 = vmatmul.msk.bf16.gmra.mxu3 %vm1331_vm0, %v10187_v62  ;;  %v8422_v10 = vpop.f32.mrf.mxu1 }
 0x420   : > { %v3063_v4 = vadd.f32 %v3004_v13, %v10191_v2  ;;  %v2733_v12 = vadd.f32 %v10195_v37, %v2531_v47  ;;  %v10201_v37 = vld [vmem:[#allocation15_spill] sm:$0xff] }
 0x422   : > { %5720 = vmatmul.msk.bf16.gmra.mxu0 %vm1331_vm0, %v8418_v31  ;;  %v3618_v28 = vpop.f32.mrf.mxu3  ;;  %5856 = vmatmul.msk.bf16.gmra.mxu1 %vm1331_vm0, %v10192_v61  ;;  %v3393_v32 = vadd.f32 %v10193_v35, %v3063_v4 }
 0x423   : > { %v8435_v3 = vadd.f32 %v3618_v28, %v8253_v33  ;;  %v10196_v28 = vld [vmem:[#allocation19_spill] sm:$0xff] }
 0x424   : > { %v8438_v62 = vadd.f32 %v3486_v40, %v3393_v32  ;;  %v10199_v32 = vld [vmem:[#allocation118_spill] sm:$0xff] }
 0x425   : > { %v2309_v47 = vadd.f32 %v10200_v51, %v10199_v32 }
 0x426   : > { %v3496_v61 = vpop.f32.mrf.mxu2 }
 0x427   : > { %v3006_v13 = vpop.f32.mrf.mxu0  ;;  %v8441_v2 = vpop.f32.mrf.mxu1 }
 0x428   : > { %v3064_v46 = vadd.f32 %v3006_v13, %v2733_v12  ;;  %v10204_v12 = vld [vmem:[#allocation119_spill] sm:$0xff] }
 0x429   : > { %v2533_v13 = vadd.f32 %v10204_v12, %v2309_v47  ;;  %v10211_v47 = vld [vmem:[#allocation128_spill] sm:$0xff] }
 0x42a   : > { %v3620_v50 = vpop.f32.mrf.mxu3  ;;  %v3394_v31 = vadd.f32 %v8001_v22, %v3064_v46 }
 0x42b   : > { %v8445_v4 = vadd.f32 %v3620_v50, %v8271_v57  ;;  %v10202_v50 = vld [vmem:[#allocation21_spill] sm:$0xff]  ;;  %v2735_v32 = vadd.f32 %v8017_v42, %v2533_v13  ;;  %v10213_v13 = vld [vmem:[#allocation18_spill] sm:$0xff] }
 0x42c   : > { %v8447_v35 = vadd.f32 %v3488_v59, %v3394_v31  ;;  %v10210_v42 = vld [vmem:[#allocation125_spill] sm:$0xff] }
 0x42d   : > { %5874 = vmatmul.msk.bf16.gmra.mxu2 %vm1331_vm0, %v10198_v0 }
 0x42e   : > { %v3498_v59 = vpop.f32.mrf.mxu2 }
 0x42f   : > { %v3009_v33 = vpop.f32.mrf.mxu0  ;;  %5801 = vmatmul.msk.bf16.gmra.mxu3 %vm1331_vm0, %v10196_v28  ;;  %v8451_v40 = vpop.f32.mrf.mxu1  ;;  %v10206_v28 = vld [vmem:[#allocation20_spill] sm:$0xff] }
 0x430   : > { %10197 = vst [vmem:[#allocation41_spill] sm:$0xff] %v8451_v40  ;;  %v3065_v22 = vadd.f32 %v3009_v33, %v8006_v48 }
 0x432   : > { %v3623_v46 = vpop.f32.mrf.mxu3  ;;  %5817 = vmatmul.msk.bf16.vlgmr.msra.gmra.mxu0 %vm1331_vm0, %v10201_v37  ;;  %5857 = vmatmul.msk.bf16.gmra.mxu1 %vm1331_vm0, %v10202_v50  ;;  %v3395_v57 = vadd.f32 %v8015_v56, %v3065_v22 }
 0x433   : > { %v8464_v31 = vadd.f32 %v3623_v46, %v8294_v63  ;;  %v10208_v46 = vld [vmem:[#allocation25_spill] sm:$0xff] }
 0x434   : > { %v8467_v0 = vadd.f32 %v3491_v29, %v3395_v57  ;;  %v10212_v57 = vld [vmem:[#allocation89_spill] sm:$0xff] }
 0x435   : > { %10203 = vst [vmem:[#allocation112_spill] sm:$0xff] %v8464_v31  ;;  %v2314_v12 = vadd.f32 %v10212_v57, %v10211_v47  ;;  %v10219_v47 = vld [vmem:[#allocation129_spill] sm:$0xff] }
 0x436   : > { %v3501_v50 = vpop.f32.mrf.mxu2 }
 0x437   : > { %v3011_v48 = vpop.f32.mrf.mxu0  ;;  %v8470_v33 = vpop.f32.mrf.mxu1 }
 0x438   : > { %10205 = vst [vmem:[#allocation99_spill] sm:$0xff] %v8470_v33  ;;  %v3066_v51 = vadd.f32 %v3011_v48, %v2735_v32  ;;  %v10214_v48 = vld [vmem:[#allocation28_spill] sm:$0xff] }
 0x43a   : > { %v3625_v37 = vpop.f32.mrf.mxu3  ;;  %v3396_v40 = vadd.f32 %v10206_v28, %v3066_v51 }
 0x43b   : > { %v8474_v56 = vadd.f32 %v3625_v37, %v8318_v7  ;;  %v10215_v7 = vld [vmem:[#allocation24_spill] sm:$0xff] }
 0x43c   : > { %v8476_v22 = vadd.f32 %v3493_v49, %v3396_v40  ;;  %v10216_v49 = vld [vmem:[#allocation130_spill] sm:$0xff] }
 0x43d   : > { %10207 = vst [vmem:[#allocation71_spill] sm:$0xff] %v8474_v56  ;;  %5875 = vmatmul.msk.bf16.gmra.mxu2 %vm1331_vm0, %v10210_v42  ;;  %v10221_v56 = vld [vmem:[#allocation134_spill] sm:$0xff] }
 0x43e   : > { %v3503_v51 = vpop.f32.mrf.mxu2 }
 0x43f   : > { %v3014_v63 = vpop.f32.mrf.mxu0  ;;  %5802 = vmatmul.msk.bf16.gmra.mxu3 %vm1331_vm0, %v10208_v46  ;;  %v8480_v29 = vpop.f32.mrf.mxu1  ;;  %v10218_v46 = vld [vmem:[#allocation126_spill] sm:$0xff] }
 0x440   : > { %10209 = vst [vmem:[#allocation114_spill] sm:$0xff] %v8480_v29  ;;  %v3067_v28 = vadd.f32 %v3014_v63, %v10213_v13  ;;  %v2535_v42 = vadd.f32 %v10218_v46, %v2314_v12  ;;  %v10224_v46 = vld [vmem:[#allocation91_spill] sm:$0xff] }
 0x442   : > { %v3628_v32 = vpop.f32.mrf.mxu3  ;;  %5818 = vmatmul.msk.bf16.gmra.mxu0 %vm1331_vm0, %v10214_v48  ;;  %5858 = vmatmul.msk.bf16.gmra.mxu1 %vm1331_vm0, %v10215_v7  ;;  %v3397_v40 = vadd.f32 %v10216_v49, %v3067_v28  ;;  %v2737_v57 = vadd.f32 %v10219_v47, %v2535_v42 }
 0x443   : > { %v8493_v37 = vadd.f32 %v3628_v32, %v8347_v58  ;;  %v6137_v58 = vld [vmem:[%s9785_s7 + $0x50] sm:$0xff] }
 0x444   : > { %v8496_v29 = vadd.f32 %v3496_v61, %v3397_v40  ;;  %v10223_v61 = vld [vmem:[#allocation137_spill] sm:$0xff]  ;;  %4185 = vmatpush.bf16.msrb.mxu3 %v6137_v58  ;;  %v10225_v32 = vld [vmem:[#allocation34_spill] sm:$0xff]  ;;  %v10232_v58 = vld [vmem:[#allocation135_spill] sm:$0xff] }
 0x445   : > { %10217 = vst [vmem:[#allocation88_spill] sm:$0xff] %v8493_v37  ;;  %v2319_v42 = vadd.f32 %v10224_v46, %v10223_v61 }
 0x446   : > { %v3506_v7 = vpop.f32.mrf.mxu2 }
 0x447   : > { %v3016_v63 = vpop.f32.mrf.mxu0  ;;  %v8499_v13 = vpop.f32.mrf.mxu1 }
 0x448   : > { %10220 = vst [vmem:[#allocation100_spill] sm:$0xff] %v8499_v13  ;;  %v3068_v33 = vadd.f32 %v3016_v63, %v2737_v57  ;;  %v10230_v57 = vld [vmem:[#allocation32_spill] sm:$0xff]  ;;  %v10231_v63 = vld [vmem:[#allocation35_spill] sm:$0xff] }
 0x44a   : > { %v3630_v48 = vpop.f32.mrf.mxu3  ;;  %v3398_v31 = vadd.f32 %v10221_v56, %v3068_v33  ;;  %v10227_v33 = vld [vmem:[#allocation127_spill] sm:$0xff]  ;;  %v10229_v56 = vld [vmem:[#allocation132_spill] sm:$0xff] }
 0x44b   : > { %v8503_v28 = vadd.f32 %v3630_v48, %v8369_v30  ;;  %v10228_v30 = vld [vmem:[#allocation133_spill] sm:$0xff]  ;;  %v2537_v48 = vadd.f32 %v10229_v56, %v2319_v42  ;;  %v3569_v42 = vrot.slane %v8303_v15, 7 }
 0x44c   : > { %v8505_v49 = vadd.f32 %v3498_v59, %v3398_v31  ;;  %v6141_v31 = vld [vmem:[%s9785_s7 + $0x60] sm:$0xff] }
 0x44d   : > { %10222 = vst [vmem:[#allocation113_spill] sm:$0xff] %v8503_v28  ;;  %5876 = vmatmul.msk.bf16.gmra.mxu2 %vm1331_vm0, %v10227_v33  ;;  %4489 = vmatpush.bf16.msrb.mxu1 %v6141_v31 }
 0x44e   : > { %v3508_v46 = vpop.f32.mrf.mxu2 }
 0x44f   : > { %v3019_v12 = vpop.f32.mrf.mxu0  ;;  %5803 = vmatmul.msk.bf16.gmra.mxu3 %vm1331_vm0, %v10225_v32  ;;  %v8514_v40 = vpop.f32.mrf.mxu1  ;;  %v10233_v32 = vld [vmem:[#allocation73_spill] sm:$0xff] }
 0x450   : > { %10226 = vst [vmem:[#allocation80_spill] sm:$0xff] %v8514_v40  ;;  %v3069_v59 = vadd.f32 %v3019_v12, %v10228_v30  ;;  %v1679_v30 = vld [vmem:[#allocation3 + $0x200] sm:$0xff]  ;;  %v2739_v40 = vadd.f32 %v10233_v32, %v2537_v48 }
 0x451   : > { %v3566_v28 = vrot.slane %v1679_v30, 7  ;;  %v10236_v30 = vld [vmem:[#allocation131_spill] sm:$0xff] }
 0x452   : > { %v3633_v47 = vpop.f32.mrf.mxu3  ;;  %5819 = vmatmul.msk.bf16.gmra.mxu0 %vm1331_vm0, %v10230_v57  ;;  %5859 = vmatmul.msk.bf16.gmra.mxu1 %vm1331_vm0, %v10231_v63  ;;  %v3399_v61 = vadd.f32 %v10232_v58, %v3069_v59  ;;  %v3567_v63 = vrot.slane %v8296_v38, 7  ;;  %v10234_v58 = vld [vmem:[#allocation138_spill] sm:$0xff] }
 0x453   : > { %v8529_v33 = vadd.f32 %v3633_v47, %v8401_v53 }
 0x454   : > { %v8531_v12 = vadd.f32 %v3501_v50, %v3399_v61  ;;  %v3570_v53 = vsel %vm1735_vm1, %v3567_v63, %v3569_v42  ;;  %v3568_v32 = vsel %vm1735_vm1, %v3566_v28, %v3567_v63  ;;  %v10240_v28 = vld [vmem:[#allocation139_spill] sm:$0xff] }
 0x455   : > { %v8546_v48 = vpack.c.bf16 %v3570_v53, %v3568_v32 }
 0x456   : > { %v3511_v31 = vpop.f32.mrf.mxu2 }
 0x457   : > { %v3021_v56 = vpop.f32.mrf.mxu0  ;;  %v8535_v13 = vpop.f32.mrf.mxu1  ;;  %10235 = vst [vmem:[#allocation48_spill] sm:$0xff] %v8546_v48 }
 0x458   : > { %v3070_v57 = vadd.f32 %v3021_v56, %v2739_v40 }
 0x45a   : > { %v3635_v59 = vpop.f32.mrf.mxu3  ;;  %v3400_v37 = vadd.f32 %v10234_v58, %v3070_v57  ;;  %v10237_v57 = vld [vmem:[#allocation140_spill] sm:$0xff] }
 0x45b   : > { %v8541_v50 = vadd.f32 %v3635_v59, %v8416_v27  ;;  %v8557_v27 = vpack.c.bf16 %v8303_v15, %v8296_v38 }
 0x45c   : > { %v8543_v47 = vadd.f32 %v3503_v51, %v3400_v37  ;;  %v10239_v37 = vld [vmem:[#allocation40_spill] sm:$0xff] }
 0x45d   : > { %5877 = vmatmul.msk.bf16.gmra.mxu2 %vm1331_vm0, %v10236_v30  ;;  %10238 = vst [vmem:[#allocation81_spill] sm:$0xff] %v8557_v27 }
 0x45e   : > { %v3513_v56 = vpop.f32.mrf.mxu2 }
 0x45f   : > { %v3024_v61 = vpop.f32.mrf.mxu0  ;;  %5804 = vmatmul.msk.bf16.gmra.mxu3 %vm1331_vm0, %v8546_v48  ;;  %v8550_v40 = vpop.f32.mrf.mxu1 }
 0x460   : > { %v3071_v42 = vadd.f32 %v3024_v61, %v10237_v57  ;;  %v10241_v61 = vld [vmem:[#allocation141_spill] sm:$0xff] }
 0x462   : > { %v3638_v51 = vpop.f32.mrf.mxu3  ;;  %5820 = vmatmul.msk.bf16.gmra.mxu0 %vm1331_vm0, %v10239_v37  ;;  %5860 = vmatmul.msk.bf16.gmra.mxu1 %vm1331_vm0, %v8557_v27  ;;  %v3401_v63 = vadd.f32 %v10240_v28, %v3071_v42 }
 0x463   : > { %v8565_v59 = vadd.f32 %v3638_v51, %v8438_v62  ;;  %v10242_v62 = vld [vmem:[#allocation29_spill] sm:$0xff] }
 0x464   : > { %v8567_v58 = vadd.f32 %v3506_v7, %v3401_v63  ;;  %v10243_v7 = vld [vmem:[#allocation136_spill] sm:$0xff]  ;;  %v10244_v63 = vld [vmem:[#allocation50_spill] sm:$0xff] }
 0x467   : > { %v3026_v53 = vpop.f32.mrf.mxu0  ;;  %v8569_v32 = vpop.f32.mrf.mxu1 }
 0x468   : > { %v3072_v38 = vadd.f32 %v3026_v53, %v8115_v45  ;;  %v3516_v30 = vpop.f32.mrf.mxu2  ;;  %v10245_v53 = vld [vmem:[#allocation31_spill] sm:$0xff] }
 0x46a   : > { %v3640_v15 = vpop.f32.mrf.mxu3  ;;  %v3402_v57 = vadd.f32 %v10241_v61, %v3072_v38 }
 0x46b   : > { %v8574_v48 = vadd.f32 %v3640_v15, %v8447_v35 }
 0x46c   : > { %v8576_v27 = vadd.f32 %v3508_v46, %v3402_v57 }
 0x46d   : > { %5878 = vmatmul.msk.bf16.gmra.mxu2 %vm1331_vm0, %v10243_v7 }
 0x46f   : > { %v3029_v42 = vpop.f32.mrf.mxu0  ;;  %v8578_v28 = vpop.f32.mrf.mxu1  ;;  %5901 = vmatmul.msk.bf16.vlgmr.msrb.gmra.mxu3 %vm1331_vm0, %v10242_v62 }
 0x470   : > { %v3073_v45 = vadd.f32 %v3029_v42, %v8133_v5  ;;  %v3518_v15 = vpop.f32.mrf.mxu2 }
 0x472   : > { %v3643_v51 = vpop.f32.mrf.mxu3  ;;  %5821 = vmatmul.msk.bf16.gmra.mxu0 %vm1331_vm0, %v10244_v63  ;;  %5957 = vmatmul.msk.bf16.vlgmr.msrb.gmra.mxu1 %vm1331_vm0, %v10245_v53  ;;  %v3403_v35 = vadd.f32 %v8121_v11, %v3073_v45 }
 0x473   : > { %v8591_v46 = vadd.f32 %v3643_v51, %v8467_v0  ;;  %v10247_v51 = vld [vmem:[#allocation74_spill] sm:$0xff] }
 0x474   : > { %v8593_v38 = vadd.f32 %v3511_v31, %v3403_v35  ;;  %v10246_v31 = vld [vmem:[#allocation36_spill] sm:$0xff] }
 0x477   : > { %v3031_v61 = vpop.f32.mrf.mxu0  ;;  %v8595_v57 = vpop.f32.mrf.mxu1 }
 0x478   : > { %v3074_v5 = vadd.f32 %v3031_v61, %v8146_v17  ;;  %v3521_v11 = vpop.f32.mrf.mxu2  ;;  %v10248_v61 = vld [vmem:[#allocation59_spill] sm:$0xff] }
 0x47a   : > { %v3645_v42 = vpop.f32.mrf.mxu3  ;;  %v3404_v62 = vadd.f32 %v8138_v41, %v3074_v5  ;;  %v10249_v41 = vld [vmem:[#allocation38_spill] sm:$0xff] }
 0x47b   : > { %v8600_v7 = vadd.f32 %v3645_v42, %v8476_v22 }
 0x47c   : > { %v8602_v53 = vadd.f32 %v3513_v56, %v3404_v62 }
 0x47d   : > { %5879 = vmatmul.msk.bf16.gmra.mxu2 %vm1331_vm0, %v10247_v51 }
 0x47f   : > { %v3034_v45 = vpop.f32.mrf.mxu0  ;;  %v8604_v0 = vpop.f32.mrf.mxu1  ;;  %5902 = vmatmul.msk.bf16.gmra.mxu3 %vm1331_vm0, %v10246_v31 }
 0x480   : > { %v3075_v17 = vadd.f32 %v3034_v45, %v8167_v55  ;;  %v3523_v55 = vpop.f32.mrf.mxu2 }
 0x482   : > { %v3648_v35 = vpop.f32.mrf.mxu3  ;;  %5822 = vmatmul.msk.bf16.gmra.mxu0 %vm1331_vm0, %v10248_v61  ;;  %5958 = vmatmul.msk.bf16.gmra.mxu1 %vm1331_vm0, %v10249_v41  ;;  %v3405_v22 = vadd.f32 %v8154_v26, %v3075_v17 }
 0x483   : > { %v8617_v56 = vadd.f32 %v3648_v35, %v8496_v29  ;;  %v10250_v29 = vld [vmem:[#allocation42_spill] sm:$0xff]  ;;  %v10251_v35 = vld [vmem:[#allocation75_spill] sm:$0xff] }
 0x484   : > { %v8619_v5 = vadd.f32 %v3516_v30, %v3405_v22 }
 0x487   : > { %v3036_v42 = vpop.f32.mrf.mxu0  ;;  %v8621_v62 = vpop.f32.mrf.mxu1 }
 0x488   : > { %v3076_v51 = vadd.f32 %v3036_v42, %v8181_v24 }
 0x48a   : > { %v3650_v45 = vpop.f32.mrf.mxu3  ;;  %v3406_v31 = vadd.f32 %v8173_v23, %v3076_v51  ;;  %v10252_v23 = vld [vmem:[#allocation44_spill] sm:$0xff] }
 0x48b   : > { %v8626_v61 = vadd.f32 %v3650_v45, %v8505_v49  ;;  %v6139_v51 = vld [vmem:[%s9784_s6 + $0x60] sm:$0xff] }
 0x48c   : > { %v8628_v41 = vadd.f32 %v3518_v15, %v3406_v31  ;;  %4337 = vmatpush.bf16.msrb.mxu0 %v6139_v51 }
 0x48d   : > { %5880 = vmatmul.msk.bf16.gmra.mxu2 %vm1331_vm0, %v8119_v9 }
 0x48f   : > { %v3039_v26 = vpop.f32.mrf.mxu0  ;;  %v8630_v17 = vpop.f32.mrf.mxu1  ;;  %5903 = vmatmul.msk.bf16.gmra.mxu3 %vm1331_vm0, %v10250_v29 }
 0x490   : > { %v3077_v24 = vadd.f32 %v3039_v26, %v8204_v20  ;;  %v3526_v15 = vpop.f32.mrf.mxu2 }
 0x492   : > { %v3653_v30 = vpop.f32.mrf.mxu3  ;;  %5823 = vmatmul.msk.bf16.gmra.mxu0 %vm1331_vm0, %v10251_v35  ;;  %5959 = vmatmul.msk.bf16.gmra.mxu1 %vm1331_vm0, %v10252_v23  ;;  %v3407_v49 = vadd.f32 %v8189_v43, %v3077_v24 }
 0x493   : > { %v8643_v31 = vadd.f32 %v3653_v30, %v8531_v12 }
 0x494   : > { %v8648_v22 = vadd.f32 %v3521_v11, %v3407_v49  ;;  %v10253_v11 = vld [vmem:[#allocation46_spill] sm:$0xff] }
 0x495   : > { %v10254_v49 = vld [vmem:[#allocation78_spill] sm:$0xff] }
 0x497   : > { %v3041_v20 = vpop.f32.mrf.mxu0  ;;  %v8650_v42 = vpop.f32.mrf.mxu1 }
 0x498   : > { %v3078_v45 = vadd.f32 %v3041_v20, %v8220_v8  ;;  %v3528_v43 = vpop.f32.mrf.mxu2  ;;  %v10255_v20 = vld [vmem:[#allocation79_spill] sm:$0xff] }
 0x49a   : > { %v3655_v26 = vpop.f32.mrf.mxu3  ;;  %v3408_v23 = vadd.f32 %v8210_v36, %v3078_v45  ;;  %v10256_v36 = vld [vmem:[#allocation51_spill] sm:$0xff] }
 0x49b   : > { %v8655_v24 = vadd.f32 %v3655_v26, %v8543_v47  ;;  %v10257_v47 = vld [vmem:[#allocation57_spill] sm:$0xff] }
 0x49c   : > { %v8657_v12 = vadd.f32 %v3523_v55, %v3408_v23 }
 0x49d   : > { %5881 = vmatmul.msk.bf16.gmra.mxu2 %vm1331_vm0, %v10254_v49  ;;  %v6144_v49 = vld [vmem:[%s9784_s6 + $0x78] sm:$0xff] }
 0x49e   : > { %4630 = vmatpush.bf16.msrb.mxu2 %v6144_v49  ;;  %v10260_v49 = vld [vmem:[#allocation56_spill] sm:$0xff] }
 0x49f   : > { %v3044_v30 = vpop.f32.mrf.mxu0  ;;  %v8659_v9 = vpop.f32.mrf.mxu1  ;;  %5904 = vmatmul.msk.bf16.gmra.mxu3 %vm1331_vm0, %v10253_v11 }
 0x4a0   : > { %v3079_v8 = vadd.f32 %v3044_v30, %v8250_v6  ;;  %v4037_v45 = vpop.f32.mrf.mxu2 }
 0x4a2   : > { %v3658_v51 = vpop.f32.mrf.mxu3  ;;  %5824 = vmatmul.msk.bf16.gmra.mxu0 %vm1331_vm0, %v10255_v20  ;;  %5960 = vmatmul.msk.bf16.gmra.mxu1 %vm1331_vm0, %v10256_v36  ;;  %v3409_v55 = vadd.f32 %v10257_v47, %v3079_v8  ;;  %v10261_v20 = vld [vmem:[#allocation90_spill] sm:$0xff] }
 0x4a3   : > { %v8672_v26 = vadd.f32 %v3658_v51, %v8567_v58 }
 0x4a4   : > { %v8674_v23 = vadd.f32 %v3526_v15, %v3409_v55  ;;  %v10259_v55 = vld [vmem:[#allocation52_spill] sm:$0xff] }
 0x4a7   : > { %v3046_v6 = vpop.f32.mrf.mxu0  ;;  %v8679_v30 = vpop.f32.mrf.mxu1 }
 0x4a8   : > { %v3080_v11 = vadd.f32 %v3046_v6, %v8266_v52  ;;  %v4039_v8 = vpop.f32.mrf.mxu2 }
 0x4aa   : > { %v3660_v29 = vpop.f32.mrf.mxu3  ;;  %v3410_v36 = vadd.f32 %v8256_v44, %v3080_v11  ;;  %v10262_v44 = vld [vmem:[#allocation64_spill] sm:$0xff] }
 0x4ab   : > { %v8684_v47 = vadd.f32 %v3660_v29, %v8576_v27 }
 0x4ac   : > { %v8686_v58 = vadd.f32 %v3528_v43, %v3410_v36 }
 0x4ad   : > { %5882 = vmatmul.msk.bf16.gmra.mxu2 %vm1331_vm0, %v10260_v49  ;;  %v10263_v49 = vld [vmem:[#allocation26_spill] sm:$0xff] }
 0x4af   : > { %v3745_v15 = vpop.f32.mrf.mxu0  ;;  %v8688_v51 = vpop.f32.mrf.mxu1  ;;  %5905 = vmatmul.msk.bf16.gmra.mxu3 %vm1331_vm0, %v10259_v55 }
 0x4b0   : > { %10258 = vst [vmem:[#allocation92_spill] sm:$0xff] %v8688_v51  ;;  %v3825_v52 = vadd.f32 %v3745_v15, %v8290_v16  ;;  %v4042_v29 = vpop.f32.mrf.mxu2 }
 0x4b2   : > { %v3663_v6 = vpop.f32.mrf.mxu3  ;;  %5825 = vmatmul.msk.bf16.gmra.mxu0 %vm1331_vm0, %v10261_v20  ;;  %5961 = vmatmul.msk.bf16.gmra.mxu1 %vm1331_vm0, %v10262_v44  ;;  %v3967_v27 = vadd.f32 %v8277_v18, %v3825_v52 }
 0x4b3   : > { %v8701_v43 = vadd.f32 %v3663_v6, %v8593_v38  ;;  %v10265_v38 = vld [vmem:[#allocation65_spill] sm:$0xff] }
 0x4b4   : > { %v8703_v11 = vadd.f32 %v4037_v45, %v3967_v27  ;;  %v10266_v45 = vld [vmem:[#allocation17_spill] sm:$0xff] }
 0x4b5   : > { %v10267_v27 = vld [vmem:[#allocation101_spill] sm:$0xff] }
 0x4b7   : > { %v3747_v36 = vpop.f32.mrf.mxu0  ;;  %v8705_v55 = vpop.f32.mrf.mxu1 }
 0x4b8   : > { %v3826_v16 = vadd.f32 %v3747_v36, %v8312_v34  ;;  %v4044_v20 = vpop.f32.mrf.mxu2 }
 0x4ba   : > { %v3665_v15 = vpop.f32.mrf.mxu3  ;;  %v3968_v51 = vadd.f32 %v10263_v49, %v3826_v16  ;;  %v10268_v49 = vld [vmem:[#allocation82_spill] sm:$0xff] }
 0x4bb   : > { %v8710_v35 = vadd.f32 %v3665_v15, %v8602_v53 }
 0x4bc   : > { %v8712_v44 = vadd.f32 %v4039_v8, %v3968_v51 }
 0x4bd   : > { %5883 = vmatmul.msk.bf16.gmra.mxu2 %vm1331_vm0, %v10266_v45  ;;  %v10269_v45 = vld [vmem:[#allocation33_spill] sm:$0xff] }
 0x4bf   : > { %v3750_v18 = vpop.f32.mrf.mxu0  ;;  %v8714_v52 = vpop.f32.mrf.mxu1  ;;  %5906 = vmatmul.msk.bf16.gmra.mxu3 %vm1331_vm0, %v10265_v38 }
 0x4c0   : > { %10264 = vst [vmem:[#allocation54_spill] sm:$0xff] %v8714_v52  ;;  %v3827_v34 = vadd.f32 %v3750_v18, %v8343_v54  ;;  %v4047_v8 = vpop.f32.mrf.mxu2 }
 0x4c2   : > { %v3668_v6 = vpop.f32.mrf.mxu3  ;;  %5826 = vmatmul.msk.bf16.gmra.mxu0 %vm1331_vm0, %v10267_v27  ;;  %5962 = vmatmul.msk.bf16.gmra.mxu1 %vm1331_vm0, %v10268_v49  ;;  %v3969_v53 = vadd.f32 %v8326_v39, %v3827_v34 }
 0x4c3   : > { %v8727_v51 = vadd.f32 %v3668_v6, %v8619_v5  ;;  %v10270_v5 = vld [vmem:[#allocation83_spill] sm:$0xff] }
 0x4c4   : > { %v8729_v36 = vadd.f32 %v4042_v29, %v3969_v53  ;;  %v10271_v29 = vld [vmem:[#allocation62_spill] sm:$0xff]  ;;  %v10272_v53 = vld [vmem:[#allocation109_spill] sm:$0xff] }
 0x4c7   : > { %v3752_v16 = vpop.f32.mrf.mxu0  ;;  %v8731_v15 = vpop.f32.mrf.mxu1 }
 0x4c8   : > { %v3828_v54 = vadd.f32 %v3752_v16, %v8360_v19  ;;  %v4049_v27 = vpop.f32.mrf.mxu2 }
 0x4ca   : > { %v3670_v18 = vpop.f32.mrf.mxu3  ;;  %v3970_v38 = vadd.f32 %v10269_v45, %v3828_v54  ;;  %v10273_v45 = vld [vmem:[#allocation86_spill] sm:$0xff] }
 0x4cb   : > { %v8736_v52 = vadd.f32 %v3670_v18, %v8628_v41 }
 0x4cc   : > { %v8738_v49 = vadd.f32 %v4044_v20, %v3970_v38 }
 0x4cd   : > { %5884 = vmatmul.msk.bf16.gmra.mxu2 %vm1331_vm0, %v10271_v29 }
 0x4cf   : > { %v3755_v39 = vpop.f32.mrf.mxu0  ;;  %v8740_v34 = vpop.f32.mrf.mxu1  ;;  %5907 = vmatmul.msk.bf16.gmra.mxu3 %vm1331_vm0, %v10270_v5 }
 0x4d0   : > { %v3829_v19 = vadd.f32 %v3755_v39, %v8394_v1  ;;  %v4052_v20 = vpop.f32.mrf.mxu2 }
 0x4d2   : > { %v3673_v6 = vpop.f32.mrf.mxu3  ;;  %5827 = vmatmul.msk.bf16.gmra.mxu0 %vm1331_vm0, %v10272_v53  ;;  %5963 = vmatmul.msk.bf16.gmra.mxu1 %vm1331_vm0, %v10273_v45  ;;  %v3971_v41 = vadd.f32 %v8381_v14, %v3829_v19 }
 0x4d3   : > { %v8753_v38 = vadd.f32 %v3673_v6, %v8648_v22  ;;  %v10275_v22 = vld [vmem:[#allocation87_spill] sm:$0xff] }
 0x4d4   : > { %v8755_v16 = vadd.f32 %v4047_v8, %v3971_v41  ;;  %v10276_v8 = vld [vmem:[#allocation69_spill] sm:$0xff]  ;;  %v10277_v41 = vld [vmem:[#allocation58_spill] sm:$0xff] }
 0x4d7   : > { %v3757_v54 = vpop.f32.mrf.mxu0  ;;  %v8757_v18 = vpop.f32.mrf.mxu1 }
 0x4d8   : > { %v3830_v1 = vadd.f32 %v3757_v54, %v8411_v25  ;;  %v4054_v5 = vpop.f32.mrf.mxu2 }
 0x4da   : > { %v3675_v39 = vpop.f32.mrf.mxu3  ;;  %v3972_v29 = vadd.f32 %v8407_v21, %v3830_v1  ;;  %v10278_v21 = vld [vmem:[#allocation94_spill] sm:$0xff] }
 0x4db   : > { %v8762_v53 = vadd.f32 %v3675_v39, %v8657_v12 }
 0x4dc   : > { %v8764_v45 = vadd.f32 %v4049_v27, %v3972_v29 }
 0x4dd   : > { %5885 = vmatmul.msk.bf16.gmra.mxu2 %vm1331_vm0, %v10276_v8 }
 0x4df   : > { %v3760_v14 = vpop.f32.mrf.mxu0  ;;  %v8766_v19 = vpop.f32.mrf.mxu1  ;;  %5908 = vmatmul.msk.bf16.gmra.mxu3 %vm1331_vm0, %v10275_v22 }
 0x4e0   : > { %10274 = vst [vmem:[#allocation93_spill] sm:$0xff] %v8766_v19  ;;  %v3831_v25 = vadd.f32 %v3760_v14, %v8435_v3  ;;  %v4057_v27 = vpop.f32.mrf.mxu2 }
 0x4e2   : > { %v3678_v6 = vpop.f32.mrf.mxu3  ;;  %5828 = vmatmul.msk.bf16.gmra.mxu0 %vm1331_vm0, %v10277_v41  ;;  %5964 = vmatmul.msk.bf16.gmra.mxu1 %vm1331_vm0, %v10278_v21  ;;  %v3973_v12 = vadd.f32 %v8422_v10, %v3831_v25  ;;  %v10282_v25 = vld [vmem:[#allocation95_spill] sm:$0xff] }
 0x4e3   : > { %v8779_v29 = vadd.f32 %v3678_v6, %v8674_v23  ;;  %v10285_v6 = vld [vmem:[#allocation60_spill] sm:$0xff] }
 0x4e4   : > { %v8781_v54 = vadd.f32 %v4052_v20, %v3973_v12  ;;  %v10284_v20 = vld [vmem:[#allocation112_spill] sm:$0xff]  ;;  %v10286_v12 = vld [vmem:[#allocation107_spill] sm:$0xff] }
 0x4e5   : > { %10279 = vst [vmem:[#allocation105_spill] sm:$0xff] %v8779_v29  ;;  %v10304_v29 = vld [vmem:[#allocation100_spill] sm:$0xff] }
 0x4e7   : > { %v3762_v1 = vpop.f32.mrf.mxu0  ;;  %v8783_v39 = vpop.f32.mrf.mxu1 }
 0x4e8   : > { %10280 = vst [vmem:[#allocation67_spill] sm:$0xff] %v8783_v39  ;;  %v3832_v3 = vadd.f32 %v3762_v1, %v8445_v4  ;;  %v4059_v22 = vpop.f32.mrf.mxu2 }
 0x4ea   : > { %v3680_v14 = vpop.f32.mrf.mxu3  ;;  %v3974_v8 = vadd.f32 %v8441_v2, %v3832_v3 }
 0x4eb   : > { %v8788_v41 = vadd.f32 %v3680_v14, %v8686_v58  ;;  %v10287_v58 = vld [vmem:[#allocation41_spill] sm:$0xff] }
 0x4ec   : > { %v8790_v21 = vadd.f32 %v4054_v5, %v3974_v8 }
 0x4ed   : > { %10281 = vst [vmem:[#allocation103_spill] sm:$0xff] %v8788_v41  ;;  %5886 = vmatmul.msk.bf16.gmra.mxu2 %vm1331_vm0, %v8377_v60  ;;  %v10290_v60 = vld [vmem:[#allocation71_spill] sm:$0xff] }
 0x4ef   : > { %v3765_v10 = vpop.f32.mrf.mxu0  ;;  %5909 = vmatmul.msk.bf16.gmra.mxu3 %vm1331_vm0, %v10282_v25  ;;  %v8794_v23 = vpop.f32.mrf.mxu1 }
 0x4f0   : > { %10283 = vst [vmem:[#allocation120_spill] sm:$0xff] %v8794_v23  ;;  %v3833_v4 = vadd.f32 %v3765_v10, %v10284_v20  ;;  %v4062_v8 = vpop.f32.mrf.mxu2  ;;  %v10291_v23 = vld [vmem:[#allocation99_spill] sm:$0xff] }
 0x4f2   : > { %5829 = vmatmul.msk.bf16.gmra.mxu0 %vm1331_vm0, %v10285_v6  ;;  %v4187_v2 = vpop.f32.mrf.mxu3  ;;  %5965 = vmatmul.msk.bf16.gmra.mxu1 %vm1331_vm0, %v10286_v12  ;;  %v3975_v5 = vadd.f32 %v10287_v58, %v3833_v4  ;;  %v10293_v58 = vld [vmem:[#allocation108_spill] sm:$0xff] }
 0x4f3   : > { %v8805_v1 = vadd.f32 %v4187_v2, %v8703_v11  ;;  %v10296_v2 = vld [vmem:[#allocation88_spill] sm:$0xff] }
 0x4f4   : > { %v8807_v3 = vadd.f32 %v4057_v27, %v3975_v5  ;;  %v10295_v27 = vld [vmem:[#allocation72_spill] sm:$0xff]  ;;  %v1610_v5 = vld [vmem:[#allocation2 + $0x218] sm:$0x1] }
 0x4f5   : > { %10288 = vst [vmem:[#allocation111_spill] sm:$0xff] %v8805_v1 }
 0x4f7   : > { %v3767_v14 = vpop.f32.mrf.mxu0  ;;  %v8809_v25 = vpop.f32.mrf.mxu1 }
 0x4f8   : > { %10289 = vst [vmem:[#allocation76_spill] sm:$0xff] %v8809_v25  ;;  %v3834_v10 = vadd.f32 %v3767_v14, %v10290_v60  ;;  %v4064_v39 = vpop.f32.mrf.mxu2  ;;  %v10297_v14 = vld [vmem:[#allocation63_spill] sm:$0xff]  ;;  %v10301_v25 = vld [vmem:[#allocation96_spill] sm:$0xff] }
 0x4fa   : > { %v4189_v20 = vpop.f32.mrf.mxu3  ;;  %v3976_v6 = vadd.f32 %v10291_v23, %v3834_v10 }
 0x4fb   : > { %v8814_v41 = vadd.f32 %v4189_v20, %v8712_v44  ;;  %v10298_v44 = vld [vmem:[#allocation116_spill] sm:$0xff] }
 0x4fc   : > { %v8816_v12 = vadd.f32 %v4059_v22, %v3976_v6  ;;  %v10299_v22 = vld [vmem:[#allocation114_spill] sm:$0xff] }
 0x4fd   : > { %10292 = vst [vmem:[#allocation122_spill] sm:$0xff] %v8814_v41  ;;  %5887 = vmatmul.msk.bf16.gmra.mxu2 %vm1331_vm0, %v10295_v27 }
 0x4ff   : > { %v3770_v4 = vpop.f32.mrf.mxu0  ;;  %5910 = vmatmul.msk.bf16.gmra.mxu3 %vm1331_vm0, %v10293_v58  ;;  %v8820_v11 = vpop.f32.mrf.mxu1 }
 0x500   : > { %10294 = vst [vmem:[#allocation123_spill] sm:$0xff] %v8820_v11  ;;  %v3835_v60 = vadd.f32 %v3770_v4, %v10296_v2  ;;  %v4067_v10 = vpop.f32.mrf.mxu2  ;;  %v10300_v11 = vld [vmem:[#allocation104_spill] sm:$0xff]  ;;  %v4001_v4 = vrot.slane %v10301_v25, 1  ;;  %v4003_v2 = vrot.slane %v1610_v5, 1  ;;  %v6146_v5 = vld [vmem:[%s9785_s7 + $0x78] sm:$0xff] }
 0x501   : > { %v4000_v27 = vrot.slane %v10300_v11, 1  ;;  %4772 = vmatpush.bf16.msra.mxu3 %v6146_v5 }
 0x502   : > { %5830 = vmatmul.msk.bf16.gmra.mxu0 %vm1331_vm0, %v10297_v14  ;;  %v4192_v23 = vpop.f32.mrf.mxu3  ;;  %5966 = vmatmul.msk.bf16.gmra.mxu1 %vm1331_vm0, %v10298_v44  ;;  %v3977_v6 = vadd.f32 %v10299_v22, %v3835_v60  ;;  %v10303_v14 = vld [vmem:[#allocation113_spill] sm:$0xff]  ;;  %v4004_v60 = vsel %vm2766_vm3, %v4001_v4, %v4003_v2  ;;  %v10309_v2 = vld [vmem:[#allocation80_spill] sm:$0xff] }
 0x503   : > { %v8831_v20 = vadd.f32 %v4192_v23, %v8729_v36  ;;  %v4002_v44 = vsel %vm2766_vm3, %v4000_v27, %v4001_v4  ;;  %v10308_v4 = vld [vmem:[#allocation12_spill] sm:$0xff] }
 0x504   : > { %v8833_v58 = vadd.f32 %v4062_v8, %v3977_v6  ;;  %v8846_v6 = vpack.c.bf16 %v4004_v60, %v4002_v44 }
 0x506   : > { %10305 = vst [vmem:[#allocation124_spill] sm:$0xff] %v8846_v6 }
 0x507   : > { %v3772_v41 = vpop.f32.mrf.mxu0  ;;  %v8837_v1 = vpop.f32.mrf.mxu1 }
 0x508   : > { %10302 = vst [vmem:[#allocation110_spill] sm:$0xff] %v8837_v1  ;;  %v3836_v19 = vadd.f32 %v3772_v41, %v10303_v14  ;;  %v4069_v23 = vpop.f32.mrf.mxu2  ;;  %v6143_v41 = vld [vmem:[%s9784_s6 + $0x70] sm:$0xff] }
 0x509   : > { %4631 = vmatpush.bf16.msrb.mxu2 %v6143_v41  ;;  %v10307_v14 = vld [vmem:[#allocation70_spill] sm:$0xff] }
 0x50a   : > { %v4194_v22 = vpop.f32.mrf.mxu3  ;;  %v3978_v36 = vadd.f32 %v10304_v29, %v3836_v19  ;;  %v10306_v19 = vld [vmem:[#allocation117_spill] sm:$0xff] }
 0x50b   : > { %v8844_v8 = vadd.f32 %v4194_v22, %v8738_v49 }
 0x50c   : > { %v8851_v1 = vadd.f32 %v4064_v39, %v3978_v36  ;;  %v6148_v36 = vld [vmem:[%s9784_s6 + $0x88] sm:$0xff] }
 0x50d   : > { %5888 = vmatmul.msk.bf16.gmra.mxu2 %vm1331_vm0, %v8846_v6  ;;  %4922 = vmatpush.bf16.msra.mxu0 %v6148_v36 }
 0x50f   : > { %v3775_v27 = vpop.f32.mrf.mxu0  ;;  %5911 = vmatmul.msk.bf16.gmra.mxu3 %vm1331_vm0, %v10306_v19  ;;  %v8858_v49 = vpop.f32.mrf.mxu1 }
 0x510   : > { %v3837_v29 = vadd.f32 %v3775_v27, %v8529_v33  ;;  %v4072_v60 = vpop.f32.mrf.mxu2  ;;  %v6150_v33 = vld [vmem:[%s9785_s7 + $0x88] sm:$0xff] }
 0x511   : > { %5072 = vmatpush.bf16.msra.mxu1 %v6150_v33  ;;  %v10310_v33 = vld [vmem:[#allocation22_spill] sm:$0xff] }
 0x512   : > { %5831 = vmatmul.msk.bf16.gmra.mxu0 %vm1331_vm0, %v10307_v14  ;;  %v4197_v39 = vpop.f32.mrf.mxu3  ;;  %5967 = vmatmul.msk.bf16.gmra.mxu1 %vm1331_vm0, %v10308_v4  ;;  %v3979_v44 = vadd.f32 %v10309_v2, %v3837_v29 }
 0x513   : > { %v8869_v22 = vadd.f32 %v4197_v39, %v8755_v16 }
 0x514   : > { %v8874_v5 = vadd.f32 %v4067_v10, %v3979_v44  ;;  %v8890_v44 = vpack.c.bf16 %v10301_v25, %v10300_v11 }
 0x517   : > { %v3777_v41 = vpop.f32.mrf.mxu0  ;;  %v8879_v27 = vpop.f32.mrf.mxu1 }
 0x518   : > { %v3838_v29 = vadd.f32 %v3777_v41, %v8541_v50  ;;  %v4074_v39 = vpop.f32.mrf.mxu2  ;;  %v10311_v50 = vld [vmem:[#allocation28_spill] sm:$0xff] }
 0x51a   : > { %v4199_v4 = vpop.f32.mrf.mxu3  ;;  %v3980_v16 = vadd.f32 %v8535_v13, %v3838_v29 }
 0x51b   : > { %v8884_v2 = vadd.f32 %v4199_v4, %v8764_v45 }
 0x51c   : > { %v8886_v10 = vadd.f32 %v4069_v23, %v3980_v16  ;;  %v10312_v23 = vld [vmem:[#allocation19_spill] sm:$0xff] }
 0x51d   : > { %5985 = vmatmul.msk.bf16.vlgmr.msrb.gmra.mxu2 %vm1331_vm0, %v10311_v50 }
 0x51f   : > { %v3780_v36 = vpop.f32.mrf.mxu0  ;;  %5912 = vmatmul.msk.bf16.gmra.mxu3 %vm1331_vm0, %v10310_v33  ;;  %v8894_v6 = vpop.f32.mrf.mxu1 }
 0x520   : > { %v3839_v13 = vadd.f32 %v3780_v36, %v8565_v59  ;;  %v4077_v11 = vpop.f32.mrf.mxu2 }
 0x522   : > { %5832 = vmatmul.msk.bf16.gmra.mxu0 %vm1331_vm0, %v8890_v44  ;;  %v4202_v45 = vpop.f32.mrf.mxu3  ;;  %5968 = vmatmul.msk.bf16.gmra.mxu1 %vm1331_vm0, %v10312_v23  ;;  %v3981_v25 = vadd.f32 %v8550_v40, %v3839_v13  ;;  %v10313_v13 = vld [vmem:[#allocation23_spill] sm:$0xff] }
 0x523   : > { %v8905_v41 = vadd.f32 %v4202_v45, %v8781_v54 }
 0x524   : > { %v8907_v29 = vadd.f32 %v4072_v60, %v3981_v25  ;;  %v10314_v60 = vld [vmem:[#allocation32_spill] sm:$0xff] }
 0x525   : > { %v10315_v25 = vld [vmem:[#allocation4_spill] sm:$0xff] }
 0x527   : > { %v3782_v4 = vpop.f32.mrf.mxu0  ;;  %v8909_v16 = vpop.f32.mrf.mxu1 }
 0x528   : > { %v3840_v59 = vadd.f32 %v3782_v4, %v8574_v48  ;;  %v4079_v33 = vpop.f32.mrf.mxu2 }
 0x52a   : > { %v4204_v36 = vpop.f32.mrf.mxu3  ;;  %v3982_v50 = vadd.f32 %v8569_v32, %v3840_v59  ;;  %v10316_v32 = vld [vmem:[#allocation25_spill] sm:$0xff] }
 0x52b   : > { %v8914_v19 = vadd.f32 %v4204_v36, %v8790_v21 }
 0x52c   : > { %v8916_v23 = vadd.f32 %v4074_v39, %v3982_v50 }
 0x52d   : > { %5986 = vmatmul.msk.bf16.gmra.mxu2 %vm1331_vm0, %v10314_v60 }
 0x52f   : > { %v3785_v40 = vpop.f32.mrf.mxu0  ;;  %5913 = vmatmul.msk.bf16.gmra.mxu3 %vm1331_vm0, %v10313_v13  ;;  %v8920_v54 = vpop.f32.mrf.mxu1 }
 0x530   : > { %v3841_v48 = vadd.f32 %v3785_v40, %v8591_v46  ;;  %v4082_v39 = vpop.f32.mrf.mxu2 }
 0x532   : > { %v4207_v45 = vpop.f32.mrf.mxu3  ;;  %5929 = vmatmul.msk.bf16.vlgmr.msrb.gmra.mxu0 %vm1331_vm0, %v10315_v25  ;;  %5969 = vmatmul.msk.bf16.gmra.mxu1 %vm1331_vm0, %v10316_v32  ;;  %v3983_v21 = vadd.f32 %v8578_v28, %v3841_v48  ;;  %v10318_v48 = vld [vmem:[#allocation27_spill] sm:$0xff] }
 0x533   : > { %v8931_v4 = vadd.f32 %v4207_v45, %v8807_v3 }
 0x534   : > { %v8933_v59 = vadd.f32 %v4077_v11, %v3983_v21  ;;  %v10319_v11 = vld [vmem:[#allocation5_spill] sm:$0xff] }
 0x537   : > { %v3787_v36 = vpop.f32.mrf.mxu0  ;;  %v8936_v60 = vpop.f32.mrf.mxu1 }
 0x538   : > { %v3842_v50 = vadd.f32 %v3787_v36, %v8600_v7  ;;  %10317 = vst [vmem:[#allocation118_spill] sm:$0xff] %v8936_v60  ;;  %v4084_v25 = vpop.f32.mrf.mxu2 }
 0x53a   : > { %v4209_v46 = vpop.f32.mrf.mxu3  ;;  %v3984_v40 = vadd.f32 %v8595_v57, %v3842_v50  ;;  %v10320_v57 = vld [vmem:[#allocation34_spill] sm:$0xff] }
 0x53b   : > { %v8940_v13 = vadd.f32 %v4209_v46, %v8816_v12 }
 0x53c   : > { %v8942_v32 = vadd.f32 %v4079_v33, %v3984_v40 }
 0x53d   : > { %5987 = vmatmul.msk.bf16.gmra.mxu2 %vm1331_vm0, %v10239_v37 }
 0x53f   : > { %v3790_v28 = vpop.f32.mrf.mxu0  ;;  %5914 = vmatmul.msk.bf16.gmra.mxu3 %vm1331_vm0, %v10318_v48  ;;  %v8954_v45 = vpop.f32.mrf.mxu1 }
 0x540   : > { %v3843_v7 = vadd.f32 %v3790_v28, %v8617_v56  ;;  %v4087_v33 = vpop.f32.mrf.mxu2 }
 0x542   : > { %v4212_v3 = vpop.f32.mrf.mxu3  ;;  %5930 = vmatmul.msk.bf16.gmra.mxu0 %vm1331_vm0, %v10319_v11  ;;  %5970 = vmatmul.msk.bf16.gmra.mxu1 %vm1331_vm0, %v10320_v57  ;;  %v3985_v12 = vadd.f32 %v8604_v0, %v3843_v7  ;;  %v6145_v0 = vld [vmem:[%s9785_s7 + $0x70] sm:$0xff]  ;;  %v10322_v7 = vld [vmem:[#allocation37_spill] sm:$0xff] }
 0x543   : > { %v8957_v21 = vadd.f32 %v4212_v3, %v8833_v58  ;;  %4773 = vmatpush.bf16.msra.mxu3 %v6145_v0  ;;  %v10324_v3 = vld [vmem:[#allocation48_spill] sm:$0xff] }
 0x544   : > { %v8959_v36 = vadd.f32 %v4082_v39, %v3985_v12 }
 0x547   : > { %v3792_v37 = vpop.f32.mrf.mxu0  ;;  %v8971_v58 = vpop.f32.mrf.mxu1 }
 0x548   : > { %v3844_v56 = vadd.f32 %v3792_v37, %v8626_v61  ;;  %v4089_v40 = vpop.f32.mrf.mxu2  ;;  %10321 = vst [vmem:[#allocation84_spill] sm:$0xff] %v8971_v58 }
 0x54a   : > { %v4214_v50 = vpop.f32.mrf.mxu3  ;;  %v3986_v46 = vadd.f32 %v8621_v62, %v3844_v56  ;;  %v6149_v62 = vld [vmem:[%s9785_s7 + $0x80] sm:$0xff]  ;;  %v8991_v56 = vld [vmem:[#allocation3 + $0x228] sm:$0xff] }
 0x54b   : > { %v8964_v28 = vadd.f32 %v4214_v50, %v8851_v1  ;;  %5073 = vmatpush.bf16.msra.mxu1 %v6149_v62  ;;  %10325 = vst [vmem:[#allocation15_spill] sm:$0xff] %v8991_v56  ;;  %v8993_v50 = vld [vmem:[#allocation3 + $0x230] sm:$0xff] }
 0x54c   : > { %v8966_v11 = vadd.f32 %v4084_v25, %v3986_v46  ;;  %v10323_v25 = vld [vmem:[#allocation6_spill] sm:$0xff]  ;;  %10326 = vst [vmem:[#allocation119_spill] sm:$0xff] %v8993_v50 }
 0x54d   : > { %5988 = vmatmul.msk.bf16.gmra.mxu2 %vm1331_vm0, %v10244_v63 }
 0x54f   : > { %v3795_v39 = vpop.f32.mrf.mxu0  ;;  %5915 = vmatmul.msk.bf16.gmra.mxu3 %vm1331_vm0, %v10322_v7  ;;  %v8995_v46 = vpop.f32.mrf.mxu1 }
 0x550   : > { %v3845_v61 = vadd.f32 %v3795_v39, %v8643_v31  ;;  %v4092_v12 = vpop.f32.mrf.mxu2  ;;  %v1683_v31 = vld [vmem:[#allocation3 + $0x220] sm:$0xff] }
 0x551   : > { %v4454_v39 = vrot.slane %v1683_v31, 7 }
 0x552   : > { %v4217_v1 = vpop.f32.mrf.mxu3  ;;  %5931 = vmatmul.msk.bf16.gmra.mxu0 %vm1331_vm0, %v10323_v25  ;;  %5971 = vmatmul.msk.bf16.gmra.mxu1 %vm1331_vm0, %v10324_v3  ;;  %v3987_v57 = vadd.f32 %v8630_v17, %v3845_v61  ;;  %v4455_v25 = vrot.slane %v8991_v56, 7  ;;  %v4457_v17 = vrot.slane %v8993_v50, 7  ;;  %v10327_v56 = vld [vmem:[#allocation61_spill] sm:$0xff]  ;;  %v10328_v50 = vld [vmem:[#allocation59_spill] sm:$0xff] }
 0x553   : > { %v8987_v37 = vadd.f32 %v4217_v1, %v8874_v5 }
 0x554   : > { %v8989_v63 = vadd.f32 %v4087_v33, %v3987_v57  ;;  %v4456_v3 = vsel %vm1735_vm1, %v4454_v39, %v4455_v25  ;;  %v4458_v57 = vsel %vm1735_vm1, %v4455_v25, %v4457_v17 }
 0x555   : > { %v4461_v31 = vpack.c.bf16 %v4458_v57, %v4456_v3 }
 0x557   : > { %v3797_v0 = vpop.f32.mrf.mxu0 }
 0x558   : > { %v3846_v61 = vadd.f32 %v3797_v0, %v8655_v24  ;;  %v4094_v33 = vpop.f32.mrf.mxu2  ;;  %v9013_v24 = vpop.f32.mrf.mxu1  ;;  %v10330_v0 = vld [vmem:[#allocation7_spill] sm:$0xff] }
 0x559   : > { %10329 = vst [vmem:[#allocation20_spill] sm:$0xff] %v9013_v24 }
 0x55a   : > { %v4219_v5 = vpop.f32.mrf.mxu3  ;;  %v3988_v62 = vadd.f32 %v8650_v42, %v3846_v61 }
 0x55b   : > { %v9002_v1 = vadd.f32 %v4219_v5, %v8886_v10 }
 0x55c   : > { %v9006_v58 = vadd.f32 %v4089_v40, %v3988_v62 }
 0x55d   : > { %5989 = vmatmul.msk.bf16.gmra.mxu2 %vm1331_vm0, %v10328_v50 }
 0x55f   : > { %v3800_v60 = vpop.f32.mrf.mxu0  ;;  %5916 = vmatmul.msk.bf16.gmra.mxu3 %vm1331_vm0, %v10327_v56 }
 0x560   : > { %v3847_v42 = vadd.f32 %v3800_v60, %v8672_v26  ;;  %v4097_v39 = vpop.f32.mrf.mxu2  ;;  %v9026_v62 = vpop.f32.mrf.mxu1 }
 0x562   : > { %v4222_v10 = vpop.f32.mrf.mxu3  ;;  %5932 = vmatmul.msk.bf16.gmra.mxu0 %vm1331_vm0, %v10330_v0  ;;  %5972 = vmatmul.msk.bf16.gmra.mxu1 %vm1331_vm0, %v4461_v31  ;;  %v3989_v40 = vadd.f32 %v8659_v9, %v3847_v42  ;;  %v10331_v31 = vld [vmem:[#allocation30_spill] sm:$0xff]  ;;  %v10333_v42 = vld [vmem:[#allocation8_spill] sm:$0xff] }
 0x563   : > { %v9020_v25 = vadd.f32 %v4222_v10, %v8907_v29  ;;  %v10332_v29 = vld [vmem:[#allocation75_spill] sm:$0xff] }
 0x564   : > { %v9022_v17 = vadd.f32 %v4092_v12, %v3989_v40 }
 0x567   : > { %v3802_v61 = vpop.f32.mrf.mxu0 }
 0x568   : > { %v3848_v50 = vadd.f32 %v3802_v61, %v8684_v47  ;;  %v4099_v5 = vpop.f32.mrf.mxu2  ;;  %v9048_v61 = vpop.f32.mrf.mxu1 }
 0x569   : > { %10336 = vst [vmem:[#allocation128_spill] sm:$0xff] %v9048_v61 }
 0x56a   : > { %v4224_v26 = vpop.f32.mrf.mxu3  ;;  %v3990_v60 = vadd.f32 %v8679_v30, %v3848_v50  ;;  %v10334_v30 = vld [vmem:[#allocation36_spill] sm:$0xff] }
 0x56b   : > { %v9029_v3 = vadd.f32 %v4224_v26, %v8916_v23  ;;  %v10335_v23 = vld [vmem:[#allocation92_spill] sm:$0xff] }
 0x56c   : > { %v9031_v57 = vadd.f32 %v4094_v33, %v3990_v60 }
 0x56d   : > { %5990 = vmatmul.msk.bf16.gmra.mxu2 %vm1331_vm0, %v10332_v29 }
 0x56f   : > { %v3805_v9 = vpop.f32.mrf.mxu0  ;;  %6013 = vmatmul.msk.bf16.vlgmr.msra.gmra.mxu3 %vm1331_vm0, %v10331_v31 }
 0x570   : > { %v3849_v47 = vadd.f32 %v3805_v9, %v8701_v43  ;;  %v4102_v33 = vpop.f32.mrf.mxu2 }
 0x572   : > { %v4227_v12 = vpop.f32.mrf.mxu3  ;;  %5933 = vmatmul.msk.bf16.gmra.mxu0 %vm1331_vm0, %v10333_v42  ;;  %6069 = vmatmul.msk.bf16.vlgmr.msra.gmra.mxu1 %vm1331_vm0, %v10334_v30  ;;  %v3991_v10 = vadd.f32 %v10335_v23, %v3849_v47  ;;  %v9057_v47 = vpop.f32.mrf.mxu1  ;;  %v10339_v30 = vld [vmem:[#allocation9_spill] sm:$0xff] }
 0x573   : > { %v9044_v0 = vadd.f32 %v4227_v12, %v8933_v59  ;;  %v10337_v12 = vld [vmem:[#allocation39_spill] sm:$0xff] }
 0x574   : > { %v9046_v40 = vadd.f32 %v4097_v39, %v3991_v10  ;;  %v10338_v39 = vld [vmem:[#allocation79_spill] sm:$0xff] }
 0x577   : > { %v3807_v50 = vpop.f32.mrf.mxu0 }
 0x578   : > { %v3850_v43 = vadd.f32 %v3807_v50, %v8710_v35  ;;  %v4104_v9 = vpop.f32.mrf.mxu2 }
 0x57a   : > { %v4229_v26 = vpop.f32.mrf.mxu3  ;;  %v3992_v60 = vadd.f32 %v8705_v55, %v3850_v43  ;;  %v10340_v55 = vld [vmem:[#allocation42_spill] sm:$0xff] }
 0x57b   : > { %v9053_v31 = vadd.f32 %v4229_v26, %v8942_v32  ;;  %v10341_v32 = vld [vmem:[#allocation54_spill] sm:$0xff] }
 0x57c   : > { %v9055_v29 = vadd.f32 %v4099_v5, %v3992_v60  ;;  %v9075_v60 = vpop.f32.mrf.mxu1 }
 0x57d   : > { %5991 = vmatmul.msk.bf16.gmra.mxu2 %vm1331_vm0, %v10338_v39  ;;  %10342 = vst [vmem:[#allocation89_spill] sm:$0xff] %v9075_v60 }
 0x57f   : > { %v3810_v59 = vpop.f32.mrf.mxu0  ;;  %6014 = vmatmul.msk.bf16.gmra.mxu3 %vm1331_vm0, %v10337_v12 }
 0x580   : > { %v3851_v35 = vadd.f32 %v3810_v59, %v8727_v51  ;;  %v4107_v23 = vpop.f32.mrf.mxu2 }
 0x582   : > { %v4232_v42 = vpop.f32.mrf.mxu3  ;;  %5934 = vmatmul.msk.bf16.gmra.mxu0 %vm1331_vm0, %v10339_v30  ;;  %6070 = vmatmul.msk.bf16.gmra.mxu1 %vm1331_vm0, %v10340_v55  ;;  %v3993_v5 = vadd.f32 %v10341_v32, %v3851_v35  ;;  %v10343_v55 = vld [vmem:[#allocation45_spill] sm:$0xff] }
 0x583   : > { %v9070_v10 = vadd.f32 %v4232_v42, %v8959_v36  ;;  %v10344_v36 = vld [vmem:[#allocation90_spill] sm:$0xff] }
 0x584   : > { %v9072_v50 = vadd.f32 %v4102_v33, %v3993_v5  ;;  %v10345_v42 = vld [vmem:[#allocation10_spill] sm:$0xff]  ;;  %v9093_v32 = vpop.f32.mrf.mxu1 }
 0x587   : > { %v3812_v43 = vpop.f32.mrf.mxu0 }
 0x588   : > { %v3852_v26 = vadd.f32 %v3812_v43, %v8736_v52  ;;  %v4109_v12 = vpop.f32.mrf.mxu2  ;;  %v6147_v43 = vld [vmem:[%s9784_s6 + $0x80] sm:$0xff] }
 0x589   : > { %4923 = vmatpush.bf16.msra.mxu0 %v6147_v43 }
 0x58a   : > { %v4234_v51 = vpop.f32.mrf.mxu3  ;;  %v3994_v59 = vadd.f32 %v8731_v15, %v3852_v26  ;;  %v10346_v15 = vld [vmem:[#allocation46_spill] sm:$0xff] }
 0x58b   : > { %v9079_v39 = vadd.f32 %v4234_v51, %v8966_v11 }
 0x58c   : > { %v9081_v30 = vadd.f32 %v4104_v9, %v3994_v59 }
 0x58d   : > { %5992 = vmatmul.msk.bf16.gmra.mxu2 %vm1331_vm0, %v10344_v36 }
 0x58f   : > { %v3815_v35 = vpop.f32.mrf.mxu0  ;;  %6015 = vmatmul.msk.bf16.gmra.mxu3 %vm1331_vm0, %v10343_v55 }
 0x590   : > { %v3853_v52 = vadd.f32 %v3815_v35, %v8753_v38  ;;  %v4112_v9 = vpop.f32.mrf.mxu2 }
 0x592   : > { %v4237_v33 = vpop.f32.mrf.mxu3  ;;  %5935 = vmatmul.msk.bf16.gmra.mxu0 %vm1331_vm0, %v10345_v42  ;;  %6071 = vmatmul.msk.bf16.gmra.mxu1 %vm1331_vm0, %v10346_v15  ;;  %v3995_v11 = vadd.f32 %v8740_v34, %v3853_v52  ;;  %v10350_v42 = vld [vmem:[#allocation105_spill] sm:$0xff] }
 0x593   : > { %v9096_v5 = vadd.f32 %v4237_v33, %v8989_v63  ;;  %v9110_v63 = vpop.f32.mrf.mxu1  ;;  %v10348_v33 = vld [vmem:[#allocation53_spill] sm:$0xff] }
 0x594   : > { %v9101_v38 = vadd.f32 %v4107_v23, %v3995_v11  ;;  %10347 = vst [vmem:[#allocation18_spill] sm:$0xff] %v9110_v63  ;;  %v10349_v23 = vld [vmem:[#allocation101_spill] sm:$0xff]  ;;  %v10351_v11 = vld [vmem:[#allocation11_spill] sm:$0xff] }
 0x597   : > { %v3817_v26 = vpop.f32.mrf.mxu0 }
 0x598   : > { %v3854_v51 = vadd.f32 %v3817_v26, %v8762_v53  ;;  %v4114_v34 = vpop.f32.mrf.mxu2 }
 0x59a   : > { %v4239_v59 = vpop.f32.mrf.mxu3  ;;  %v3996_v35 = vadd.f32 %v8757_v18, %v3854_v51  ;;  %v10352_v18 = vld [vmem:[#allocation52_spill] sm:$0xff] }
 0x59b   : > { %v9106_v55 = vadd.f32 %v4239_v59, %v9006_v58  ;;  %v10353_v58 = vld [vmem:[#allocation93_spill] sm:$0xff] }
 0x59c   : > { %v9108_v36 = vadd.f32 %v4109_v12, %v3996_v35  ;;  %v6152_v59 = vld [vmem:[%s9788_s10 + $0x8] sm:$0xff]  ;;  %v9130_v35 = vpop.f32.mrf.mxu1 }
 0x59d   : > { %5993 = vmatmul.msk.bf16.gmra.mxu2 %vm1331_vm0, %v10349_v23 }
 0x59e   : > { %5381 = vmatpush.bf16.msra.mxu2 %v6152_v59  ;;  %v10359_v59 = vld [vmem:[#allocation111_spill] sm:$0xff] }
 0x59f   : > { %v3820_v52 = vpop.f32.mrf.mxu0  ;;  %6016 = vmatmul.msk.bf16.gmra.mxu3 %vm1331_vm0, %v10348_v33  ;;  %v10354_v33 = vld [vmem:[#allocation103_spill] sm:$0xff] }
 0x5a0   : > { %v3855_v53 = vadd.f32 %v3820_v52, %v10350_v42  ;;  %v4633_v43 = vpop.f32.mrf.mxu2 }
 0x5a2   : > { %v4242_v15 = vpop.f32.mrf.mxu3  ;;  %5936 = vmatmul.msk.bf16.gmra.mxu0 %vm1331_vm0, %v10351_v11  ;;  %6072 = vmatmul.msk.bf16.gmra.mxu1 %vm1331_vm0, %v10352_v18  ;;  %v3997_v12 = vadd.f32 %v10353_v58, %v3855_v53  ;;  %v10355_v11 = vld [vmem:[#allocation67_spill] sm:$0xff] }
 0x5a3   : > { %v9123_v26 = vadd.f32 %v4242_v15, %v9022_v17  ;;  %v10357_v15 = vld [vmem:[#allocation66_spill] sm:$0xff] }
 0x5a4   : > { %v9125_v51 = vadd.f32 %v4112_v9, %v3997_v12  ;;  %v10358_v12 = vld [vmem:[#allocation109_spill] sm:$0xff]  ;;  %v9144_v60 = vpop.f32.mrf.mxu1 }
 0x5a5   : > { %10360 = vst [vmem:[#allocation126_spill] sm:$0xff] %v9144_v60  ;;  %v10365_v60 = vld [vmem:[#allocation76_spill] sm:$0xff] }
 0x5a7   : > { %v3822_v52 = vpop.f32.mrf.mxu0 }
 0x5a8   : > { %v3856_v23 = vadd.f32 %v3822_v52, %v10354_v33  ;;  %v4635_v53 = vpop.f32.mrf.mxu2  ;;  %v10361_v33 = vld [vmem:[#allocation14_spill] sm:$0xff] }
 0x5aa   : > { %v4244_v42 = vpop.f32.mrf.mxu3  ;;  %v3998_v18 = vadd.f32 %v10355_v11, %v3856_v23  ;;  %v10362_v23 = vld [vmem:[#allocation65_spill] sm:$0xff] }
 0x5ab   : > { %v9135_v58 = vadd.f32 %v4244_v42, %v9031_v57  ;;  %v10363_v57 = vld [vmem:[#allocation120_spill] sm:$0xff] }
 0x5ac   : > { %v9137_v17 = vadd.f32 %v4114_v34, %v3998_v18 }
 0x5ad   : > { %10356 = vst [vmem:[#allocation130_spill] sm:$0xff] %v9135_v58  ;;  %5994 = vmatmul.msk.bf16.gmra.mxu2 %vm1331_vm0, %v10358_v12  ;;  %v10364_v12 = vld [vmem:[#allocation122_spill] sm:$0xff]  ;;  %v9158_v58 = vpop.f32.mrf.mxu1 }
 0x5af   : > { %v4339_v9 = vpop.f32.mrf.mxu0  ;;  %6017 = vmatmul.msk.bf16.gmra.mxu3 %vm1331_vm0, %v10357_v15 }
 0x5b0   : > { %v4419_v63 = vadd.f32 %v4339_v9, %v10359_v59  ;;  %v4638_v42 = vpop.f32.mrf.mxu2 }
 0x5b2   : > { %v4247_v52 = vpop.f32.mrf.mxu3  ;;  %5937 = vmatmul.msk.bf16.gmra.mxu0 %vm1331_vm0, %v10361_v33  ;;  %6073 = vmatmul.msk.bf16.gmra.mxu1 %vm1331_vm0, %v10362_v23  ;;  %v4571_v34 = vadd.f32 %v10363_v57, %v4419_v63  ;;  %v10367_v57 = vld [vmem:[#allocation98_spill] sm:$0xff] }
 0x5b3   : > { %v9152_v11 = vadd.f32 %v4247_v52, %v9046_v40  ;;  %v10368_v40 = vld [vmem:[#allocation58_spill] sm:$0xff] }
 0x5b4   : > { %v9154_v18 = vadd.f32 %v4633_v43, %v4571_v34  ;;  %v10369_v34 = vld [vmem:[#allocation16_spill] sm:$0xff] }
 0x5b7   : > { %v4341_v15 = vpop.f32.mrf.mxu0 }
 0x5b8   : > { %v4420_v9 = vadd.f32 %v4341_v15, %v10364_v12  ;;  %v4640_v24 = vpop.f32.mrf.mxu2 }
 0x5ba   : > { %v4249_v59 = vpop.f32.mrf.mxu3  ;;  %v4572_v61 = vadd.f32 %v10365_v60, %v4420_v9  ;;  %v10370_v60 = vld [vmem:[#allocation83_spill] sm:$0xff]  ;;  %v9180_v9 = vpop.f32.mrf.mxu1 }
 0x5bb   : > { %v9161_v33 = vadd.f32 %v4249_v59, %v9055_v29  ;;  %v10371_v29 = vld [vmem:[#allocation123_spill] sm:$0xff]  ;;  %10372 = vst [vmem:[#allocation134_spill] sm:$0xff] %v9180_v9 }
 0x5bc   : > { %v9163_v23 = vadd.f32 %v4635_v53, %v4572_v61 }
 0x5bd   : > { %10366 = vst [vmem:[#allocation129_spill] sm:$0xff] %v9161_v33  ;;  %5995 = vmatmul.msk.bf16.gmra.mxu2 %vm1331_vm0, %v10368_v40 }
 0x5bf   : > { %v4344_v63 = vpop.f32.mrf.mxu0  ;;  %6018 = vmatmul.msk.bf16.gmra.mxu3 %vm1331_vm0, %v10367_v57  ;;  %v10373_v57 = vld [vmem:[#allocation110_spill] sm:$0xff] }
 0x5c0   : > { %v4421_v43 = vadd.f32 %v4344_v63, %v8831_v20  ;;  %v4643_v61 = vpop.f32.mrf.mxu2 }
 0x5c2   : > { %v4252_v52 = vpop.f32.mrf.mxu3  ;;  %5938 = vmatmul.msk.bf16.gmra.mxu0 %vm1331_vm0, %v10369_v34  ;;  %6074 = vmatmul.msk.bf16.gmra.mxu1 %vm1331_vm0, %v10370_v60  ;;  %v4573_v15 = vadd.f32 %v10371_v29, %v4421_v43  ;;  %v9189_v43 = vpop.f32.mrf.mxu1 }
 0x5c3   : > { %v9176_v53 = vadd.f32 %v4252_v52, %v9072_v50  ;;  %v10374_v52 = vld [vmem:[#allocation85_spill] sm:$0xff] }
 0x5c4   : > { %v9178_v12 = vadd.f32 %v4638_v42, %v4573_v15  ;;  %v10375_v42 = vld [vmem:[#allocation60_spill] sm:$0xff]  ;;  %v10376_v15 = vld [vmem:[#allocation43_spill] sm:$0xff] }
 0x5c7   : > { %v4346_v59 = vpop.f32.mrf.mxu0 }
 0x5c8   : > { %v4422_v20 = vadd.f32 %v4346_v59, %v8844_v8  ;;  %v4645_v34 = vpop.f32.mrf.mxu2  ;;  %v10377_v59 = vld [vmem:[#allocation87_spill] sm:$0xff] }
 0x5ca   : > { %v4254_v63 = vpop.f32.mrf.mxu3  ;;  %v4574_v40 = vadd.f32 %v10373_v57, %v4422_v20 }
 0x5cb   : > { %v9185_v33 = vadd.f32 %v4254_v63, %v9081_v30 }
 0x5cc   : > { %v9187_v60 = vadd.f32 %v4640_v24, %v4574_v40 }
 0x5cd   : > { %5996 = vmatmul.msk.bf16.gmra.mxu2 %vm1331_vm0, %v10375_v42 }
 0x5cf   : > { %v4349_v50 = vpop.f32.mrf.mxu0  ;;  %6019 = vmatmul.msk.bf16.gmra.mxu3 %vm1331_vm0, %v10374_v52  ;;  %v9207_v52 = vpop.f32.mrf.mxu1 }
 0x5d0   : > { %v4423_v8 = vadd.f32 %v4349_v50, %v8869_v22  ;;  %v4648_v30 = vpop.f32.mrf.mxu2  ;;  %10378 = vst [vmem:[#allocation137_spill] sm:$0xff] %v9207_v52  ;;  %v10395_v52 = vld [vmem:[#allocation21_spill] sm:$0xff] }
 0x5d2   : > { %v4257_v29 = vpop.f32.mrf.mxu3  ;;  %5939 = vmatmul.msk.bf16.gmra.mxu0 %vm1331_vm0, %v10376_v15  ;;  %6075 = vmatmul.msk.bf16.gmra.mxu1 %vm1331_vm0, %v10377_v59  ;;  %v4575_v24 = vadd.f32 %v8858_v49, %v4423_v8  ;;  %v10379_v8 = vld [vmem:[#allocation102_spill] sm:$0xff] }
 0x5d3   : > { %v9202_v20 = vadd.f32 %v4257_v29, %v9101_v38  ;;  %v10380_v38 = vld [vmem:[#allocation63_spill] sm:$0xff] }
 0x5d4   : > { %v9204_v63 = vadd.f32 %v4643_v61, %v4575_v24  ;;  %v10381_v29 = vld [vmem:[#allocation47_spill] sm:$0xff] }
 0x5d7   : > { %v4351_v57 = vpop.f32.mrf.mxu0  ;;  %v9225_v24 = vpop.f32.mrf.mxu1 }
 0x5d8   : > { %v4424_v40 = vadd.f32 %v4351_v57, %v8884_v2  ;;  %v4650_v42 = vpop.f32.mrf.mxu2 }
 0x5da   : > { %v4259_v22 = vpop.f32.mrf.mxu3  ;;  %v4576_v50 = vadd.f32 %v8879_v27, %v4424_v40  ;;  %v10382_v27 = vld [vmem:[#allocation95_spill] sm:$0xff] }
 0x5db   : > { %v9211_v15 = vadd.f32 %v4259_v22, %v9108_v36 }
 0x5dc   : > { %v9213_v59 = vadd.f32 %v4645_v34, %v4576_v50 }
 0x5dd   : > { %5997 = vmatmul.msk.bf16.gmra.mxu2 %vm1331_vm0, %v10380_v38 }
 0x5df   : > { %v4354_v49 = vpop.f32.mrf.mxu0  ;;  %6020 = vmatmul.msk.bf16.gmra.mxu3 %vm1331_vm0, %v10379_v8 }
 0x5e0   : > { %v4425_v2 = vadd.f32 %v4354_v49, %v8905_v41  ;;  %v4653_v34 = vpop.f32.mrf.mxu2 }
 0x5e2   : > { %v4262_v61 = vpop.f32.mrf.mxu3  ;;  %5940 = vmatmul.msk.bf16.gmra.mxu0 %vm1331_vm0, %v10381_v29  ;;  %6076 = vmatmul.msk.bf16.gmra.mxu1 %vm1331_vm0, %v10382_v27  ;;  %v4577_v36 = vadd.f32 %v8894_v6, %v4425_v2  ;;  %v9241_v2 = vpop.f32.mrf.mxu1 }
 0x5e3   : > { %v9228_v57 = vadd.f32 %v4262_v61, %v9125_v51  ;;  %10383 = vst [vmem:[#allocation91_spill] sm:$0xff] %v9241_v2  ;;  %v10384_v51 = vld [vmem:[#allocation106_spill] sm:$0xff]  ;;  %v10386_v61 = vld [vmem:[#allocation108_spill] sm:$0xff] }
 0x5e4   : > { %v9230_v40 = vadd.f32 %v4648_v30, %v4577_v36  ;;  %v10385_v30 = vld [vmem:[#allocation49_spill] sm:$0xff] }
 0x5e7   : > { %v4356_v22 = vpop.f32.mrf.mxu0 }
 0x5e8   : > { %v4426_v41 = vadd.f32 %v4356_v22, %v8914_v19  ;;  %v9234_v8 = vpop.f32.mrf.mxu2 }
 0x5ea   : > { %v4264_v50 = vpop.f32.mrf.mxu3  ;;  %v4578_v49 = vadd.f32 %v8909_v16, %v4426_v41  ;;  %v9258_v22 = vpop.f32.mrf.mxu1 }
 0x5eb   : > { %v9237_v38 = vadd.f32 %v4264_v50, %v9137_v17 }
 0x5ec   : > { %v9239_v6 = vadd.f32 %v4650_v42, %v4578_v49 }
 0x5ed   : > { %5998 = vmatmul.msk.bf16.gmra.mxu2 %vm1331_vm0, %v10307_v14 }
 0x5ef   : > { %v4359_v29 = vpop.f32.mrf.mxu0  ;;  %6021 = vmatmul.msk.bf16.gmra.mxu3 %vm1331_vm0, %v10384_v51  ;;  %v10389_v51 = vld [vmem:[#allocation55_spill] sm:$0xff] }
 0x5f0   : > { %v4427_v19 = vadd.f32 %v4359_v29, %v8931_v4  ;;  %v4658_v42 = vpop.f32.mrf.mxu2 }
 0x5f2   : > { %5941 = vmatmul.msk.bf16.gmra.mxu0 %vm1331_vm0, %v10385_v30  ;;  %v4775_v16 = vpop.f32.mrf.mxu3  ;;  %6077 = vmatmul.msk.bf16.gmra.mxu1 %vm1331_vm0, %v10386_v61  ;;  %v4579_v17 = vadd.f32 %v8920_v54, %v4427_v19  ;;  %v10387_v54 = vld [vmem:[#allocation115_spill] sm:$0xff]  ;;  %v10390_v19 = vld [vmem:[#allocation117_spill] sm:$0xff] }
 0x5f3   : > { %v9254_v27 = vadd.f32 %v4775_v16, %v9154_v18 }
 0x5f4   : > { %v9256_v36 = vadd.f32 %v4653_v34, %v4579_v17  ;;  %v9273_v34 = vpop.f32.mrf.mxu1  ;;  %v9288_v17 = vld [vmem:[#allocation2 + $0x228] sm:$0xff] }
 0x5f5   : > { %10388 = vst [vmem:[#allocation133_spill] sm:$0xff] %v9273_v34 }
 0x5f7   : > { %v4361_v14 = vpop.f32.mrf.mxu0 }
 0x5f8   : > { %v9261_v4 = vadd.f32 %v4361_v14, %v8940_v13  ;;  %v9263_v50 = vpop.f32.mrf.mxu2  ;;  %v9290_v14 = vld [vmem:[#allocation2 + $0x230] sm:$0xff] }
 0x5fa   : > { %v4777_v41 = vpop.f32.mrf.mxu3 }
 0x5fb   : > { %v9266_v49 = vadd.f32 %v4777_v41, %v9163_v23 }
 0x5fd   : > { %5999 = vmatmul.msk.bf16.gmra.mxu2 %vm1331_vm0, %v8890_v44 }
 0x5ff   : > { %v4364_v29 = vpop.f32.mrf.mxu0  ;;  %6022 = vmatmul.msk.bf16.gmra.mxu3 %vm1331_vm0, %v10387_v54  ;;  %v9294_v54 = vpop.f32.mrf.mxu1 }
 0x600   : > { %v4429_v18 = vadd.f32 %v4364_v29, %v8957_v21  ;;  %v4663_v30 = vpop.f32.mrf.mxu2 }
 0x602   : > { %5942 = vmatmul.msk.bf16.gmra.mxu0 %vm1331_vm0, %v10389_v51  ;;  %v4780_v13 = vpop.f32.mrf.mxu3  ;;  %6078 = vmatmul.msk.bf16.gmra.mxu1 %vm1331_vm0, %v10390_v19  ;;  %v4581_v23 = vadd.f32 %v8954_v45, %v4429_v18  ;;  %v10391_v18 = vld [vmem:[#allocation13_spill] sm:$0xff]  ;;  %v10392_v51 = vld [vmem:[#allocation68_spill] sm:$0xff]  ;;  %v10393_v19 = vld [vmem:[#allocation22_spill] sm:$0xff] }
 0x603   : > { %v9281_v16 = vadd.f32 %v4780_v13, %v9178_v12  ;;  %v4603_v12 = vpack.c.bf16 %v9290_v14, %v9288_v17 }
 0x604   : > { %v9283_v61 = vadd.f32 %v4658_v42, %v4581_v23 }
 0x607   : > { %v4366_v44 = vpop.f32.mrf.mxu0  ;;  %v9315_v34 = vpop.f32.mrf.mxu1 }
 0x608   : > { %v9286_v21 = vadd.f32 %v4366_v44, %v8964_v28  ;;  %v9292_v29 = vpop.f32.mrf.mxu2  ;;  %10394 = vst [vmem:[#allocation132_spill] sm:$0xff] %v9315_v34 }
 0x60a   : > { %v4782_v41 = vpop.f32.mrf.mxu3 }
 0x60b   : > { %v9297_v45 = vadd.f32 %v4782_v41, %v9187_v60 }
 0x60d   : > { %6000 = vmatmul.msk.bf16.gmra.mxu2 %vm1331_vm0, %v4603_v12 }
 0x60f   : > { %v4369_v42 = vpop.f32.mrf.mxu0  ;;  %6023 = vmatmul.msk.bf16.gmra.mxu3 %vm1331_vm0, %v10391_v18  ;;  %v1611_v18 = vld [vmem:[#allocation2 + $0x220] sm:$0xff] }
 0x610   : > { %v4431_v28 = vadd.f32 %v4369_v42, %v8987_v37  ;;  %v4668_v23 = vpop.f32.mrf.mxu2  ;;  %v4303_v37 = vrot.slane %v9288_v17, 7  ;;  %v4305_v42 = vrot.slane %v9290_v14, 7 }
 0x612   : > { %5943 = vmatmul.msk.bf16.gmra.mxu0 %vm1331_vm0, %v10392_v51  ;;  %v4785_v13 = vpop.f32.mrf.mxu3  ;;  %6079 = vmatmul.msk.bf16.gmra.mxu1 %vm1331_vm0, %v10393_v19  ;;  %v4583_v60 = vadd.f32 %v8995_v46, %v4431_v28  ;;  %v4302_v51 = vrot.slane %v1611_v18, 7  ;;  %v4306_v28 = vsel %vm1735_vm1, %v4303_v37, %v4305_v42 }
 0x613   : > { %v9311_v44 = vadd.f32 %v4785_v13, %v9204_v63 }
 0x614   : > { %v9313_v41 = vadd.f32 %v4663_v30, %v4583_v60  ;;  %v4304_v30 = vsel %vm1735_vm1, %v4302_v51, %v4303_v37  ;;  %v9329_v60 = vpop.f32.mrf.mxu1 }
 0x615   : > { %v4309_v13 = vpack.c.bf16 %v4306_v28, %v4304_v30 }
 0x617   : > { %v4371_v12 = vpop.f32.mrf.mxu0 }
 0x618   : > { %v9320_v2 = vadd.f32 %v4371_v12, %v9002_v1  ;;  %v9322_v46 = vpop.f32.mrf.mxu2  ;;  %v10396_v12 = vld [vmem:[#allocation23_spill] sm:$0xff] }
 0x61a   : > { %v4787_v19 = vpop.f32.mrf.mxu3 }
 0x61b   : > { %v9325_v63 = vadd.f32 %v4787_v19, %v9213_v59 }
 0x61c   : > { %v9349_v19 = vpop.f32.mrf.mxu1 }
 0x61f   : > { %v4374_v34 = vpop.f32.mrf.mxu0  ;;  %6024 = vmatmul.msk.bf16.gmra.mxu3 %vm1331_vm0, %v10395_v52  ;;  %v6151_v52 = vld [vmem:[%s9788_s10] sm:$0xff] }
 0x620   : > { %v4433_v1 = vadd.f32 %v4374_v34, %v9020_v25  ;;  %v4673_v51 = vpop.f32.mrf.mxu2  ;;  %5382 = vmatpush.bf16.msra.mxu2 %v6151_v52 }
 0x622   : > { %5944 = vmatmul.msk.bf16.gmra.mxu0 %vm1331_vm0, %v4309_v13  ;;  %v4790_v18 = vpop.f32.mrf.mxu3  ;;  %6080 = vmatmul.msk.bf16.gmra.mxu1 %vm1331_vm0, %v10396_v12  ;;  %v4585_v59 = vadd.f32 %v9026_v62, %v4433_v1  ;;  %v10398_v1 = vld [vmem:[#allocation121_spill] sm:$0xff] }
 0x623   : > { %v9339_v37 = vadd.f32 %v4790_v18, %v9230_v40 }
 0x624   : > { %v9341_v42 = vadd.f32 %v4668_v23, %v4585_v59  ;;  %v10397_v23 = vld [vmem:[#allocation24_spill] sm:$0xff]  ;;  %v9364_v12 = vpop.f32.mrf.mxu1 }
 0x627   : > { %v4376_v25 = vpop.f32.mrf.mxu0 }
 0x628   : > { %v9347_v34 = vadd.f32 %v4376_v25, %v9029_v3  ;;  %v9351_v28 = vpop.f32.mrf.mxu2 }
 0x62a   : > { %v4792_v30 = vpop.f32.mrf.mxu3 }
 0x62b   : > { %v9354_v62 = vadd.f32 %v4792_v30, %v9239_v6 }
 0x62f   : > { %v4379_v40 = vpop.f32.mrf.mxu0  ;;  %6025 = vmatmul.msk.bf16.gmra.mxu3 %vm1331_vm0, %v10397_v23 }
 0x630   : > { %v4435_v13 = vadd.f32 %v4379_v40, %v9044_v0  ;;  %v4678_v18 = vpop.f32.mrf.mxu2  ;;  %v9373_v0 = vpop.f32.mrf.mxu1  ;;  %v10399_v40 = vld [vmem:[#allocation35_spill] sm:$0xff] }
 0x632   : > { %6041 = vmatmul.msk.bf16.vlgmr.msra.gmra.mxu0 %vm1331_vm0, %v10398_v1  ;;  %6081 = vmatmul.msk.bf16.gmra.mxu1 %vm1331_vm0, %v10318_v48  ;;  %v4587_v3 = vadd.f32 %v9057_v47, %v4435_v13  ;;  %v10400_v47 = vld [vmem:[#allocation125_spill] sm:$0xff] }
 0x634   : > { %v9366_v59 = vadd.f32 %v4673_v51, %v4587_v3 }
 0x637   : > { %v4381_v6 = vpop.f32.mrf.mxu0 }
 0x638   : > { %v9369_v52 = vadd.f32 %v4381_v6, %v9053_v31  ;;  %v9371_v25 = vpop.f32.mrf.mxu2  ;;  %v9385_v1 = vpop.f32.mrf.mxu1 }
 0x63f   : > { %v4384_v30 = vpop.f32.mrf.mxu0  ;;  %6026 = vmatmul.msk.bf16.gmra.mxu3 %vm1331_vm0, %v10399_v40 }
 0x640   : > { %v4437_v48 = vadd.f32 %v4384_v30, %v9070_v10  ;;  %v4683_v31 = vpop.f32.mrf.mxu2  ;;  %v10402_v30 = vld [vmem:[#allocation81_spill] sm:$0xff] }
 0x642   : > { %6042 = vmatmul.msk.bf16.gmra.mxu0 %vm1331_vm0, %v10400_v47  ;;  %6082 = vmatmul.msk.bf16.gmra.mxu1 %vm1331_vm0, %v10322_v7  ;;  %v4589_v51 = vadd.f32 %v9093_v32, %v4437_v48  ;;  %v9395_v7 = vpop.f32.mrf.mxu1  ;;  %v10403_v32 = vld [vmem:[#allocation127_spill] sm:$0xff] }
 0x644   : > { %v9383_v23 = vadd.f32 %v4678_v18, %v4589_v51 }
 0x647   : > { %v4386_v13 = vpop.f32.mrf.mxu0 }
 0x648   : > { %v9388_v3 = vadd.f32 %v4386_v13, %v9079_v39  ;;  %v9390_v6 = vpop.f32.mrf.mxu2  ;;  %v10405_v13 = vld [vmem:[#allocation15_spill] sm:$0xff] }
 0x649   : > { %10401 = vst [vmem:[#allocation135_spill] sm:$0xff] %v9390_v6 }
 0x64f   : > { %v4389_v10 = vpop.f32.mrf.mxu0  ;;  %6027 = vmatmul.msk.bf16.gmra.mxu3 %vm1331_vm0, %v10402_v30  ;;  %v10406_v30 = vld [vmem:[#allocation119_spill] sm:$0xff] }
 0x650   : > { %v4439_v40 = vadd.f32 %v4389_v10, %v9096_v5  ;;  %v4688_v39 = vpop.f32.mrf.mxu2  ;;  %v4745_v5 = vpack.c.bf16 %v10406_v30, %v10405_v13 }
 0x652   : > { %6043 = vmatmul.msk.bf16.gmra.mxu0 %vm1331_vm0, %v10403_v32  ;;  %6083 = vmatmul.msk.bf16.gmra.mxu1 %vm1331_vm0, %v10327_v56  ;;  %v4591_v18 = vadd.f32 %v9130_v35, %v4439_v40  ;;  %v10408_v56 = vld [vmem:[#allocation131_spill] sm:$0xff] }
 0x654   : > { %v9402_v48 = vadd.f32 %v4683_v31, %v4591_v18  ;;  %v10409_v18 = vld [vmem:[#allocation130_spill] sm:$0xff] }
 0x657   : > { %v4391_v47 = vpop.f32.mrf.mxu0 }
 0x658   : > { %v9405_v51 = vadd.f32 %v4391_v47, %v9106_v55  ;;  %v9409_v10 = vpop.f32.mrf.mxu2 }
 0x659   : > { %10407 = vst [vmem:[#allocation138_spill] sm:$0xff] %v9409_v10 }
 0x65a   : > { %10404 = vst [vmem:[#allocation73_spill] sm:$0xff] %v9405_v51 }
 0x65f   : > { %v4394_v9 = vpop.f32.mrf.mxu0  ;;  %6028 = vmatmul.msk.bf16.gmra.mxu3 %vm1331_vm0, %v4745_v5  ;;  %v10410_v5 = vld [vmem:[#allocation136_spill] sm:$0xff] }
 0x660   : > { %v4441_v32 = vadd.f32 %v4394_v9, %v9123_v26  ;;  %v4693_v40 = vpop.f32.mrf.mxu2 }
 0x662   : > { %6044 = vmatmul.msk.bf16.gmra.mxu0 %vm1331_vm0, %v10408_v56  ;;  %v4593_v35 = vadd.f32 %v9158_v58, %v4441_v32 }
 0x664   : > { %v9416_v31 = vadd.f32 %v4688_v39, %v4593_v35  ;;  %v10411_v39 = vld [vmem:[#allocation129_spill] sm:$0xff] }
 0x667   : > { %v4396_v55 = vpop.f32.mrf.mxu0 }
 0x668   : > { %v9419_v47 = vadd.f32 %v4396_v55, %v10409_v18  ;;  %v9421_v51 = vpop.f32.mrf.mxu2  ;;  %v10412_v18 = vld [vmem:[#allocation74_spill] sm:$0xff] }
 0x66f   : > { %v4399_v6 = vpop.f32.mrf.mxu0 }
 0x670   : > { %v4443_v10 = vadd.f32 %v4399_v6, %v9152_v11  ;;  %v4698_v56 = vpop.f32.mrf.mxu2 }
 0x672   : > { %6045 = vmatmul.msk.bf16.gmra.mxu0 %vm1331_vm0, %v10410_v5  ;;  %v4595_v26 = vadd.f32 %v9189_v43, %v4443_v10 }
 0x674   : > { %v9427_v9 = vadd.f32 %v4693_v40, %v4595_v26 }
 0x677   : > { %v4401_v58 = vpop.f32.mrf.mxu0 }
 0x678   : > { %v9430_v32 = vadd.f32 %v4401_v58, %v10411_v39  ;;  %v9436_v6 = vpop.f32.mrf.mxu2  ;;  %v10413_v39 = vld [vmem:[#allocation77_spill] sm:$0xff] }
 0x67f   : > { %v4404_v35 = vpop.f32.mrf.mxu0 }
 0x680   : > { %v4445_v55 = vadd.f32 %v4404_v35, %v9176_v53  ;;  %v4703_v40 = vpop.f32.mrf.mxu2 }
 0x682   : > { %6046 = vmatmul.msk.bf16.gmra.mxu0 %vm1331_vm0, %v10412_v18  ;;  %v4597_v11 = vadd.f32 %v9225_v24, %v4445_v55 }
 0x684   : > { %v9438_v5 = vadd.f32 %v4698_v56, %v4597_v11 }
 0x687   : > { %v4406_v43 = vpop.f32.mrf.mxu0 }
 0x688   : > { %v9441_v10 = vadd.f32 %v4406_v43, %v9185_v33  ;;  %v9449_v55 = vpop.f32.mrf.mxu2  ;;  %v10414_v43 = vld [vmem:[#allocation78_spill] sm:$0xff] }
 0x68f   : > { %v4409_v26 = vpop.f32.mrf.mxu0 }
 0x690   : > { %v4447_v58 = vadd.f32 %v4409_v26, %v9202_v20  ;;  %v4708_v11 = vpop.f32.mrf.mxu2 }
 0x692   : > { %6047 = vmatmul.msk.bf16.gmra.mxu0 %vm1331_vm0, %v10413_v39  ;;  %v4599_v53 = vadd.f32 %v9258_v22, %v4447_v58  ;;  %v5090_v39 = vpop.f32.mrf.mxu1 }
 0x694   : > { %v9447_v35 = vadd.f32 %v4703_v40, %v4599_v53  ;;  %v10417_v53 = vld [vmem:[#allocation56_spill] sm:$0xff] }
 0x697   : > { %v4411_v24 = vpop.f32.mrf.mxu0 }
 0x698   : > { %v9452_v56 = vadd.f32 %v4411_v24, %v9211_v15  ;;  %v9470_v24 = vld [vmem:[%s9786_s8] ss:$0 sm:$0xff] }
 0x69f   : > { %v4414_v18 = vpop.f32.mrf.mxu0 }
 0x6a0   : > { %v4449_v33 = vadd.f32 %v4414_v18, %v9228_v57 }
 0x6a2   : > { %6048 = vmatmul.msk.bf16.gmra.mxu0 %vm1331_vm0, %v10414_v43  ;;  %v4601_v20 = vadd.f32 %v9294_v54, %v4449_v33  ;;  %v5092_v33 = vpop.f32.mrf.mxu1  ;;  %v4795_v43 = vpop.f32.mrf.mxu3 }
 0x6a4   : > { %v9458_v26 = vadd.f32 %v4708_v11, %v4601_v20 }
 0x6a6   : > { %10415 = vst [vmem:[#allocation140_spill] sm:$0xff] %v9458_v26  ;;  %v10418_v26 = vld [vmem:[#allocation17_spill] sm:$0xff] }
 0x6a7   : > { %v4416_v22 = vpop.f32.mrf.mxu0 }
 0x6a8   : > { %v9461_v40 = vadd.f32 %v4416_v22, %v9237_v38  ;;  %v9476_v38 = vld [vmem:[%s9787_s9] ss:$0 sm:$0xff] }
 0x6aa   : > { %10416 = vst [vmem:[#allocation40_spill] sm:$0xff] %v9461_v40 }
 0x6af   : > { %v4925_v58 = vpop.f32.mrf.mxu0 }
 0x6b0   : > { %v5005_v15 = vadd.f32 %v4925_v58, %v9254_v27 }
 0x6b2   : > { %6049 = vmatmul.msk.bf16.gmra.mxu0 %vm1331_vm0, %v10417_v53  ;;  %v5155_v57 = vadd.f32 %v9329_v60, %v5005_v15 }
 0x6b4   : > { %v5191_v18 = vmul.f32 %v9470_v24, %v5155_v57 }
 0x6b6   : > { %v5227_v60 = vadd.f32 %v9476_v38, %v5191_v18 }
 0x6b7   : > { %v4927_v54 = vpop.f32.mrf.mxu0 }
 0x6b8   : > { %v5006_v27 = vadd.f32 %v4927_v54, %v9266_v49  ;;  %v5259_v15 = vmax.f32 %v5227_v60, 0.0  ;;  %v5095_v49 = vpop.f32.mrf.mxu1 }
 0x6ba   : > { %v5156_v11 = vadd.f32 %v9349_v19, %v5006_v27  ;;  %v4797_v19 = vpop.f32.mrf.mxu3 }
 0x6bc   : > { %v5192_v20 = vmul.f32 %v9470_v24, %v5156_v11 }
 0x6be   : > { %v5228_v22 = vadd.f32 %v9476_v38, %v5192_v20 }
 0x6bf   : > { %v4930_v58 = vpop.f32.mrf.mxu0 }
 0x6c0   : > { %v5260_v53 = vmax.f32 %v5228_v22, 0.0  ;;  %v5007_v57 = vadd.f32 %v4930_v58, %v9281_v16  ;;  %v5097_v22 = vpop.f32.mrf.mxu1 }
 0x6c2   : > { %v5291_v40 = vpack.c.bf16 %v5260_v53, %v5259_v15  ;;  %6050 = vmatmul.msk.bf16.gmra.mxu0 %vm1331_vm0, %v10418_v26  ;;  %v5157_v54 = vadd.f32 %v9364_v12, %v5007_v57  ;;  %v4800_v15 = vpop.f32.mrf.mxu3  ;;  %v10419_v57 = vld [vmem:[#allocation62_spill] sm:$0xff] }
 0x6c4   : > { %6093 = vmatmul.msk.bf16.vlgmr.msra.gmra.mxu2 %vm1331_vm0, %v5291_v40  ;;  %v5193_v27 = vmul.f32 %v9470_v24, %v5157_v54 }
 0x6c6   : > { %v5229_v20 = vadd.f32 %v9476_v38, %v5193_v27 }
 0x6c7   : > { %v4932_v18 = vpop.f32.mrf.mxu0 }
 0x6c8   : > { %v5008_v11 = vadd.f32 %v4932_v18, %v9297_v45  ;;  %v5261_v12 = vmax.f32 %v5229_v20, 0.0  ;;  %v9499_v18 = vpop.f32.mrf.mxu1 }
 0x6ca   : > { %v5158_v60 = vadd.f32 %v9373_v0, %v5008_v11 }
 0x6cc   : > { %v5194_v16 = vmul.f32 %v9470_v24, %v5158_v60  ;;  %v9503_v60 = vpop.f32.mrf.mxu3 }
 0x6ce   : > { %v5230_v26 = vadd.f32 %v9476_v38, %v5194_v16 }
 0x6cf   : > { %v4935_v58 = vpop.f32.mrf.mxu0 }
 0x6d0   : > { %v5262_v53 = vmax.f32 %v5230_v26, 0.0  ;;  %v5009_v40 = vadd.f32 %v4935_v58, %v9311_v44 }
 0x6d2   : > { %6051 = vmatmul.msk.bf16.gmra.mxu0 %vm1331_vm0, %v10419_v57  ;;  %v5292_v54 = vpack.c.bf16 %v5262_v53, %v5261_v12  ;;  %v5159_v45 = vadd.f32 %v9385_v1, %v5009_v40  ;;  %v9510_v40 = vpop.f32.mrf.mxu1  ;;  %v10420_v57 = vld [vmem:[#allocation69_spill] sm:$0xff] }
 0x6d4   : > { %6094 = vmatmul.msk.bf16.gmra.mxu2 %vm1331_vm0, %v5292_v54  ;;  %v5195_v27 = vmul.f32 %v9470_v24, %v5159_v45  ;;  %v9514_v54 = vpop.f32.mrf.mxu3 }
 0x6d6   : > { %v5231_v44 = vadd.f32 %v9476_v38, %v5195_v27 }
 0x6d7   : > { %v4937_v0 = vpop.f32.mrf.mxu0 }
 0x6d8   : > { %v5010_v11 = vadd.f32 %v4937_v0, %v9325_v63  ;;  %v5263_v58 = vmax.f32 %v5231_v44, 0.0 }
 0x6da   : > { %v5160_v20 = vadd.f32 %v9395_v7, %v5010_v11 }
 0x6dc   : > { %v5196_v16 = vmul.f32 %v9470_v24, %v5160_v20  ;;  %v9519_v20 = vpop.f32.mrf.mxu1 }
 0x6de   : > { %v5232_v26 = vadd.f32 %v9476_v38, %v5196_v16  ;;  %v4863_v16 = vadd.f32 %v4795_v43, %v9256_v36 }
 0x6df   : > { %v4940_v1 = vpop.f32.mrf.mxu0 }
 0x6e0   : > { %v5264_v12 = vmax.f32 %v5232_v26, 0.0  ;;  %v5011_v53 = vadd.f32 %v4940_v1, %v9339_v37  ;;  %v9524_v26 = vpop.f32.mrf.mxu3 }
 0x6e2   : > { %6052 = vmatmul.msk.bf16.gmra.mxu0 %vm1331_vm0, %v10420_v57  ;;  %v5293_v63 = vpack.c.bf16 %v5264_v12, %v5263_v58  ;;  %v5161_v7 = vadd.f32 %v5090_v39, %v5011_v53  ;;  %v10421_v58 = vld [vmem:[#allocation118_spill] sm:$0xff] }
 0x6e3   : > { %v4580_v12 = vadd.f32 %v10421_v58, %v9261_v4 }
 0x6e4   : > { %6095 = vmatmul.msk.bf16.gmra.mxu2 %vm1331_vm0, %v5293_v63  ;;  %v5197_v0 = vmul.f32 %v9470_v24, %v5161_v7  ;;  %v9533_v43 = vpop.f32.mrf.mxu1 }
 0x6e6   : > { %v5233_v37 = vadd.f32 %v9476_v38, %v5197_v0 }
 0x6e7   : > { %v4942_v45 = vpop.f32.mrf.mxu0 }
 0x6e8   : > { %v5012_v27 = vadd.f32 %v4942_v45, %v9354_v62  ;;  %v5265_v53 = vmax.f32 %v5233_v37, 0.0  ;;  %v4722_v45 = vadd.f32 %v9234_v8, %v4580_v12 }
 0x6ea   : > { %v5162_v11 = vadd.f32 %v5092_v33, %v5012_v27  ;;  %v10422_v33 = vld [vmem:[#allocation97_spill] sm:$0xff]  ;;  %v4864_v36 = vadd.f32 %v4797_v19, %v4722_v45  ;;  %v10424_v45 = vld [vmem:[#allocation72_spill] sm:$0xff] }
 0x6ec   : > { %v5198_v44 = vmul.f32 %v9470_v24, %v5162_v11  ;;  %v9536_v11 = vpop.f32.mrf.mxu3  ;;  %v9544_v12 = vpop.f32.mrf.mxu1 }
 0x6ee   : > { %v5234_v39 = vadd.f32 %v9476_v38, %v5198_v44 }
 0x6ef   : > { %v4945_v1 = vpop.f32.mrf.mxu0 }
 0x6f0   : > { %v5266_v57 = vmax.f32 %v5234_v39, 0.0  ;;  %v5013_v62 = vadd.f32 %v4945_v1, %v4863_v16  ;;  %v10423_v39 = vld [vmem:[#allocation84_spill] sm:$0xff] }
 0x6f1   : > { %v4582_v19 = vadd.f32 %v10423_v39, %v9286_v21  ;;  %v4888_v21 = vrot.slane %v9288_v17, 1  ;;  %v1614_v17 = vld [vmem:[#allocation2 + $0x238] sm:$0x1] }
 0x6f2   : > { %6053 = vmatmul.msk.bf16.gmra.mxu0 %vm1331_vm0, %v10422_v33  ;;  %v5294_v63 = vpack.c.bf16 %v5266_v57, %v5265_v53  ;;  %v5163_v7 = vadd.f32 %v5095_v49, %v5013_v62  ;;  %v4865_v49 = vadd.f32 %v4800_v15, %v9283_v61  ;;  %v1686_v62 = vld [vmem:[#allocation3 + $0x238] sm:$0x1]  ;;  %v5039_v33 = vrot.slane %v10406_v30, 1 }
 0x6f4   : > { %6096 = vmatmul.msk.bf16.gmra.mxu2 %vm1331_vm0, %v5294_v63  ;;  %v5199_v0 = vmul.f32 %v9470_v24, %v5163_v7  ;;  %v5041_v63 = vrot.slane %v1686_v62, 1  ;;  %v4812_v7 = vpop.f32.mrf.mxu3  ;;  %v10425_v62 = vld [vmem:[#allocation20_spill] sm:$0xff] }
 0x6f6   : > { %v5235_v44 = vadd.f32 %v9476_v38, %v5199_v0  ;;  %v4724_v0 = vadd.f32 %v9263_v50, %v4582_v19  ;;  %v5112_v50 = vpop.f32.mrf.mxu1 }
 0x6f7   : > { %v4947_v27 = vpop.f32.mrf.mxu0 }
 0x6f8   : > { %v5014_v4 = vadd.f32 %v4947_v27, %v4864_v36  ;;  %v5267_v1 = vmax.f32 %v5235_v44, 0.0  ;;  %v5042_v36 = vsel %vm2766_vm3, %v5039_v33, %v5041_v63  ;;  %v4889_v27 = vrot.slane %v9290_v14, 1 }
 0x6fa   : > { %v5164_v37 = vadd.f32 %v5097_v22, %v5014_v4  ;;  %v5038_v22 = vrot.slane %v10405_v13, 1  ;;  %v4866_v4 = vadd.f32 %v9503_v60, %v4724_v0 }
 0x6fc   : > { %v5200_v16 = vmul.f32 %v9470_v24, %v5164_v37  ;;  %v5040_v15 = vsel %vm2766_vm3, %v5038_v22, %v5039_v33  ;;  %v4815_v39 = vpop.f32.mrf.mxu3  ;;  %v4584_v22 = vadd.f32 %v10425_v62, %v9320_v2 }
 0x6fd   : > { %v5045_v30 = vpack.c.bf16 %v5042_v36, %v5040_v15 }
 0x6fe   : > { %v5236_v8 = vadd.f32 %v9476_v38, %v5200_v16  ;;  %v4726_v15 = vadd.f32 %v9292_v29, %v4584_v22  ;;  %v4869_v29 = vadd.f32 %v9536_v11, %v9341_v42 }
 0x6ff   : > { %v4950_v58 = vpop.f32.mrf.mxu0  ;;  %6084 = vmatmul.msk.bf16.gmra.mxu1 %vm1331_vm0, %v5045_v30 }
 0x700   : > { %v5268_v53 = vmax.f32 %v5236_v8, 0.0  ;;  %v5015_v57 = vadd.f32 %v4950_v58, %v4865_v49  ;;  %v4890_v49 = vsel %vm2766_vm3, %v4888_v21, %v4889_v27  ;;  %v4891_v8 = vrot.slane %v1614_v17, 1  ;;  %v5115_v21 = vpop.f32.mrf.mxu1 }
 0x701   : > { %v4867_v58 = vadd.f32 %v9514_v54, %v9313_v41  ;;  %v4868_v41 = vadd.f32 %v9524_v26, %v4726_v15  ;;  %v10427_v26 = vld [vmem:[#allocation128_spill] sm:$0xff] }
 0x702   : > { %6054 = vmatmul.msk.bf16.gmra.mxu0 %vm1331_vm0, %v10424_v45  ;;  %v5295_v61 = vpack.c.bf16 %v5268_v53, %v5267_v1  ;;  %v5165_v13 = vadd.f32 %v9499_v18, %v5015_v57  ;;  %v4892_v18 = vsel %vm2766_vm3, %v4889_v27, %v4891_v8  ;;  %v10426_v45 = vld [vmem:[#allocation124_spill] sm:$0xff] }
 0x703   : > { %v4895_v1 = vpack.c.bf16 %v4892_v18, %v4890_v49 }
 0x704   : > { %6097 = vmatmul.msk.bf16.gmra.mxu2 %vm1331_vm0, %v5295_v61  ;;  %v5201_v44 = vmul.f32 %v9470_v24, %v5165_v13  ;;  %v4817_v54 = vpop.f32.mrf.mxu3 }
 0x706   : > { %v5237_v19 = vadd.f32 %v9476_v38, %v5201_v44 }
 0x707   : > { %v4952_v37 = vpop.f32.mrf.mxu0 }
 0x708   : > { %v5016_v16 = vadd.f32 %v4952_v37, %v4866_v4  ;;  %v5269_v33 = vmax.f32 %v5237_v19, 0.0  ;;  %v5117_v37 = vpop.f32.mrf.mxu1 }
 0x70a   : > { %v5166_v14 = vadd.f32 %v9510_v40, %v5016_v16  ;;  %v4586_v16 = vadd.f32 %v10427_v26, %v9347_v34 }
 0x70c   : > { %v5202_v60 = vmul.f32 %v9470_v24, %v5166_v14  ;;  %v4820_v17 = vpop.f32.mrf.mxu3  ;;  %v4728_v18 = vadd.f32 %v9322_v46, %v4586_v16 }
 0x70e   : > { %v5238_v53 = vadd.f32 %v9476_v38, %v5202_v60  ;;  %v4870_v42 = vadd.f32 %v4812_v7, %v4728_v18 }
 0x70f   : > { %v4955_v57 = vpop.f32.mrf.mxu0 }
 0x710   : > { %v5270_v63 = vmax.f32 %v5238_v53, 0.0  ;;  %v5017_v40 = vadd.f32 %v4955_v57, %v4867_v58  ;;  %v5120_v60 = vpop.f32.mrf.mxu1 }
 0x712   : > { %6055 = vmatmul.msk.bf16.gmra.mxu0 %vm1331_vm0, %v10426_v45  ;;  %v5296_v61 = vpack.c.bf16 %v5270_v63, %v5269_v33  ;;  %v5167_v36 = vadd.f32 %v9519_v20, %v5017_v40 }
 0x714   : > { %6098 = vmatmul.msk.bf16.gmra.mxu2 %vm1331_vm0, %v5296_v61  ;;  %v5203_v2 = vmul.f32 %v9470_v24, %v5167_v36  ;;  %v4822_v34 = vpop.f32.mrf.mxu3 }
 0x716   : > { %v5239_v30 = vadd.f32 %v9476_v38, %v5203_v2 }
 0x717   : > { %v4957_v0 = vpop.f32.mrf.mxu0 }
 0x718   : > { %v5018_v27 = vadd.f32 %v4957_v0, %v4868_v41  ;;  %v5271_v49 = vmax.f32 %v5239_v30, 0.0  ;;  %v5122_v61 = vpop.f32.mrf.mxu1 }
 0x71a   : > { %v5168_v13 = vadd.f32 %v9533_v43, %v5018_v27 }
 0x71c   : > { %v5204_v4 = vmul.f32 %v9470_v24, %v5168_v13 }
 0x71e   : > { %v5240_v20 = vadd.f32 %v9476_v38, %v5204_v4  ;;  %v4873_v4 = vadd.f32 %v4820_v17, %v9383_v23  ;;  %v9612_v23 = vld [vmem:[%s9789_s11] ss:$0 sm:$0xff] }
 0x71f   : > { %v4960_v44 = vpop.f32.mrf.mxu0 }
 0x720   : > { %v5272_v8 = vmax.f32 %v5240_v20, 0.0  ;;  %v5019_v14 = vadd.f32 %v4960_v44, %v4869_v29  ;;  %v5125_v13 = vpop.f32.mrf.mxu1 }
 0x722   : > { %6056 = vmatmul.msk.bf16.gmra.mxu0 %vm1331_vm0, %v4895_v1  ;;  %v5297_v43 = vpack.c.bf16 %v5272_v8, %v5271_v49  ;;  %v5169_v19 = vadd.f32 %v9544_v12, %v5019_v14  ;;  %v4871_v1 = vadd.f32 %v4815_v39, %v9366_v59  ;;  %v10428_v12 = vld [vmem:[#allocation89_spill] sm:$0xff] }
 0x723   : > { %v4588_v63 = vadd.f32 %v10428_v12, %v9369_v52 }
 0x724   : > { %6099 = vmatmul.msk.bf16.gmra.mxu2 %vm1331_vm0, %v5297_v43  ;;  %v5205_v58 = vmul.f32 %v9470_v24, %v5169_v19 }
 0x725   : > { %v4730_v36 = vadd.f32 %v9351_v28, %v4588_v63 }
 0x726   : > { %v5241_v62 = vadd.f32 %v9476_v38, %v5205_v58 }
 0x727   : > { %v4962_v11 = vpop.f32.mrf.mxu0  ;;  %v4872_v0 = vadd.f32 %v4817_v54, %v4730_v36  ;;  %v10429_v54 = vld [vmem:[#allocation18_spill] sm:$0xff]  ;;  %v10432_v36 = vld [vmem:[#allocation135_spill] sm:$0xff] }
 0x728   : > { %v5020_v53 = vadd.f32 %v4962_v11, %v4870_v42  ;;  %v5273_v7 = vmax.f32 %v5241_v62, 0.0  ;;  %v4590_v44 = vadd.f32 %v10429_v54, %v9388_v3  ;;  %v5127_v43 = vpop.f32.mrf.mxu1  ;;  %v10430_v62 = vld [vmem:[#allocation73_spill] sm:$0xff]  ;;  %v10433_v54 = vld [vmem:[#allocation134_spill] sm:$0xff] }
 0x72a   : > { %v5170_v57 = vadd.f32 %v5112_v50, %v5020_v53  ;;  %v4825_v50 = vpop.f32.mrf.mxu3  ;;  %v4732_v8 = vadd.f32 %v9371_v25, %v4590_v44  ;;  %v4594_v44 = vadd.f32 %v10433_v54, %v9419_v47 }
 0x72c   : > { %v5206_v22 = vmul.f32 %v9470_v24, %v5170_v57  ;;  %v4874_v17 = vadd.f32 %v4822_v34, %v4732_v8  ;;  %v4875_v34 = vadd.f32 %v4825_v50, %v9402_v48 }
 0x72e   : > { %v5242_v46 = vadd.f32 %v9476_v38, %v5206_v22  ;;  %v10431_v22 = vld [vmem:[#allocation126_spill] sm:$0xff] }
 0x72f   : > { %v4965_v33 = vpop.f32.mrf.mxu0 }
 0x730   : > { %v5274_v40 = vmax.f32 %v5242_v46, 0.0  ;;  %v5021_v45 = vadd.f32 %v4965_v33, %v4871_v1  ;;  %v4592_v1 = vadd.f32 %v10431_v22, %v10430_v62  ;;  %v5130_v12 = vpop.f32.mrf.mxu1 }
 0x732   : > { %v5298_v15 = vpack.c.bf16 %v5274_v40, %v5273_v7  ;;  %v5171_v41 = vadd.f32 %v5115_v21, %v5021_v45  ;;  %v4827_v29 = vpop.f32.mrf.mxu3  ;;  %v9603_v21 = vpop.f32.mrf.mxu2  ;;  %v4734_v48 = vadd.f32 %v10432_v36, %v4592_v1 }
 0x734   : > { %6100 = vmatmul.msk.bf16.gmra.mxu2 %vm1331_vm0, %v5298_v15  ;;  %v5207_v59 = vmul.f32 %v9470_v24, %v5171_v41  ;;  %v4876_v41 = vadd.f32 %v4827_v29, %v4734_v48 }
 0x736   : > { %v5243_v52 = vadd.f32 %v9476_v38, %v5207_v59 }
 0x737   : > { %v4967_v2 = vpop.f32.mrf.mxu0 }
 0x738   : > { %v5022_v39 = vadd.f32 %v4967_v2, %v4872_v0  ;;  %v5275_v26 = vmax.f32 %v5243_v52, 0.0  ;;  %v5132_v52 = vpop.f32.mrf.mxu1 }
 0x73a   : > { %v5172_v27 = vadd.f32 %v5117_v37, %v5022_v39  ;;  %v4830_v25 = vpop.f32.mrf.mxu3 }
 0x73c   : > { %v5208_v30 = vmul.f32 %v9470_v24, %v5172_v27 }
 0x73e   : > { %v5244_v28 = vadd.f32 %v9476_v38, %v5208_v30 }
 0x73f   : > { %v4970_v20 = vpop.f32.mrf.mxu0 }
 0x740   : > { %v5276_v16 = vmax.f32 %v5244_v28, 0.0  ;;  %v5023_v37 = vadd.f32 %v4970_v20, %v4873_v4  ;;  %v4877_v20 = vadd.f32 %v4830_v25, %v9416_v31 }
 0x742   : > { %v5299_v49 = vpack.c.bf16 %v5276_v16, %v5275_v26  ;;  %v5173_v14 = vadd.f32 %v5120_v60, %v5023_v37 }
 0x744   : > { %6101 = vmatmul.msk.bf16.gmra.mxu2 %vm1331_vm0, %v5299_v49  ;;  %v5209_v19 = vmul.f32 %v9470_v24, %v5173_v14 }
 0x746   : > { %v5245_v58 = vadd.f32 %v9476_v38, %v5209_v19 }
 0x747   : > { %v4972_v18 = vpop.f32.mrf.mxu0  ;;  %v5384_v3 = vpop.f32.mrf.mxu2 }
 0x748   : > { %v5024_v42 = vadd.f32 %v4972_v18, %v4874_v17  ;;  %v5385_v11 = vadd.f32 %v9612_v23, %v5384_v3  ;;  %v5277_v63 = vmax.f32 %v5245_v58, 0.0  ;;  %v5135_v3 = vpop.f32.mrf.mxu1 }
 0x74a   : > { %v5174_v60 = vadd.f32 %v5122_v61, %v5024_v42  ;;  %5465 = vst.msk [vmem:[%s9618_s13] sm:$0xff] %vm5464_vm4, %v5385_v11  ;;  %v4832_v61 = vpop.f32.mrf.mxu3 }
 0x74c   : > { %v5210_v53 = vmul.f32 %v9470_v24, %v5174_v60 }
 0x74e   : > { %v5246_v57 = vadd.f32 %v9476_v38, %v5210_v53 }
 0x74f   : > { %v4975_v46 = vpop.f32.mrf.mxu0  ;;  %v5386_v33 = vpop.f32.mrf.mxu2 }
 0x750   : > { %v5278_v7 = vmax.f32 %v5246_v57, 0.0  ;;  %v5025_v40 = vadd.f32 %v4975_v46, %v4875_v34  ;;  %v5387_v45 = vadd.f32 %v9612_v23, %v5386_v33  ;;  %v5137_v22 = vpop.f32.mrf.mxu1  ;;  %v10435_v46 = vld [vmem:[#allocation137_spill] sm:$0xff] }
 0x751   : > { %v4596_v33 = vadd.f32 %v10435_v46, %v9430_v32 }
 0x752   : > { %5466 = vst.msk [vmem:[%s9618_s13 + $0x8] sm:$0xff] %vm5464_vm4, %v5387_v45  ;;  %v5300_v15 = vpack.c.bf16 %v5278_v7, %v5277_v63  ;;  %v5175_v50 = vadd.f32 %v5125_v13, %v5025_v40  ;;  %v4835_v4 = vpop.f32.mrf.mxu3 }
 0x753   : > { %v4879_v62 = vadd.f32 %v4835_v4, %v9427_v9  ;;  %v4738_v9 = vadd.f32 %v9421_v51, %v4596_v33 }
 0x754   : > { %6102 = vmatmul.msk.bf16.gmra.mxu2 %vm1331_vm0, %v5300_v15  ;;  %v5211_v59 = vmul.f32 %v9470_v24, %v5175_v50 }
 0x756   : > { %v5247_v28 = vadd.f32 %v9476_v38, %v5211_v59 }
 0x757   : > { %v4977_v0 = vpop.f32.mrf.mxu0  ;;  %v5389_v2 = vpop.f32.mrf.mxu2 }
 0x758   : > { %v5026_v39 = vadd.f32 %v4977_v0, %v4876_v41  ;;  %v5390_v27 = vadd.f32 %v9612_v23, %v5389_v2  ;;  %v5279_v37 = vmax.f32 %v5247_v28, 0.0  ;;  %v5140_v0 = vpop.f32.mrf.mxu1 }
 0x75a   : > { %v5176_v30 = vadd.f32 %v5127_v43, %v5026_v39  ;;  %5467 = vst.msk [vmem:[%s9618_s13 + $0x10] sm:$0xff] %vm5464_vm4, %v5390_v27  ;;  %v10434_v43 = vld [vmem:[#allocation138_spill] sm:$0xff]  ;;  %v4837_v19 = vpop.f32.mrf.mxu3 }
 0x75b   : > { %v4736_v18 = vadd.f32 %v10434_v43, %v4594_v44  ;;  %v4880_v50 = vadd.f32 %v4837_v19, %v4738_v9 }
 0x75c   : > { %v5212_v13 = vmul.f32 %v9470_v24, %v5176_v30 }
 0x75d   : > { %v4878_v25 = vadd.f32 %v4832_v61, %v4736_v18 }
 0x75e   : > { %v5248_v29 = vadd.f32 %v9476_v38, %v5212_v13  ;;  %v10436_v13 = vld [vmem:[#allocation91_spill] sm:$0xff] }
 0x75f   : > { %v4980_v26 = vpop.f32.mrf.mxu0  ;;  %v5391_v16 = vpop.f32.mrf.mxu2 }
 0x760   : > { %v5280_v49 = vmax.f32 %v5248_v29, 0.0  ;;  %v5027_v8 = vadd.f32 %v4980_v26, %v4877_v20  ;;  %v5392_v14 = vadd.f32 %v9612_v23, %v5391_v16  ;;  %v4598_v20 = vadd.f32 %v10436_v13, %v9441_v10 }
 0x762   : > { %5468 = vst.msk [vmem:[%s9618_s13 + $0x18] sm:$0xff] %vm5464_vm4, %v5392_v14  ;;  %v5301_v17 = vpack.c.bf16 %v5280_v49, %v5279_v37  ;;  %v5177_v31 = vadd.f32 %v5130_v12, %v5027_v8  ;;  %v4840_v7 = vpop.f32.mrf.mxu3  ;;  %v5142_v49 = vpop.f32.mrf.mxu1  ;;  %v4740_v14 = vadd.f32 %v9436_v6, %v4598_v20 }
 0x763   : > { %v4881_v4 = vadd.f32 %v4840_v7, %v9438_v5 }
 0x764   : > { %6103 = vmatmul.msk.bf16.gmra.mxu2 %vm1331_vm0, %v5301_v17  ;;  %v5213_v11 = vmul.f32 %v9470_v24, %v5177_v31 }
 0x766   : > { %v5249_v34 = vadd.f32 %v9476_v38, %v5213_v11 }
 0x767   : > { %v4982_v47 = vpop.f32.mrf.mxu0  ;;  %v5394_v42 = vpop.f32.mrf.mxu2 }
 0x768   : > { %v5028_v60 = vadd.f32 %v4982_v47, %v4878_v25  ;;  %v5395_v58 = vadd.f32 %v9612_v23, %v5394_v42  ;;  %v5281_v40 = vmax.f32 %v5249_v34, 0.0 }
 0x76a   : > { %v5178_v53 = vadd.f32 %v5132_v52, %v5028_v60  ;;  %5469 = vst.msk [vmem:[%s9618_s13 + $0x20] sm:$0xff] %vm5464_vm4, %v5395_v58  ;;  %v4842_v27 = vpop.f32.mrf.mxu3  ;;  %v5145_v47 = vpop.f32.mrf.mxu1 }
 0x76b   : > { %v4882_v43 = vadd.f32 %v4842_v27, %v4740_v14 }
 0x76c   : > { %v5214_v57 = vmul.f32 %v9470_v24, %v5178_v53  ;;  %v10437_v53 = vld [vmem:[#allocation133_spill] sm:$0xff] }
 0x76d   : > { %v4600_v34 = vadd.f32 %v10437_v53, %v9452_v56 }
 0x76e   : > { %v5250_v1 = vadd.f32 %v9476_v38, %v5214_v57 }
 0x76f   : > { %v4985_v12 = vpop.f32.mrf.mxu0  ;;  %v5396_v63 = vpop.f32.mrf.mxu2 }
 0x770   : > { %v5282_v45 = vmax.f32 %v5250_v1, 0.0  ;;  %v5029_v61 = vadd.f32 %v4985_v12, %v4879_v62  ;;  %v5397_v15 = vadd.f32 %v9612_v23, %v5396_v63  ;;  %v4742_v63 = vadd.f32 %v9449_v55, %v4600_v34 }
 0x772   : > { %5470 = vst.msk [vmem:[%s9618_s13 + $0x28] sm:$0xff] %vm5464_vm4, %v5397_v15  ;;  %v5302_v36 = vpack.c.bf16 %v5282_v45, %v5281_v40  ;;  %v5179_v48 = vadd.f32 %v5135_v3, %v5029_v61  ;;  %v4845_v5 = vpop.f32.mrf.mxu3  ;;  %v5147_v7 = vpop.f32.mrf.mxu1 }
 0x773   : > { %v4883_v11 = vadd.f32 %v4845_v5, %v9447_v35 }
 0x774   : > { %6104 = vmatmul.msk.bf16.gmra.mxu2 %vm1331_vm0, %v5302_v36  ;;  %v5215_v2 = vmul.f32 %v9470_v24, %v5179_v48 }
 0x776   : > { %v5251_v30 = vadd.f32 %v9476_v38, %v5215_v2 }
 0x777   : > { %v4987_v41 = vpop.f32.mrf.mxu0  ;;  %v5399_v32 = vpop.f32.mrf.mxu2 }
 0x778   : > { %v5030_v59 = vadd.f32 %v4987_v41, %v4880_v50  ;;  %v5400_v39 = vadd.f32 %v9612_v23, %v5399_v32  ;;  %v5283_v44 = vmax.f32 %v5251_v30, 0.0  ;;  %v10438_v41 = vld [vmem:[#allocation140_spill] sm:$0xff] }
 0x77a   : > { %v5180_v52 = vadd.f32 %v5137_v22, %v5030_v59  ;;  %5471 = vst.msk [vmem:[%s9618_s13 + $0x30] sm:$0xff] %vm5464_vm4, %v5400_v39  ;;  %v4847_v60 = vpop.f32.mrf.mxu3  ;;  %v10439_v59 = vld [vmem:[#allocation40_spill] sm:$0xff] }
 0x77b   : > { %v4884_v40 = vadd.f32 %v4847_v60, %v4742_v63  ;;  %v10440_v39 = vld [vmem:[#allocation132_spill] sm:$0xff] }
 0x77c   : > { %v5216_v51 = vmul.f32 %v9470_v24, %v5180_v52  ;;  %v5150_v2 = vpop.f32.mrf.mxu1  ;;  %v4602_v27 = vadd.f32 %v10440_v39, %v10439_v59 }
 0x77e   : > { %v5252_v28 = vadd.f32 %v9476_v38, %v5216_v51 }
 0x77f   : > { %v4990_v29 = vpop.f32.mrf.mxu0  ;;  %v5401_v54 = vpop.f32.mrf.mxu2 }
 0x780   : > { %v5284_v26 = vmax.f32 %v5252_v28, 0.0  ;;  %v5031_v16 = vadd.f32 %v4990_v29, %v4881_v4  ;;  %v5402_v37 = vadd.f32 %v9612_v23, %v5401_v54  ;;  %v4744_v54 = vadd.f32 %v9603_v21, %v4602_v27 }
 0x782   : > { %5472 = vst.msk [vmem:[%s9618_s13 + $0x38] sm:$0xff] %vm5464_vm4, %v5402_v37  ;;  %v5303_v8 = vpack.c.bf16 %v5284_v26, %v5283_v44  ;;  %v5181_v17 = vadd.f32 %v5140_v0, %v5031_v16  ;;  %v4850_v9 = vpop.f32.mrf.mxu3 }
 0x783   : > { %v4885_v32 = vadd.f32 %v4850_v9, %v10438_v41 }
 0x784   : > { %6105 = vmatmul.msk.bf16.gmra.mxu2 %vm1331_vm0, %v5303_v8  ;;  %v5217_v3 = vmul.f32 %v9470_v24, %v5181_v17  ;;  %v5152_v5 = vpop.f32.mrf.mxu1 }
 0x786   : > { %v5253_v42 = vadd.f32 %v9476_v38, %v5217_v3 }
 0x787   : > { %v4992_v10 = vpop.f32.mrf.mxu0  ;;  %v5404_v18 = vpop.f32.mrf.mxu2 }
 0x788   : > { %v5032_v31 = vadd.f32 %v4992_v10, %v4882_v43  ;;  %v5405_v25 = vadd.f32 %v9612_v23, %v5404_v18  ;;  %v5285_v22 = vmax.f32 %v5253_v42, 0.0 }
 0x78a   : > { %v5182_v19 = vadd.f32 %v5142_v49, %v5032_v31  ;;  %5473 = vst.msk [vmem:[%s9618_s13 + $0x40] sm:$0xff] %vm5464_vm4, %v5405_v25  ;;  %v4852_v29 = vpop.f32.mrf.mxu3 }
 0x78b   : > { %v4886_v26 = vadd.f32 %v4852_v29, %v4744_v54 }
 0x78c   : > { %v5218_v6 = vmul.f32 %v9470_v24, %v5182_v19 }
 0x78e   : > { %v5254_v58 = vadd.f32 %v9476_v38, %v5218_v6 }
 0x78f   : > { %v4995_v57 = vpop.f32.mrf.mxu0  ;;  %v5406_v62 = vpop.f32.mrf.mxu2 }
 0x790   : > { %v5286_v1 = vmax.f32 %v5254_v58, 0.0  ;;  %v5033_v46 = vadd.f32 %v4995_v57, %v4883_v11  ;;  %v5407_v33 = vadd.f32 %v9612_v23, %v5406_v62 }
 0x792   : > { %5474 = vst.msk [vmem:[%s9618_s13 + $0x48] sm:$0xff] %vm5464_vm4, %v5407_v33  ;;  %v5304_v12 = vpack.c.bf16 %v5286_v1, %v5285_v22  ;;  %v5183_v35 = vadd.f32 %v5145_v47, %v5033_v46 }
 0x794   : > { %6106 = vmatmul.msk.bf16.gmra.mxu2 %vm1331_vm0, %v5304_v12  ;;  %v5219_v61 = vmul.f32 %v9470_v24, %v5183_v35 }
 0x796   : > { %v5255_v50 = vadd.f32 %v9476_v38, %v5219_v61 }
 0x797   : > { %v4997_v45 = vpop.f32.mrf.mxu0  ;;  %v5409_v56 = vpop.f32.mrf.mxu2 }
 0x798   : > { %v5034_v15 = vadd.f32 %v4997_v45, %v4884_v40  ;;  %v5410_v36 = vadd.f32 %v9612_v23, %v5409_v56  ;;  %v5287_v51 = vmax.f32 %v5255_v50, 0.0 }
 0x79a   : > { %v5184_v48 = vadd.f32 %v5147_v7, %v5034_v15  ;;  %5475 = vst.msk [vmem:[%s9618_s13 + $0x50] sm:$0xff] %vm5464_vm4, %v5410_v36 }
 0x79c   : > { %v5220_v55 = vmul.f32 %v9470_v24, %v5184_v48 }
 0x79e   : > { %v5256_v0 = vadd.f32 %v9476_v38, %v5220_v55 }
 0x79f   : > { %v5000_v52 = vpop.f32.mrf.mxu0  ;;  %v5411_v30 = vpop.f32.mrf.mxu2 }
 0x7a0   : > { %v5288_v4 = vmax.f32 %v5256_v0, 0.0  ;;  %v5035_v28 = vadd.f32 %v5000_v52, %v4885_v32  ;;  %v5412_v13 = vadd.f32 %v9612_v23, %v5411_v30 }
 0x7a2   : > { %5476 = vst.msk [vmem:[%s9618_s13 + $0x58] sm:$0xff] %vm5464_vm4, %v5412_v13  ;;  %v5305_v20 = vpack.c.bf16 %v5288_v4, %v5287_v51  ;;  %v5185_v44 = vadd.f32 %v5150_v2, %v5035_v28 }
 0x7a4   : > { %6107 = vmatmul.msk.bf16.gmra.mxu2 %vm1331_vm0, %v5305_v20  ;;  %v5221_v49 = vmul.f32 %v9470_v24, %v5185_v44 }
 0x7a6   : > { %v5257_v21 = vadd.f32 %v9476_v38, %v5221_v49 }
 0x7a7   : > { %v5002_v16 = vpop.f32.mrf.mxu0  ;;  %v5414_v37 = vpop.f32.mrf.mxu2 }
 0x7a8   : > { %v5036_v8 = vadd.f32 %v5002_v16, %v4886_v26  ;;  %v5415_v14 = vadd.f32 %v9612_v23, %v5414_v37  ;;  %v5289_v3 = vmax.f32 %v5257_v21, 0.0 }
 0x7aa   : > { %v5186_v17 = vadd.f32 %v5152_v5, %v5036_v8  ;;  %5477 = vst.msk [vmem:[%s9618_s13 + $0x60] sm:$0xff] %vm5464_vm4, %v5415_v14 }
 0x7ac   : > { %v5222_v43 = vmul.f32 %v9470_v24, %v5186_v17 }
 0x7ae   : > { %v5258_v10 = vadd.f32 %v9476_v38, %v5222_v43 }
 0x7af   : > { %v5416_v18 = vpop.f32.mrf.mxu2 }
 0x7b0   : > { %v5290_v31 = vmax.f32 %v5258_v10, 0.0  ;;  %v5417_v25 = vadd.f32 %v9612_v23, %v5416_v18 }
 0x7b2   : > { %5478 = vst.msk [vmem:[%s9618_s13 + $0x68] sm:$0xff] %vm5464_vm4, %v5417_v25  ;;  %v5306_v19 = vpack.c.bf16 %v5290_v31, %v5289_v3 }
 0x7b4   : > { %6108 = vmatmul.msk.bf16.gmra.mxu2 %vm1331_vm0, %v5306_v19 }
 0x7b7   : > { %v5419_v47 = vpop.f32.mrf.mxu2 }
 0x7b8   : > { %v5420_v42 = vadd.f32 %v9612_v23, %v5419_v47 }
 0x7ba   : > { %5479 = vst.msk [vmem:[%s9618_s13 + $0x70] sm:$0xff] %vm5464_vm4, %v5420_v42 }
 0x7bf   : > { %v5421_v24 = vpop.f32.mrf.mxu2 }
 0x7c0   : > { %v5422_v38 = vadd.f32 %v9612_v23, %v5421_v24 }
 0x7c2   : > { %5480 = vst.msk [vmem:[%s9618_s13 + $0x78] sm:$0xff] %vm5464_vm4, %v5422_v38 }
 0x7c7   : > { %v5424_v6 = vpop.f32.mrf.mxu2 }
 0x7c8   : > { %v5425_v11 = vadd.f32 %v9612_v23, %v5424_v6 }
 0x7ca   : > { %5481 = vst.msk [vmem:[%s9618_s13 + $0x80] sm:$0xff] %vm5464_vm4, %v5425_v11 }
 0x7cf   : > { %v5426_v60 = vpop.f32.mrf.mxu2 }
 0x7d0   : > { %v5427_v58 = vadd.f32 %v9612_v23, %v5426_v60 }
 0x7d2   : > { %5482 = vst.msk [vmem:[%s9618_s13 + $0x88] sm:$0xff] %vm5464_vm4, %v5427_v58 }
 0x7d7   : > { %v5429_v53 = vpop.f32.mrf.mxu2 }
 0x7d8   : > { %v5430_v34 = vadd.f32 %v9612_v23, %v5429_v53 }
 0x7da   : > { %5483 = vst.msk [vmem:[%s9618_s13 + $0x90] sm:$0xff] %vm5464_vm4, %v5430_v34 }
 0x7df   : > { %v5431_v57 = vpop.f32.mrf.mxu2 }
 0x7e0   : > { %v5432_v62 = vadd.f32 %v9612_v23, %v5431_v57 }
 0x7e2   : > { %5484 = vst.msk [vmem:[%s9618_s13 + $0x98] sm:$0xff] %vm5464_vm4, %v5432_v62 }
 0x7e7   : > { %v5434_v22 = vpop.f32.mrf.mxu2 }
 0x7e8   : > { %v5435_v1 = vadd.f32 %v9612_v23, %v5434_v22 }
 0x7ea   : > { %5485 = vst.msk [vmem:[%s9618_s13 + $0xa0] sm:$0xff] %vm5464_vm4, %v5435_v1 }
 0x7ef   : > { %v5436_v46 = vpop.f32.mrf.mxu2 }
 0x7f0   : > { %v5437_v33 = vadd.f32 %v9612_v23, %v5436_v46 }
 0x7f2   : > { %5486 = vst.msk [vmem:[%s9618_s13 + $0xa8] sm:$0xff] %vm5464_vm4, %v5437_v33 }
 0x7f7   : > { %v5439_v12 = vpop.f32.mrf.mxu2 }
 0x7f8   : > { %v5440_v63 = vadd.f32 %v9612_v23, %v5439_v12 }
 0x7fa   : > { %5487 = vst.msk [vmem:[%s9618_s13 + $0xb0] sm:$0xff] %vm5464_vm4, %v5440_v63 }
 0x7ff   : > { %v5441_v35 = vpop.f32.mrf.mxu2 }
 0x800   : > { %v5442_v7 = vadd.f32 %v9612_v23, %v5441_v35 }
 0x802   : > { %5488 = vst.msk [vmem:[%s9618_s13 + $0xb8] sm:$0xff] %vm5464_vm4, %v5442_v7 }
 0x807   : > { %v5444_v40 = vpop.f32.mrf.mxu2 }
 0x808   : > { %v5445_v45 = vadd.f32 %v9612_v23, %v5444_v40 }
 0x80a   : > { %5489 = vst.msk [vmem:[%s9618_s13 + $0xc0] sm:$0xff] %vm5464_vm4, %v5445_v45 }
 0x80f   : > { %v5446_v56 = vpop.f32.mrf.mxu2 }
 0x810   : > { %v5447_v61 = vadd.f32 %v9612_v23, %v5446_v56 }
 0x812   : > { %5490 = vst.msk [vmem:[%s9618_s13 + $0xc8] sm:$0xff] %vm5464_vm4, %v5447_v61 }
 0x817   : > { %v5449_v15 = vpop.f32.mrf.mxu2 }
 0x818   : > { %v5450_v36 = vadd.f32 %v9612_v23, %v5449_v15 }
 0x81a   : > { %5491 = vst.msk [vmem:[%s9618_s13 + $0xd0] sm:$0xff] %vm5464_vm4, %v5450_v36 }
 0x81f   : > { %v5451_v9 = vpop.f32.mrf.mxu2 }
 0x820   : > { %v5452_v48 = vadd.f32 %v9612_v23, %v5451_v9 }
 0x822   : > { %5492 = vst.msk [vmem:[%s9618_s13 + $0xd8] sm:$0xff] %vm5464_vm4, %v5452_v48 }
 0x827   : > { %v5454_v50 = vpop.f32.mrf.mxu2 }
 0x828   : > { %v5455_v55 = vadd.f32 %v9612_v23, %v5454_v50 }
 0x82a   : > { %5493 = vst.msk [vmem:[%s9618_s13 + $0xe0] sm:$0xff] %vm5464_vm4, %v5455_v55 }
 0x82f   : > { %v5456_v41 = vpop.f32.mrf.mxu2 }
 0x830   : > { %v5457_v32 = vadd.f32 %v9612_v23, %v5456_v41 }
 0x832   : > { %5494 = vst.msk [vmem:[%s9618_s13 + $0xe8] sm:$0xff] %vm5464_vm4, %v5457_v32 }
 0x837   : > { %v5459_v0 = vpop.f32.mrf.mxu2 }
 0x838   : > { %v5460_v2 = vadd.f32 %v9612_v23, %v5459_v0 }
 0x83a   : > { %5495 = vst.msk [vmem:[%s9618_s13 + $0xf0] sm:$0xff] %vm5464_vm4, %v5460_v2 }
 0x83f   : > { %v5461_v59 = vpop.f32.mrf.mxu2 }
 0x840   : > { %v5462_v39 = vadd.f32 %v9612_v23, %v5461_v59 }
 0x842   : > { %5496 = vst.msk [vmem:[%s9618_s13 + $0xf8] sm:$0xff] %vm5464_vm4, %v5462_v39 }
 0x843 PF: > { %s22_s21 = sadd.s32 1, %s6367_s21  }
 0x844   : > { %p19_p4 = scmp.ge.s32.totalorder %s22_s21, 4  }
 0x846   :  { %21 = sbr.rel (!%p19_p4) target bundleno = 1 (0x1), region = 122 }

</bundles_post_ra>
